<compile_context>
chip_gen: v7x
topology: tpu7x:2x2x1
jax: 0.10.0
libtpu: 0.0.40
codegen_flags: <defaults>
</compile_context>

<pallas_src>
import functools

import jax
import jax.numpy as jnp
from jax.experimental import pallas as pl
from jax.experimental.pallas import tpu as pltpu


def _round_up(x, m):
    return ((x + m - 1) // m) * m


@functools.lru_cache(maxsize=1)
def _vmem_limit_bytes():
    # Generation-aware scoped-VMEM budget: leave headroom on 64-MiB parts.
    try:
        cap = int(getattr(pltpu.get_tpu_info(), "vmem_capacity_bytes",
                          128 * 1024 * 1024))
    except Exception:
        cap = 64 * 1024 * 1024
    if cap <= 64 * 1024 * 1024:      # v7x-class: 64 MiB physical per TC
        return 48 * 1024 * 1024
    return 64 * 1024 * 1024          # v5e / v6e: 128 MiB physical


# ---------------------------------------------------------------------------
# Pallas kernel: fused matmul + bias + activation (conv contraction hot path)
# ---------------------------------------------------------------------------
def _make_matmul_kernel(act):
    def kernel(x_ref, w_ref, b_ref, o_ref):
        acc = jnp.dot(x_ref[...], w_ref[...],
                      preferred_element_type=jnp.float32)
        acc = acc + b_ref[...]
        if act == "relu":
            acc = jnp.maximum(acc, 0.0)
        elif act == "sigmoid":
            acc = jax.nn.sigmoid(acc)
        o_ref[...] = acc.astype(o_ref.dtype)
    return kernel


def matmul_bias_act(x, w, b, act="none", tm_max=1024):
    """Y = act(x @ w + b).  x: (M, K), w: (K, N), b: (N,).  f32 accumulation."""
    M, K = x.shape
    Kw, N = w.shape
    assert K == Kw, (K, Kw)
    # Robust M tiling: pad to a multiple of the tile instead of asserting.
    tm = min(tm_max, _round_up(M, 8))
    m_pad = _round_up(M, tm)
    if m_pad != M:
        x = jnp.pad(x, ((0, m_pad - M), (0, 0)))
    grid = (m_pad // tm,)
    out = pl.pallas_call(
        _make_matmul_kernel(act),
        out_shape=jax.ShapeDtypeStruct((m_pad, N), jnp.float32),
        grid_spec=pltpu.PrefetchScalarGridSpec(
            num_scalar_prefetch=0,
            grid=grid,
            in_specs=[
                pl.BlockSpec((tm, K), lambda i: (i, 0)),   # activation tile
                pl.BlockSpec((K, N), lambda i: (0, 0)),    # full weight (small)
                pl.BlockSpec((1, N), lambda i: (0, 0)),    # bias row
            ],
            out_specs=pl.BlockSpec((tm, N), lambda i: (i, 0)),
        ),
        compiler_params=pltpu.CompilerParams(
            dimension_semantics=("parallel",),
            vmem_limit_bytes=_vmem_limit_bytes(),
        ),
    )(x, w, b.reshape(1, N).astype(jnp.float32))
    return out if m_pad == M else out[:M]


# ---------------------------------------------------------------------------
# Conv2d(Cin->Cout, 5x5, stride=2, padding=2) + ReLU on an NHWC activation
# ---------------------------------------------------------------------------
def conv2d_bias_relu(x_nhwc, w, b, *, stride=2, padding=2, tm_max=1024):
    """x_nhwc: (B,H,W,Cin) f32.  w: (Cout,Cin,KH,KW) PyTorch layout.  b: (Cout,)."""
    B, H, W, Cin = x_nhwc.shape
    Cout, Cin_w, KH, KW = w.shape
    assert Cin == Cin_w
    Ho = (H + 2 * padding - KH) // stride + 1
    Wo = (W + 2 * padding - KW) // stride + 1

    xp = jnp.pad(x_nhwc, ((0, 0), (padding, padding), (padding, padding), (0, 0)))
    # im2col via strided slicing; NHWC keeps the feature dim already ordered
    # (kh, kw, cin) after a trailing-axis stack (no full-tensor transpose).
    taps = [
        xp[:, kh:kh + stride * (Ho - 1) + 1:stride,
              kw:kw + stride * (Wo - 1) + 1:stride, :]
        for kh in range(KH) for kw in range(KW)
    ]
    xcol = jnp.stack(taps, axis=3).reshape(B * Ho * Wo, KH * KW * Cin)
    xcol = xcol.astype(jnp.bfloat16)

    # (Cout,Cin,KH,KW) -> (KH,KW,Cin,Cout) to match the (kh,kw,cin) patch order.
    w_mat = jnp.transpose(w, (2, 3, 1, 0)).reshape(KH * KW * Cin, Cout)
    w_mat = w_mat.astype(jnp.bfloat16)

    y = matmul_bias_act(xcol, w_mat, b, act="relu", tm_max=tm_max)
    return y.reshape(B, Ho, Wo, Cout)


# ---------------------------------------------------------------------------
# Fused FC head: h -> fc1 (no activation) -> (fc2, fc3), single pallas_call
# ---------------------------------------------------------------------------
def _head_kernel(h_ref, w1_ref, b1_ref, w2_ref, b2_ref, w3_ref, b3_ref,
                 mu_ref, lv_ref):
    hd = jnp.dot(h_ref[...], w1_ref[...],
                 preferred_element_type=jnp.float32) + b1_ref[...]
    hd = hd.astype(w2_ref.dtype)
    mu = jnp.dot(hd, w2_ref[...], preferred_element_type=jnp.float32) + b2_ref[...]
    lv = jnp.dot(hd, w3_ref[...], preferred_element_type=jnp.float32) + b3_ref[...]
    mu_ref[...] = mu.astype(mu_ref.dtype)
    lv_ref[...] = lv.astype(lv_ref.dtype)


def fc_head(h, params):
    """h: (B, 4096) f32.  Returns (mu, log_var), each (B, z_dim) f32."""
    B, K = h.shape
    w1, b1 = params["fc1"]
    w2, b2 = params["fc2"]
    w3, b3 = params["fc3"]
    z = w2.shape[0]
    w1m = w1.T.astype(jnp.bfloat16)          # (4096, 256)
    w2m = w2.T.astype(jnp.bfloat16)          # (256, z)
    w3m = w3.T.astype(jnp.bfloat16)          # (256, z)
    h_b = h.astype(jnp.bfloat16)

    def full(shape):
        return pl.BlockSpec(shape, lambda i: (0,) * len(shape))

    mu, lv = pl.pallas_call(
        _head_kernel,
        out_shape=(jax.ShapeDtypeStruct((B, z), jnp.float32),
                   jax.ShapeDtypeStruct((B, z), jnp.float32)),
        grid_spec=pltpu.PrefetchScalarGridSpec(
            num_scalar_prefetch=0,
            grid=(1,),
            in_specs=[
                full((B, K)),
                full(w1m.shape), full((1, w1m.shape[1])),
                full(w2m.shape), full((1, z)),
                full(w3m.shape), full((1, z)),
            ],
            out_specs=[full((B, z)), full((B, z))],
        ),
        compiler_params=pltpu.CompilerParams(
            dimension_semantics=("arbitrary",),
            vmem_limit_bytes=_vmem_limit_bytes(),
        ),
    )(h_b,
      w1m, b1.reshape(1, -1).astype(jnp.float32),
      w2m, b2.reshape(1, -1).astype(jnp.float32),
      w3m, b3.reshape(1, -1).astype(jnp.float32))
    return mu, lv


# ---------------------------------------------------------------------------
# Deterministic parameter construction (synthetic; no checkpoint load)
# ---------------------------------------------------------------------------
def init_params(key, z_dim=32):
    ks = jax.random.split(key, 7)

    def conv(k, cin, cout, kh, kw):
        k1, k2 = jax.random.split(k)
        s = 1.0 / jnp.sqrt(cin * kh * kw)
        return (jax.random.uniform(k1, (cout, cin, kh, kw), jnp.float32, -s, s),
                jax.random.uniform(k2, (cout,), jnp.float32, -s, s))

    def lin(k, fin, fout):
        k1, k2 = jax.random.split(k)
        s = 1.0 / jnp.sqrt(fin)
        return (jax.random.uniform(k1, (fout, fin), jnp.float32, -s, s),
                jax.random.uniform(k2, (fout,), jnp.float32, -s, s))

    return {
        "conv1": conv(ks[0], 3, 32, 5, 5),
        "conv2": conv(ks[1], 32, 64, 5, 5),
        "conv3": conv(ks[2], 64, 128, 5, 5),
        "conv4": conv(ks[3], 128, 256, 5, 5),
        "fc1": lin(ks[4], 4096, 256),
        "fc2": lin(ks[5], 256, z_dim),
        "fc3": lin(ks[6], 256, z_dim),
    }


# ---------------------------------------------------------------------------
# Encoder_Net.forward
# ---------------------------------------------------------------------------
def encoder_net_forward(params, x_nchw):
    # NCHW -> NHWC once at the module boundary; stay NHWC between layers.
    x = jnp.transpose(x_nchw, (0, 2, 3, 1))
    for name in ("conv1", "conv2", "conv3", "conv4"):
        w, b = params[name]
        x = conv2d_bias_relu(x, w, b, stride=2, padding=2)   # ReLU fused
    # PyTorch's Flatten flattens NCHW -> (B, C*H*W); restore that ordering so
    # fc1 keeps its PyTorch feature layout (tiny 4x4x256 transpose per sample).
    B = x.shape[0]
    h = jnp.transpose(x, (0, 3, 1, 2)).reshape(B, -1)         # (B, 4096)
    mu, log_var = fc_head(h, params)
    return mu, log_var


if __name__ == "__main__":
    key = jax.random.PRNGKey(0)
    kx, kp = jax.random.split(key)
    B = 2
    x = jax.random.normal(kx, (B, 3, 64, 64), jnp.float32)    # Car-Racing frame
    params = init_params(kp, z_dim=32)

    fwd = jax.jit(encoder_net_forward)
    mu, log_var = fwd(params, x)
    jax.block_until_ready((mu, log_var))

    assert mu.shape == (B, 32), mu.shape
    assert log_var.shape == (B, 32), log_var.shape
    assert bool(jnp.all(jnp.isfinite(mu)))
    assert bool(jnp.all(jnp.isfinite(log_var)))
    print("KERNEL_OK")
</pallas_src>

<mosaic_0001>
module attributes {stable_mosaic.version = 11 : i64} {
  func.func @kernel(%arg0: i32, %arg1: memref<1024x75xbf16, #tpu.memory_space<vmem>>, %arg2: memref<75x32xbf16, #tpu.memory_space<vmem>>, %arg3: memref<1x32xf32, #tpu.memory_space<vmem>>, %arg4: memref<1024x32xf32, #tpu.memory_space<vmem>>) attributes {dimension_semantics = [#tpu.dimension_semantics<parallel>], iteration_bounds = array<i64: 2>, scalar_prefetch = 0 : i64, scratch_operands = 0 : i64, tpu.core_type = #tpu.core_type<tc>, window_params = [{transform_indices = @transform_0, window_bounds = array<i64: 1024, 75>}, {pipeline_mode = #tpu.pipeline_mode<synchronous>, transform_indices = @transform_1, window_bounds = array<i64: 75, 32>}, {pipeline_mode = #tpu.pipeline_mode<synchronous>, transform_indices = @transform_2, window_bounds = array<i64: 1, 32>}, {transform_indices = @transform_3, window_bounds = array<i64: 1024, 32>}]} {
    %c0 = arith.constant 0 : index
    %c0_0 = arith.constant 0 : index
    %0 = vector.load %arg1[%c0, %c0_0] : memref<1024x75xbf16, #tpu.memory_space<vmem>>, vector<1024x75xbf16>
    %c0_1 = arith.constant 0 : index
    %c0_2 = arith.constant 0 : index
    %1 = vector.load %arg2[%c0_1, %c0_2] : memref<75x32xbf16, #tpu.memory_space<vmem>>, vector<75x32xbf16>
    %cst = arith.constant dense<0.000000e+00> : vector<1024x32xf32>
    %2 = tpu.matmul %0, %1, %cst {dimension_numbers = #tpu.dot_dimension_numbers<[1], [0], [0], [1], [0, 0, 1, 1], [], []>} : vector<1024x75xbf16>, vector<75x32xbf16>, vector<1024x32xf32> -> vector<1024x32xf32>
    %c0_3 = arith.constant 0 : index
    %c0_4 = arith.constant 0 : index
    %3 = vector.load %arg3[%c0_3, %c0_4] : memref<1x32xf32, #tpu.memory_space<vmem>>, vector<1x32xf32>
    %4 = vector.broadcast %3 : vector<1x32xf32> to vector<1024x32xf32>
    %5 = arith.addf %2, %4 : vector<1024x32xf32>
    %cst_5 = arith.constant 0.000000e+00 : f32
    %6 = vector.broadcast %cst_5 : f32 to vector<1024x32xf32>
    %7 = arith.maximumf %5, %6 : vector<1024x32xf32>
    %c0_6 = arith.constant 0 : index
    %c0_7 = arith.constant 0 : index
    %8 = vector.load %arg4[%c0_6, %c0_7] : memref<1024x32xf32, #tpu.memory_space<vmem>>, vector<1024x32xf32>
    tpu.vector_store %arg4[%c0_6, %c0_7], %7 {strides = array<i32>} : memref<1024x32xf32, #tpu.memory_space<vmem>>, vector<1024x32xf32>,
    return
  }
  func.func @transform_0(%arg0: i32) -> (i32, i32) {
    %c0_i32 = arith.constant 0 : i32
    %c0_i32_0 = arith.constant 0 : i32
    return %arg0, %c0_i32 : i32, i32
  }
  func.func @transform_1(%arg0: i32) -> (i32, i32) {
    %c0_i32 = arith.constant 0 : i32
    %c0_i32_0 = arith.constant 0 : i32
    %c0_i32_1 = arith.constant 0 : i32
    return %c0_i32, %c0_i32_0 : i32, i32
  }
  func.func @transform_2(%arg0: i32) -> (i32, i32) {
    %c0_i32 = arith.constant 0 : i32
    %c0_i32_0 = arith.constant 0 : i32
    %c0_i32_1 = arith.constant 0 : i32
    return %c0_i32, %c0_i32_0 : i32, i32
  }
  func.func @transform_3(%arg0: i32) -> (i32, i32) {
    %c0_i32 = arith.constant 0 : i32
    %c0_i32_0 = arith.constant 0 : i32
    return %arg0, %c0_i32 : i32, i32
  }
}

module attributes {stable_mosaic.version = 11 : i64} {
  func.func @kernel(%arg0: i32, %arg1: memref<512x800xbf16, #tpu.memory_space<vmem>>, %arg2: memref<800x64xbf16, #tpu.memory_space<vmem>>, %arg3: memref<1x64xf32, #tpu.memory_space<vmem>>, %arg4: memref<512x64xf32, #tpu.memory_space<vmem>>) attributes {dimension_semantics = [#tpu.dimension_semantics<parallel>], iteration_bounds = array<i64: 1>, scalar_prefetch = 0 : i64, scratch_operands = 0 : i64, tpu.core_type = #tpu.core_type<tc>, window_params = [{transform_indices = @transform_0, window_bounds = array<i64: 512, 800>}, {pipeline_mode = #tpu.pipeline_mode<synchronous>, transform_indices = @transform_1, window_bounds = array<i64: 800, 64>}, {pipeline_mode = #tpu.pipeline_mode<synchronous>, transform_indices = @transform_2, window_bounds = array<i64: 1, 64>}, {transform_indices = @transform_3, window_bounds = array<i64: 512, 64>}]} {
    %c0 = arith.constant 0 : index
    %c0_0 = arith.constant 0 : index
    %0 = vector.load %arg1[%c0, %c0_0] : memref<512x800xbf16, #tpu.memory_space<vmem>>, vector<512x800xbf16>
    %c0_1 = arith.constant 0 : index
    %c0_2 = arith.constant 0 : index
    %1 = vector.load %arg2[%c0_1, %c0_2] : memref<800x64xbf16, #tpu.memory_space<vmem>>, vector<800x64xbf16>
    %cst = arith.constant dense<0.000000e+00> : vector<512x64xf32>
    %2 = tpu.matmul %0, %1, %cst {dimension_numbers = #tpu.dot_dimension_numbers<[1], [0], [0], [1], [0, 0, 1, 1], [], []>} : vector<512x800xbf16>, vector<800x64xbf16>, vector<512x64xf32> -> vector<512x64xf32>
    %c0_3 = arith.constant 0 : index
    %c0_4 = arith.constant 0 : index
    %3 = vector.load %arg3[%c0_3, %c0_4] : memref<1x64xf32, #tpu.memory_space<vmem>>, vector<1x64xf32>
    %4 = vector.broadcast %3 : vector<1x64xf32> to vector<512x64xf32>
    %5 = arith.addf %2, %4 : vector<512x64xf32>
    %cst_5 = arith.constant 0.000000e+00 : f32
    %6 = vector.broadcast %cst_5 : f32 to vector<512x64xf32>
    %7 = arith.maximumf %5, %6 : vector<512x64xf32>
    %c0_6 = arith.constant 0 : index
    %c0_7 = arith.constant 0 : index
    %8 = vector.load %arg4[%c0_6, %c0_7] : memref<512x64xf32, #tpu.memory_space<vmem>>, vector<512x64xf32>
    tpu.vector_store %arg4[%c0_6, %c0_7], %7 {strides = array<i32>} : memref<512x64xf32, #tpu.memory_space<vmem>>, vector<512x64xf32>,
    return
  }
  func.func @transform_0(%arg0: i32) -> (i32, i32) {
    %c0_i32 = arith.constant 0 : i32
    %c0_i32_0 = arith.constant 0 : i32
    return %arg0, %c0_i32 : i32, i32
  }
  func.func @transform_1(%arg0: i32) -> (i32, i32) {
    %c0_i32 = arith.constant 0 : i32
    %c0_i32_0 = arith.constant 0 : i32
    %c0_i32_1 = arith.constant 0 : i32
    return %c0_i32, %c0_i32_0 : i32, i32
  }
  func.func @transform_2(%arg0: i32) -> (i32, i32) {
    %c0_i32 = arith.constant 0 : i32
    %c0_i32_0 = arith.constant 0 : i32
    %c0_i32_1 = arith.constant 0 : i32
    return %c0_i32, %c0_i32_0 : i32, i32
  }
  func.func @transform_3(%arg0: i32) -> (i32, i32) {
    %c0_i32 = arith.constant 0 : i32
    %c0_i32_0 = arith.constant 0 : i32
    return %arg0, %c0_i32 : i32, i32
  }
}

module attributes {stable_mosaic.version = 11 : i64} {
  func.func @kernel(%arg0: i32, %arg1: memref<128x1600xbf16, #tpu.memory_space<vmem>>, %arg2: memref<1600x128xbf16, #tpu.memory_space<vmem>>, %arg3: memref<1x128xf32, #tpu.memory_space<vmem>>, %arg4: memref<128x128xf32, #tpu.memory_space<vmem>>) attributes {dimension_semantics = [#tpu.dimension_semantics<parallel>], iteration_bounds = array<i64: 1>, scalar_prefetch = 0 : i64, scratch_operands = 0 : i64, tpu.core_type = #tpu.core_type<tc>, window_params = [{transform_indices = @transform_0, window_bounds = array<i64: 128, 1600>}, {pipeline_mode = #tpu.pipeline_mode<synchronous>, transform_indices = @transform_1, window_bounds = array<i64: 1600, 128>}, {pipeline_mode = #tpu.pipeline_mode<synchronous>, transform_indices = @transform_2, window_bounds = array<i64: 1, 128>}, {transform_indices = @transform_3, window_bounds = array<i64: 128, 128>}]} {
    %c0 = arith.constant 0 : index
    %c0_0 = arith.constant 0 : index
    %0 = vector.load %arg1[%c0, %c0_0] : memref<128x1600xbf16, #tpu.memory_space<vmem>>, vector<128x1600xbf16>
    %c0_1 = arith.constant 0 : index
    %c0_2 = arith.constant 0 : index
    %1 = vector.load %arg2[%c0_1, %c0_2] : memref<1600x128xbf16, #tpu.memory_space<vmem>>, vector<1600x128xbf16>
    %cst = arith.constant dense<0.000000e+00> : vector<128x128xf32>
    %2 = tpu.matmul %0, %1, %cst {dimension_numbers = #tpu.dot_dimension_numbers<[1], [0], [0], [1], [0, 0, 1, 1], [], []>} : vector<128x1600xbf16>, vector<1600x128xbf16>, vector<128x128xf32> -> vector<128x128xf32>
    %c0_3 = arith.constant 0 : index
    %c0_4 = arith.constant 0 : index
    %3 = vector.load %arg3[%c0_3, %c0_4] : memref<1x128xf32, #tpu.memory_space<vmem>>, vector<1x128xf32>
    %4 = vector.broadcast %3 : vector<1x128xf32> to vector<128x128xf32>
    %5 = arith.addf %2, %4 : vector<128x128xf32>
    %cst_5 = arith.constant 0.000000e+00 : f32
    %6 = vector.broadcast %cst_5 : f32 to vector<128x128xf32>
    %7 = arith.maximumf %5, %6 : vector<128x128xf32>
    %c0_6 = arith.constant 0 : index
    %c0_7 = arith.constant 0 : index
    %8 = vector.load %arg4[%c0_6, %c0_7] : memref<128x128xf32, #tpu.memory_space<vmem>>, vector<128x128xf32>
    tpu.vector_store %arg4[%c0_6, %c0_7], %7 {strides = array<i32>} : memref<128x128xf32, #tpu.memory_space<vmem>>, vector<128x128xf32>,
    return
  }
  func.func @transform_0(%arg0: i32) -> (i32, i32) {
    %c0_i32 = arith.constant 0 : i32
    %c0_i32_0 = arith.constant 0 : i32
    return %arg0, %c0_i32 : i32, i32
  }
  func.func @transform_1(%arg0: i32) -> (i32, i32) {
    %c0_i32 = arith.constant 0 : i32
    %c0_i32_0 = arith.constant 0 : i32
    %c0_i32_1 = arith.constant 0 : i32
    return %c0_i32, %c0_i32_0 : i32, i32
  }
  func.func @transform_2(%arg0: i32) -> (i32, i32) {
    %c0_i32 = arith.constant 0 : i32
    %c0_i32_0 = arith.constant 0 : i32
    %c0_i32_1 = arith.constant 0 : i32
    return %c0_i32, %c0_i32_0 : i32, i32
  }
  func.func @transform_3(%arg0: i32) -> (i32, i32) {
    %c0_i32 = arith.constant 0 : i32
    %c0_i32_0 = arith.constant 0 : i32
    return %arg0, %c0_i32 : i32, i32
  }
}

module attributes {stable_mosaic.version = 11 : i64} {
  func.func @kernel(%arg0: i32, %arg1: memref<32x3200xbf16, #tpu.memory_space<vmem>>, %arg2: memref<3200x256xbf16, #tpu.memory_space<vmem>>, %arg3: memref<1x256xf32, #tpu.memory_space<vmem>>, %arg4: memref<32x256xf32, #tpu.memory_space<vmem>>) attributes {dimension_semantics = [#tpu.dimension_semantics<parallel>], iteration_bounds = array<i64: 1>, scalar_prefetch = 0 : i64, scratch_operands = 0 : i64, tpu.core_type = #tpu.core_type<tc>, window_params = [{transform_indices = @transform_0, window_bounds = array<i64: 32, 3200>}, {pipeline_mode = #tpu.pipeline_mode<synchronous>, transform_indices = @transform_1, window_bounds = array<i64: 3200, 256>}, {pipeline_mode = #tpu.pipeline_mode<synchronous>, transform_indices = @transform_2, window_bounds = array<i64: 1, 256>}, {transform_indices = @transform_3, window_bounds = array<i64: 32, 256>}]} {
    %c0 = arith.constant 0 : index
    %c0_0 = arith.constant 0 : index
    %0 = vector.load %arg1[%c0, %c0_0] : memref<32x3200xbf16, #tpu.memory_space<vmem>>, vector<32x3200xbf16>
    %c0_1 = arith.constant 0 : index
    %c0_2 = arith.constant 0 : index
    %1 = vector.load %arg2[%c0_1, %c0_2] : memref<3200x256xbf16, #tpu.memory_space<vmem>>, vector<3200x256xbf16>
    %cst = arith.constant dense<0.000000e+00> : vector<32x256xf32>
    %2 = tpu.matmul %0, %1, %cst {dimension_numbers = #tpu.dot_dimension_numbers<[1], [0], [0], [1], [0, 0, 1, 1], [], []>} : vector<32x3200xbf16>, vector<3200x256xbf16>, vector<32x256xf32> -> vector<32x256xf32>
    %c0_3 = arith.constant 0 : index
    %c0_4 = arith.constant 0 : index
    %3 = vector.load %arg3[%c0_3, %c0_4] : memref<1x256xf32, #tpu.memory_space<vmem>>, vector<1x256xf32>
    %4 = vector.broadcast %3 : vector<1x256xf32> to vector<32x256xf32>
    %5 = arith.addf %2, %4 : vector<32x256xf32>
    %cst_5 = arith.constant 0.000000e+00 : f32
    %6 = vector.broadcast %cst_5 : f32 to vector<32x256xf32>
    %7 = arith.maximumf %5, %6 : vector<32x256xf32>
    %c0_6 = arith.constant 0 : index
    %c0_7 = arith.constant 0 : index
    %8 = vector.load %arg4[%c0_6, %c0_7] : memref<32x256xf32, #tpu.memory_space<vmem>>, vector<32x256xf32>
    tpu.vector_store %arg4[%c0_6, %c0_7], %7 {strides = array<i32>} : memref<32x256xf32, #tpu.memory_space<vmem>>, vector<32x256xf32>,
    return
  }
  func.func @transform_0(%arg0: i32) -> (i32, i32) {
    %c0_i32 = arith.constant 0 : i32
    %c0_i32_0 = arith.constant 0 : i32
    return %arg0, %c0_i32 : i32, i32
  }
  func.func @transform_1(%arg0: i32) -> (i32, i32) {
    %c0_i32 = arith.constant 0 : i32
    %c0_i32_0 = arith.constant 0 : i32
    %c0_i32_1 = arith.constant 0 : i32
    return %c0_i32, %c0_i32_0 : i32, i32
  }
  func.func @transform_2(%arg0: i32) -> (i32, i32) {
    %c0_i32 = arith.constant 0 : i32
    %c0_i32_0 = arith.constant 0 : i32
    %c0_i32_1 = arith.constant 0 : i32
    return %c0_i32, %c0_i32_0 : i32, i32
  }
  func.func @transform_3(%arg0: i32) -> (i32, i32) {
    %c0_i32 = arith.constant 0 : i32
    %c0_i32_0 = arith.constant 0 : i32
    return %arg0, %c0_i32 : i32, i32
  }
}

module attributes {stable_mosaic.version = 11 : i64} {
  func.func @_head_kernel(%arg0: i32, %arg1: memref<2x4096xbf16, #tpu.memory_space<vmem>>, %arg2: memref<4096x256xbf16, #tpu.memory_space<vmem>>, %arg3: memref<1x256xf32, #tpu.memory_space<vmem>>, %arg4: memref<256x32xbf16, #tpu.memory_space<vmem>>, %arg5: memref<1x32xf32, #tpu.memory_space<vmem>>, %arg6: memref<256x32xbf16, #tpu.memory_space<vmem>>, %arg7: memref<1x32xf32, #tpu.memory_space<vmem>>, %arg8: memref<2x32xf32, #tpu.memory_space<vmem>>, %arg9: memref<2x32xf32, #tpu.memory_space<vmem>>) attributes {dimension_semantics = [#tpu.dimension_semantics<arbitrary>], iteration_bounds = array<i64: 1>, scalar_prefetch = 0 : i64, scratch_operands = 0 : i64, tpu.core_type = #tpu.core_type<tc>, window_params = [{pipeline_mode = #tpu.pipeline_mode<synchronous>, transform_indices = @transform_0, window_bounds = array<i64: 2, 4096>}, {pipeline_mode = #tpu.pipeline_mode<synchronous>, transform_indices = @transform_1, window_bounds = array<i64: 4096, 256>}, {pipeline_mode = #tpu.pipeline_mode<synchronous>, transform_indices = @transform_2, window_bounds = array<i64: 1, 256>}, {pipeline_mode = #tpu.pipeline_mode<synchronous>, transform_indices = @transform_3, window_bounds = array<i64: 256, 32>}, {pipeline_mode = #tpu.pipeline_mode<synchronous>, transform_indices = @transform_4, window_bounds = array<i64: 1, 32>}, {pipeline_mode = #tpu.pipeline_mode<synchronous>, transform_indices = @transform_5, window_bounds = array<i64: 256, 32>}, {pipeline_mode = #tpu.pipeline_mode<synchronous>, transform_indices = @transform_6, window_bounds = array<i64: 1, 32>}, {pipeline_mode = #tpu.pipeline_mode<synchronous>, transform_indices = @transform_7, window_bounds = array<i64: 2, 32>}, {pipeline_mode = #tpu.pipeline_mode<synchronous>, transform_indices = @transform_8, window_bounds = array<i64: 2, 32>}]} {
    %c0 = arith.constant 0 : index
    %c0_0 = arith.constant 0 : index
    %0 = vector.load %arg1[%c0, %c0_0] : memref<2x4096xbf16, #tpu.memory_space<vmem>>, vector<2x4096xbf16>
    %c0_1 = arith.constant 0 : index
    %c0_2 = arith.constant 0 : index
    %1 = vector.load %arg2[%c0_1, %c0_2] : memref<4096x256xbf16, #tpu.memory_space<vmem>>, vector<4096x256xbf16>
    %cst = arith.constant dense<0.000000e+00> : vector<2x256xf32>
    %2 = tpu.matmul %0, %1, %cst {dimension_numbers = #tpu.dot_dimension_numbers<[1], [0], [0], [1], [0, 0, 1, 1], [], []>} : vector<2x4096xbf16>, vector<4096x256xbf16>, vector<2x256xf32> -> vector<2x256xf32>
    %c0_3 = arith.constant 0 : index
    %c0_4 = arith.constant 0 : index
    %3 = vector.load %arg3[%c0_3, %c0_4] : memref<1x256xf32, #tpu.memory_space<vmem>>, vector<1x256xf32>
    %4 = vector.broadcast %3 : vector<1x256xf32> to vector<2x256xf32>
    %5 = arith.addf %2, %4 : vector<2x256xf32>
    %6 = arith.truncf %5 : vector<2x256xf32> to vector<2x256xbf16>
    %c0_5 = arith.constant 0 : index
    %c0_6 = arith.constant 0 : index
    %7 = vector.load %arg4[%c0_5, %c0_6] : memref<256x32xbf16, #tpu.memory_space<vmem>>, vector<256x32xbf16>
    %cst_7 = arith.constant dense<0.000000e+00> : vector<2x32xf32>
    %8 = tpu.matmul %6, %7, %cst_7 {dimension_numbers = #tpu.dot_dimension_numbers<[1], [0], [0], [1], [0, 0, 1, 1], [], []>} : vector<2x256xbf16>, vector<256x32xbf16>, vector<2x32xf32> -> vector<2x32xf32>
    %c0_8 = arith.constant 0 : index
    %c0_9 = arith.constant 0 : index
    %9 = vector.load %arg5[%c0_8, %c0_9] : memref<1x32xf32, #tpu.memory_space<vmem>>, vector<1x32xf32>
    %10 = vector.broadcast %9 : vector<1x32xf32> to vector<2x32xf32>
    %11 = arith.addf %8, %10 : vector<2x32xf32>
    %c0_10 = arith.constant 0 : index
    %c0_11 = arith.constant 0 : index
    %12 = vector.load %arg6[%c0_10, %c0_11] : memref<256x32xbf16, #tpu.memory_space<vmem>>, vector<256x32xbf16>
    %cst_12 = arith.constant dense<0.000000e+00> : vector<2x32xf32>
    %13 = tpu.matmul %6, %12, %cst_12 {dimension_numbers = #tpu.dot_dimension_numbers<[1], [0], [0], [1], [0, 0, 1, 1], [], []>} : vector<2x256xbf16>, vector<256x32xbf16>, vector<2x32xf32> -> vector<2x32xf32>
    %c0_13 = arith.constant 0 : index
    %c0_14 = arith.constant 0 : index
    %14 = vector.load %arg7[%c0_13, %c0_14] : memref<1x32xf32, #tpu.memory_space<vmem>>, vector<1x32xf32>
    %15 = vector.broadcast %14 : vector<1x32xf32> to vector<2x32xf32>
    %16 = arith.addf %13, %15 : vector<2x32xf32>
    %c0_15 = arith.constant 0 : index
    %c0_16 = arith.constant 0 : index
    %17 = vector.load %arg8[%c0_15, %c0_16] : memref<2x32xf32, #tpu.memory_space<vmem>>, vector<2x32xf32>
    tpu.vector_store %arg8[%c0_15, %c0_16], %11 {strides = array<i32>} : memref<2x32xf32, #tpu.memory_space<vmem>>, vector<2x32xf32>,
    %c0_17 = arith.constant 0 : index
    %c0_18 = arith.constant 0 : index
    %18 = vector.load %arg9[%c0_17, %c0_18] : memref<2x32xf32, #tpu.memory_space<vmem>>, vector<2x32xf32>
    tpu.vector_store %arg9[%c0_17, %c0_18], %16 {strides = array<i32>} : memref<2x32xf32, #tpu.memory_space<vmem>>, vector<2x32xf32>,
    return
  }
  func.func @transform_0(%arg0: i32) -> (i32, i32) {
    %c0_i32 = arith.constant 0 : i32
    %c0_i32_0 = arith.constant 0 : i32
    %c0_i32_1 = arith.constant 0 : i32
    return %c0_i32, %c0_i32_0 : i32, i32
  }
  func.func @transform_1(%arg0: i32) -> (i32, i32) {
    %c0_i32 = arith.constant 0 : i32
    %c0_i32_0 = arith.constant 0 : i32
    %c0_i32_1 = arith.constant 0 : i32
    return %c0_i32, %c0_i32_0 : i32, i32
  }
  func.func @transform_2(%arg0: i32) -> (i32, i32) {
    %c0_i32 = arith.constant 0 : i32
    %c0_i32_0 = arith.constant 0 : i32
    %c0_i32_1 = arith.constant 0 : i32
    return %c0_i32, %c0_i32_0 : i32, i32
  }
  func.func @transform_3(%arg0: i32) -> (i32, i32) {
    %c0_i32 = arith.constant 0 : i32
    %c0_i32_0 = arith.constant 0 : i32
    %c0_i32_1 = arith.constant 0 : i32
    return %c0_i32, %c0_i32_0 : i32, i32
  }
  func.func @transform_4(%arg0: i32) -> (i32, i32) {
    %c0_i32 = arith.constant 0 : i32
    %c0_i32_0 = arith.constant 0 : i32
    %c0_i32_1 = arith.constant 0 : i32
    return %c0_i32, %c0_i32_0 : i32, i32
  }
  func.func @transform_5(%arg0: i32) -> (i32, i32) {
    %c0_i32 = arith.constant 0 : i32
    %c0_i32_0 = arith.constant 0 : i32
    %c0_i32_1 = arith.constant 0 : i32
    return %c0_i32, %c0_i32_0 : i32, i32
  }
  func.func @transform_6(%arg0: i32) -> (i32, i32) {
    %c0_i32 = arith.constant 0 : i32
    %c0_i32_0 = arith.constant 0 : i32
    %c0_i32_1 = arith.constant 0 : i32
    return %c0_i32, %c0_i32_0 : i32, i32
  }
  func.func @transform_7(%arg0: i32) -> (i32, i32) {
    %c0_i32 = arith.constant 0 : i32
    %c0_i32_0 = arith.constant 0 : i32
    %c0_i32_1 = arith.constant 0 : i32
    return %c0_i32, %c0_i32_0 : i32, i32
  }
  func.func @transform_8(%arg0: i32) -> (i32, i32) {
    %c0_i32 = arith.constant 0 : i32
    %c0_i32_0 = arith.constant 0 : i32
    %c0_i32_1 = arith.constant 0 : i32
    return %c0_i32, %c0_i32_0 : i32, i32
  }
}

</mosaic_0001>

<bundles_post_ra>
// kernel: encoder_net_forward.5
= control target key start
LH: loop header
LB: loop body
LE: loop exit
PB: predicated region body
PF: predicated region fallthrough
CT: control target
= control target key end

     0   :  { %s2196_s12 = smov 0   ;;  %s2753_s0 = inlined_call_operand.vmem [shape: bf16[2048,75], index: 0, kind: input, shape index: {}]   ;;  %s2754_s1 = inlined_call_operand.vmem [shape: bf16[75,32], index: 1, kind: input, shape index: {}]   ;;  %s2755_s2 = inlined_call_operand.vmem [shape: f32[1,32], index: 2, kind: input, shape index: {}]   ;;  %s2756_s3 = inlined_call_operand.vmem [shape: f32[2048,32], index: 3, kind: output, shape index: {}]  }
   0x1 LB: > { %s1727_s13 = sadd.s32 4294967295, %s2173_s12   ;;  %p1731_p0 = scmp.ge.s32.totalorder %s2173_s12, 1  ;;  %s2173_s12 = sphi %s2196_s12, %s13_s12  }
   0x2   : > { %p138_p1 = scmp.lt.s32.totalorder %s2173_s12, 3 }
   0x4   : > { %p139_p2 = pnand %p1731_p0, %p138_p1 }
   0x5   : > { %v2098_v0 = vld [vmem:[%s2754_s1] sm:$0xff] (!%p139_p2)   ;;  %v2099_v1 = vld [vmem:[%s2754_s1 + $0x8] sm:$0xff] (!%p139_p2)   ;;  %vm862_vm0 = vcmask (!%p139_p2), 1044480   ;;  %v2100_v2 = vld [vmem:[%s2754_s1 + $0x10] sm:$0xff] (!%p139_p2)   ;;  %s1732_s20 = sshll.u32 (!%p139_p2), %s1727_s13, 7  ;;  %vm863_vm1 = vcmask (!%p139_p2), 1045504  }
   0x6   : > { %142 = sbr.rel (%p139_p2) target bundleno = 366 (0x16e), region = 32  ;;  %1941 = vmatprep.subr.bf16.mxu0 (!%p139_p2), %v2098_v0  ;;  %2079 = vmatprep.subr.bf16.mxu1 (!%p139_p2), %v2098_v0  ;;  %v2175_v3 = vmov (!%p139_p2), 65535   ;;  %p163_p3 = scmp.lt.s32.totalorder (!%p139_p2), %s1732_s20, 255  ;;  %v2101_v5 = vld [vmem:[%s2754_s1 + $0x18] sm:$0xff] (!%p139_p2)   ;;  %v2102_v6 = vld [vmem:[%s2754_s1 + $0x20] sm:$0x3f] (!%p139_p2)  }
   0x7   : > { %1942 = vmatpush3.bf16.msra.mxu0 (!%p139_p2), %v2098_v0  ;;  %2084 = vmatpush3.bf16.msra.mxu1 (!%p139_p2), %v2098_v0  ;;  %v864_v4 = vsel (!%p139_p2), %vm862_vm0, 4294967295, %v2175_v3  ;;  %vm669_vm2 = vcmask (!%p139_p2), 613376   ;;  %vm1542_vm3 = vcmask (!%p139_p2), 261120  }
   0x8   : > { %1943 = vmatprep.subr.bf16.mxu0 (!%p139_p2), %v2099_v1  ;;  %2080 = vmatprep.subr.bf16.mxu1 (!%p139_p2), %v2099_v1  ;;  %v865_v7 = vsel (!%p139_p2), %vm863_vm1, %v864_v4, 0 }
   0x9   : > { %v867_v8 = vand.u32 (!%p139_p2), %v2102_v6, %v865_v7 }
   0xb   : > { %1944 = vmatpush3.bf16.msra.mxu0 (!%p139_p2), %v2099_v1  ;;  %2085 = vmatpush3.bf16.msra.mxu1 (!%p139_p2), %v2099_v1 }
   0xc   : > { %1945 = vmatprep.subr.bf16.mxu0 (!%p139_p2), %v2100_v2  ;;  %2081 = vmatprep.subr.bf16.mxu1 (!%p139_p2), %v2100_v2 }
   0xd   : > { %s2758_s20 = smov (!%p163_p3, %s1732_s20), 255 }
   0xe   : > { %s1733_s25 = sshll.u32 %s2758_s20, 2  ;;  %s1735_s4 = sshll.u32 %s2758_s20, 3 }
   0xf   : > { %1946 = vmatpush3.bf16.msra.mxu0 %v2100_v2  ;;  %2086 = vmatpush3.bf16.msra.mxu1 %v2100_v2  ;;  %s2225_s28 = scalar_lea.vmem %s2753_s0, %s1733_s25  ;;  %s2366_s7 = scalar_lea.vmem %s2756_s3, %s1735_s4 }
  0x10   : > { %1947 = vmatprep.subr.bf16.mxu0 %v2101_v5  ;;  %2082 = vmatprep.subr.bf16.mxu1 %v2101_v5  ;;  %v2103_v9 = vld [vmem:[%s2225_s28] sm:$0xff]   ;;  %v2105_v11 = vld [vmem:[%s2225_s28 + $0x8] sm:$0xff]   ;;  %v2107_v13 = vld [vmem:[%s2225_s28 + $0x10] sm:$0xff]  }
  0x11   : > { %v2104_v10 = vld [vmem:[%s2225_s28 + $0x100] sm:$0xff]   ;;  %1951 = vmatprep.mubr.msk.bf16.mxu0 %vm669_vm2, %v2103_v9  ;;  %v2106_v12 = vld [vmem:[%s2225_s28 + $0x108] sm:$0xff]   ;;  %v2108_v14 = vld [vmem:[%s2225_s28 + $0x110] sm:$0xff]  }
  0x12   : > { %2015 = vmatprep.mubr.msk.bf16.mxu1 %vm669_vm2, %v2104_v10  ;;  %v2109_v15 = vld [vmem:[%s2225_s28 + $0x18] sm:$0xff]   ;;  %v2111_v17 = vld [vmem:[%s2225_s28 + $0x20] sm:$0xff]   ;;  %v2113_v19 = vld [vmem:[%s2225_s28 + $0x28] sm:$0xff]  }
  0x13   : > { %1948 = vmatpush3.bf16.msra.mxu0 %v2101_v5  ;;  %2087 = vmatpush3.bf16.msra.mxu1 %v2101_v5  ;;  %v2110_v16 = vld [vmem:[%s2225_s28 + $0x118] sm:$0xff]   ;;  %v2112_v18 = vld [vmem:[%s2225_s28 + $0x120] sm:$0xff]   ;;  %v2114_v20 = vld [vmem:[%s2225_s28 + $0x128] sm:$0xff]  }
  0x14   : > { %1949 = vmatprep.subr.bf16.mxu0 %v867_v8  ;;  %2083 = vmatprep.subr.bf16.mxu1 %v867_v8  ;;  %v2115_v21 = vld [vmem:[%s2225_s28 + $0x30] sm:$0xff]   ;;  %v2117_v23 = vld [vmem:[%s2225_s28 + $0x38] sm:$0xff]   ;;  %v2119_v25 = vld [vmem:[%s2225_s28 + $0x40] sm:$0xff]  }
  0x15   : > { %v2116_v22 = vld [vmem:[%s2225_s28 + $0x130] sm:$0xff]   ;;  %v2118_v24 = vld [vmem:[%s2225_s28 + $0x138] sm:$0xff]   ;;  %v2120_v26 = vld [vmem:[%s2225_s28 + $0x140] sm:$0xff]  }
  0x16   : > { %v2121_v27 = vld [vmem:[%s2225_s28 + $0x48] sm:$0xff]   ;;  %v2123_v29 = vld [vmem:[%s2225_s28 + $0x50] sm:$0xff]   ;;  %v2125_v31 = vld [vmem:[%s2225_s28 + $0x58] sm:$0xff]  }
  0x17   : > { %1950 = vmatpush3.bf16.msra.mxu0 %v867_v8  ;;  %2088 = vmatpush3.bf16.msra.mxu1 %v867_v8  ;;  %v2122_v28 = vld [vmem:[%s2225_s28 + $0x148] sm:$0xff]   ;;  %v2124_v30 = vld [vmem:[%s2225_s28 + $0x150] sm:$0xff]   ;;  %v2126_v32 = vld [vmem:[%s2225_s28 + $0x158] sm:$0xff]  }
  0x18   : > { %v2127_v33 = vld [vmem:[%s2225_s28 + $0x60] sm:$0xff]   ;;  %v2129_v35 = vld [vmem:[%s2225_s28 + $0x68] sm:$0xff]   ;;  %v2131_v37 = vld [vmem:[%s2225_s28 + $0x70] sm:$0xff]  }
  0x19   : > { %v2128_v34 = vld [vmem:[%s2225_s28 + $0x160] sm:$0xff]   ;;  %v2130_v36 = vld [vmem:[%s2225_s28 + $0x168] sm:$0xff]   ;;  %v2132_v38 = vld [vmem:[%s2225_s28 + $0x170] sm:$0xff]  }
  0x1a   : > { %1952 = vmatmul.mubr.msk.bf16.vlgmr.msra.gmra.mrb[0].mxu0 %vm669_vm2, %v2105_v11  ;;  %2016 = vmatmul.mubr.msk.bf16.vlgmr.msra.gmra.mrb[0].mxu1 %vm669_vm2, %v2106_v12  ;;  %v2133_v39 = vld [vmem:[%s2225_s28 + $0x78] sm:$0xff]   ;;  %v2135_v41 = vld [vmem:[%s2225_s28 + $0x80] sm:$0xff]   ;;  %v2137_v43 = vld [vmem:[%s2225_s28 + $0x88] sm:$0xff]  }
  0x1b   : > { %1955 = vmatprep.mubr.msk.bf16.mxu0 %vm669_vm2, %v2107_v13  ;;  %2019 = vmatprep.mubr.msk.bf16.mxu1 %vm669_vm2, %v2108_v14  ;;  %v2134_v40 = vld [vmem:[%s2225_s28 + $0x178] sm:$0xff]   ;;  %v2136_v42 = vld [vmem:[%s2225_s28 + $0x180] sm:$0xff]   ;;  %v2138_v44 = vld [vmem:[%s2225_s28 + $0x188] sm:$0xff]  }
  0x1c   : > { %v2139_v45 = vld [vmem:[%s2225_s28 + $0x90] sm:$0xff]   ;;  %v2141_v47 = vld [vmem:[%s2225_s28 + $0x98] sm:$0xff]   ;;  %v2143_v49 = vld [vmem:[%s2225_s28 + $0xa0] sm:$0xff]  }
  0x1d   : > { %v2140_v46 = vld [vmem:[%s2225_s28 + $0x190] sm:$0xff]   ;;  %v2142_v48 = vld [vmem:[%s2225_s28 + $0x198] sm:$0xff]   ;;  %v2144_v50 = vld [vmem:[%s2225_s28 + $0x1a0] sm:$0xff]  }
  0x1e   : > { %v2145_v51 = vld [vmem:[%s2225_s28 + $0xa8] sm:$0xff]   ;;  %v2147_v53 = vld [vmem:[%s2225_s28 + $0xb0] sm:$0xff]   ;;  %v2149_v55 = vld [vmem:[%s2225_s28 + $0xb8] sm:$0xff]  }
  0x1f   : > { %v2146_v52 = vld [vmem:[%s2225_s28 + $0x1a8] sm:$0xff]   ;;  %v2148_v54 = vld [vmem:[%s2225_s28 + $0x1b0] sm:$0xff]   ;;  %v2150_v56 = vld [vmem:[%s2225_s28 + $0x1b8] sm:$0xff]  }
  0x20   : > { %v2151_v57 = vld [vmem:[%s2225_s28 + $0xc0] sm:$0xff]   ;;  %v2153_v59 = vld [vmem:[%s2225_s28 + $0xc8] sm:$0xff]   ;;  %v2155_v61 = vld [vmem:[%s2225_s28 + $0xd0] sm:$0xff]  }
  0x21   : > { %v2152_v58 = vld [vmem:[%s2225_s28 + $0x1c0] sm:$0xff]   ;;  %v2154_v60 = vld [vmem:[%s2225_s28 + $0x1c8] sm:$0xff]   ;;  %v2156_v62 = vld [vmem:[%s2225_s28 + $0x1d0] sm:$0xff]  }
  0x22   : > { %1956 = vmatmul.mubr.msk.bf16.gmra.mrb[4].mxu0 %vm669_vm2, %v2109_v15  ;;  %2020 = vmatmul.mubr.msk.bf16.gmra.mrb[4].mxu1 %vm669_vm2, %v2110_v16  ;;  %v2157_v63 = vld [vmem:[%s2225_s28 + $0xd8] sm:$0xff]   ;;  %v2159_v1 = vld [vmem:[%s2225_s28 + $0xe0] sm:$0xff]   ;;  %v2161_v3 = vld [vmem:[%s2225_s28 + $0xe8] sm:$0xff]  }
  0x23   : > { %1959 = vmatprep.mubr.msk.bf16.mxu0 %vm669_vm2, %v2111_v17  ;;  %2023 = vmatprep.mubr.msk.bf16.mxu1 %vm669_vm2, %v2112_v18  ;;  %v2158_v0 = vld [vmem:[%s2225_s28 + $0x1d8] sm:$0xff]   ;;  %v2160_v2 = vld [vmem:[%s2225_s28 + $0x1e0] sm:$0xff]   ;;  %v2162_v4 = vld [vmem:[%s2225_s28 + $0x1e8] sm:$0xff]  }
  0x24   : > { %v2163_v5 = vld [vmem:[%s2225_s28 + $0xf0] sm:$0xff]   ;;  %v2165_v7 = vld [vmem:[%s2225_s28 + $0xf8] sm:$0xff]   ;;  %v2358_v9 = vld [vmem:[%s2755_s2] ss:$0 sm:$0xff] }
  0x25   : > { %v2164_v6 = vld [vmem:[%s2225_s28 + $0x1f0] sm:$0xff]   ;;  %v2166_v8 = vld [vmem:[%s2225_s28 + $0x1f8] sm:$0xff]  }
  0x2a   : > { %1960 = vmatmul.mubr.msk.bf16.gmra.mrb[8].mxu0 %vm669_vm2, %v2113_v19  ;;  %2024 = vmatmul.mubr.msk.bf16.gmra.mrb[8].mxu1 %vm669_vm2, %v2114_v20 }
  0x2b   : > { %1963 = vmatprep.mubr.msk.bf16.mxu0 %vm669_vm2, %v2115_v21  ;;  %2027 = vmatprep.mubr.msk.bf16.mxu1 %vm669_vm2, %v2116_v22 }
  0x32   : > { %1964 = vmatmul.mubr.msk.bf16.gmra.mrb[12].mxu0 %vm669_vm2, %v2117_v23  ;;  %2028 = vmatmul.mubr.msk.bf16.gmra.mrb[12].mxu1 %vm669_vm2, %v2118_v24 }
  0x33   : > { %1967 = vmatprep.mubr.msk.bf16.mxu0 %vm669_vm2, %v2119_v25  ;;  %2031 = vmatprep.mubr.msk.bf16.mxu1 %vm669_vm2, %v2120_v26 }
  0x3a   : > { %1968 = vmatmul.mubr.msk.bf16.gmra.mrb[16].mxu0 %vm669_vm2, %v2121_v27  ;;  %2032 = vmatmul.mubr.msk.bf16.gmra.mrb[16].mxu1 %vm669_vm2, %v2122_v28 }
  0x3b   : > { %1971 = vmatprep.mubr.msk.bf16.mxu0 %vm669_vm2, %v2123_v29  ;;  %2035 = vmatprep.mubr.msk.bf16.mxu1 %vm669_vm2, %v2124_v30 }
  0x42   : > { %1972 = vmatmul.mubr.msk.bf16.gmra.mrb[20].mxu0 %vm669_vm2, %v2125_v31  ;;  %2036 = vmatmul.mubr.msk.bf16.gmra.mrb[20].mxu1 %vm669_vm2, %v2126_v32 }
  0x43   : > { %1975 = vmatprep.mubr.msk.bf16.mxu0 %vm669_vm2, %v2127_v33  ;;  %2039 = vmatprep.mubr.msk.bf16.mxu1 %vm669_vm2, %v2128_v34 }
  0x4a   : > { %1976 = vmatmul.mubr.msk.bf16.gmra.mrb[24].mxu0 %vm669_vm2, %v2129_v35  ;;  %2040 = vmatmul.mubr.msk.bf16.gmra.mrb[24].mxu1 %vm669_vm2, %v2130_v36 }
  0x4b   : > { %1979 = vmatprep.mubr.msk.bf16.mxu0 %vm669_vm2, %v2131_v37  ;;  %2043 = vmatprep.mubr.msk.bf16.mxu1 %vm669_vm2, %v2132_v38 }
  0x52   : > { %1980 = vmatmul.mubr.msk.bf16.gmra.mrb[28].mxu0 %vm669_vm2, %v2133_v39  ;;  %2044 = vmatmul.mubr.msk.bf16.gmra.mrb[28].mxu1 %vm669_vm2, %v2134_v40 }
  0x53   : > { %1983 = vmatprep.mubr.msk.bf16.mxu0 %vm669_vm2, %v2135_v41  ;;  %2047 = vmatprep.mubr.msk.bf16.mxu1 %vm669_vm2, %v2136_v42 }
  0x5a   : > { %1984 = vmatmul.mubr.msk.bf16.gmra.mrb[32].mxu0 %vm669_vm2, %v2137_v43  ;;  %2048 = vmatmul.mubr.msk.bf16.gmra.mrb[32].mxu1 %vm669_vm2, %v2138_v44 }
  0x5b   : > { %1987 = vmatprep.mubr.msk.bf16.mxu0 %vm669_vm2, %v2139_v45  ;;  %2051 = vmatprep.mubr.msk.bf16.mxu1 %vm669_vm2, %v2140_v46 }
  0x62   : > { %1988 = vmatmul.mubr.msk.bf16.gmra.mrb[36].mxu0 %vm669_vm2, %v2141_v47  ;;  %2052 = vmatmul.mubr.msk.bf16.gmra.mrb[36].mxu1 %vm669_vm2, %v2142_v48 }
  0x63   : > { %1991 = vmatprep.mubr.msk.bf16.mxu0 %vm669_vm2, %v2143_v49  ;;  %2055 = vmatprep.mubr.msk.bf16.mxu1 %vm669_vm2, %v2144_v50 }
  0x6a   : > { %1992 = vmatmul.mubr.msk.bf16.gmra.mrb[40].mxu0 %vm669_vm2, %v2145_v51  ;;  %2056 = vmatmul.mubr.msk.bf16.gmra.mrb[40].mxu1 %vm669_vm2, %v2146_v52 }
  0x6b   : > { %1995 = vmatprep.mubr.msk.bf16.mxu0 %vm669_vm2, %v2147_v53  ;;  %2059 = vmatprep.mubr.msk.bf16.mxu1 %vm669_vm2, %v2148_v54 }
  0x72   : > { %1996 = vmatmul.mubr.msk.bf16.gmra.mrb[44].mxu0 %vm669_vm2, %v2149_v55  ;;  %2060 = vmatmul.mubr.msk.bf16.gmra.mrb[44].mxu1 %vm669_vm2, %v2150_v56 }
  0x73   : > { %1999 = vmatprep.mubr.msk.bf16.mxu0 %vm669_vm2, %v2151_v57  ;;  %2063 = vmatprep.mubr.msk.bf16.mxu1 %vm669_vm2, %v2152_v58 }
  0x7a   : > { %2000 = vmatmul.mubr.msk.bf16.gmra.mrb[48].mxu0 %vm669_vm2, %v2153_v59  ;;  %2064 = vmatmul.mubr.msk.bf16.gmra.mrb[48].mxu1 %vm669_vm2, %v2154_v60 }
  0x7b   : > { %2003 = vmatprep.mubr.msk.bf16.mxu0 %vm669_vm2, %v2155_v61  ;;  %2067 = vmatprep.mubr.msk.bf16.mxu1 %vm669_vm2, %v2156_v62 }
  0x82   : > { %2004 = vmatmul.mubr.msk.bf16.gmra.mrb[52].mxu0 %vm669_vm2, %v2157_v63  ;;  %2068 = vmatmul.mubr.msk.bf16.gmra.mrb[52].mxu1 %vm669_vm2, %v2158_v0 }
  0x83   : > { %2007 = vmatprep.mubr.msk.bf16.mxu0 %vm669_vm2, %v2159_v1  ;;  %2071 = vmatprep.mubr.msk.bf16.mxu1 %vm669_vm2, %v2160_v2 }
  0x8a   : > { %2008 = vmatmul.mubr.msk.bf16.gmra.mrb[56].mxu0 %vm669_vm2, %v2161_v3  ;;  %2072 = vmatmul.mubr.msk.bf16.gmra.mrb[56].mxu1 %vm669_vm2, %v2162_v4 }
  0x8b   : > { %2011 = vmatprep.mubr.msk.bf16.mxu0 %vm669_vm2, %v2163_v5  ;;  %2075 = vmatprep.mubr.msk.bf16.mxu1 %vm669_vm2, %v2164_v6 }
  0x92   : > { %2012 = vmatmul.mubr.msk.bf16.gmra.mrb[60].mxu0 %vm669_vm2, %v2165_v7  ;;  %2076 = vmatmul.mubr.msk.bf16.gmra.mrb[60].mxu1 %vm669_vm2, %v2166_v8 }
  0xed   : > { %v1953_v10 = vpop.f32.mrb[0].mxu0  ;;  %v2017_v11 = vpop.f32.mrb[0].mxu1 }
  0xee   : > { %v912_v12 = vadd.f32 %v1953_v10, %v2358_v9  ;;  %v1168_v13 = vadd.f32 %v2017_v11, %v2358_v9  ;;  %v903_v14 = vpop.f32.mrb[1].mxu0  ;;  %v1159_v15 = vpop.f32.mrb[1].mxu1 }
  0xef   : > { %v904_v16 = vadd.f32 %v2358_v9, %v903_v14  ;;  %v1160_v17 = vadd.f32 %v2358_v9, %v1159_v15  ;;  %v1954_v18 = vpop.f32.mrb[2].mxu0  ;;  %v2018_v19 = vpop.f32.mrb[2].mxu1 }
  0xf0   : > { %v1416_v20 = vmax.f32 %v912_v12, 0.0  ;;  %v1480_v21 = vmax.f32 %v1168_v13, 0.0  ;;  %v915_v22 = vadd.f32 %v1954_v18, %v2358_v9  ;;  %v1171_v23 = vadd.f32 %v2018_v19, %v2358_v9  ;;  %v906_v24 = vpop.f32.mrb[3].mxu0  ;;  %v1162_v25 = vpop.f32.mrb[3].mxu1 }
  0xf1   : > { %v1414_v26 = vmax.f32 %v904_v16, 0.0  ;;  %v1478_v27 = vmax.f32 %v1160_v17, 0.0  ;;  %v907_v28 = vadd.f32 %v2358_v9, %v906_v24  ;;  %v1163_v29 = vadd.f32 %v2358_v9, %v1162_v25 }
  0xf2   : > { %1545 = vst.msk [vmem:[%s2366_s7 + $0x10] sm:$0xff] %vm1542_vm3, %v1416_v20  ;;  %1609 = vst.msk [vmem:[%s2366_s7 + $0x210] sm:$0xff] %vm1542_vm3, %v1480_v21  ;;  %v1417_v30 = vmax.f32 %v915_v22, 0.0  ;;  %v1481_v31 = vmax.f32 %v1171_v23, 0.0 }
  0xf3   : > { %1543 = vst.msk [vmem:[%s2366_s7] sm:$0xff] %vm1542_vm3, %v1414_v26  ;;  %1607 = vst.msk [vmem:[%s2366_s7 + $0x200] sm:$0xff] %vm1542_vm3, %v1478_v27  ;;  %v1415_v32 = vmax.f32 %v907_v28, 0.0  ;;  %v1479_v33 = vmax.f32 %v1163_v29, 0.0 }
  0xf4   : > { %1546 = vst.msk [vmem:[%s2366_s7 + $0x18] sm:$0xff] %vm1542_vm3, %v1417_v30  ;;  %1610 = vst.msk [vmem:[%s2366_s7 + $0x218] sm:$0xff] %vm1542_vm3, %v1481_v31 }
  0xf5   : > { %1544 = vst.msk [vmem:[%s2366_s7 + $0x8] sm:$0xff] %vm1542_vm3, %v1415_v32  ;;  %1608 = vst.msk [vmem:[%s2366_s7 + $0x208] sm:$0xff] %vm1542_vm3, %v1479_v33  ;;  %v1957_v34 = vpop.f32.mrb[4].mxu0  ;;  %v2021_v35 = vpop.f32.mrb[4].mxu1 }
  0xf6   : > { %v928_v36 = vadd.f32 %v1957_v34, %v2358_v9  ;;  %v1184_v37 = vadd.f32 %v2021_v35, %v2358_v9  ;;  %v919_v38 = vpop.f32.mrb[5].mxu0  ;;  %v1175_v39 = vpop.f32.mrb[5].mxu1 }
  0xf7   : > { %v920_v40 = vadd.f32 %v2358_v9, %v919_v38  ;;  %v1176_v41 = vadd.f32 %v2358_v9, %v1175_v39  ;;  %v1958_v42 = vpop.f32.mrb[6].mxu0  ;;  %v2022_v43 = vpop.f32.mrb[6].mxu1 }
  0xf8   : > { %v1420_v44 = vmax.f32 %v928_v36, 0.0  ;;  %v1484_v45 = vmax.f32 %v1184_v37, 0.0  ;;  %v931_v46 = vadd.f32 %v1958_v42, %v2358_v9  ;;  %v1187_v47 = vadd.f32 %v2022_v43, %v2358_v9  ;;  %v922_v48 = vpop.f32.mrb[7].mxu0  ;;  %v1178_v49 = vpop.f32.mrb[7].mxu1 }
  0xf9   : > { %v1418_v50 = vmax.f32 %v920_v40, 0.0  ;;  %v1482_v51 = vmax.f32 %v1176_v41, 0.0  ;;  %v923_v52 = vadd.f32 %v2358_v9, %v922_v48  ;;  %v1179_v53 = vadd.f32 %v2358_v9, %v1178_v49 }
  0xfa   : > { %1549 = vst.msk [vmem:[%s2366_s7 + $0x30] sm:$0xff] %vm1542_vm3, %v1420_v44  ;;  %1613 = vst.msk [vmem:[%s2366_s7 + $0x230] sm:$0xff] %vm1542_vm3, %v1484_v45  ;;  %v1421_v54 = vmax.f32 %v931_v46, 0.0  ;;  %v1485_v55 = vmax.f32 %v1187_v47, 0.0 }
  0xfb   : > { %1547 = vst.msk [vmem:[%s2366_s7 + $0x20] sm:$0xff] %vm1542_vm3, %v1418_v50  ;;  %1611 = vst.msk [vmem:[%s2366_s7 + $0x220] sm:$0xff] %vm1542_vm3, %v1482_v51  ;;  %v1419_v56 = vmax.f32 %v923_v52, 0.0  ;;  %v1483_v57 = vmax.f32 %v1179_v53, 0.0 }
  0xfc   : > { %1550 = vst.msk [vmem:[%s2366_s7 + $0x38] sm:$0xff] %vm1542_vm3, %v1421_v54  ;;  %1614 = vst.msk [vmem:[%s2366_s7 + $0x238] sm:$0xff] %vm1542_vm3, %v1485_v55 }
  0xfd   : > { %1548 = vst.msk [vmem:[%s2366_s7 + $0x28] sm:$0xff] %vm1542_vm3, %v1419_v56  ;;  %1612 = vst.msk [vmem:[%s2366_s7 + $0x228] sm:$0xff] %vm1542_vm3, %v1483_v57  ;;  %v1961_v58 = vpop.f32.mrb[8].mxu0  ;;  %v2025_v59 = vpop.f32.mrb[8].mxu1 }
  0xfe   : > { %v944_v60 = vadd.f32 %v1961_v58, %v2358_v9  ;;  %v1200_v61 = vadd.f32 %v2025_v59, %v2358_v9  ;;  %v935_v62 = vpop.f32.mrb[9].mxu0  ;;  %v1191_v63 = vpop.f32.mrb[9].mxu1 }
  0xff   : > { %v936_v0 = vadd.f32 %v2358_v9, %v935_v62  ;;  %v1192_v1 = vadd.f32 %v2358_v9, %v1191_v63  ;;  %v1962_v2 = vpop.f32.mrb[10].mxu0  ;;  %v2026_v3 = vpop.f32.mrb[10].mxu1 }
 0x100   : > { %v1424_v4 = vmax.f32 %v944_v60, 0.0  ;;  %v1488_v5 = vmax.f32 %v1200_v61, 0.0  ;;  %v947_v6 = vadd.f32 %v1962_v2, %v2358_v9  ;;  %v1203_v7 = vadd.f32 %v2026_v3, %v2358_v9  ;;  %v938_v8 = vpop.f32.mrb[11].mxu0  ;;  %v1194_v10 = vpop.f32.mrb[11].mxu1 }
 0x101   : > { %v1422_v11 = vmax.f32 %v936_v0, 0.0  ;;  %v1486_v12 = vmax.f32 %v1192_v1, 0.0  ;;  %v939_v13 = vadd.f32 %v2358_v9, %v938_v8  ;;  %v1195_v14 = vadd.f32 %v2358_v9, %v1194_v10 }
 0x102   : > { %1553 = vst.msk [vmem:[%s2366_s7 + $0x50] sm:$0xff] %vm1542_vm3, %v1424_v4  ;;  %1617 = vst.msk [vmem:[%s2366_s7 + $0x250] sm:$0xff] %vm1542_vm3, %v1488_v5  ;;  %v1425_v15 = vmax.f32 %v947_v6, 0.0  ;;  %v1489_v16 = vmax.f32 %v1203_v7, 0.0 }
 0x103   : > { %1551 = vst.msk [vmem:[%s2366_s7 + $0x40] sm:$0xff] %vm1542_vm3, %v1422_v11  ;;  %1615 = vst.msk [vmem:[%s2366_s7 + $0x240] sm:$0xff] %vm1542_vm3, %v1486_v12  ;;  %v1423_v17 = vmax.f32 %v939_v13, 0.0  ;;  %v1487_v18 = vmax.f32 %v1195_v14, 0.0 }
 0x104   : > { %1554 = vst.msk [vmem:[%s2366_s7 + $0x58] sm:$0xff] %vm1542_vm3, %v1425_v15  ;;  %1618 = vst.msk [vmem:[%s2366_s7 + $0x258] sm:$0xff] %vm1542_vm3, %v1489_v16 }
 0x105   : > { %1552 = vst.msk [vmem:[%s2366_s7 + $0x48] sm:$0xff] %vm1542_vm3, %v1423_v17  ;;  %1616 = vst.msk [vmem:[%s2366_s7 + $0x248] sm:$0xff] %vm1542_vm3, %v1487_v18  ;;  %v1965_v19 = vpop.f32.mrb[12].mxu0  ;;  %v2029_v20 = vpop.f32.mrb[12].mxu1 }
 0x106   : > { %v960_v21 = vadd.f32 %v1965_v19, %v2358_v9  ;;  %v1216_v22 = vadd.f32 %v2029_v20, %v2358_v9  ;;  %v951_v23 = vpop.f32.mrb[13].mxu0  ;;  %v1207_v24 = vpop.f32.mrb[13].mxu1 }
 0x107   : > { %v952_v25 = vadd.f32 %v2358_v9, %v951_v23  ;;  %v1208_v26 = vadd.f32 %v2358_v9, %v1207_v24  ;;  %v1966_v27 = vpop.f32.mrb[14].mxu0  ;;  %v2030_v28 = vpop.f32.mrb[14].mxu1 }
 0x108   : > { %v1428_v29 = vmax.f32 %v960_v21, 0.0  ;;  %v1492_v30 = vmax.f32 %v1216_v22, 0.0  ;;  %v963_v31 = vadd.f32 %v1966_v27, %v2358_v9  ;;  %v1219_v32 = vadd.f32 %v2030_v28, %v2358_v9  ;;  %v954_v33 = vpop.f32.mrb[15].mxu0  ;;  %v1210_v34 = vpop.f32.mrb[15].mxu1 }
 0x109   : > { %v1426_v35 = vmax.f32 %v952_v25, 0.0  ;;  %v1490_v36 = vmax.f32 %v1208_v26, 0.0  ;;  %v955_v37 = vadd.f32 %v2358_v9, %v954_v33  ;;  %v1211_v38 = vadd.f32 %v2358_v9, %v1210_v34 }
 0x10a   : > { %1557 = vst.msk [vmem:[%s2366_s7 + $0x70] sm:$0xff] %vm1542_vm3, %v1428_v29  ;;  %1621 = vst.msk [vmem:[%s2366_s7 + $0x270] sm:$0xff] %vm1542_vm3, %v1492_v30  ;;  %v1429_v39 = vmax.f32 %v963_v31, 0.0  ;;  %v1493_v40 = vmax.f32 %v1219_v32, 0.0 }
 0x10b   : > { %1555 = vst.msk [vmem:[%s2366_s7 + $0x60] sm:$0xff] %vm1542_vm3, %v1426_v35  ;;  %1619 = vst.msk [vmem:[%s2366_s7 + $0x260] sm:$0xff] %vm1542_vm3, %v1490_v36  ;;  %v1427_v41 = vmax.f32 %v955_v37, 0.0  ;;  %v1491_v42 = vmax.f32 %v1211_v38, 0.0 }
 0x10c   : > { %1558 = vst.msk [vmem:[%s2366_s7 + $0x78] sm:$0xff] %vm1542_vm3, %v1429_v39  ;;  %1622 = vst.msk [vmem:[%s2366_s7 + $0x278] sm:$0xff] %vm1542_vm3, %v1493_v40 }
 0x10d   : > { %1556 = vst.msk [vmem:[%s2366_s7 + $0x68] sm:$0xff] %vm1542_vm3, %v1427_v41  ;;  %1620 = vst.msk [vmem:[%s2366_s7 + $0x268] sm:$0xff] %vm1542_vm3, %v1491_v42  ;;  %v1969_v43 = vpop.f32.mrb[16].mxu0  ;;  %v2033_v44 = vpop.f32.mrb[16].mxu1 }
 0x10e   : > { %v976_v45 = vadd.f32 %v1969_v43, %v2358_v9  ;;  %v1232_v46 = vadd.f32 %v2033_v44, %v2358_v9  ;;  %v967_v47 = vpop.f32.mrb[17].mxu0  ;;  %v1223_v48 = vpop.f32.mrb[17].mxu1 }
 0x10f   : > { %v968_v49 = vadd.f32 %v2358_v9, %v967_v47  ;;  %v1224_v50 = vadd.f32 %v2358_v9, %v1223_v48  ;;  %v1970_v51 = vpop.f32.mrb[18].mxu0  ;;  %v2034_v52 = vpop.f32.mrb[18].mxu1 }
 0x110   : > { %v1432_v53 = vmax.f32 %v976_v45, 0.0  ;;  %v1496_v54 = vmax.f32 %v1232_v46, 0.0  ;;  %v979_v55 = vadd.f32 %v1970_v51, %v2358_v9  ;;  %v1235_v56 = vadd.f32 %v2034_v52, %v2358_v9  ;;  %v970_v57 = vpop.f32.mrb[19].mxu0  ;;  %v1226_v58 = vpop.f32.mrb[19].mxu1 }
 0x111   : > { %v1430_v59 = vmax.f32 %v968_v49, 0.0  ;;  %v1494_v60 = vmax.f32 %v1224_v50, 0.0  ;;  %v971_v61 = vadd.f32 %v2358_v9, %v970_v57  ;;  %v1227_v62 = vadd.f32 %v2358_v9, %v1226_v58 }
 0x112   : > { %1561 = vst.msk [vmem:[%s2366_s7 + $0x90] sm:$0xff] %vm1542_vm3, %v1432_v53  ;;  %1625 = vst.msk [vmem:[%s2366_s7 + $0x290] sm:$0xff] %vm1542_vm3, %v1496_v54  ;;  %v1433_v63 = vmax.f32 %v979_v55, 0.0  ;;  %v1497_v0 = vmax.f32 %v1235_v56, 0.0 }
 0x113   : > { %1559 = vst.msk [vmem:[%s2366_s7 + $0x80] sm:$0xff] %vm1542_vm3, %v1430_v59  ;;  %1623 = vst.msk [vmem:[%s2366_s7 + $0x280] sm:$0xff] %vm1542_vm3, %v1494_v60  ;;  %v1431_v1 = vmax.f32 %v971_v61, 0.0  ;;  %v1495_v2 = vmax.f32 %v1227_v62, 0.0 }
 0x114   : > { %1562 = vst.msk [vmem:[%s2366_s7 + $0x98] sm:$0xff] %vm1542_vm3, %v1433_v63  ;;  %1626 = vst.msk [vmem:[%s2366_s7 + $0x298] sm:$0xff] %vm1542_vm3, %v1497_v0 }
 0x115   : > { %1560 = vst.msk [vmem:[%s2366_s7 + $0x88] sm:$0xff] %vm1542_vm3, %v1431_v1  ;;  %1624 = vst.msk [vmem:[%s2366_s7 + $0x288] sm:$0xff] %vm1542_vm3, %v1495_v2  ;;  %v1973_v3 = vpop.f32.mrb[20].mxu0  ;;  %v2037_v4 = vpop.f32.mrb[20].mxu1 }
 0x116   : > { %v992_v5 = vadd.f32 %v1973_v3, %v2358_v9  ;;  %v1248_v6 = vadd.f32 %v2037_v4, %v2358_v9  ;;  %v983_v7 = vpop.f32.mrb[21].mxu0  ;;  %v1239_v8 = vpop.f32.mrb[21].mxu1 }
 0x117   : > { %v984_v10 = vadd.f32 %v2358_v9, %v983_v7  ;;  %v1240_v11 = vadd.f32 %v2358_v9, %v1239_v8  ;;  %v1974_v12 = vpop.f32.mrb[22].mxu0  ;;  %v2038_v13 = vpop.f32.mrb[22].mxu1 }
 0x118   : > { %v1436_v14 = vmax.f32 %v992_v5, 0.0  ;;  %v1500_v15 = vmax.f32 %v1248_v6, 0.0  ;;  %v995_v16 = vadd.f32 %v1974_v12, %v2358_v9  ;;  %v1251_v17 = vadd.f32 %v2038_v13, %v2358_v9  ;;  %v986_v18 = vpop.f32.mrb[23].mxu0  ;;  %v1242_v19 = vpop.f32.mrb[23].mxu1 }
 0x119   : > { %v1434_v20 = vmax.f32 %v984_v10, 0.0  ;;  %v1498_v21 = vmax.f32 %v1240_v11, 0.0  ;;  %v987_v22 = vadd.f32 %v2358_v9, %v986_v18  ;;  %v1243_v23 = vadd.f32 %v2358_v9, %v1242_v19 }
 0x11a   : > { %1565 = vst.msk [vmem:[%s2366_s7 + $0xb0] sm:$0xff] %vm1542_vm3, %v1436_v14  ;;  %1629 = vst.msk [vmem:[%s2366_s7 + $0x2b0] sm:$0xff] %vm1542_vm3, %v1500_v15  ;;  %v1437_v24 = vmax.f32 %v995_v16, 0.0  ;;  %v1501_v25 = vmax.f32 %v1251_v17, 0.0 }
 0x11b   : > { %1563 = vst.msk [vmem:[%s2366_s7 + $0xa0] sm:$0xff] %vm1542_vm3, %v1434_v20  ;;  %1627 = vst.msk [vmem:[%s2366_s7 + $0x2a0] sm:$0xff] %vm1542_vm3, %v1498_v21  ;;  %v1435_v26 = vmax.f32 %v987_v22, 0.0  ;;  %v1499_v27 = vmax.f32 %v1243_v23, 0.0 }
 0x11c   : > { %1566 = vst.msk [vmem:[%s2366_s7 + $0xb8] sm:$0xff] %vm1542_vm3, %v1437_v24  ;;  %1630 = vst.msk [vmem:[%s2366_s7 + $0x2b8] sm:$0xff] %vm1542_vm3, %v1501_v25 }
 0x11d   : > { %1564 = vst.msk [vmem:[%s2366_s7 + $0xa8] sm:$0xff] %vm1542_vm3, %v1435_v26  ;;  %1628 = vst.msk [vmem:[%s2366_s7 + $0x2a8] sm:$0xff] %vm1542_vm3, %v1499_v27  ;;  %v1977_v28 = vpop.f32.mrb[24].mxu0  ;;  %v2041_v29 = vpop.f32.mrb[24].mxu1 }
 0x11e   : > { %v1008_v30 = vadd.f32 %v1977_v28, %v2358_v9  ;;  %v1264_v31 = vadd.f32 %v2041_v29, %v2358_v9  ;;  %v999_v32 = vpop.f32.mrb[25].mxu0  ;;  %v1255_v33 = vpop.f32.mrb[25].mxu1 }
 0x11f   : > { %v1000_v34 = vadd.f32 %v2358_v9, %v999_v32  ;;  %v1256_v35 = vadd.f32 %v2358_v9, %v1255_v33  ;;  %v1978_v36 = vpop.f32.mrb[26].mxu0  ;;  %v2042_v37 = vpop.f32.mrb[26].mxu1 }
 0x120   : > { %v1440_v38 = vmax.f32 %v1008_v30, 0.0  ;;  %v1504_v39 = vmax.f32 %v1264_v31, 0.0  ;;  %v1011_v40 = vadd.f32 %v1978_v36, %v2358_v9  ;;  %v1267_v41 = vadd.f32 %v2042_v37, %v2358_v9  ;;  %v1002_v42 = vpop.f32.mrb[27].mxu0  ;;  %v1258_v43 = vpop.f32.mrb[27].mxu1 }
 0x121   : > { %v1438_v44 = vmax.f32 %v1000_v34, 0.0  ;;  %v1502_v45 = vmax.f32 %v1256_v35, 0.0  ;;  %v1003_v46 = vadd.f32 %v2358_v9, %v1002_v42  ;;  %v1259_v47 = vadd.f32 %v2358_v9, %v1258_v43 }
 0x122   : > { %1569 = vst.msk [vmem:[%s2366_s7 + $0xd0] sm:$0xff] %vm1542_vm3, %v1440_v38  ;;  %1633 = vst.msk [vmem:[%s2366_s7 + $0x2d0] sm:$0xff] %vm1542_vm3, %v1504_v39  ;;  %v1441_v48 = vmax.f32 %v1011_v40, 0.0  ;;  %v1505_v49 = vmax.f32 %v1267_v41, 0.0 }
 0x123   : > { %1567 = vst.msk [vmem:[%s2366_s7 + $0xc0] sm:$0xff] %vm1542_vm3, %v1438_v44  ;;  %1631 = vst.msk [vmem:[%s2366_s7 + $0x2c0] sm:$0xff] %vm1542_vm3, %v1502_v45  ;;  %v1439_v50 = vmax.f32 %v1003_v46, 0.0  ;;  %v1503_v51 = vmax.f32 %v1259_v47, 0.0 }
 0x124   : > { %1570 = vst.msk [vmem:[%s2366_s7 + $0xd8] sm:$0xff] %vm1542_vm3, %v1441_v48  ;;  %1634 = vst.msk [vmem:[%s2366_s7 + $0x2d8] sm:$0xff] %vm1542_vm3, %v1505_v49 }
 0x125   : > { %1568 = vst.msk [vmem:[%s2366_s7 + $0xc8] sm:$0xff] %vm1542_vm3, %v1439_v50  ;;  %1632 = vst.msk [vmem:[%s2366_s7 + $0x2c8] sm:$0xff] %vm1542_vm3, %v1503_v51  ;;  %v1981_v52 = vpop.f32.mrb[28].mxu0  ;;  %v2045_v53 = vpop.f32.mrb[28].mxu1 }
 0x126   : > { %v1024_v54 = vadd.f32 %v1981_v52, %v2358_v9  ;;  %v1280_v55 = vadd.f32 %v2045_v53, %v2358_v9  ;;  %v1015_v56 = vpop.f32.mrb[29].mxu0  ;;  %v1271_v57 = vpop.f32.mrb[29].mxu1 }
 0x127   : > { %v1016_v58 = vadd.f32 %v2358_v9, %v1015_v56  ;;  %v1272_v59 = vadd.f32 %v2358_v9, %v1271_v57  ;;  %v1982_v60 = vpop.f32.mrb[30].mxu0  ;;  %v2046_v61 = vpop.f32.mrb[30].mxu1 }
 0x128   : > { %v1444_v62 = vmax.f32 %v1024_v54, 0.0  ;;  %v1508_v63 = vmax.f32 %v1280_v55, 0.0  ;;  %v1027_v0 = vadd.f32 %v1982_v60, %v2358_v9  ;;  %v1283_v1 = vadd.f32 %v2046_v61, %v2358_v9  ;;  %v1018_v2 = vpop.f32.mrb[31].mxu0  ;;  %v1274_v3 = vpop.f32.mrb[31].mxu1 }
 0x129   : > { %v1442_v4 = vmax.f32 %v1016_v58, 0.0  ;;  %v1506_v5 = vmax.f32 %v1272_v59, 0.0  ;;  %v1019_v6 = vadd.f32 %v2358_v9, %v1018_v2  ;;  %v1275_v7 = vadd.f32 %v2358_v9, %v1274_v3 }
 0x12a   : > { %1573 = vst.msk [vmem:[%s2366_s7 + $0xf0] sm:$0xff] %vm1542_vm3, %v1444_v62  ;;  %1637 = vst.msk [vmem:[%s2366_s7 + $0x2f0] sm:$0xff] %vm1542_vm3, %v1508_v63  ;;  %v1445_v8 = vmax.f32 %v1027_v0, 0.0  ;;  %v1509_v10 = vmax.f32 %v1283_v1, 0.0 }
 0x12b   : > { %1571 = vst.msk [vmem:[%s2366_s7 + $0xe0] sm:$0xff] %vm1542_vm3, %v1442_v4  ;;  %1635 = vst.msk [vmem:[%s2366_s7 + $0x2e0] sm:$0xff] %vm1542_vm3, %v1506_v5  ;;  %v1443_v11 = vmax.f32 %v1019_v6, 0.0  ;;  %v1507_v12 = vmax.f32 %v1275_v7, 0.0 }
 0x12c   : > { %1574 = vst.msk [vmem:[%s2366_s7 + $0xf8] sm:$0xff] %vm1542_vm3, %v1445_v8  ;;  %1638 = vst.msk [vmem:[%s2366_s7 + $0x2f8] sm:$0xff] %vm1542_vm3, %v1509_v10 }
 0x12d   : > { %1572 = vst.msk [vmem:[%s2366_s7 + $0xe8] sm:$0xff] %vm1542_vm3, %v1443_v11  ;;  %1636 = vst.msk [vmem:[%s2366_s7 + $0x2e8] sm:$0xff] %vm1542_vm3, %v1507_v12  ;;  %v1985_v13 = vpop.f32.mrb[32].mxu0  ;;  %v2049_v14 = vpop.f32.mrb[32].mxu1 }
 0x12e   : > { %v1040_v15 = vadd.f32 %v1985_v13, %v2358_v9  ;;  %v1296_v16 = vadd.f32 %v2049_v14, %v2358_v9  ;;  %v1031_v17 = vpop.f32.mrb[33].mxu0  ;;  %v1287_v18 = vpop.f32.mrb[33].mxu1 }
 0x12f   : > { %v1032_v19 = vadd.f32 %v2358_v9, %v1031_v17  ;;  %v1288_v20 = vadd.f32 %v2358_v9, %v1287_v18  ;;  %v1986_v21 = vpop.f32.mrb[34].mxu0  ;;  %v2050_v22 = vpop.f32.mrb[34].mxu1 }
 0x130   : > { %v1448_v23 = vmax.f32 %v1040_v15, 0.0  ;;  %v1512_v24 = vmax.f32 %v1296_v16, 0.0  ;;  %v1043_v25 = vadd.f32 %v1986_v21, %v2358_v9  ;;  %v1299_v26 = vadd.f32 %v2050_v22, %v2358_v9  ;;  %v1034_v27 = vpop.f32.mrb[35].mxu0  ;;  %v1290_v28 = vpop.f32.mrb[35].mxu1 }
 0x131   : > { %v1446_v29 = vmax.f32 %v1032_v19, 0.0  ;;  %v1510_v30 = vmax.f32 %v1288_v20, 0.0  ;;  %v1035_v31 = vadd.f32 %v2358_v9, %v1034_v27  ;;  %v1291_v32 = vadd.f32 %v2358_v9, %v1290_v28 }
 0x132   : > { %1577 = vst.msk [vmem:[%s2366_s7 + $0x110] sm:$0xff] %vm1542_vm3, %v1448_v23  ;;  %1641 = vst.msk [vmem:[%s2366_s7 + $0x310] sm:$0xff] %vm1542_vm3, %v1512_v24  ;;  %v1449_v33 = vmax.f32 %v1043_v25, 0.0  ;;  %v1513_v34 = vmax.f32 %v1299_v26, 0.0 }
 0x133   : > { %1575 = vst.msk [vmem:[%s2366_s7 + $0x100] sm:$0xff] %vm1542_vm3, %v1446_v29  ;;  %1639 = vst.msk [vmem:[%s2366_s7 + $0x300] sm:$0xff] %vm1542_vm3, %v1510_v30  ;;  %v1447_v35 = vmax.f32 %v1035_v31, 0.0  ;;  %v1511_v36 = vmax.f32 %v1291_v32, 0.0 }
 0x134   : > { %1578 = vst.msk [vmem:[%s2366_s7 + $0x118] sm:$0xff] %vm1542_vm3, %v1449_v33  ;;  %1642 = vst.msk [vmem:[%s2366_s7 + $0x318] sm:$0xff] %vm1542_vm3, %v1513_v34 }
 0x135   : > { %1576 = vst.msk [vmem:[%s2366_s7 + $0x108] sm:$0xff] %vm1542_vm3, %v1447_v35  ;;  %1640 = vst.msk [vmem:[%s2366_s7 + $0x308] sm:$0xff] %vm1542_vm3, %v1511_v36  ;;  %v1989_v37 = vpop.f32.mrb[36].mxu0  ;;  %v2053_v38 = vpop.f32.mrb[36].mxu1 }
 0x136   : > { %v1056_v39 = vadd.f32 %v1989_v37, %v2358_v9  ;;  %v1312_v40 = vadd.f32 %v2053_v38, %v2358_v9  ;;  %v1047_v41 = vpop.f32.mrb[37].mxu0  ;;  %v1303_v42 = vpop.f32.mrb[37].mxu1 }
 0x137   : > { %v1048_v43 = vadd.f32 %v2358_v9, %v1047_v41  ;;  %v1304_v44 = vadd.f32 %v2358_v9, %v1303_v42  ;;  %v1990_v45 = vpop.f32.mrb[38].mxu0  ;;  %v2054_v46 = vpop.f32.mrb[38].mxu1 }
 0x138   : > { %v1452_v47 = vmax.f32 %v1056_v39, 0.0  ;;  %v1516_v48 = vmax.f32 %v1312_v40, 0.0  ;;  %v1059_v49 = vadd.f32 %v1990_v45, %v2358_v9  ;;  %v1315_v50 = vadd.f32 %v2054_v46, %v2358_v9  ;;  %v1050_v51 = vpop.f32.mrb[39].mxu0  ;;  %v1306_v52 = vpop.f32.mrb[39].mxu1 }
 0x139   : > { %v1450_v53 = vmax.f32 %v1048_v43, 0.0  ;;  %v1514_v54 = vmax.f32 %v1304_v44, 0.0  ;;  %v1051_v55 = vadd.f32 %v2358_v9, %v1050_v51  ;;  %v1307_v56 = vadd.f32 %v2358_v9, %v1306_v52 }
 0x13a   : > { %1581 = vst.msk [vmem:[%s2366_s7 + $0x130] sm:$0xff] %vm1542_vm3, %v1452_v47  ;;  %1645 = vst.msk [vmem:[%s2366_s7 + $0x330] sm:$0xff] %vm1542_vm3, %v1516_v48  ;;  %v1453_v57 = vmax.f32 %v1059_v49, 0.0  ;;  %v1517_v58 = vmax.f32 %v1315_v50, 0.0 }
 0x13b   : > { %1579 = vst.msk [vmem:[%s2366_s7 + $0x120] sm:$0xff] %vm1542_vm3, %v1450_v53  ;;  %1643 = vst.msk [vmem:[%s2366_s7 + $0x320] sm:$0xff] %vm1542_vm3, %v1514_v54  ;;  %v1451_v59 = vmax.f32 %v1051_v55, 0.0  ;;  %v1515_v60 = vmax.f32 %v1307_v56, 0.0 }
 0x13c   : > { %1582 = vst.msk [vmem:[%s2366_s7 + $0x138] sm:$0xff] %vm1542_vm3, %v1453_v57  ;;  %1646 = vst.msk [vmem:[%s2366_s7 + $0x338] sm:$0xff] %vm1542_vm3, %v1517_v58 }
 0x13d   : > { %1580 = vst.msk [vmem:[%s2366_s7 + $0x128] sm:$0xff] %vm1542_vm3, %v1451_v59  ;;  %1644 = vst.msk [vmem:[%s2366_s7 + $0x328] sm:$0xff] %vm1542_vm3, %v1515_v60  ;;  %v1993_v61 = vpop.f32.mrb[40].mxu0  ;;  %v2057_v62 = vpop.f32.mrb[40].mxu1 }
 0x13e   : > { %v1072_v63 = vadd.f32 %v1993_v61, %v2358_v9  ;;  %v1328_v0 = vadd.f32 %v2057_v62, %v2358_v9  ;;  %v1063_v1 = vpop.f32.mrb[41].mxu0  ;;  %v1319_v2 = vpop.f32.mrb[41].mxu1 }
 0x13f   : > { %v1064_v3 = vadd.f32 %v2358_v9, %v1063_v1  ;;  %v1320_v4 = vadd.f32 %v2358_v9, %v1319_v2  ;;  %v1994_v5 = vpop.f32.mrb[42].mxu0  ;;  %v2058_v6 = vpop.f32.mrb[42].mxu1 }
 0x140   : > { %v1456_v7 = vmax.f32 %v1072_v63, 0.0  ;;  %v1520_v8 = vmax.f32 %v1328_v0, 0.0  ;;  %v1075_v10 = vadd.f32 %v1994_v5, %v2358_v9  ;;  %v1331_v11 = vadd.f32 %v2058_v6, %v2358_v9  ;;  %v1066_v12 = vpop.f32.mrb[43].mxu0  ;;  %v1322_v13 = vpop.f32.mrb[43].mxu1 }
 0x141   : > { %v1454_v14 = vmax.f32 %v1064_v3, 0.0  ;;  %v1518_v15 = vmax.f32 %v1320_v4, 0.0  ;;  %v1067_v16 = vadd.f32 %v2358_v9, %v1066_v12  ;;  %v1323_v17 = vadd.f32 %v2358_v9, %v1322_v13 }
 0x142   : > { %1585 = vst.msk [vmem:[%s2366_s7 + $0x150] sm:$0xff] %vm1542_vm3, %v1456_v7  ;;  %1649 = vst.msk [vmem:[%s2366_s7 + $0x350] sm:$0xff] %vm1542_vm3, %v1520_v8  ;;  %v1457_v18 = vmax.f32 %v1075_v10, 0.0  ;;  %v1521_v19 = vmax.f32 %v1331_v11, 0.0 }
 0x143   : > { %1583 = vst.msk [vmem:[%s2366_s7 + $0x140] sm:$0xff] %vm1542_vm3, %v1454_v14  ;;  %1647 = vst.msk [vmem:[%s2366_s7 + $0x340] sm:$0xff] %vm1542_vm3, %v1518_v15  ;;  %v1455_v20 = vmax.f32 %v1067_v16, 0.0  ;;  %v1519_v21 = vmax.f32 %v1323_v17, 0.0 }
 0x144   : > { %1586 = vst.msk [vmem:[%s2366_s7 + $0x158] sm:$0xff] %vm1542_vm3, %v1457_v18  ;;  %1650 = vst.msk [vmem:[%s2366_s7 + $0x358] sm:$0xff] %vm1542_vm3, %v1521_v19 }
 0x145   : > { %1584 = vst.msk [vmem:[%s2366_s7 + $0x148] sm:$0xff] %vm1542_vm3, %v1455_v20  ;;  %1648 = vst.msk [vmem:[%s2366_s7 + $0x348] sm:$0xff] %vm1542_vm3, %v1519_v21  ;;  %v1997_v22 = vpop.f32.mrb[44].mxu0  ;;  %v2061_v23 = vpop.f32.mrb[44].mxu1 }
 0x146   : > { %v1088_v24 = vadd.f32 %v1997_v22, %v2358_v9  ;;  %v1344_v25 = vadd.f32 %v2061_v23, %v2358_v9  ;;  %v1079_v26 = vpop.f32.mrb[45].mxu0  ;;  %v1335_v27 = vpop.f32.mrb[45].mxu1 }
 0x147   : > { %v1080_v28 = vadd.f32 %v2358_v9, %v1079_v26  ;;  %v1336_v29 = vadd.f32 %v2358_v9, %v1335_v27  ;;  %v1998_v30 = vpop.f32.mrb[46].mxu0  ;;  %v2062_v31 = vpop.f32.mrb[46].mxu1 }
 0x148   : > { %v1460_v32 = vmax.f32 %v1088_v24, 0.0  ;;  %v1524_v33 = vmax.f32 %v1344_v25, 0.0  ;;  %v1091_v34 = vadd.f32 %v1998_v30, %v2358_v9  ;;  %v1347_v35 = vadd.f32 %v2062_v31, %v2358_v9  ;;  %v1082_v36 = vpop.f32.mrb[47].mxu0  ;;  %v1338_v37 = vpop.f32.mrb[47].mxu1 }
 0x149   : > { %v1458_v38 = vmax.f32 %v1080_v28, 0.0  ;;  %v1522_v39 = vmax.f32 %v1336_v29, 0.0  ;;  %v1083_v40 = vadd.f32 %v2358_v9, %v1082_v36  ;;  %v1339_v41 = vadd.f32 %v2358_v9, %v1338_v37 }
 0x14a   : > { %1589 = vst.msk [vmem:[%s2366_s7 + $0x170] sm:$0xff] %vm1542_vm3, %v1460_v32  ;;  %1653 = vst.msk [vmem:[%s2366_s7 + $0x370] sm:$0xff] %vm1542_vm3, %v1524_v33  ;;  %v1461_v42 = vmax.f32 %v1091_v34, 0.0  ;;  %v1525_v43 = vmax.f32 %v1347_v35, 0.0 }
 0x14b   : > { %1587 = vst.msk [vmem:[%s2366_s7 + $0x160] sm:$0xff] %vm1542_vm3, %v1458_v38  ;;  %1651 = vst.msk [vmem:[%s2366_s7 + $0x360] sm:$0xff] %vm1542_vm3, %v1522_v39  ;;  %v1459_v44 = vmax.f32 %v1083_v40, 0.0  ;;  %v1523_v45 = vmax.f32 %v1339_v41, 0.0 }
 0x14c   : > { %1590 = vst.msk [vmem:[%s2366_s7 + $0x178] sm:$0xff] %vm1542_vm3, %v1461_v42  ;;  %1654 = vst.msk [vmem:[%s2366_s7 + $0x378] sm:$0xff] %vm1542_vm3, %v1525_v43 }
 0x14d   : > { %1588 = vst.msk [vmem:[%s2366_s7 + $0x168] sm:$0xff] %vm1542_vm3, %v1459_v44  ;;  %1652 = vst.msk [vmem:[%s2366_s7 + $0x368] sm:$0xff] %vm1542_vm3, %v1523_v45  ;;  %v2001_v46 = vpop.f32.mrb[48].mxu0  ;;  %v2065_v47 = vpop.f32.mrb[48].mxu1 }
 0x14e   : > { %v1104_v48 = vadd.f32 %v2001_v46, %v2358_v9  ;;  %v1360_v49 = vadd.f32 %v2065_v47, %v2358_v9  ;;  %v1095_v50 = vpop.f32.mrb[49].mxu0  ;;  %v1351_v51 = vpop.f32.mrb[49].mxu1 }
 0x14f   : > { %v1096_v52 = vadd.f32 %v2358_v9, %v1095_v50  ;;  %v1352_v53 = vadd.f32 %v2358_v9, %v1351_v51  ;;  %v2002_v54 = vpop.f32.mrb[50].mxu0  ;;  %v2066_v55 = vpop.f32.mrb[50].mxu1 }
 0x150   : > { %v1464_v56 = vmax.f32 %v1104_v48, 0.0  ;;  %v1528_v57 = vmax.f32 %v1360_v49, 0.0  ;;  %v1107_v58 = vadd.f32 %v2002_v54, %v2358_v9  ;;  %v1363_v59 = vadd.f32 %v2066_v55, %v2358_v9  ;;  %v1098_v60 = vpop.f32.mrb[51].mxu0  ;;  %v1354_v61 = vpop.f32.mrb[51].mxu1 }
 0x151   : > { %v1462_v62 = vmax.f32 %v1096_v52, 0.0  ;;  %v1526_v63 = vmax.f32 %v1352_v53, 0.0  ;;  %v1099_v0 = vadd.f32 %v2358_v9, %v1098_v60  ;;  %v1355_v1 = vadd.f32 %v2358_v9, %v1354_v61 }
 0x152   : > { %1593 = vst.msk [vmem:[%s2366_s7 + $0x190] sm:$0xff] %vm1542_vm3, %v1464_v56  ;;  %1657 = vst.msk [vmem:[%s2366_s7 + $0x390] sm:$0xff] %vm1542_vm3, %v1528_v57  ;;  %v1465_v2 = vmax.f32 %v1107_v58, 0.0  ;;  %v1529_v3 = vmax.f32 %v1363_v59, 0.0 }
 0x153   : > { %1591 = vst.msk [vmem:[%s2366_s7 + $0x180] sm:$0xff] %vm1542_vm3, %v1462_v62  ;;  %1655 = vst.msk [vmem:[%s2366_s7 + $0x380] sm:$0xff] %vm1542_vm3, %v1526_v63  ;;  %v1463_v4 = vmax.f32 %v1099_v0, 0.0  ;;  %v1527_v5 = vmax.f32 %v1355_v1, 0.0 }
 0x154   : > { %1594 = vst.msk [vmem:[%s2366_s7 + $0x198] sm:$0xff] %vm1542_vm3, %v1465_v2  ;;  %1658 = vst.msk [vmem:[%s2366_s7 + $0x398] sm:$0xff] %vm1542_vm3, %v1529_v3 }
 0x155   : > { %1592 = vst.msk [vmem:[%s2366_s7 + $0x188] sm:$0xff] %vm1542_vm3, %v1463_v4  ;;  %1656 = vst.msk [vmem:[%s2366_s7 + $0x388] sm:$0xff] %vm1542_vm3, %v1527_v5  ;;  %v2005_v6 = vpop.f32.mrb[52].mxu0  ;;  %v2069_v7 = vpop.f32.mrb[52].mxu1 }
 0x156   : > { %v1120_v8 = vadd.f32 %v2005_v6, %v2358_v9  ;;  %v1376_v10 = vadd.f32 %v2069_v7, %v2358_v9  ;;  %v1111_v11 = vpop.f32.mrb[53].mxu0  ;;  %v1367_v12 = vpop.f32.mrb[53].mxu1 }
 0x157   : > { %v1112_v13 = vadd.f32 %v2358_v9, %v1111_v11  ;;  %v1368_v14 = vadd.f32 %v2358_v9, %v1367_v12  ;;  %v2006_v15 = vpop.f32.mrb[54].mxu0  ;;  %v2070_v16 = vpop.f32.mrb[54].mxu1 }
 0x158   : > { %v1468_v17 = vmax.f32 %v1120_v8, 0.0  ;;  %v1532_v18 = vmax.f32 %v1376_v10, 0.0  ;;  %v1123_v19 = vadd.f32 %v2006_v15, %v2358_v9  ;;  %v1379_v20 = vadd.f32 %v2070_v16, %v2358_v9  ;;  %v1114_v21 = vpop.f32.mrb[55].mxu0  ;;  %v1370_v22 = vpop.f32.mrb[55].mxu1 }
 0x159   : > { %v1466_v23 = vmax.f32 %v1112_v13, 0.0  ;;  %v1530_v24 = vmax.f32 %v1368_v14, 0.0  ;;  %v1115_v25 = vadd.f32 %v2358_v9, %v1114_v21  ;;  %v1371_v26 = vadd.f32 %v2358_v9, %v1370_v22 }
 0x15a   : > { %1597 = vst.msk [vmem:[%s2366_s7 + $0x1b0] sm:$0xff] %vm1542_vm3, %v1468_v17  ;;  %1661 = vst.msk [vmem:[%s2366_s7 + $0x3b0] sm:$0xff] %vm1542_vm3, %v1532_v18  ;;  %v1469_v27 = vmax.f32 %v1123_v19, 0.0  ;;  %v1533_v28 = vmax.f32 %v1379_v20, 0.0 }
 0x15b   : > { %1595 = vst.msk [vmem:[%s2366_s7 + $0x1a0] sm:$0xff] %vm1542_vm3, %v1466_v23  ;;  %1659 = vst.msk [vmem:[%s2366_s7 + $0x3a0] sm:$0xff] %vm1542_vm3, %v1530_v24  ;;  %v1467_v29 = vmax.f32 %v1115_v25, 0.0  ;;  %v1531_v30 = vmax.f32 %v1371_v26, 0.0 }
 0x15c   : > { %1598 = vst.msk [vmem:[%s2366_s7 + $0x1b8] sm:$0xff] %vm1542_vm3, %v1469_v27  ;;  %1662 = vst.msk [vmem:[%s2366_s7 + $0x3b8] sm:$0xff] %vm1542_vm3, %v1533_v28 }
 0x15d   : > { %1596 = vst.msk [vmem:[%s2366_s7 + $0x1a8] sm:$0xff] %vm1542_vm3, %v1467_v29  ;;  %1660 = vst.msk [vmem:[%s2366_s7 + $0x3a8] sm:$0xff] %vm1542_vm3, %v1531_v30  ;;  %v2009_v31 = vpop.f32.mrb[56].mxu0  ;;  %v2073_v32 = vpop.f32.mrb[56].mxu1 }
 0x15e   : > { %v1136_v33 = vadd.f32 %v2009_v31, %v2358_v9  ;;  %v1392_v34 = vadd.f32 %v2073_v32, %v2358_v9  ;;  %v1127_v35 = vpop.f32.mrb[57].mxu0  ;;  %v1383_v36 = vpop.f32.mrb[57].mxu1 }
 0x15f   : > { %v1128_v37 = vadd.f32 %v2358_v9, %v1127_v35  ;;  %v1384_v38 = vadd.f32 %v2358_v9, %v1383_v36  ;;  %v2010_v39 = vpop.f32.mrb[58].mxu0  ;;  %v2074_v40 = vpop.f32.mrb[58].mxu1 }
 0x160   : > { %v1472_v41 = vmax.f32 %v1136_v33, 0.0  ;;  %v1536_v42 = vmax.f32 %v1392_v34, 0.0  ;;  %v1139_v43 = vadd.f32 %v2010_v39, %v2358_v9  ;;  %v1395_v44 = vadd.f32 %v2074_v40, %v2358_v9  ;;  %v1130_v45 = vpop.f32.mrb[59].mxu0  ;;  %v1386_v46 = vpop.f32.mrb[59].mxu1 }
 0x161   : > { %v1470_v47 = vmax.f32 %v1128_v37, 0.0  ;;  %v1534_v48 = vmax.f32 %v1384_v38, 0.0  ;;  %v1131_v49 = vadd.f32 %v2358_v9, %v1130_v45  ;;  %v1387_v50 = vadd.f32 %v2358_v9, %v1386_v46 }
 0x162   : > { %1601 = vst.msk [vmem:[%s2366_s7 + $0x1d0] sm:$0xff] %vm1542_vm3, %v1472_v41  ;;  %1665 = vst.msk [vmem:[%s2366_s7 + $0x3d0] sm:$0xff] %vm1542_vm3, %v1536_v42  ;;  %v1473_v51 = vmax.f32 %v1139_v43, 0.0  ;;  %v1537_v52 = vmax.f32 %v1395_v44, 0.0 }
 0x163   : > { %1599 = vst.msk [vmem:[%s2366_s7 + $0x1c0] sm:$0xff] %vm1542_vm3, %v1470_v47  ;;  %1663 = vst.msk [vmem:[%s2366_s7 + $0x3c0] sm:$0xff] %vm1542_vm3, %v1534_v48  ;;  %v1471_v53 = vmax.f32 %v1131_v49, 0.0  ;;  %v1535_v54 = vmax.f32 %v1387_v50, 0.0 }
 0x164   : > { %1602 = vst.msk [vmem:[%s2366_s7 + $0x1d8] sm:$0xff] %vm1542_vm3, %v1473_v51  ;;  %1666 = vst.msk [vmem:[%s2366_s7 + $0x3d8] sm:$0xff] %vm1542_vm3, %v1537_v52 }
 0x165   : > { %1600 = vst.msk [vmem:[%s2366_s7 + $0x1c8] sm:$0xff] %vm1542_vm3, %v1471_v53  ;;  %1664 = vst.msk [vmem:[%s2366_s7 + $0x3c8] sm:$0xff] %vm1542_vm3, %v1535_v54  ;;  %v2013_v55 = vpop.f32.mrb[60].mxu0  ;;  %v2077_v56 = vpop.f32.mrb[60].mxu1 }
 0x166   : > { %v1152_v57 = vadd.f32 %v2013_v55, %v2358_v9  ;;  %v1408_v58 = vadd.f32 %v2077_v56, %v2358_v9  ;;  %v1143_v59 = vpop.f32.mrb[61].mxu0  ;;  %v1399_v60 = vpop.f32.mrb[61].mxu1 }
 0x167   : > { %v1144_v61 = vadd.f32 %v2358_v9, %v1143_v59  ;;  %v1400_v62 = vadd.f32 %v2358_v9, %v1399_v60  ;;  %v2014_v63 = vpop.f32.mrb[62].mxu0  ;;  %v2078_v0 = vpop.f32.mrb[62].mxu1 }
 0x168   : > { %v1476_v1 = vmax.f32 %v1152_v57, 0.0  ;;  %v1540_v2 = vmax.f32 %v1408_v58, 0.0  ;;  %v1155_v3 = vadd.f32 %v2014_v63, %v2358_v9  ;;  %v1411_v4 = vadd.f32 %v2078_v0, %v2358_v9  ;;  %v1146_v5 = vpop.f32.mrb[63].mxu0  ;;  %v1402_v6 = vpop.f32.mrb[63].mxu1 }
 0x169   : > { %v1474_v7 = vmax.f32 %v1144_v61, 0.0  ;;  %v1538_v8 = vmax.f32 %v1400_v62, 0.0  ;;  %v1147_v10 = vadd.f32 %v2358_v9, %v1146_v5  ;;  %v1403_v11 = vadd.f32 %v2358_v9, %v1402_v6 }
 0x16a   : > { %1605 = vst.msk [vmem:[%s2366_s7 + $0x1f0] sm:$0xff] %vm1542_vm3, %v1476_v1  ;;  %1669 = vst.msk [vmem:[%s2366_s7 + $0x3f0] sm:$0xff] %vm1542_vm3, %v1540_v2  ;;  %v1477_v12 = vmax.f32 %v1155_v3, 0.0  ;;  %v1541_v13 = vmax.f32 %v1411_v4, 0.0 }
 0x16b   : > { %1603 = vst.msk [vmem:[%s2366_s7 + $0x1e0] sm:$0xff] %vm1542_vm3, %v1474_v7  ;;  %1667 = vst.msk [vmem:[%s2366_s7 + $0x3e0] sm:$0xff] %vm1542_vm3, %v1538_v8  ;;  %v1475_v14 = vmax.f32 %v1147_v10, 0.0  ;;  %v1539_v15 = vmax.f32 %v1403_v11, 0.0 }
 0x16c   : > { %1606 = vst.msk [vmem:[%s2366_s7 + $0x1f8] sm:$0xff] %vm1542_vm3, %v1477_v12  ;;  %1670 = vst.msk [vmem:[%s2366_s7 + $0x3f8] sm:$0xff] %vm1542_vm3, %v1541_v13 }
 0x16d   : > { %1604 = vst.msk [vmem:[%s2366_s7 + $0x1e8] sm:$0xff] %vm1542_vm3, %v1475_v14  ;;  %1668 = vst.msk [vmem:[%s2366_s7 + $0x3e8] sm:$0xff] %vm1542_vm3, %v1539_v15 }
 0x16e PF: > { %s13_s12 = sadd.s32 1, %s2173_s12  }
 0x16f   : > { %p10_p4 = scmp.ge.s32.totalorder %s13_s12, 4  }
 0x171   :  { %12 = sbr.rel (!%p10_p4) target bundleno = 1 (0x1), region = 62 }

// kernel: encoder_net_forward.6
= control target key start
LH: loop header
LB: loop body
LE: loop exit
PB: predicated region body
PF: predicated region fallthrough
CT: control target
= control target key end

     0   :  { %v4253_v0 = vmov 0   ;;  %vm1798_vm0 = vcmask 261120   ;;  %vm3115_vm1 = vcmask 523264   ;;  %s5936_s1 = inlined_call_operand.vmem [shape: bf16[800,64], index: 1, kind: input, shape index: {}]   ;;  %s5937_s0 = inlined_call_operand.vmem [shape: bf16[512,800], index: 0, kind: input, shape index: {}]   ;;  %s5938_s2 = inlined_call_operand.vmem [shape: f32[1,64], index: 2, kind: input, shape index: {}]   ;;  %s5939_s3 = inlined_call_operand.vmem [shape: f32[512,64], index: 3, kind: output, shape index: {}]  }
   0x1   :  { %1895 = vmatprep.subr.bf16.mxu1 %v4253_v0  ;;  %2184 = vmatprep.subr.bf16.mxu0 %v4253_v0  ;;  %v3882_v1 = vld [vmem:[%s5936_s1] sm:$0xff]   ;;  %v3884_v3 = vld [vmem:[%s5936_s1 + $0x8] sm:$0xff]   ;;  %v3886_v5 = vld [vmem:[%s5936_s1 + $0x10] sm:$0xff]  }
   0x2   :  { %v4282_v2 = vld [vmem:[%s5936_s1 + $0x80] sm:$0xff]   ;;  %1896 = vmatpush1.bf16.msra.mxu1 %v3882_v1  ;;  %v4292_v4 = vld [vmem:[%s5936_s1 + $0x88] sm:$0xff]   ;;  %v4303_v6 = vld [vmem:[%s5936_s1 + $0x90] sm:$0xff]  }
   0x3   :  { %2185 = vmatpush1.bf16.msra.mxu0 %v4282_v2  ;;  %1897 = vmatprep.subr.bf16.mxu1 %v4253_v0  ;;  %v3888_v7 = vld [vmem:[%s5936_s1 + $0x18] sm:$0xff]   ;;  %v3890_v9 = vld [vmem:[%s5936_s1 + $0x20] sm:$0xff]   ;;  %v3892_v11 = vld [vmem:[%s5936_s1 + $0x28] sm:$0xff]  }
   0x4   :  { %2186 = vmatprep.subr.bf16.mxu0 %v4253_v0  ;;  %v4314_v8 = vld [vmem:[%s5936_s1 + $0x98] sm:$0xff]   ;;  %v4325_v10 = vld [vmem:[%s5936_s1 + $0xa0] sm:$0xff]   ;;  %v4336_v12 = vld [vmem:[%s5936_s1 + $0xa8] sm:$0xff]  }
   0x5   :  { %v3894_v13 = vld [vmem:[%s5936_s1 + $0x30] sm:$0xff]   ;;  %v3896_v15 = vld [vmem:[%s5936_s1 + $0x38] sm:$0xff]   ;;  %v3898_v17 = vld [vmem:[%s5936_s1 + $0x40] sm:$0xff]  }
   0x6   :  { %1898 = vmatpush1.bf16.msra.mxu1 %v3884_v3  ;;  %v4347_v14 = vld [vmem:[%s5936_s1 + $0xb0] sm:$0xff]   ;;  %v4358_v16 = vld [vmem:[%s5936_s1 + $0xb8] sm:$0xff]   ;;  %v4369_v18 = vld [vmem:[%s5936_s1 + $0xc0] sm:$0xff]  }
   0x7   :  { %2187 = vmatpush1.bf16.msra.mxu0 %v4292_v4  ;;  %1899 = vmatprep.subr.bf16.mxu1 %v4253_v0  ;;  %v3916_v19 = vld [vmem:[%s5937_s0 + $0x4] ss:$28 sps:$4 sm:$0xff]   ;;  %v3900_v20 = vld [vmem:[%s5936_s1 + $0x48] sm:$0xff]   ;;  %v3902_v23 = vld [vmem:[%s5936_s1 + $0x50] sm:$0xff]  }
   0x8   :  { %2188 = vmatprep.subr.bf16.mxu0 %v4253_v0  ;;  %v3919_v21 = vld [vmem:[%s5937_s0 + $0xc] ss:$28 sps:$4 sm:$0xff]   ;;  %1927 = vmatprep.mubr.bf16.mxu1 %v3916_v19  ;;  %v4397_v24 = vld [vmem:[%s5936_s1 + $0xd0] sm:$0xff]   ;;  %v3904_v25 = vld [vmem:[%s5936_s1 + $0x58] sm:$0xff]  }
   0x9   :  { %v4386_v22 = vld [vmem:[%s5936_s1 + $0xc8] sm:$0xff]   ;;  %2216 = vmatprep.mubr.bf16.mxu0 %v3919_v21  ;;  %v4408_v26 = vld [vmem:[%s5936_s1 + $0xd8] sm:$0xff]   ;;  %v3906_v27 = vld [vmem:[%s5936_s1 + $0x60] sm:$0xff]  }
   0xa   :  { %1900 = vmatpush1.bf16.msra.mxu1 %v3886_v5  ;;  %v4419_v28 = vld [vmem:[%s5936_s1 + $0xe0] sm:$0xff]   ;;  %v3908_v29 = vld [vmem:[%s5936_s1 + $0x68] sm:$0xff]   ;;  %v3910_v31 = vld [vmem:[%s5936_s1 + $0x70] sm:$0xff]  }
   0xb   :  { %2189 = vmatpush1.bf16.msra.mxu0 %v4303_v6  ;;  %1901 = vmatprep.subr.bf16.mxu1 %v4253_v0  ;;  %v4430_v30 = vld [vmem:[%s5936_s1 + $0xe8] sm:$0xff]   ;;  %v4441_v32 = vld [vmem:[%s5936_s1 + $0xf0] sm:$0xff]   ;;  %v3912_v33 = vld [vmem:[%s5936_s1 + $0x78] sm:$0xff]  }
   0xc   :  { %2190 = vmatprep.subr.bf16.mxu0 %v4253_v0  ;;  %v4452_v34 = vld [vmem:[%s5936_s1 + $0xf8] sm:$0xff]   ;;  %v3917_v36 = vld [vmem:[%s5937_s0 + $0x8] ss:$28 sps:$4 sm:$0xff]   ;;  %v3928_v43 = vld [vmem:[%s5937_s0 + $0x74] ss:$28 sps:$4 sm:$0xff]  }
   0xd   :  { %v3914_v35 = vld [vmem:[%s5937_s0] ss:$28 sps:$4 sm:$0xff]   ;;  %v3927_v40 = vld [vmem:[%s5936_s1 + $0x108] sm:$0xff]   ;;  %v3925_v41 = vld [vmem:[%s5937_s0 + $0x38] ss:$28 sps:$4 sm:$0xff]  }
   0xe   :  { %1902 = vmatpush1.bf16.msra.mxu1 %v3888_v7  ;;  %v3920_v37 = vld [vmem:[%s5936_s1 + $0x100] sm:$0xff]   ;;  %v3921_v38 = vld [vmem:[%s5937_s0 + $0x3c] ss:$28 sps:$4 sm:$0xff]   ;;  %v3940_v45 = vld [vmem:[%s5936_s1 + $0x110] sm:$0xff]  }
   0xf   :  { %2191 = vmatpush1.bf16.msra.mxu0 %v4314_v8  ;;  %1903 = vmatprep.subr.bf16.mxu1 %v4253_v0  ;;  %v3923_v39 = vld [vmem:[%s5937_s0 + $0x44] ss:$28 sps:$4 sm:$0xff]   ;;  %v3930_v44 = vld [vmem:[%s5937_s0 + $0x7c] ss:$28 sps:$4 sm:$0xff]   ;;  %v3932_v47 = vld [vmem:[%s5937_s0 + $0x70] ss:$28 sps:$4 sm:$0xff]  }
  0x10   :  { %2192 = vmatprep.subr.bf16.mxu0 %v4253_v0  ;;  %v3926_v42 = vld [vmem:[%s5937_s0 + $0x40] ss:$28 sps:$4 sm:$0xff]   ;;  %v3933_v48 = vld [vmem:[%s5937_s0 + $0x78] ss:$28 sps:$4 sm:$0xff]   ;;  %v3934_v49 = vld [vmem:[%s5937_s0 + $0xac] ss:$28 sps:$4 sm:$0xff]  }
  0x11   :  { %v3947_v46 = vld [vmem:[%s5936_s1 + $0x118] sm:$0xff]   ;;  %v3936_v50 = vld [vmem:[%s5937_s0 + $0xb4] ss:$28 sps:$4 sm:$0xff]   ;;  %v3960_v51 = vld [vmem:[%s5936_s1 + $0x120] sm:$0xff]  }
  0x12   :  { %1904 = vmatpush1.bf16.msra.mxu1 %v3890_v9  ;;  %v3967_v52 = vld [vmem:[%s5936_s1 + $0x128] sm:$0xff]   ;;  %v3941_v55 = vld [vmem:[%s5937_s0 + $0xe4] ss:$28 sps:$4 sm:$0xff]   ;;  %v3980_v57 = vld [vmem:[%s5936_s1 + $0x130] sm:$0xff]  }
  0x13   :  { %2193 = vmatpush1.bf16.msra.mxu0 %v4325_v10  ;;  %1905 = vmatprep.subr.bf16.mxu1 %v4253_v0  ;;  %v3938_v53 = vld [vmem:[%s5937_s0 + $0xa8] ss:$28 sps:$4 sm:$0xff]   ;;  %v3939_v54 = vld [vmem:[%s5937_s0 + $0xb0] ss:$28 sps:$4 sm:$0xff]   ;;  %v3987_v58 = vld [vmem:[%s5936_s1 + $0x138] sm:$0xff]  }
  0x14   :  { %2194 = vmatprep.subr.bf16.mxu0 %v4253_v0  ;;  %v3943_v56 = vld [vmem:[%s5937_s0 + $0xec] ss:$28 sps:$4 sm:$0xff]   ;;  %v3945_v59 = vld [vmem:[%s5937_s0 + $0xe0] ss:$28 sps:$4 sm:$0xff]   ;;  %v3959_v9 = vld [vmem:[%s5937_s0 + $0x158] ss:$28 sps:$4 sm:$0xff]  }
  0x15   :  { %v3946_v60 = vld [vmem:[%s5937_s0 + $0xe8] ss:$28 sps:$4 sm:$0xff]   ;;  %v3948_v61 = vld [vmem:[%s5937_s0 + $0x11c] ss:$28 sps:$4 sm:$0xff]   ;;  %v3958_v7 = vld [vmem:[%s5937_s0 + $0x150] ss:$28 sps:$4 sm:$0xff]  }
  0x16   :  { %1906 = vmatpush1.bf16.msra.mxu1 %v3892_v11  ;;  %v3950_v62 = vld [vmem:[%s5937_s0 + $0x124] ss:$28 sps:$4 sm:$0xff]   ;;  %v4007_v1 = vld [vmem:[%s5936_s1 + $0x148] sm:$0xff]   ;;  %v3956_v5 = vld [vmem:[%s5937_s0 + $0x15c] ss:$28 sps:$4 sm:$0xff]  }
  0x17   :  { %2195 = vmatpush1.bf16.msra.mxu0 %v4336_v12  ;;  %1907 = vmatprep.subr.bf16.mxu1 %v4253_v0  ;;  %v4000_v63 = vld [vmem:[%s5936_s1 + $0x140] sm:$0xff]   ;;  %v3963_v11 = vld [vmem:[%s5937_s0 + $0x194] ss:$28 sps:$4 sm:$0xff]  }
  0x18   :  { %2196 = vmatprep.subr.bf16.mxu0 %v4253_v0  ;;  %v3953_v3 = vld [vmem:[%s5937_s0 + $0x120] ss:$28 sps:$4 sm:$0xff]   ;;  %v3973_v21 = vld [vmem:[%s5937_s0 + $0x1c8] ss:$28 sps:$4 sm:$0xff]  }
  0x19   :  { %v3972_v19 = vld [vmem:[%s5937_s0 + $0x1c0] ss:$28 sps:$4 sm:$0xff]  }
  0x1a   :  { %1908 = vmatpush1.bf16.msra.mxu1 %v3894_v13  ;;  %v3965_v13 = vld [vmem:[%s5937_s0 + $0x188] ss:$28 sps:$4 sm:$0xff]  }
  0x1b   :  { %2197 = vmatpush1.bf16.msra.mxu0 %v4347_v14  ;;  %1909 = vmatprep.subr.bf16.mxu1 %v4253_v0 }
  0x1c   :  { %2198 = vmatprep.subr.bf16.mxu0 %v4253_v0 }
  0x1e   :  { %1910 = vmatpush1.bf16.msra.mxu1 %v3896_v15  ;;  %v3966_v15 = vld [vmem:[%s5937_s0 + $0x190] ss:$28 sps:$4 sm:$0xff]  }
  0x1f   :  { %2199 = vmatpush1.bf16.msra.mxu0 %v4358_v16  ;;  %1911 = vmatprep.subr.bf16.mxu1 %v4253_v0 }
  0x20   :  { %2200 = vmatprep.subr.bf16.mxu0 %v4253_v0 }
  0x22   :  { %1912 = vmatpush1.bf16.msra.mxu1 %v3898_v17  ;;  %v3970_v17 = vld [vmem:[%s5937_s0 + $0x1cc] ss:$28 sps:$4 sm:$0xff]  }
  0x23   :  { %2201 = vmatpush1.bf16.msra.mxu0 %v4369_v18  ;;  %1913 = vmatprep.subr.bf16.mxu1 %v4253_v0 }
  0x24   :  { %2202 = vmatprep.subr.bf16.mxu0 %v4253_v0 }
  0x26   :  { %1914 = vmatpush1.bf16.msra.mxu1 %v3900_v20  ;;  %v4067_v20 = vld [vmem:[%s5936_s1 + $0x178] sm:$0xff]  }
  0x27   :  { %2203 = vmatpush1.bf16.msra.mxu0 %v4386_v22  ;;  %1915 = vmatprep.subr.bf16.mxu1 %v4253_v0 }
  0x28   :  { %2204 = vmatprep.subr.bf16.mxu0 %v4253_v0 }
  0x2a   :  { %1916 = vmatpush1.bf16.msra.mxu1 %v3902_v23  ;;  %v3976_v23 = vld [vmem:[%s5937_s0 + $0x204] ss:$28 sps:$4 sm:$0xff]  }
  0x2b   :  { %2205 = vmatpush1.bf16.msra.mxu0 %v4397_v24  ;;  %1917 = vmatprep.subr.bf16.mxu1 %v4253_v0 }
  0x2c   :  { %2206 = vmatprep.subr.bf16.mxu0 %v4253_v0 }
  0x2e   :  { %1918 = vmatpush1.bf16.msra.mxu1 %v3904_v25  ;;  %v3979_v25 = vld [vmem:[%s5937_s0 + $0x200] ss:$28 sps:$4 sm:$0xff]  }
  0x2f   :  { %2207 = vmatpush1.bf16.msra.mxu0 %v4408_v26  ;;  %1919 = vmatprep.subr.bf16.mxu1 %v4253_v0 }
  0x30   :  { %2208 = vmatprep.subr.bf16.mxu0 %v4253_v0 }
  0x32   :  { %1920 = vmatpush1.bf16.msra.mxu1 %v3906_v27  ;;  %v3985_v27 = vld [vmem:[%s5937_s0 + $0x230] ss:$28 sps:$4 sm:$0xff]  }
  0x33   :  { %2209 = vmatpush1.bf16.msra.mxu0 %v4419_v28  ;;  %1921 = vmatprep.subr.bf16.mxu1 %v4253_v0 }
  0x34   :  { %2210 = vmatprep.subr.bf16.mxu0 %v4253_v0 }
  0x36   :  { %1922 = vmatpush1.bf16.msra.mxu1 %v3908_v29  ;;  %v3988_v29 = vld [vmem:[%s5937_s0 + $0x26c] ss:$28 sps:$4 sm:$0xff]  }
  0x37   :  { %2211 = vmatpush1.bf16.msra.mxu0 %v4430_v30  ;;  %1923 = vmatprep.subr.bf16.mxu1 %v4253_v0 }
  0x38   :  { %2212 = vmatprep.subr.bf16.mxu0 %v4253_v0 }
  0x3a   :  { %1924 = vmatpush1.bf16.msra.mxu1 %v3910_v31  ;;  %v3992_v31 = vld [vmem:[%s5937_s0 + $0x268] ss:$28 sps:$4 sm:$0xff]  }
  0x3b   :  { %2213 = vmatpush1.bf16.msra.mxu0 %v4441_v32  ;;  %1925 = vmatprep.subr.bf16.mxu1 %v4253_v0 }
  0x3c   :  { %2214 = vmatprep.subr.bf16.mxu0 %v4253_v0 }
  0x3e   :  { %1926 = vmatpush1.bf16.msra.mxu1 %v3912_v33  ;;  %v3994_v33 = vld [vmem:[%s5937_s0 + $0x2a4] ss:$28 sps:$4 sm:$0xff]  }
  0x3f   :  { %2215 = vmatpush1.bf16.msra.mxu0 %v4452_v34  ;;  %3593 = vmatprep.subr.bf16.mxu1 %v4253_v0 }
  0x40   :  { %2473 = vmatprep.subr.bf16.mxu0 %v4253_v0 }
  0x41   :  { %1928 = vmatmul.mubr.bf16.vlgmr.msra.gmra.mrb[0].mxu1 %v3914_v35  ;;  %v3998_v35 = vld [vmem:[%s5937_s0 + $0x2a0] ss:$28 sps:$4 sm:$0xff]  }
  0x42   :  { %2217 = vmatmul.mubr.bf16.vlgmr.msra.gmra.mrb[0].mxu0 %v3917_v36  ;;  %3609 = vmatpush1.bf16.msra.mxu1 %v4282_v2  ;;  %v3952_v2 = vld [vmem:[%s5937_s0 + $0x118] ss:$28 sps:$4 sm:$0xff]   ;;  %v3999_v36 = vld [vmem:[%s5937_s0 + $0x2a8] ss:$28 sps:$4 sm:$0xff]  }
  0x43   :  { %2474 = vmatpush1.bf16.msra.mxu0 %v3920_v37  ;;  %1935 = vmatprep.mubr.bf16.mxu1 %v3921_v38  ;;  %v4001_v37 = vld [vmem:[%s5937_s0 + $0x2dc] ss:$28 sps:$4 sm:$0xff]   ;;  %v4003_v38 = vld [vmem:[%s5937_s0 + $0x2e4] ss:$28 sps:$4 sm:$0xff]  }
  0x44   :  { %2224 = vmatprep.mubr.bf16.mxu0 %v3923_v39  ;;  %2475 = vmatprep.subr.bf16.mxu0 %v4253_v0  ;;  %v4005_v39 = vld [vmem:[%s5937_s0 + $0x2d8] ss:$28 sps:$4 sm:$0xff]  }
  0x45   :  { %3594 = vmatprep.subr.bf16.mxu1 %v4253_v0 }
  0x46   :  { %3610 = vmatpush1.bf16.msra.mxu1 %v4292_v4  ;;  %v3954_v4 = vld [vmem:[%s5937_s0 + $0x154] ss:$28 sps:$4 sm:$0xff]  }
  0x47   :  { %2476 = vmatpush1.bf16.msra.mxu0 %v3927_v40  ;;  %3595 = vmatprep.subr.bf16.mxu1 %v4253_v0  ;;  %v4006_v40 = vld [vmem:[%s5937_s0 + $0x2e0] ss:$28 sps:$4 sm:$0xff]  }
  0x48   :  { %2477 = vmatprep.subr.bf16.mxu0 %v4253_v0 }
  0x49   :  { %1936 = vmatmul.mubr.bf16.gmra.mrb[4].mxu1 %v3925_v41  ;;  %v4008_v41 = vld [vmem:[%s5937_s0 + $0x314] ss:$28 sps:$4 sm:$0xff]  }
  0x4a   :  { %2225 = vmatmul.mubr.bf16.gmra.mrb[4].mxu0 %v3926_v42  ;;  %1943 = vmatprep.mubr.bf16.mxu1 %v3928_v43  ;;  %v4010_v42 = vld [vmem:[%s5937_s0 + $0x31c] ss:$28 sps:$4 sm:$0xff]   ;;  %v4012_v43 = vld [vmem:[%s5937_s0 + $0x310] ss:$28 sps:$4 sm:$0xff]  }
  0x4b   :  { %2232 = vmatprep.mubr.bf16.mxu0 %v3930_v44  ;;  %2478 = vmatpush1.bf16.msra.mxu0 %v3940_v45  ;;  %v4013_v44 = vld [vmem:[%s5937_s0 + $0x318] ss:$28 sps:$4 sm:$0xff]   ;;  %v4014_v45 = vld [vmem:[%s5937_s0 + $0x34c] ss:$28 sps:$4 sm:$0xff]  }
  0x4c   :  { %3611 = vmatpush1.bf16.msra.mxu1 %v4303_v6  ;;  %2479 = vmatprep.subr.bf16.mxu0 %v4253_v0  ;;  %v4020_v6 = vld [vmem:[%s5936_s1 + $0x150] sm:$0xff]  }
  0x4d   :  { %3596 = vmatprep.subr.bf16.mxu1 %v4253_v0 }
  0x4f   :  { %2480 = vmatpush1.bf16.msra.mxu0 %v3947_v46  ;;  %v4016_v46 = vld [vmem:[%s5937_s0 + $0x354] ss:$28 sps:$4 sm:$0xff]  }
  0x50   :  { %2481 = vmatprep.subr.bf16.mxu0 %v4253_v0  ;;  %3612 = vmatpush1.bf16.msra.mxu1 %v4314_v8  ;;  %v4027_v8 = vld [vmem:[%s5936_s1 + $0x158] sm:$0xff]  }
  0x51   :  { %1944 = vmatmul.mubr.bf16.gmra.mrb[8].mxu1 %v3932_v47  ;;  %3597 = vmatprep.subr.bf16.mxu1 %v4253_v0  ;;  %v4018_v47 = vld [vmem:[%s5937_s0 + $0x348] ss:$28 sps:$4 sm:$0xff]  }
  0x52   :  { %2233 = vmatmul.mubr.bf16.gmra.mrb[8].mxu0 %v3933_v48  ;;  %1951 = vmatprep.mubr.bf16.mxu1 %v3934_v49  ;;  %v4019_v48 = vld [vmem:[%s5937_s0 + $0x350] ss:$28 sps:$4 sm:$0xff]   ;;  %v4021_v49 = vld [vmem:[%s5937_s0 + $0x384] ss:$28 sps:$4 sm:$0xff]  }
  0x53   :  { %2240 = vmatprep.mubr.bf16.mxu0 %v3936_v50  ;;  %2482 = vmatpush1.bf16.msra.mxu0 %v3960_v51  ;;  %v4023_v50 = vld [vmem:[%s5937_s0 + $0x38c] ss:$28 sps:$4 sm:$0xff]   ;;  %v4025_v51 = vld [vmem:[%s5937_s0 + $0x380] ss:$28 sps:$4 sm:$0xff]  }
  0x54   :  { %2483 = vmatprep.subr.bf16.mxu0 %v4253_v0  ;;  %3613 = vmatpush1.bf16.msra.mxu1 %v4325_v10  ;;  %v3961_v10 = vld [vmem:[%s5937_s0 + $0x18c] ss:$28 sps:$4 sm:$0xff]  }
  0x55   :  { %3598 = vmatprep.subr.bf16.mxu1 %v4253_v0 }
  0x57   :  { %2484 = vmatpush1.bf16.msra.mxu0 %v3967_v52  ;;  %v4026_v52 = vld [vmem:[%s5937_s0 + $0x388] ss:$28 sps:$4 sm:$0xff]  }
  0x58   :  { %2485 = vmatprep.subr.bf16.mxu0 %v4253_v0  ;;  %3614 = vmatpush1.bf16.msra.mxu1 %v4336_v12  ;;  %v4040_v12 = vld [vmem:[%s5936_s1 + $0x160] sm:$0xff]  }
  0x59   :  { %1952 = vmatmul.mubr.bf16.gmra.mrb[12].mxu1 %v3938_v53  ;;  %3599 = vmatprep.subr.bf16.mxu1 %v4253_v0  ;;  %v4028_v53 = vld [vmem:[%s5937_s0 + $0x3bc] ss:$28 sps:$4 sm:$0xff]  }
  0x5a   :  { %2241 = vmatmul.mubr.bf16.gmra.mrb[12].mxu0 %v3939_v54  ;;  %1959 = vmatprep.mubr.bf16.mxu1 %v3941_v55  ;;  %v4030_v54 = vld [vmem:[%s5937_s0 + $0x3c4] ss:$28 sps:$4 sm:$0xff]  }
  0x5b   :  { %2248 = vmatprep.mubr.bf16.mxu0 %v3943_v56  ;;  %2486 = vmatpush1.bf16.msra.mxu0 %v3980_v57  ;;  %v4759_v55 = vld [vmem:[%s5936_s1 + $0x180] sm:$0xff]   ;;  %v4032_v56 = vld [vmem:[%s5937_s0 + $0x3b8] ss:$28 sps:$4 sm:$0xff]  }
  0x5c   :  { %2487 = vmatprep.subr.bf16.mxu0 %v4253_v0  ;;  %3615 = vmatpush1.bf16.msra.mxu1 %v4347_v14  ;;  %v4047_v14 = vld [vmem:[%s5936_s1 + $0x168] sm:$0xff]   ;;  %v4033_v57 = vld [vmem:[%s5937_s0 + $0x3c0] ss:$28 sps:$4 sm:$0xff]  }
  0x5d   :  { %3600 = vmatprep.subr.bf16.mxu1 %v4253_v0 }
  0x5f   :  { %2488 = vmatpush1.bf16.msra.mxu0 %v3987_v58  ;;  %v4034_v58 = vld [vmem:[%s5937_s0 + $0x3f4] ss:$28 sps:$4 sm:$0xff]  }
  0x60   :  { %2489 = vmatprep.subr.bf16.mxu0 %v4253_v0  ;;  %3616 = vmatpush1.bf16.msra.mxu1 %v4358_v16  ;;  %v3968_v16 = vld [vmem:[%s5937_s0 + $0x1c4] ss:$28 sps:$4 sm:$0xff]  }
  0x61   :  { %1960 = vmatmul.mubr.bf16.gmra.mrb[16].mxu1 %v3945_v59  ;;  %3601 = vmatprep.subr.bf16.mxu1 %v4253_v0  ;;  %v4036_v59 = vld [vmem:[%s5937_s0 + $0x3fc] ss:$28 sps:$4 sm:$0xff]  }
  0x62   :  { %2249 = vmatmul.mubr.bf16.gmra.mrb[16].mxu0 %v3946_v60  ;;  %1967 = vmatprep.mubr.bf16.mxu1 %v3948_v61  ;;  %v4038_v60 = vld [vmem:[%s5937_s0 + $0x3f0] ss:$28 sps:$4 sm:$0xff]   ;;  %v4039_v61 = vld [vmem:[%s5937_s0 + $0x3f8] ss:$28 sps:$4 sm:$0xff]  }
  0x63   :  { %2256 = vmatprep.mubr.bf16.mxu0 %v3950_v62  ;;  %2490 = vmatpush1.bf16.msra.mxu0 %v4000_v63  ;;  %v4041_v62 = vld [vmem:[%s5937_s0 + $0x42c] ss:$28 sps:$4 sm:$0xff]   ;;  %v4043_v63 = vld [vmem:[%s5937_s0 + $0x434] ss:$28 sps:$4 sm:$0xff]  }
  0x64   :  { %2491 = vmatprep.subr.bf16.mxu0 %v4253_v0  ;;  %3617 = vmatpush1.bf16.msra.mxu1 %v4369_v18  ;;  %v4060_v18 = vld [vmem:[%s5936_s1 + $0x170] sm:$0xff]  }
  0x65   :  { %3602 = vmatprep.subr.bf16.mxu1 %v4253_v0 }
  0x67   :  { %2492 = vmatpush1.bf16.msra.mxu0 %v4007_v1  ;;  %v4045_v1 = vld [vmem:[%s5937_s0 + $0x428] ss:$28 sps:$4 sm:$0xff]  }
  0x68   :  { %2493 = vmatprep.subr.bf16.mxu0 %v4253_v0  ;;  %3618 = vmatpush1.bf16.msra.mxu1 %v4386_v22  ;;  %v3974_v22 = vld [vmem:[%s5937_s0 + $0x1fc] ss:$28 sps:$4 sm:$0xff]  }
  0x69   :  { %1968 = vmatmul.mubr.bf16.gmra.mrb[20].mxu1 %v3952_v2  ;;  %3603 = vmatprep.subr.bf16.mxu1 %v4253_v0  ;;  %v4046_v2 = vld [vmem:[%s5937_s0 + $0x430] ss:$28 sps:$4 sm:$0xff]  }
  0x6a   :  { %2257 = vmatmul.mubr.bf16.gmra.mrb[20].mxu0 %v3953_v3  ;;  %1975 = vmatprep.mubr.bf16.mxu1 %v3954_v4  ;;  %v4048_v3 = vld [vmem:[%s5937_s0 + $0x464] ss:$28 sps:$4 sm:$0xff]   ;;  %v4050_v4 = vld [vmem:[%s5937_s0 + $0x46c] ss:$28 sps:$4 sm:$0xff]  }
  0x6b   :  { %2264 = vmatprep.mubr.bf16.mxu0 %v3956_v5  ;;  %2494 = vmatpush1.bf16.msra.mxu0 %v4020_v6  ;;  %v4052_v5 = vld [vmem:[%s5937_s0 + $0x460] ss:$28 sps:$4 sm:$0xff]   ;;  %v4053_v6 = vld [vmem:[%s5937_s0 + $0x468] ss:$28 sps:$4 sm:$0xff]  }
  0x6c   :  { %2495 = vmatprep.subr.bf16.mxu0 %v4253_v0  ;;  %3619 = vmatpush1.bf16.msra.mxu1 %v4397_v24  ;;  %v3978_v24 = vld [vmem:[%s5937_s0 + $0x1f8] ss:$28 sps:$4 sm:$0xff]  }
  0x6d   :  { %3604 = vmatprep.subr.bf16.mxu1 %v4253_v0 }
  0x6f   :  { %2496 = vmatpush1.bf16.msra.mxu0 %v4027_v8  ;;  %v4056_v8 = vld [vmem:[%s5937_s0 + $0x4a4] ss:$28 sps:$4 sm:$0xff]  }
  0x70   :  { %2497 = vmatprep.subr.bf16.mxu0 %v4253_v0  ;;  %3620 = vmatpush1.bf16.msra.mxu1 %v4408_v26  ;;  %v3981_v26 = vld [vmem:[%s5937_s0 + $0x234] ss:$28 sps:$4 sm:$0xff]  }
  0x71   :  { %1976 = vmatmul.mubr.bf16.gmra.mrb[24].mxu1 %v3958_v7  ;;  %3605 = vmatprep.subr.bf16.mxu1 %v4253_v0  ;;  %v4054_v7 = vld [vmem:[%s5937_s0 + $0x49c] ss:$28 sps:$4 sm:$0xff]  }
  0x72   :  { %2265 = vmatmul.mubr.bf16.gmra.mrb[24].mxu0 %v3959_v9  ;;  %1983 = vmatprep.mubr.bf16.mxu1 %v3961_v10  ;;  %v4058_v9 = vld [vmem:[%s5937_s0 + $0x498] ss:$28 sps:$4 sm:$0xff]   ;;  %v4059_v10 = vld [vmem:[%s5937_s0 + $0x4a0] ss:$28 sps:$4 sm:$0xff]  }
  0x73   :  { %2272 = vmatprep.mubr.bf16.mxu0 %v3963_v11  ;;  %2498 = vmatpush1.bf16.msra.mxu0 %v4040_v12  ;;  %v4061_v11 = vld [vmem:[%s5937_s0 + $0x4d4] ss:$28 sps:$4 sm:$0xff]   ;;  %v4063_v12 = vld [vmem:[%s5937_s0 + $0x4dc] ss:$28 sps:$4 sm:$0xff]  }
  0x74   :  { %2499 = vmatprep.subr.bf16.mxu0 %v4253_v0  ;;  %3621 = vmatpush1.bf16.msra.mxu1 %v4419_v28  ;;  %v3986_v28 = vld [vmem:[%s5937_s0 + $0x238] ss:$28 sps:$4 sm:$0xff]  }
  0x75   :  { %3606 = vmatprep.subr.bf16.mxu1 %v4253_v0 }
  0x77   :  { %2500 = vmatpush1.bf16.msra.mxu0 %v4047_v14  ;;  %v4066_v14 = vld [vmem:[%s5937_s0 + $0x4d8] ss:$28 sps:$4 sm:$0xff]  }
  0x78   :  { %2501 = vmatprep.subr.bf16.mxu0 %v4253_v0  ;;  %3622 = vmatpush1.bf16.msra.mxu1 %v4430_v30  ;;  %v3990_v30 = vld [vmem:[%s5937_s0 + $0x274] ss:$28 sps:$4 sm:$0xff]  }
  0x79   :  { %1984 = vmatmul.mubr.bf16.gmra.mrb[28].mxu1 %v3965_v13  ;;  %3607 = vmatprep.subr.bf16.mxu1 %v4253_v0  ;;  %v4065_v13 = vld [vmem:[%s5937_s0 + $0x4d0] ss:$28 sps:$4 sm:$0xff]  }
  0x7a   :  { %2273 = vmatmul.mubr.bf16.gmra.mrb[28].mxu0 %v3966_v15  ;;  %1991 = vmatprep.mubr.bf16.mxu1 %v3968_v16  ;;  %v4068_v15 = vld [vmem:[%s5937_s0 + $0x50c] ss:$28 sps:$4 sm:$0xff]   ;;  %v4070_v16 = vld [vmem:[%s5937_s0 + $0x514] ss:$28 sps:$4 sm:$0xff]  }
  0x7b   :  { %2280 = vmatprep.mubr.bf16.mxu0 %v3970_v17  ;;  %2502 = vmatpush1.bf16.msra.mxu0 %v4060_v18  ;;  %v4072_v17 = vld [vmem:[%s5937_s0 + $0x508] ss:$28 sps:$4 sm:$0xff]   ;;  %v4073_v18 = vld [vmem:[%s5937_s0 + $0x510] ss:$28 sps:$4 sm:$0xff]  }
  0x7c   :  { %2503 = vmatprep.subr.bf16.mxu0 %v4253_v0  ;;  %3623 = vmatpush1.bf16.msra.mxu1 %v4441_v32  ;;  %v3993_v32 = vld [vmem:[%s5937_s0 + $0x270] ss:$28 sps:$4 sm:$0xff]  }
  0x7d   :  { %3608 = vmatprep.subr.bf16.mxu1 %v4253_v0  ;;  %v3983_v0 = vld [vmem:[%s5937_s0 + $0x23c] ss:$28 sps:$4 sm:$0xff]  }
  0x7f   :  { %2504 = vmatpush1.bf16.msra.mxu0 %v4067_v20  ;;  %v4078_v20 = vld [vmem:[%s5937_s0 + $0x14] ss:$28 sps:$4 sm:$0xff]  }
  0x80   :  { %3624 = vmatpush1.bf16.msra.mxu1 %v4452_v34  ;;  %v3996_v34 = vld [vmem:[%s5937_s0 + $0x2ac] ss:$28 sps:$4 sm:$0xff]  }
  0x81   :  { %1992 = vmatmul.mubr.bf16.gmra.mrb[32].mxu1 %v3972_v19  ;;  %3525 = vmatprep.subr.bf16.mxu1 %v4759_v55  ;;  %v4074_v19 = vld [vmem:[%s5937_s0 + $0x544] ss:$28 sps:$4 sm:$0xff]  }
  0x82   :  { %2281 = vmatmul.mubr.bf16.gmra.mrb[32].mxu0 %v3973_v21  ;;  %1999 = vmatprep.mubr.bf16.mxu1 %v3974_v22  ;;  %v4079_v21 = vld [vmem:[%s5937_s0 + $0x540] ss:$28 sps:$4 sm:$0xff]   ;;  %v4076_v22 = vld [vmem:[%s5937_s0 + $0x10] ss:$28 sps:$4 sm:$0xff]  }
  0x83   :  { %2288 = vmatprep.mubr.bf16.mxu0 %v3976_v23  ;;  %v4080_v23 = vld [vmem:[%s5937_s0 + $0x57c] ss:$28 sps:$4 sm:$0xff]  }
  0x89   :  { %2000 = vmatmul.mubr.bf16.gmra.mrb[36].mxu1 %v3978_v24  ;;  %v4082_v24 = vld [vmem:[%s5937_s0 + $0x4c] ss:$28 sps:$4 sm:$0xff]  }
  0x8a   :  { %2289 = vmatmul.mubr.bf16.gmra.mrb[36].mxu0 %v3979_v25  ;;  %2007 = vmatprep.mubr.bf16.mxu1 %v3981_v26  ;;  %v4084_v25 = vld [vmem:[%s5937_s0 + $0x578] ss:$28 sps:$4 sm:$0xff]   ;;  %v4085_v26 = vld [vmem:[%s5937_s0 + $0x48] ss:$28 sps:$4 sm:$0xff]  }
  0x8b   :  { %2296 = vmatprep.mubr.bf16.mxu0 %v3983_v0  ;;  %v4086_v0 = vld [vmem:[%s5937_s0 + $0x5b4] ss:$28 sps:$4 sm:$0xff]  }
  0x91   :  { %2008 = vmatmul.mubr.bf16.gmra.mrb[40].mxu1 %v3985_v27  ;;  %v4088_v27 = vld [vmem:[%s5937_s0 + $0x84] ss:$28 sps:$4 sm:$0xff]  }
  0x92   :  { %2297 = vmatmul.mubr.bf16.gmra.mrb[40].mxu0 %v3986_v28  ;;  %2015 = vmatprep.mubr.bf16.mxu1 %v3988_v29  ;;  %v4090_v28 = vld [vmem:[%s5937_s0 + $0x5b0] ss:$28 sps:$4 sm:$0xff]   ;;  %v4091_v29 = vld [vmem:[%s5937_s0 + $0x80] ss:$28 sps:$4 sm:$0xff]  }
  0x93   :  { %2304 = vmatprep.mubr.bf16.mxu0 %v3990_v30  ;;  %v4092_v30 = vld [vmem:[%s5937_s0 + $0x5ec] ss:$28 sps:$4 sm:$0xff]  }
  0x99   :  { %2016 = vmatmul.mubr.bf16.gmra.mrb[44].mxu1 %v3992_v31  ;;  %v4094_v31 = vld [vmem:[%s5937_s0 + $0xbc] ss:$28 sps:$4 sm:$0xff]  }
  0x9a   :  { %2305 = vmatmul.mubr.bf16.gmra.mrb[44].mxu0 %v3993_v32  ;;  %2023 = vmatprep.mubr.bf16.mxu1 %v3994_v33 }
  0x9b   :  { %2312 = vmatprep.mubr.bf16.mxu0 %v3996_v34  ;;  %v4096_v34 = vld [vmem:[%s5937_s0 + $0x5e8] ss:$28 sps:$4 sm:$0xff]  }
  0xa1   :  { %2024 = vmatmul.mubr.bf16.gmra.mrb[48].mxu1 %v3998_v35 }
  0xa2   :  { %2313 = vmatmul.mubr.bf16.gmra.mrb[48].mxu0 %v3999_v36  ;;  %2031 = vmatprep.mubr.bf16.mxu1 %v4001_v37  ;;  %v4097_v36 = vld [vmem:[%s5937_s0 + $0xb8] ss:$28 sps:$4 sm:$0xff]   ;;  %v4098_v37 = vld [vmem:[%s5937_s0 + $0x624] ss:$28 sps:$4 sm:$0xff]  }
  0xa3   :  { %2320 = vmatprep.mubr.bf16.mxu0 %v4003_v38 }
  0xa9   :  { %2032 = vmatmul.mubr.bf16.gmra.mrb[52].mxu1 %v4005_v39  ;;  %v4100_v39 = vld [vmem:[%s5937_s0 + $0xf4] ss:$28 sps:$4 sm:$0xff]  }
  0xaa   :  { %2321 = vmatmul.mubr.bf16.gmra.mrb[52].mxu0 %v4006_v40  ;;  %2039 = vmatprep.mubr.bf16.mxu1 %v4008_v41 }
  0xab   :  { %2328 = vmatprep.mubr.bf16.mxu0 %v4010_v42  ;;  %v4102_v42 = vld [vmem:[%s5937_s0 + $0x620] ss:$28 sps:$4 sm:$0xff]  }
  0xb1   :  { %2040 = vmatmul.mubr.bf16.gmra.mrb[56].mxu1 %v4012_v43 }
  0xb2   :  { %2329 = vmatmul.mubr.bf16.gmra.mrb[56].mxu0 %v4013_v44  ;;  %2047 = vmatprep.mubr.bf16.mxu1 %v4014_v45  ;;  %v4103_v44 = vld [vmem:[%s5937_s0 + $0xf0] ss:$28 sps:$4 sm:$0xff]   ;;  %v4104_v45 = vld [vmem:[%s5937_s0 + $0x65c] ss:$28 sps:$4 sm:$0xff]  }
  0xb3   :  { %2336 = vmatprep.mubr.bf16.mxu0 %v4016_v46 }
  0xb9   :  { %2048 = vmatmul.mubr.bf16.gmra.mrb[60].mxu1 %v4018_v47  ;;  %v4106_v47 = vld [vmem:[%s5937_s0 + $0x12c] ss:$28 sps:$4 sm:$0xff]  }
  0xba   :  { %2337 = vmatmul.mubr.bf16.gmra.mrb[60].mxu0 %v4019_v48  ;;  %2055 = vmatprep.mubr.bf16.mxu1 %v4021_v49 }
  0xbb   :  { %2344 = vmatprep.mubr.bf16.mxu0 %v4023_v50  ;;  %v4108_v50 = vld [vmem:[%s5937_s0 + $0x658] ss:$28 sps:$4 sm:$0xff]  }
  0xc1   :  { %2056 = vmatmul.mubr.bf16.gmra.mrb[64].mxu1 %v4025_v51 }
  0xc2   :  { %2345 = vmatmul.mubr.bf16.gmra.mrb[64].mxu0 %v4026_v52  ;;  %2063 = vmatprep.mubr.bf16.mxu1 %v4028_v53  ;;  %v4109_v52 = vld [vmem:[%s5937_s0 + $0x128] ss:$28 sps:$4 sm:$0xff]   ;;  %v4110_v53 = vld [vmem:[%s5937_s0 + $0x694] ss:$28 sps:$4 sm:$0xff]  }
  0xc3   :  { %2352 = vmatprep.mubr.bf16.mxu0 %v4030_v54 }
  0xc9   :  { %2064 = vmatmul.mubr.bf16.gmra.mrb[68].mxu1 %v4032_v56  ;;  %v4112_v56 = vld [vmem:[%s5937_s0 + $0x164] ss:$28 sps:$4 sm:$0xff]  }
  0xca   :  { %2353 = vmatmul.mubr.bf16.gmra.mrb[68].mxu0 %v4033_v57  ;;  %2071 = vmatprep.mubr.bf16.mxu1 %v4034_v58 }
  0xcb   :  { %2360 = vmatprep.mubr.bf16.mxu0 %v4036_v59  ;;  %v4114_v59 = vld [vmem:[%s5937_s0 + $0x690] ss:$28 sps:$4 sm:$0xff]  }
  0xd1   :  { %2072 = vmatmul.mubr.bf16.gmra.mrb[72].mxu1 %v4038_v60 }
  0xd2   :  { %2361 = vmatmul.mubr.bf16.gmra.mrb[72].mxu0 %v4039_v61  ;;  %2079 = vmatprep.mubr.bf16.mxu1 %v4041_v62  ;;  %v4115_v61 = vld [vmem:[%s5937_s0 + $0x160] ss:$28 sps:$4 sm:$0xff]   ;;  %v4116_v62 = vld [vmem:[%s5937_s0 + $0x6cc] ss:$28 sps:$4 sm:$0xff]  }
  0xd3   :  { %2368 = vmatprep.mubr.bf16.mxu0 %v4043_v63 }
  0xd9   :  { %2080 = vmatmul.mubr.bf16.gmra.mrb[76].mxu1 %v4045_v1  ;;  %v4118_v1 = vld [vmem:[%s5937_s0 + $0x19c] ss:$28 sps:$4 sm:$0xff]  }
  0xda   :  { %2369 = vmatmul.mubr.bf16.gmra.mrb[76].mxu0 %v4046_v2  ;;  %2087 = vmatprep.mubr.bf16.mxu1 %v4048_v3 }
  0xdb   :  { %2376 = vmatprep.mubr.bf16.mxu0 %v4050_v4  ;;  %v4120_v4 = vld [vmem:[%s5937_s0 + $0x6c8] ss:$28 sps:$4 sm:$0xff]  }
  0xe1   :  { %2088 = vmatmul.mubr.bf16.gmra.mrb[80].mxu1 %v4052_v5 }
  0xe2   :  { %2377 = vmatmul.mubr.bf16.gmra.mrb[80].mxu0 %v4053_v6  ;;  %2095 = vmatprep.mubr.bf16.mxu1 %v4054_v7  ;;  %v4121_v6 = vld [vmem:[%s5937_s0 + $0x198] ss:$28 sps:$4 sm:$0xff]   ;;  %v4124_v7 = vld [vmem:[%s5937_s0 + $0x54c] ss:$28 sps:$4 sm:$0xff]  }
  0xe3   :  { %2384 = vmatprep.mubr.bf16.mxu0 %v4056_v8 }
  0xe9   :  { %2096 = vmatmul.mubr.bf16.gmra.mrb[84].mxu1 %v4058_v9  ;;  %v4125_v9 = vld [vmem:[%s5937_s0 + $0x1d4] ss:$28 sps:$4 sm:$0xff]  }
  0xea   :  { %2385 = vmatmul.mubr.bf16.gmra.mrb[84].mxu0 %v4059_v10  ;;  %2103 = vmatprep.mubr.bf16.mxu1 %v4061_v11 }
  0xeb   :  { %2392 = vmatprep.mubr.bf16.mxu0 %v4063_v12  ;;  %v4122_v12 = vld [vmem:[%s5937_s0 + $0x548] ss:$28 sps:$4 sm:$0xff]  }
  0xf1   :  { %2104 = vmatmul.mubr.bf16.gmra.mrb[88].mxu1 %v4065_v13 }
  0xf2   :  { %2393 = vmatmul.mubr.bf16.gmra.mrb[88].mxu0 %v4066_v14  ;;  %2111 = vmatprep.mubr.bf16.mxu1 %v4068_v15  ;;  %v4127_v14 = vld [vmem:[%s5937_s0 + $0x1d0] ss:$28 sps:$4 sm:$0xff]  }
  0xf3   :  { %2400 = vmatprep.mubr.bf16.mxu0 %v4070_v16  ;;  %v4129_v16 = vld [vmem:[%s5937_s0 + $0x584] ss:$28 sps:$4 sm:$0xff]  }
  0xf9   :  { %2112 = vmatmul.mubr.bf16.gmra.mrb[92].mxu1 %v4072_v17  ;;  %v4131_v17 = vld [vmem:[%s5937_s0 + $0x20c] ss:$28 sps:$4 sm:$0xff]  }
  0xfa   :  { %2401 = vmatmul.mubr.bf16.gmra.mrb[92].mxu0 %v4073_v18  ;;  %2119 = vmatprep.mubr.bf16.mxu1 %v4074_v19  ;;  %v4153_v18 = vld [vmem:[%s5936_s1 + $0x188] sm:$0xff]  }
  0xfb   :  { %2505 = vmatprep.mubr.bf16.mxu0 %v4078_v20 }
 0x101   :  { %2120 = vmatmul.mubr.bf16.gmra.mrb[96].mxu1 %v4079_v21  ;;  %v4133_v21 = vld [vmem:[%s5937_s0 + $0x580] ss:$28 sps:$4 sm:$0xff]  }
 0x102   :  { %2506 = vmatmul.mubr.bf16.vlgmr.msra.gmra.mrb[0].mxu0 %v4076_v22  ;;  %2127 = vmatprep.mubr.bf16.mxu1 %v4080_v23  ;;  %v4134_v23 = vld [vmem:[%s5937_s0 + $0x208] ss:$28 sps:$4 sm:$0xff]  }
 0x103   :  { %2513 = vmatprep.mubr.bf16.mxu0 %v4082_v24 }
 0x109   :  { %2128 = vmatmul.mubr.bf16.gmra.mrb[100].mxu1 %v4084_v25  ;;  %v4137_v25 = vld [vmem:[%s5937_s0 + $0x244] ss:$28 sps:$4 sm:$0xff]  }
 0x10a   :  { %2514 = vmatmul.mubr.bf16.gmra.mrb[4].mxu0 %v4085_v26  ;;  %2135 = vmatprep.mubr.bf16.mxu1 %v4086_v0 }
 0x10b   :  { %2521 = vmatprep.mubr.bf16.mxu0 %v4088_v27  ;;  %v4139_v27 = vld [vmem:[%s5937_s0 + $0x5b8] ss:$28 sps:$4 sm:$0xff]  }
 0x111   :  { %2136 = vmatmul.mubr.bf16.gmra.mrb[104].mxu1 %v4090_v28 }
 0x112   :  { %2522 = vmatmul.mubr.bf16.gmra.mrb[8].mxu0 %v4091_v29  ;;  %2143 = vmatprep.mubr.bf16.mxu1 %v4092_v30  ;;  %v4140_v29 = vld [vmem:[%s5937_s0 + $0x240] ss:$28 sps:$4 sm:$0xff]   ;;  %v4141_v30 = vld [vmem:[%s5937_s0 + $0x5f4] ss:$28 sps:$4 sm:$0xff]  }
 0x113   :  { %2529 = vmatprep.mubr.bf16.mxu0 %v4094_v31 }
 0x114   :  { %v4882_v32 = vpop.f32.mrb[0].mxu1 }
 0x115   :  { %v1931_v33 = vpop.f32.mrb[1].mxu1 }
 0x116   :  { %v4887_v35 = vpop.f32.mrb[2].mxu1  ;;  %v4143_v33 = vld [vmem:[%s5937_s0 + $0x27c] ss:$28 sps:$4 sm:$0xff]  }
 0x117   :  { %v1934_v38 = vpop.f32.mrb[3].mxu1 }
 0x119   :  { %2144 = vmatmul.mubr.bf16.gmra.mrb[108].mxu1 %v4096_v34 }
 0x11a   :  { %2530 = vmatmul.mubr.bf16.gmra.mrb[12].mxu0 %v4097_v36  ;;  %2151 = vmatprep.mubr.bf16.mxu1 %v4098_v37  ;;  %v4145_v37 = vld [vmem:[%s5937_s0 + $0x5f0] ss:$28 sps:$4 sm:$0xff]  }
 0x11b   :  { %2537 = vmatprep.mubr.bf16.mxu0 %v4100_v39  ;;  %v4146_v39 = vld [vmem:[%s5937_s0 + $0x278] ss:$28 sps:$4 sm:$0xff]  }
 0x11c   :  { %v4898_v40 = vpop.f32.mrb[4].mxu1 }
 0x11d   :  { %v1939_v41 = vpop.f32.mrb[5].mxu1 }
 0x11e   :  { %v4903_v43 = vpop.f32.mrb[6].mxu1  ;;  %v4147_v41 = vld [vmem:[%s5937_s0 + $0x62c] ss:$28 sps:$4 sm:$0xff]  }
 0x11f   :  { %v1942_v46 = vpop.f32.mrb[7].mxu1 }
 0x121   :  { %2152 = vmatmul.mubr.bf16.gmra.mrb[112].mxu1 %v4102_v42 }
 0x122   :  { %2538 = vmatmul.mubr.bf16.gmra.mrb[16].mxu0 %v4103_v44  ;;  %2159 = vmatprep.mubr.bf16.mxu1 %v4104_v45  ;;  %v4149_v44 = vld [vmem:[%s5937_s0 + $0x2b4] ss:$28 sps:$4 sm:$0xff]  }
 0x123   :  { %2545 = vmatprep.mubr.bf16.mxu0 %v4106_v47  ;;  %v4151_v47 = vld [vmem:[%s5937_s0 + $0x628] ss:$28 sps:$4 sm:$0xff]  }
 0x124   :  { %v4914_v48 = vpop.f32.mrb[8].mxu1 }
 0x125   :  { %v1947_v49 = vpop.f32.mrb[9].mxu1 }
 0x126   :  { %v4919_v51 = vpop.f32.mrb[10].mxu1 }
 0x127   :  { %v1950_v54 = vpop.f32.mrb[11].mxu1 }
 0x128   :  { %v4156_v54 = vld [vmem:[%s5937_s0 + $0x2ec] ss:$28 sps:$4 sm:$0xff]  }
 0x129   :  { %2160 = vmatmul.mubr.bf16.gmra.mrb[116].mxu1 %v4108_v50  ;;  %v4152_v50 = vld [vmem:[%s5937_s0 + $0x2b0] ss:$28 sps:$4 sm:$0xff]  }
 0x12a   :  { %2546 = vmatmul.mubr.bf16.gmra.mrb[20].mxu0 %v4109_v52  ;;  %2167 = vmatprep.mubr.bf16.mxu1 %v4110_v53  ;;  %v4154_v52 = vld [vmem:[%s5937_s0 + $0x664] ss:$28 sps:$4 sm:$0xff]  }
 0x12b   :  { %2553 = vmatprep.mubr.bf16.mxu0 %v4112_v56 }
 0x12c   :  { %v4930_v57 = vpop.f32.mrb[12].mxu1 }
 0x12d   :  { %v1955_v58 = vpop.f32.mrb[13].mxu1 }
 0x12e   :  { %v4935_v60 = vpop.f32.mrb[14].mxu1 }
 0x12f   :  { %v1958_v63 = vpop.f32.mrb[15].mxu1 }
 0x130   :  { %v4160_v63 = vld [vmem:[%s5937_s0 + $0x69c] ss:$28 sps:$4 sm:$0xff]  }
 0x131   :  { %2168 = vmatmul.mubr.bf16.gmra.mrb[120].mxu1 %v4114_v59  ;;  %v4158_v59 = vld [vmem:[%s5937_s0 + $0x660] ss:$28 sps:$4 sm:$0xff]  }
 0x132   :  { %2554 = vmatmul.mubr.bf16.gmra.mrb[24].mxu0 %v4115_v61  ;;  %2175 = vmatprep.mubr.bf16.mxu1 %v4116_v62  ;;  %v4159_v62 = vld [vmem:[%s5937_s0 + $0x2e8] ss:$28 sps:$4 sm:$0xff]  }
 0x133   :  { %2561 = vmatprep.mubr.bf16.mxu0 %v4118_v1 }
 0x134   :  { %v4946_v2 = vpop.f32.mrb[16].mxu1 }
 0x135   :  { %v1963_v3 = vpop.f32.mrb[17].mxu1 }
 0x136   :  { %v4951_v5 = vpop.f32.mrb[18].mxu1  ;;  %v4162_v3 = vld [vmem:[%s5937_s0 + $0x324] ss:$28 sps:$4 sm:$0xff]  }
 0x137   :  { %v1966_v8 = vpop.f32.mrb[19].mxu1 }
 0x139   :  { %2176 = vmatmul.mubr.bf16.gmra.mrb[124].mxu1 %v4120_v4 }
 0x13a   :  { %2562 = vmatmul.mubr.bf16.gmra.mrb[28].mxu0 %v4121_v6  ;;  %2408 = vmatprep.mubr.bf16.mxu1 %v4124_v7  ;;  %v4164_v7 = vld [vmem:[%s5937_s0 + $0x698] ss:$28 sps:$4 sm:$0xff]  }
 0x13b   :  { %2569 = vmatprep.mubr.bf16.mxu0 %v4125_v9  ;;  %v4165_v9 = vld [vmem:[%s5937_s0 + $0x320] ss:$28 sps:$4 sm:$0xff]  }
 0x13c   :  { %v4962_v10 = vpop.f32.mrb[20].mxu1 }
 0x13d   :  { %v1971_v11 = vpop.f32.mrb[21].mxu1 }
 0x13e   :  { %v4967_v13 = vpop.f32.mrb[22].mxu1  ;;  %v4166_v11 = vld [vmem:[%s5937_s0 + $0x6d4] ss:$28 sps:$4 sm:$0xff]  }
 0x13f   :  { %v1974_v15 = vpop.f32.mrb[23].mxu1 }
 0x141   :  { %2409 = vmatmul.mubr.bf16.vlgmr.msra.gmra.mrb[96].mxu1 %v4122_v12 }
 0x142   :  { %2570 = vmatmul.mubr.bf16.gmra.mrb[32].mxu0 %v4127_v14  ;;  %3526 = vmatpush3.bf16.msra.mxu1 %v4759_v55  ;;  %v4135_v55 = vld [vmem:[%s5937_s0 + $0x5bc] ss:$28 sps:$4 sm:$0xff]  }
 0x143   :  { %2416 = vmatprep.mubr.bf16.mxu1 %v4129_v16  ;;  %2577 = vmatprep.mubr.bf16.mxu0 %v4131_v17  ;;  %v4168_v14 = vld [vmem:[%s5937_s0 + $0x35c] ss:$28 sps:$4 sm:$0xff]   ;;  %v4170_v17 = vld [vmem:[%s5937_s0 + $0x6d0] ss:$28 sps:$4 sm:$0xff]  }
 0x144   :  { %v4982_v19 = vpop.f32.mrb[24].mxu1  ;;  %3527 = vmatprep.subr.bf16.mxu1 %v4153_v18 }
 0x145   :  { %v1979_v20 = vpop.f32.mrb[25].mxu1 }
 0x146   :  { %v4987_v22 = vpop.f32.mrb[26].mxu1  ;;  %3528 = vmatpush3.bf16.msra.mxu1 %v4153_v18  ;;  %v4171_v20 = vld [vmem:[%s5937_s0 + $0x358] ss:$28 sps:$4 sm:$0xff]  }
 0x147   :  { %v1982_v24 = vpop.f32.mrb[27].mxu1 }
 0x149   :  { %2417 = vmatmul.mubr.bf16.gmra.mrb[100].mxu1 %v4133_v21  ;;  %v4174_v21 = vld [vmem:[%s5937_s0 + $0x18] ss:$28 sps:$4 sm:$0xff]  }
 0x14a   :  { %2578 = vmatmul.mubr.bf16.gmra.mrb[36].mxu0 %v4134_v23  ;;  %2424 = vmatprep.mubr.bf16.mxu1 %v4135_v55  ;;  %v4172_v55 = vld [vmem:[%s5937_s0 + $0x394] ss:$28 sps:$4 sm:$0xff]  }
 0x14b   :  { %2585 = vmatprep.mubr.bf16.mxu0 %v4137_v25 }
 0x14c   :  { %v4998_v26 = vpop.f32.mrb[28].mxu1 }
 0x14d   :  { %v1987_v0 = vpop.f32.mrb[29].mxu1 }
 0x14e   :  { %v5003_v28 = vpop.f32.mrb[30].mxu1  ;;  %v4176_v0 = vld [vmem:[%s5937_s0 + $0x50] ss:$28 sps:$4 sm:$0xff]  }
 0x14f   :  { %v1990_v31 = vpop.f32.mrb[31].mxu1 }
 0x151   :  { %2425 = vmatmul.mubr.bf16.gmra.mrb[104].mxu1 %v4139_v27 }
 0x152   :  { %2586 = vmatmul.mubr.bf16.gmra.mrb[40].mxu0 %v4140_v29  ;;  %2432 = vmatprep.mubr.bf16.mxu1 %v4141_v30  ;;  %v4175_v29 = vld [vmem:[%s5937_s0 + $0x390] ss:$28 sps:$4 sm:$0xff]   ;;  %v4179_v30 = vld [vmem:[%s5937_s0 + $0x88] ss:$28 sps:$4 sm:$0xff]  }
 0x153   :  { %2593 = vmatprep.mubr.bf16.mxu0 %v4143_v33  ;;  %v4177_v33 = vld [vmem:[%s5937_s0 + $0x3cc] ss:$28 sps:$4 sm:$0xff]  }
 0x154   :  { %v5014_v34 = vpop.f32.mrb[32].mxu1 }
 0x155   :  { %v1995_v36 = vpop.f32.mrb[33].mxu1 }
 0x156   :  { %v5019_v38 = vpop.f32.mrb[34].mxu1 }
 0x157   :  { %v1998_v42 = vpop.f32.mrb[35].mxu1 }
 0x158   :  { %v4180_v42 = vld [vmem:[%s5937_s0 + $0x3c8] ss:$28 sps:$4 sm:$0xff]  }
 0x159   :  { %2433 = vmatmul.mubr.bf16.gmra.mrb[108].mxu1 %v4145_v37 }
 0x15a   :  { %2594 = vmatmul.mubr.bf16.gmra.mrb[44].mxu0 %v4146_v39  ;;  %2440 = vmatprep.mubr.bf16.mxu1 %v4147_v41  ;;  %v4181_v39 = vld [vmem:[%s5937_s0 + $0xc0] ss:$28 sps:$4 sm:$0xff]  }
 0x15b   :  { %2601 = vmatprep.mubr.bf16.mxu0 %v4149_v44  ;;  %v4184_v44 = vld [vmem:[%s5937_s0 + $0xf8] ss:$28 sps:$4 sm:$0xff]  }
 0x15c   :  { %v5030_v45 = vpop.f32.mrb[36].mxu1 }
 0x15d   :  { %v2003_v46 = vpop.f32.mrb[37].mxu1 }
 0x15e   :  { %v5035_v49 = vpop.f32.mrb[38].mxu1 }
 0x15f   :  { %v2006_v53 = vpop.f32.mrb[39].mxu1 }
 0x160   :  { %v4186_v53 = vld [vmem:[%s5937_s0 + $0x130] ss:$28 sps:$4 sm:$0xff]  }
 0x161   :  { %2441 = vmatmul.mubr.bf16.gmra.mrb[112].mxu1 %v4151_v47  ;;  %v4182_v47 = vld [vmem:[%s5937_s0 + $0x404] ss:$28 sps:$4 sm:$0xff]  }
 0x162   :  { %2602 = vmatmul.mubr.bf16.gmra.mrb[48].mxu0 %v4152_v50  ;;  %2448 = vmatprep.mubr.bf16.mxu1 %v4154_v52 }
 0x163   :  { %2609 = vmatprep.mubr.bf16.mxu0 %v4156_v54 }
 0x164   :  { %v5046_v56 = vpop.f32.mrb[40].mxu1 }
 0x165   :  { %v2011_v58 = vpop.f32.mrb[41].mxu1 }
 0x166   :  { %v5051_v61 = vpop.f32.mrb[42].mxu1  ;;  %v4185_v58 = vld [vmem:[%s5937_s0 + $0x400] ss:$28 sps:$4 sm:$0xff]  }
 0x167   :  { %v2014_v1 = vpop.f32.mrb[43].mxu1 }
 0x169   :  { %2449 = vmatmul.mubr.bf16.gmra.mrb[116].mxu1 %v4158_v59  ;;  %v4189_v59 = vld [vmem:[%s5937_s0 + $0x168] ss:$28 sps:$4 sm:$0xff]  }
 0x16a   :  { %2610 = vmatmul.mubr.bf16.gmra.mrb[52].mxu0 %v4159_v62  ;;  %2456 = vmatprep.mubr.bf16.mxu1 %v4160_v63  ;;  %v4187_v63 = vld [vmem:[%s5937_s0 + $0x43c] ss:$28 sps:$4 sm:$0xff]  }
 0x16b   :  { %2617 = vmatprep.mubr.bf16.mxu0 %v4162_v3 }
 0x16c   :  { %v5062_v4 = vpop.f32.mrb[44].mxu1 }
 0x16d   :  { %v2019_v6 = vpop.f32.mrb[45].mxu1 }
 0x16e   :  { %v5067_v8 = vpop.f32.mrb[46].mxu1  ;;  %v4191_v6 = vld [vmem:[%s5937_s0 + $0x1a0] ss:$28 sps:$4 sm:$0xff]  }
 0x16f   :  { %v2022_v12 = vpop.f32.mrb[47].mxu1 }
 0x171   :  { %2457 = vmatmul.mubr.bf16.gmra.mrb[120].mxu1 %v4164_v7 }
 0x172   :  { %2618 = vmatmul.mubr.bf16.gmra.mrb[56].mxu0 %v4165_v9  ;;  %2464 = vmatprep.mubr.bf16.mxu1 %v4166_v11  ;;  %v4190_v9 = vld [vmem:[%s5937_s0 + $0x438] ss:$28 sps:$4 sm:$0xff]  }
 0x173   :  { %2625 = vmatprep.mubr.bf16.mxu0 %v4168_v14  ;;  %v4194_v11 = vld [vmem:[%s5937_s0 + $0x1d8] ss:$28 sps:$4 sm:$0xff]  }
 0x174   :  { %v5078_v15 = vpop.f32.mrb[48].mxu1  ;;  %v4192_v14 = vld [vmem:[%s5937_s0 + $0x474] ss:$28 sps:$4 sm:$0xff]  }
 0x175   :  { %v2027_v16 = vpop.f32.mrb[49].mxu1 }
 0x176   :  { %v5083_v18 = vpop.f32.mrb[50].mxu1 }
 0x177   :  { %v2030_v23 = vpop.f32.mrb[51].mxu1 }
 0x178   :  { %v4195_v23 = vld [vmem:[%s5937_s0 + $0x470] ss:$28 sps:$4 sm:$0xff]  }
 0x179   :  { %2465 = vmatmul.mubr.bf16.gmra.mrb[124].mxu1 %v4170_v17 }
 0x17a   :  { %2626 = vmatmul.mubr.bf16.gmra.mrb[60].mxu0 %v4171_v20  ;;  %3529 = vmatprep.mubr.msk.bf16.mxu1 %vm1798_vm0, %v4174_v21  ;;  %v4196_v20 = vld [vmem:[%s5937_s0 + $0x210] ss:$28 sps:$4 sm:$0xff]  }
 0x17b   :  { %2633 = vmatprep.mubr.bf16.mxu0 %v4172_v55  ;;  %v4199_v55 = vld [vmem:[%s5937_s0 + $0x248] ss:$28 sps:$4 sm:$0xff]  }
 0x17c   :  { %v5095_v24 = vpop.f32.mrb[52].mxu1 }
 0x17d   :  { %v2035_v25 = vpop.f32.mrb[53].mxu1 }
 0x17e   :  { %v5100_v27 = vpop.f32.mrb[54].mxu1 }
 0x17f   :  { %v2038_v31 = vpop.f32.mrb[55].mxu1 }
 0x180   :  { %v4201_v31 = vld [vmem:[%s5937_s0 + $0x280] ss:$28 sps:$4 sm:$0xff]  }
 0x181   :  { %3530 = vmatmul.mubr.msk.bf16.vlgmr.msra.gmra.mrb[128].mxu1 %vm1798_vm0, %v4176_v0  ;;  %v4197_v0 = vld [vmem:[%s5937_s0 + $0x4ac] ss:$28 sps:$4 sm:$0xff]  }
 0x182   :  { %2634 = vmatmul.mubr.bf16.gmra.mrb[64].mxu0 %v4175_v29  ;;  %3533 = vmatprep.mubr.msk.bf16.mxu1 %vm1798_vm0, %v4179_v30 }
 0x183   :  { %2641 = vmatprep.mubr.bf16.mxu0 %v4177_v33 }
 0x184   :  { %v5113_v36 = vpop.f32.mrb[56].mxu1 }
 0x185   :  { %v2043_v37 = vpop.f32.mrb[57].mxu1 }
 0x186   :  { %v5118_v41 = vpop.f32.mrb[58].mxu1  ;;  %v4200_v37 = vld [vmem:[%s5937_s0 + $0x4a8] ss:$28 sps:$4 sm:$0xff]  }
 0x187   :  { %v2046_v46 = vpop.f32.mrb[59].mxu1 }
 0x189   :  { %3534 = vmatmul.mubr.msk.bf16.gmra.mrb[132].mxu1 %vm1798_vm0, %v4181_v39  ;;  %v4204_v39 = vld [vmem:[%s5937_s0 + $0x2b8] ss:$28 sps:$4 sm:$0xff]  }
 0x18a   :  { %2642 = vmatmul.mubr.bf16.gmra.mrb[68].mxu0 %v4180_v42  ;;  %3537 = vmatprep.mubr.msk.bf16.mxu1 %vm1798_vm0, %v4184_v44  ;;  %v4202_v44 = vld [vmem:[%s5937_s0 + $0x4e4] ss:$28 sps:$4 sm:$0xff]  }
 0x18b   :  { %2649 = vmatprep.mubr.bf16.mxu0 %v4182_v47 }
 0x18c   :  { %v5131_v50 = vpop.f32.mrb[60].mxu1 }
 0x18d   :  { %v2051_v52 = vpop.f32.mrb[61].mxu1 }
 0x18e   :  { %v5136_v54 = vpop.f32.mrb[62].mxu1  ;;  %v4206_v52 = vld [vmem:[%s5937_s0 + $0x2f0] ss:$28 sps:$4 sm:$0xff]  }
 0x18f   :  { %v2054_v62 = vpop.f32.mrb[63].mxu1 }
 0x191   :  { %3538 = vmatmul.mubr.msk.bf16.gmra.mrb[136].mxu1 %vm1798_vm0, %v4186_v53 }
 0x192   :  { %2650 = vmatmul.mubr.bf16.gmra.mrb[72].mxu0 %v4185_v58  ;;  %3541 = vmatprep.mubr.msk.bf16.mxu1 %vm1798_vm0, %v4189_v59  ;;  %v4205_v58 = vld [vmem:[%s5937_s0 + $0x4e0] ss:$28 sps:$4 sm:$0xff]   ;;  %v4209_v59 = vld [vmem:[%s5937_s0 + $0x328] ss:$28 sps:$4 sm:$0xff]  }
 0x193   :  { %2657 = vmatprep.mubr.bf16.mxu0 %v4187_v63  ;;  %v4207_v63 = vld [vmem:[%s5937_s0 + $0x51c] ss:$28 sps:$4 sm:$0xff]  }
 0x194   :  { %v5149_v1 = vpop.f32.mrb[64].mxu1 }
 0x195   :  { %v2059_v3 = vpop.f32.mrb[65].mxu1 }
 0x196   :  { %v5154_v7 = vpop.f32.mrb[66].mxu1 }
 0x197   :  { %v2062_v12 = vpop.f32.mrb[67].mxu1 }
 0x198   :  { %v4210_v12 = vld [vmem:[%s5937_s0 + $0x518] ss:$28 sps:$4 sm:$0xff]  }
 0x199   :  { %3542 = vmatmul.mubr.msk.bf16.gmra.mrb[140].mxu1 %vm1798_vm0, %v4191_v6 }
 0x19a   :  { %2658 = vmatmul.mubr.bf16.gmra.mrb[76].mxu0 %v4190_v9  ;;  %3545 = vmatprep.mubr.msk.bf16.mxu1 %vm1798_vm0, %v4194_v11  ;;  %v4211_v9 = vld [vmem:[%s5937_s0 + $0x360] ss:$28 sps:$4 sm:$0xff]  }
 0x19b   :  { %2665 = vmatprep.mubr.bf16.mxu0 %v4192_v14  ;;  %v4214_v14 = vld [vmem:[%s5937_s0 + $0x398] ss:$28 sps:$4 sm:$0xff]  }
 0x19c   :  { %v5167_v16 = vpop.f32.mrb[68].mxu1 }
 0x19d   :  { %v2067_v17 = vpop.f32.mrb[69].mxu1 }
 0x19e   :  { %v5172_v21 = vpop.f32.mrb[70].mxu1 }
 0x19f   :  { %v2070_v25 = vpop.f32.mrb[71].mxu1 }
 0x1a0   :  { %v4216_v25 = vld [vmem:[%s5937_s0 + $0x3d0] ss:$28 sps:$4 sm:$0xff]  }
 0x1a1   :  { %3546 = vmatmul.mubr.msk.bf16.gmra.mrb[144].mxu1 %vm1798_vm0, %v4196_v20  ;;  %v4212_v20 = vld [vmem:[%s5937_s0 + $0x554] ss:$28 sps:$4 sm:$0xff]  }
 0x1a2   :  { %2666 = vmatmul.mubr.bf16.gmra.mrb[80].mxu0 %v4195_v23  ;;  %3549 = vmatprep.mubr.msk.bf16.mxu1 %vm1798_vm0, %v4199_v55 }
 0x1a3   :  { %2673 = vmatprep.mubr.bf16.mxu0 %v4197_v0 }
 0x1a4   :  { %v5185_v29 = vpop.f32.mrb[72].mxu1 }
 0x1a5   :  { %v2075_v30 = vpop.f32.mrb[73].mxu1 }
 0x1a6   :  { %v5190_v33 = vpop.f32.mrb[74].mxu1  ;;  %v4215_v30 = vld [vmem:[%s5937_s0 + $0x550] ss:$28 sps:$4 sm:$0xff]  }
 0x1a7   :  { %v2078_v42 = vpop.f32.mrb[75].mxu1 }
 0x1a9   :  { %3550 = vmatmul.mubr.msk.bf16.gmra.mrb[148].mxu1 %vm1798_vm0, %v4201_v31  ;;  %v4219_v31 = vld [vmem:[%s5937_s0 + $0x408] ss:$28 sps:$4 sm:$0xff]  }
 0x1aa   :  { %2674 = vmatmul.mubr.bf16.gmra.mrb[84].mxu0 %v4200_v37  ;;  %3553 = vmatprep.mubr.msk.bf16.mxu1 %vm1798_vm0, %v4204_v39  ;;  %v4217_v39 = vld [vmem:[%s5937_s0 + $0x58c] ss:$28 sps:$4 sm:$0xff]  }
 0x1ab   :  { %2681 = vmatprep.mubr.bf16.mxu0 %v4202_v44 }
 0x1ac   :  { %v5203_v46 = vpop.f32.mrb[76].mxu1 }
 0x1ad   :  { %v2083_v47 = vpop.f32.mrb[77].mxu1 }
 0x1ae   :  { %v5208_v53 = vpop.f32.mrb[78].mxu1  ;;  %v4221_v47 = vld [vmem:[%s5937_s0 + $0x440] ss:$28 sps:$4 sm:$0xff]  }
 0x1af   :  { %v2086_v62 = vpop.f32.mrb[79].mxu1 }
 0x1b1   :  { %3554 = vmatmul.mubr.msk.bf16.gmra.mrb[152].mxu1 %vm1798_vm0, %v4206_v52 }
 0x1b2   :  { %2682 = vmatmul.mubr.bf16.gmra.mrb[88].mxu0 %v4205_v58  ;;  %3557 = vmatprep.mubr.msk.bf16.mxu1 %vm1798_vm0, %v4209_v59  ;;  %v4220_v58 = vld [vmem:[%s5937_s0 + $0x588] ss:$28 sps:$4 sm:$0xff]   ;;  %v4224_v59 = vld [vmem:[%s5937_s0 + $0x478] ss:$28 sps:$4 sm:$0xff]  }
 0x1b3   :  { %2689 = vmatprep.mubr.bf16.mxu0 %v4207_v63  ;;  %v4222_v63 = vld [vmem:[%s5937_s0 + $0x5c4] ss:$28 sps:$4 sm:$0xff]  }
 0x1b4   :  { %v5221_v3 = vpop.f32.mrb[80].mxu1 }
 0x1b5   :  { %v2091_v6 = vpop.f32.mrb[81].mxu1 }
 0x1b6   :  { %v5226_v11 = vpop.f32.mrb[82].mxu1 }
 0x1b7   :  { %v2094_v17 = vpop.f32.mrb[83].mxu1 }
 0x1b8   :  { %v4225_v17 = vld [vmem:[%s5937_s0 + $0x5c0] ss:$28 sps:$4 sm:$0xff]  }
 0x1b9   :  { %3558 = vmatmul.mubr.msk.bf16.gmra.mrb[156].mxu1 %vm1798_vm0, %v4211_v9 }
 0x1ba   :  { %2690 = vmatmul.mubr.bf16.gmra.mrb[92].mxu0 %v4210_v12  ;;  %3561 = vmatprep.mubr.msk.bf16.mxu1 %vm1798_vm0, %v4214_v14  ;;  %v4226_v12 = vld [vmem:[%s5937_s0 + $0x4b0] ss:$28 sps:$4 sm:$0xff]  }
 0x1bb   :  { %2697 = vmatprep.mubr.bf16.mxu0 %v4212_v20  ;;  %v4229_v20 = vld [vmem:[%s5937_s0 + $0x4e8] ss:$28 sps:$4 sm:$0xff]  }
 0x1bc   :  { %v5239_v23 = vpop.f32.mrb[84].mxu1 }
 0x1bd   :  { %v2099_v55 = vpop.f32.mrb[85].mxu1 }
 0x1be   :  { %v5244_v0 = vpop.f32.mrb[86].mxu1 }
 0x1bf   :  { %v2102_v37 = vpop.f32.mrb[87].mxu1 }
 0x1c1   :  { %3562 = vmatmul.mubr.msk.bf16.gmra.mrb[160].mxu1 %vm1798_vm0, %v4216_v25  ;;  %v4227_v25 = vld [vmem:[%s5937_s0 + $0x5fc] ss:$28 sps:$4 sm:$0xff]  }
 0x1c2   :  { %2698 = vmatmul.mubr.bf16.gmra.mrb[96].mxu0 %v4215_v30  ;;  %3565 = vmatprep.mubr.msk.bf16.mxu1 %vm1798_vm0, %v4219_v31  ;;  %v5294_v30 = vld [vmem:[%s5938_s2] ss:$0 sm:$0xff] }
 0x1c3   :  { %2705 = vmatprep.mubr.bf16.mxu0 %v4217_v39  ;;  %v1930_v31 = vadd.f32 %v5294_v30, %v4882_v32  ;;  %v4231_v39 = vld [vmem:[%s5937_s0 + $0x520] ss:$28 sps:$4 sm:$0xff]  }
 0x1c4   :  { %v5257_v42 = vpop.f32.mrb[88].mxu1 }
 0x1c5   :  { %v2107_v44 = vpop.f32.mrb[89].mxu1 }
 0x1c6   :  { %v5262_v52 = vpop.f32.mrb[90].mxu1  ;;  %v1933_v44 = vadd.f32 %v5294_v30, %v4887_v35  ;;  %v1938_v35 = vadd.f32 %v5294_v30, %v4898_v40 }
 0x1c7   :  { %v2110_v62 = vpop.f32.mrb[91].mxu1 }
 0x1c8   :  { %v4234_v62 = vld [vmem:[%s5937_s0 + $0x558] ss:$28 sps:$4 sm:$0xff]  }
 0x1c9   :  { %3566 = vmatmul.mubr.msk.bf16.gmra.mrb[164].mxu1 %vm1798_vm0, %v4221_v47 }
 0x1ca   :  { %2706 = vmatmul.mubr.bf16.gmra.mrb[100].mxu0 %v4220_v58  ;;  %3569 = vmatprep.mubr.msk.bf16.mxu1 %vm1798_vm0, %v4224_v59  ;;  %v4230_v59 = vld [vmem:[%s5937_s0 + $0x5f8] ss:$28 sps:$4 sm:$0xff]  }
 0x1cb   :  { %2713 = vmatprep.mubr.bf16.mxu0 %v4222_v63  ;;  %v4232_v63 = vld [vmem:[%s5937_s0 + $0x634] ss:$28 sps:$4 sm:$0xff]  }
 0x1cc   :  { %v5275_v6 = vpop.f32.mrb[92].mxu1 }
 0x1cd   :  { %v2115_v9 = vpop.f32.mrb[93].mxu1 }
 0x1ce   :  { %v5280_v14 = vpop.f32.mrb[94].mxu1 }
 0x1cf   :  { %v2118_v55 = vpop.f32.mrb[95].mxu1 }
 0x1d0   :  { %v1941_v55 = vadd.f32 %v5294_v30, %v4903_v43  ;;  %v1946_v43 = vadd.f32 %v5294_v30, %v4914_v48 }
 0x1d1   :  { %3570 = vmatmul.mubr.msk.bf16.gmra.mrb[168].mxu1 %vm1798_vm0, %v4226_v12 }
 0x1d2   :  { %2714 = vmatmul.mubr.bf16.gmra.mrb[104].mxu0 %v4225_v17  ;;  %3573 = vmatprep.mubr.msk.bf16.mxu1 %vm1798_vm0, %v4229_v20  ;;  %v4236_v20 = vld [vmem:[%s5937_s0 + $0x590] ss:$28 sps:$4 sm:$0xff]  }
 0x1d3   :  { %2721 = vmatprep.mubr.bf16.mxu0 %v4227_v25 }
 0x1d5   :  { %v2507_v37 = vpop.f32.mrb[0].mxu0 }
 0x1d6   :  { %v5305_v47 = vadd.f32 %v2507_v37, %v1930_v31  ;;  %v2509_v58 = vpop.f32.mrb[1].mxu0  ;;  %v4235_v37 = vld [vmem:[%s5937_s0 + $0x630] ss:$28 sps:$4 sm:$0xff]  }
 0x1d7   :  { %v2510_v32 = vpop.f32.mrb[2].mxu0 }
 0x1d8   :  { %v5316_v9 = vadd.f32 %v2510_v32, %v1933_v44  ;;  %v2512_v12 = vpop.f32.mrb[3].mxu0  ;;  %v4237_v44 = vld [vmem:[%s5937_s0 + $0x66c] ss:$28 sps:$4 sm:$0xff]   ;;  %v4241_v32 = vld [vmem:[%s5937_s0 + $0x600] ss:$28 sps:$4 sm:$0xff]  }
 0x1d9   :  { %3574 = vmatmul.mubr.msk.bf16.gmra.mrb[172].mxu1 %vm1798_vm0, %v4231_v39  ;;  %v4239_v39 = vld [vmem:[%s5937_s0 + $0x5c8] ss:$28 sps:$4 sm:$0xff]  }
 0x1da   :  { %2722 = vmatmul.mubr.bf16.gmra.mrb[108].mxu0 %v4230_v59  ;;  %3577 = vmatprep.mubr.msk.bf16.mxu1 %vm1798_vm0, %v4234_v62 }
 0x1db   :  { %2729 = vmatprep.mubr.bf16.mxu0 %v4232_v63  ;;  %v1949_v63 = vadd.f32 %v5294_v30, %v4919_v51  ;;  %v1954_v51 = vadd.f32 %v5294_v30, %v4930_v57 }
 0x1dd   :  { %v2515_v17 = vpop.f32.mrb[4].mxu0 }
 0x1de   :  { %v5327_v25 = vadd.f32 %v2515_v17, %v1938_v35  ;;  %v2517_v31 = vpop.f32.mrb[5].mxu0  ;;  %v4240_v17 = vld [vmem:[%s5937_s0 + $0x668] ss:$28 sps:$4 sm:$0xff]  }
 0x1df   :  { %v2518_v40 = vpop.f32.mrb[6].mxu0 }
 0x1e0   :  { %v5338_v58 = vadd.f32 %v2518_v40, %v1941_v55  ;;  %v2520_v59 = vpop.f32.mrb[7].mxu0  ;;  %v4242_v55 = vld [vmem:[%s5937_s0 + $0x6a4] ss:$28 sps:$4 sm:$0xff]   ;;  %v4246_v40 = vld [vmem:[%s5937_s0 + $0x670] ss:$28 sps:$4 sm:$0xff]  }
 0x1e1   :  { %3578 = vmatmul.mubr.msk.bf16.gmra.mrb[176].mxu1 %vm1798_vm0, %v4236_v20  ;;  %v4244_v20 = vld [vmem:[%s5937_s0 + $0x638] ss:$28 sps:$4 sm:$0xff]  }
 0x1e2   :  { %2730 = vmatmul.mubr.bf16.gmra.mrb[112].mxu0 %v4235_v37  ;;  %3581 = vmatprep.mubr.msk.bf16.mxu1 %vm1798_vm0, %v4239_v39 }
 0x1e3   :  { %2737 = vmatprep.mubr.bf16.mxu0 %v4237_v44  ;;  %v1957_v44 = vadd.f32 %v5294_v30, %v4935_v60  ;;  %v1962_v60 = vadd.f32 %v5294_v30, %v4946_v2  ;;  %v1970_v2 = vadd.f32 %v5294_v30, %v4962_v10 }
 0x1e5   :  { %v2523_v62 = vpop.f32.mrb[8].mxu0 }
 0x1e6   :  { %v5349_v12 = vadd.f32 %v2523_v62, %v1946_v43  ;;  %v2525_v35 = vpop.f32.mrb[9].mxu0  ;;  %v4245_v62 = vld [vmem:[%s5937_s0 + $0x6a0] ss:$28 sps:$4 sm:$0xff]  }
 0x1e7   :  { %v2526_v48 = vpop.f32.mrb[10].mxu0 }
 0x1e8   :  { %v5360_v31 = vadd.f32 %v2526_v48, %v1949_v63  ;;  %v2528_v37 = vpop.f32.mrb[11].mxu0  ;;  %v4247_v63 = vld [vmem:[%s5937_s0 + $0x6dc] ss:$28 sps:$4 sm:$0xff]  }
 0x1e9   :  { %3582 = vmatmul.mubr.msk.bf16.gmra.mrb[180].mxu1 %vm1798_vm0, %v4241_v32  ;;  %v4249_v32 = vld [vmem:[%s5937_s0 + $0x6a8] ss:$28 sps:$4 sm:$0xff]   ;;  %v4251_v48 = vld [vmem:[%s5937_s0 + $0x6e0] ss:$28 sps:$4 sm:$0xff]  }
 0x1ea   :  { %2738 = vmatmul.mubr.bf16.gmra.mrb[116].mxu0 %v4240_v17  ;;  %3585 = vmatprep.mubr.msk.bf16.mxu1 %vm1798_vm0, %v4244_v20 }
 0x1eb   :  { %2745 = vmatprep.mubr.bf16.mxu0 %v4242_v55  ;;  %v1965_v55 = vadd.f32 %v5294_v30, %v4951_v5  ;;  %v1973_v5 = vadd.f32 %v5294_v30, %v4967_v13 }
 0x1ed   :  { %v2531_v39 = vpop.f32.mrb[12].mxu0 }
 0x1ee   :  { %v5371_v59 = vadd.f32 %v2531_v39, %v1954_v51  ;;  %v2533_v43 = vpop.f32.mrb[13].mxu0  ;;  %v4250_v39 = vld [vmem:[%s5937_s0 + $0x6d8] ss:$28 sps:$4 sm:$0xff]  }
 0x1ef   :  { %v2534_v57 = vpop.f32.mrb[14].mxu0 }
 0x1f0   :  { %v5382_v35 = vadd.f32 %v2534_v57, %v1957_v44  ;;  %v2536_v17 = vpop.f32.mrb[15].mxu0 }
 0x1f1   :  { %3586 = vmatmul.mubr.msk.bf16.gmra.mrb[184].mxu1 %vm1798_vm0, %v4246_v40 }
 0x1f2   :  { %2746 = vmatmul.mubr.bf16.gmra.mrb[120].mxu0 %v4245_v62  ;;  %3589 = vmatprep.mubr.msk.bf16.mxu1 %vm1798_vm0, %v4249_v32 }
 0x1f3   :  { %2753 = vmatprep.mubr.bf16.mxu0 %v4247_v63 }
 0x1f5   :  { %v2539_v20 = vpop.f32.mrb[16].mxu0 }
 0x1f6   :  { %v5393_v37 = vadd.f32 %v2539_v20, %v1962_v60  ;;  %v2541_v51 = vpop.f32.mrb[17].mxu0  ;;  %v1978_v20 = vadd.f32 %v5294_v30, %v4982_v19 }
 0x1f7   :  { %v2542_v40 = vpop.f32.mrb[18].mxu0 }
 0x1f8   :  { %v5398_v44 = vadd.f32 %v2542_v40, %v1965_v55  ;;  %v2544_v43 = vpop.f32.mrb[19].mxu0 }
 0x1f9   :  { %3590 = vmatmul.mubr.msk.bf16.gmra.mrb[188].mxu1 %vm1798_vm0, %v4251_v48  ;;  %v1981_v48 = vadd.f32 %v5294_v30, %v4987_v22  ;;  %v1986_v43 = vadd.f32 %v5294_v30, %v4998_v26  ;;  %v1997_v26 = vadd.f32 %v5294_v30, %v5019_v38  ;;  %v2005_v38 = vadd.f32 %v5294_v30, %v5035_v49 }
 0x1fa   :  { %2754 = vmatmul.mubr.bf16.gmra.mrb[124].mxu0 %v4250_v39  ;;  %v2013_v49 = vadd.f32 %v5294_v30, %v5051_v61  ;;  %v2021_v61 = vadd.f32 %v5294_v30, %v5067_v8  ;;  %v2029_v8 = vadd.f32 %v5294_v30, %v5083_v18  ;;  %v2037_v18 = vadd.f32 %v5294_v30, %v5100_v27 }
 0x1fb   :  { %v2045_v27 = vadd.f32 %v5294_v30, %v5118_v41  ;;  %v2053_v41 = vadd.f32 %v5294_v30, %v5136_v54  ;;  %v2061_v54 = vadd.f32 %v5294_v30, %v5154_v7 }
 0x1fd   :  { %v2547_v62 = vpop.f32.mrb[20].mxu0 }
 0x1fe   :  { %v5405_v32 = vadd.f32 %v2547_v62, %v1970_v2  ;;  %v2549_v57 = vpop.f32.mrb[21].mxu0  ;;  %v1989_v62 = vadd.f32 %v5294_v30, %v5003_v28 }
 0x1ff   :  { %v2550_v63 = vpop.f32.mrb[22].mxu0 }
 0x200   :  { %v5407_v17 = vadd.f32 %v2550_v63, %v1973_v5  ;;  %v2552_v60 = vpop.f32.mrb[23].mxu0 }
 0x201   :  { %v1994_v60 = vadd.f32 %v5294_v30, %v5014_v34  ;;  %v2002_v34 = vadd.f32 %v5294_v30, %v5030_v45  ;;  %v2010_v45 = vadd.f32 %v5294_v30, %v5046_v56  ;;  %v2018_v56 = vadd.f32 %v5294_v30, %v5062_v4 }
 0x202   :  { %v2026_v4 = vadd.f32 %v5294_v30, %v5078_v15  ;;  %v2034_v15 = vadd.f32 %v5294_v30, %v5095_v24  ;;  %v2042_v24 = vadd.f32 %v5294_v30, %v5113_v36  ;;  %v2050_v36 = vadd.f32 %v5294_v30, %v5131_v50 }
 0x203   :  { %v2058_v50 = vadd.f32 %v5294_v30, %v5149_v1 }
 0x205   :  { %v2555_v55 = vpop.f32.mrb[24].mxu0 }
 0x206   :  { %v5413_v51 = vadd.f32 %v2555_v55, %v1978_v20  ;;  %v2557_v10 = vpop.f32.mrb[25].mxu0 }
 0x207   :  { %v2558_v39 = vpop.f32.mrb[26].mxu0 }
 0x208   :  { %v5415_v40 = vadd.f32 %v2558_v39, %v1981_v48  ;;  %v2560_v13 = vpop.f32.mrb[27].mxu0 }
 0x20d   :  { %v2563_v2 = vpop.f32.mrb[28].mxu0 }
 0x20e   :  { %v5421_v5 = vadd.f32 %v2563_v2, %v1986_v43  ;;  %v2565_v19 = vpop.f32.mrb[29].mxu0 }
 0x20f   :  { %v2566_v57 = vpop.f32.mrb[30].mxu0 }
 0x210   :  { %v5423_v63 = vadd.f32 %v2566_v57, %v1989_v62  ;;  %v2568_v22 = vpop.f32.mrb[31].mxu0 }
 0x214   :  { %v5427_v20 = vpop.f32.mrb[96].mxu1 }
 0x215   :  { %5940 = vst [vmem:[#allocation2_spill] sm:$0xff] %v5427_v20  ;;  %v2571_v55 = vpop.f32.mrb[32].mxu0  ;;  %v2412_v48 = vpop.f32.mrb[97].mxu1 }
 0x216   :  { %v5431_v10 = vadd.f32 %v2571_v55, %v1994_v60  ;;  %v2573_v28 = vpop.f32.mrb[33].mxu0  ;;  %v5433_v39 = vpop.f32.mrb[98].mxu1 }
 0x217   :  { %5941 = vst [vmem:[#allocation3_spill] sm:$0xff] %v5433_v39  ;;  %v2574_v13 = vpop.f32.mrb[34].mxu0  ;;  %v2415_v43 = vpop.f32.mrb[99].mxu1 }
 0x218   :  { %v5435_v2 = vadd.f32 %v2574_v13, %v1997_v26  ;;  %v2576_v62 = vpop.f32.mrb[35].mxu0 }
 0x21c   :  { %v5439_v19 = vpop.f32.mrb[100].mxu1 }
 0x21d   :  { %5942 = vst [vmem:[#allocation4_spill] sm:$0xff] %v5439_v19  ;;  %v2579_v57 = vpop.f32.mrb[36].mxu0  ;;  %v2420_v22 = vpop.f32.mrb[101].mxu1 }
 0x21e   :  { %v5443_v60 = vadd.f32 %v2579_v57, %v2002_v34  ;;  %v2581_v55 = vpop.f32.mrb[37].mxu0  ;;  %v5445_v48 = vpop.f32.mrb[102].mxu1 }
 0x21f   :  { %5943 = vst [vmem:[#allocation5_spill] sm:$0xff] %v5445_v48  ;;  %v2582_v28 = vpop.f32.mrb[38].mxu0  ;;  %v2423_v43 = vpop.f32.mrb[103].mxu1 }
 0x220   :  { %v5447_v26 = vadd.f32 %v2582_v28, %v2005_v38  ;;  %v2584_v13 = vpop.f32.mrb[39].mxu0 }
 0x224   :  { %v5451_v62 = vpop.f32.mrb[104].mxu1 }
 0x225   :  { %5944 = vst [vmem:[#allocation6_spill] sm:$0xff] %v5451_v62  ;;  %v2587_v19 = vpop.f32.mrb[40].mxu0  ;;  %v2428_v22 = vpop.f32.mrb[105].mxu1 }
 0x226   :  { %v5455_v34 = vadd.f32 %v2587_v19, %v2010_v45  ;;  %v2589_v57 = vpop.f32.mrb[41].mxu0  ;;  %v5457_v55 = vpop.f32.mrb[106].mxu1 }
 0x227   :  { %5945 = vst [vmem:[#allocation7_spill] sm:$0xff] %v5457_v55  ;;  %v2590_v48 = vpop.f32.mrb[42].mxu0  ;;  %v2431_v43 = vpop.f32.mrb[107].mxu1 }
 0x228   :  { %v5459_v38 = vadd.f32 %v2590_v48, %v2013_v49  ;;  %v2592_v28 = vpop.f32.mrb[43].mxu0 }
 0x22c   :  { %v5463_v13 = vpop.f32.mrb[108].mxu1 }
 0x22d   :  { %5946 = vst [vmem:[#allocation8_spill] sm:$0xff] %v5463_v13  ;;  %v2595_v62 = vpop.f32.mrb[44].mxu0  ;;  %v2436_v22 = vpop.f32.mrb[109].mxu1 }
 0x22e   :  { %v5467_v19 = vadd.f32 %v2595_v62, %v2018_v56  ;;  %v2597_v45 = vpop.f32.mrb[45].mxu0  ;;  %v5469_v57 = vpop.f32.mrb[110].mxu1 }
 0x22f   :  { %5947 = vst [vmem:[#allocation9_spill] sm:$0xff] %v5469_v57  ;;  %v2598_v55 = vpop.f32.mrb[46].mxu0  ;;  %v2439_v43 = vpop.f32.mrb[111].mxu1 }
 0x230   :  { %v5471_v48 = vadd.f32 %v2598_v55, %v2021_v61  ;;  %v2600_v49 = vpop.f32.mrb[47].mxu0 }
 0x234   :  { %v5475_v28 = vpop.f32.mrb[112].mxu1 }
 0x235   :  { %5948 = vst [vmem:[#allocation10_spill] sm:$0xff] %v5475_v28  ;;  %v2603_v13 = vpop.f32.mrb[48].mxu0  ;;  %v2444_v22 = vpop.f32.mrb[113].mxu1 }
 0x236   :  { %v5479_v62 = vadd.f32 %v2603_v13, %v2026_v4  ;;  %v2605_v56 = vpop.f32.mrb[49].mxu0  ;;  %v5481_v45 = vpop.f32.mrb[114].mxu1 }
 0x237   :  { %5949 = vst [vmem:[#allocation11_spill] sm:$0xff] %v5481_v45  ;;  %v2606_v57 = vpop.f32.mrb[50].mxu0  ;;  %v2447_v43 = vpop.f32.mrb[115].mxu1 }
 0x238   :  { %v5483_v55 = vadd.f32 %v2606_v57, %v2029_v8  ;;  %v2608_v61 = vpop.f32.mrb[51].mxu0 }
 0x23c   :  { %v5487_v49 = vpop.f32.mrb[116].mxu1 }
 0x23d   :  { %5950 = vst [vmem:[#allocation12_spill] sm:$0xff] %v5487_v49  ;;  %v2611_v28 = vpop.f32.mrb[52].mxu0  ;;  %v2452_v22 = vpop.f32.mrb[117].mxu1 }
 0x23e   :  { %v5491_v13 = vadd.f32 %v2611_v28, %v2034_v15  ;;  %v2613_v4 = vpop.f32.mrb[53].mxu0  ;;  %v5493_v56 = vpop.f32.mrb[118].mxu1 }
 0x23f   :  { %5951 = vst [vmem:[#allocation13_spill] sm:$0xff] %v5493_v56  ;;  %v2614_v45 = vpop.f32.mrb[54].mxu0  ;;  %v2455_v43 = vpop.f32.mrb[119].mxu1 }
 0x240   :  { %v5495_v57 = vadd.f32 %v2614_v45, %v2037_v18  ;;  %v2616_v8 = vpop.f32.mrb[55].mxu0 }
 0x244   :  { %v5499_v61 = vpop.f32.mrb[120].mxu1 }
 0x245   :  { %5952 = vst [vmem:[#allocation14_spill] sm:$0xff] %v5499_v61  ;;  %v2619_v49 = vpop.f32.mrb[56].mxu0  ;;  %v2460_v22 = vpop.f32.mrb[121].mxu1 }
 0x246   :  { %v5503_v28 = vadd.f32 %v2619_v49, %v2042_v24  ;;  %v2621_v15 = vpop.f32.mrb[57].mxu0  ;;  %v5505_v4 = vpop.f32.mrb[122].mxu1 }
 0x247   :  { %5953 = vst [vmem:[#allocation15_spill] sm:$0xff] %v5505_v4  ;;  %v2622_v56 = vpop.f32.mrb[58].mxu0  ;;  %v2463_v43 = vpop.f32.mrb[123].mxu1 }
 0x248   :  { %v5507_v45 = vadd.f32 %v2622_v56, %v2045_v27  ;;  %v2624_v18 = vpop.f32.mrb[59].mxu0 }
 0x24c   :  { %v5511_v8 = vpop.f32.mrb[124].mxu1 }
 0x24d   :  { %5954 = vst [vmem:[#allocation16_spill] sm:$0xff] %v5511_v8  ;;  %v2627_v61 = vpop.f32.mrb[60].mxu0  ;;  %v2468_v22 = vpop.f32.mrb[125].mxu1 }
 0x24e   :  { %v5515_v49 = vadd.f32 %v2627_v61, %v2050_v36  ;;  %v2629_v24 = vpop.f32.mrb[61].mxu0  ;;  %v5517_v15 = vpop.f32.mrb[126].mxu1 }
 0x24f   :  { %5955 = vst [vmem:[#allocation17_spill] sm:$0xff] %v5517_v15  ;;  %v2630_v4 = vpop.f32.mrb[62].mxu0  ;;  %v2471_v43 = vpop.f32.mrb[127].mxu1 }
 0x250   :  { %v5519_v56 = vadd.f32 %v2630_v4, %v2053_v41  ;;  %v2632_v27 = vpop.f32.mrb[63].mxu0 }
 0x254   :  { %v3531_v18 = vpop.f32.mrb[128].mxu1 }
 0x255   :  { %v2635_v8 = vpop.f32.mrb[64].mxu0  ;;  %v2805_v22 = vadd.f32 %v5327_v25, %v3531_v18  ;;  %v2796_v39 = vpop.f32.mrb[129].mxu1 }
 0x256   :  { %v5526_v61 = vadd.f32 %v2635_v8, %v2058_v50  ;;  %v2637_v36 = vpop.f32.mrb[65].mxu0  ;;  %v2797_v24 = vadd.f32 %v5305_v47, %v2796_v39  ;;  %v3532_v4 = vpop.f32.mrb[130].mxu1 }
 0x257   :  { %v3053_v41 = vmax.f32 %v2805_v22, 0.0  ;;  %v2638_v43 = vpop.f32.mrb[66].mxu0  ;;  %v2808_v27 = vadd.f32 %v5338_v58, %v3532_v4  ;;  %v2799_v1 = vpop.f32.mrb[131].mxu1 }
 0x258   :  { %v3051_v15 = vmax.f32 %v2797_v24, 0.0  ;;  %v5530_v20 = vadd.f32 %v2638_v43, %v2061_v54  ;;  %v2640_v25 = vpop.f32.mrb[67].mxu0  ;;  %v2800_v18 = vadd.f32 %v5316_v9, %v2799_v1  ;;  %v2066_v9 = vadd.f32 %v5294_v30, %v5167_v16 }
 0x259   :  { %3118 = vst.msk [vmem:[%s5939_s3 + $0x10] sm:$0xff] %vm3115_vm1, %v3053_v41  ;;  %v3054_v7 = vmax.f32 %v2808_v27, 0.0 }
 0x25a   :  { %3116 = vst.msk [vmem:[%s5939_s3] sm:$0xff] %vm3115_vm1, %v3051_v15  ;;  %v3052_v47 = vmax.f32 %v2800_v18, 0.0  ;;  %v2069_v15 = vadd.f32 %v5294_v30, %v5172_v21 }
 0x25b   :  { %3119 = vst.msk [vmem:[%s5939_s3 + $0x18] sm:$0xff] %vm3115_vm1, %v3054_v7 }
 0x25c   :  { %3117 = vst.msk [vmem:[%s5939_s3 + $0x8] sm:$0xff] %vm3115_vm1, %v3052_v47  ;;  %v3535_v58 = vpop.f32.mrb[132].mxu1 }
 0x25d   :  { %v2643_v39 = vpop.f32.mrb[68].mxu0  ;;  %v2821_v8 = vadd.f32 %v5371_v59, %v3535_v58  ;;  %v2812_v50 = vpop.f32.mrb[133].mxu1 }
 0x25e   :  { %v5554_v22 = vadd.f32 %v2643_v39, %v2066_v9  ;;  %v2645_v54 = vpop.f32.mrb[69].mxu0  ;;  %v2813_v36 = vadd.f32 %v5349_v12, %v2812_v50  ;;  %v3536_v24 = vpop.f32.mrb[134].mxu1  ;;  %v2077_v9 = vadd.f32 %v5294_v30, %v5190_v33 }
 0x25f   :  { %v3057_v16 = vmax.f32 %v2821_v8, 0.0  ;;  %v2646_v4 = vpop.f32.mrb[70].mxu0  ;;  %v2824_v41 = vadd.f32 %v5382_v35, %v3536_v24  ;;  %v2815_v43 = vpop.f32.mrb[135].mxu1 }
 0x260   :  { %v3055_v27 = vmax.f32 %v2813_v36, 0.0  ;;  %v5558_v1 = vadd.f32 %v2646_v4, %v2069_v15  ;;  %v2648_v25 = vpop.f32.mrb[71].mxu0  ;;  %v2816_v59 = vadd.f32 %v5360_v31, %v2815_v43  ;;  %v2074_v31 = vadd.f32 %v5294_v30, %v5185_v29 }
 0x261   :  { %3122 = vst.msk [vmem:[%s5939_s3 + $0x30] sm:$0xff] %vm3115_vm1, %v3057_v16  ;;  %v3058_v21 = vmax.f32 %v2824_v41, 0.0  ;;  %v2085_v25 = vadd.f32 %v5294_v30, %v5208_v53 }
 0x262   :  { %3120 = vst.msk [vmem:[%s5939_s3 + $0x20] sm:$0xff] %vm3115_vm1, %v3055_v27  ;;  %v3056_v12 = vmax.f32 %v2816_v59, 0.0 }
 0x263   :  { %3123 = vst.msk [vmem:[%s5939_s3 + $0x38] sm:$0xff] %vm3115_vm1, %v3058_v21 }
 0x264   :  { %3121 = vst.msk [vmem:[%s5939_s3 + $0x28] sm:$0xff] %vm3115_vm1, %v3056_v12  ;;  %v3539_v35 = vpop.f32.mrb[136].mxu1 }
 0x265   :  { %v2651_v18 = vpop.f32.mrb[72].mxu0  ;;  %v2837_v7 = vadd.f32 %v5405_v32, %v3539_v35  ;;  %v2828_v47 = vpop.f32.mrb[137].mxu1 }
 0x266   :  { %v5582_v58 = vadd.f32 %v2651_v18, %v2074_v31  ;;  %v2653_v39 = vpop.f32.mrb[73].mxu0  ;;  %v2829_v8 = vadd.f32 %v5393_v37, %v2828_v47  ;;  %v3540_v50 = vpop.f32.mrb[138].mxu1 }
 0x267   :  { %v3061_v29 = vmax.f32 %v2837_v7, 0.0  ;;  %v2654_v15 = vpop.f32.mrb[74].mxu0  ;;  %v2840_v54 = vadd.f32 %v5407_v17, %v3540_v50  ;;  %v2831_v36 = vpop.f32.mrb[139].mxu1 }
 0x268   :  { %v3059_v24 = vmax.f32 %v2829_v8, 0.0  ;;  %v5586_v16 = vadd.f32 %v2654_v15, %v2077_v9  ;;  %v2656_v4 = vpop.f32.mrb[75].mxu0  ;;  %v2832_v32 = vadd.f32 %v5398_v44, %v2831_v36  ;;  %v2082_v44 = vadd.f32 %v5294_v30, %v5203_v46 }
 0x269   :  { %3126 = vst.msk [vmem:[%s5939_s3 + $0x50] sm:$0xff] %vm3115_vm1, %v3061_v29  ;;  %v3062_v33 = vmax.f32 %v2840_v54, 0.0  ;;  %v2093_v15 = vadd.f32 %v5294_v30, %v5226_v11 }
 0x26a   :  { %3124 = vst.msk [vmem:[%s5939_s3 + $0x40] sm:$0xff] %vm3115_vm1, %v3059_v24  ;;  %v3060_v37 = vmax.f32 %v2832_v32, 0.0 }
 0x26b   :  { %3127 = vst.msk [vmem:[%s5939_s3 + $0x58] sm:$0xff] %vm3115_vm1, %v3062_v33 }
 0x26c   :  { %3125 = vst.msk [vmem:[%s5939_s3 + $0x48] sm:$0xff] %vm3115_vm1, %v3060_v37  ;;  %v3543_v17 = vpop.f32.mrb[140].mxu1 }
 0x26d   :  { %v2659_v41 = vpop.f32.mrb[76].mxu0  ;;  %v2853_v43 = vadd.f32 %v5421_v5, %v3543_v17  ;;  %v2844_v27 = vpop.f32.mrb[141].mxu1 }
 0x26e   :  { %v5610_v59 = vadd.f32 %v2659_v41, %v2082_v44  ;;  %v2661_v21 = vpop.f32.mrb[77].mxu0  ;;  %v2845_v12 = vadd.f32 %v5413_v51, %v2844_v27  ;;  %v3544_v31 = vpop.f32.mrb[142].mxu1 }
 0x26f   :  { %v3065_v46 = vmax.f32 %v2853_v43, 0.0  ;;  %v2662_v35 = vpop.f32.mrb[78].mxu0  ;;  %v2856_v18 = vadd.f32 %v5423_v63, %v3544_v31  ;;  %v2847_v7 = vpop.f32.mrb[143].mxu1  ;;  %v2101_v21 = vadd.f32 %v5294_v30, %v5244_v0 }
 0x270   :  { %v3063_v47 = vmax.f32 %v2845_v12, 0.0  ;;  %v5614_v9 = vadd.f32 %v2662_v35, %v2085_v25  ;;  %v2664_v39 = vpop.f32.mrb[79].mxu0  ;;  %v2848_v5 = vadd.f32 %v5415_v40, %v2847_v7  ;;  %v2090_v40 = vadd.f32 %v5294_v30, %v5221_v3 }
 0x271   :  { %3130 = vst.msk [vmem:[%s5939_s3 + $0x70] sm:$0xff] %vm3115_vm1, %v3065_v46  ;;  %v3066_v53 = vmax.f32 %v2856_v18, 0.0 }
 0x272   :  { %3128 = vst.msk [vmem:[%s5939_s3 + $0x60] sm:$0xff] %vm3115_vm1, %v3063_v47  ;;  %v3064_v51 = vmax.f32 %v2848_v5, 0.0 }
 0x273   :  { %3131 = vst.msk [vmem:[%s5939_s3 + $0x78] sm:$0xff] %vm3115_vm1, %v3066_v53 }
 0x274   :  { %3129 = vst.msk [vmem:[%s5939_s3 + $0x68] sm:$0xff] %vm3115_vm1, %v3064_v51  ;;  %v3547_v63 = vpop.f32.mrb[144].mxu1 }
 0x275   :  { %v2667_v8 = vpop.f32.mrb[80].mxu0  ;;  %v2869_v50 = vadd.f32 %v5443_v60, %v3547_v63  ;;  %v2860_v29 = vpop.f32.mrb[145].mxu1 }
 0x276   :  { %v5638_v54 = vadd.f32 %v2667_v8, %v2090_v40  ;;  %v2669_v36 = vpop.f32.mrb[81].mxu0  ;;  %v2861_v24 = vadd.f32 %v5431_v10, %v2860_v29  ;;  %v3548_v4 = vpop.f32.mrb[146].mxu1  ;;  %v2109_v8 = vadd.f32 %v5294_v30, %v5262_v52 }
 0x277   :  { %v3069_v3 = vmax.f32 %v2869_v50, 0.0  ;;  %v2670_v32 = vpop.f32.mrb[82].mxu0  ;;  %v2872_v33 = vadd.f32 %v5447_v26, %v3548_v4  ;;  %v2863_v37 = vpop.f32.mrb[147].mxu1 }
 0x278   :  { %v3067_v44 = vmax.f32 %v2861_v24, 0.0  ;;  %v5642_v17 = vadd.f32 %v2670_v32, %v2093_v15  ;;  %v2672_v41 = vpop.f32.mrb[83].mxu0  ;;  %v2864_v60 = vadd.f32 %v5435_v2, %v2863_v37  ;;  %v2098_v2 = vadd.f32 %v5294_v30, %v5239_v23 }
 0x279   :  { %3134 = vst.msk [vmem:[%s5939_s3 + $0x90] sm:$0xff] %vm3115_vm1, %v3069_v3  ;;  %v3070_v11 = vmax.f32 %v2872_v33, 0.0 }
 0x27a   :  { %3132 = vst.msk [vmem:[%s5939_s3 + $0x80] sm:$0xff] %vm3115_vm1, %v3067_v44  ;;  %v3068_v10 = vmax.f32 %v2864_v60, 0.0 }
 0x27b   :  { %3135 = vst.msk [vmem:[%s5939_s3 + $0x98] sm:$0xff] %vm3115_vm1, %v3070_v11  ;;  %v2117_v11 = vadd.f32 %v5294_v30, %v5280_v14 }
 0x27c   :  { %3133 = vst.msk [vmem:[%s5939_s3 + $0x88] sm:$0xff] %vm3115_vm1, %v3068_v10  ;;  %v3551_v26 = vpop.f32.mrb[148].mxu1 }
 0x27d   :  { %v2675_v43 = vpop.f32.mrb[84].mxu0  ;;  %v2885_v27 = vadd.f32 %v5467_v19, %v3551_v26  ;;  %v2876_v25 = vpop.f32.mrb[149].mxu1 }
 0x27e   :  { %v5666_v12 = vadd.f32 %v2675_v43, %v2098_v2  ;;  %v2677_v31 = vpop.f32.mrb[85].mxu0  ;;  %v2877_v46 = vadd.f32 %v5455_v34, %v2876_v25  ;;  %v3552_v35 = vpop.f32.mrb[150].mxu1 }
 0x27f   :  { %v3073_v23 = vmax.f32 %v2885_v27, 0.0  ;;  %v2678_v18 = vpop.f32.mrb[86].mxu0  ;;  %v2888_v7 = vadd.f32 %v5471_v48, %v3552_v35  ;;  %v2879_v47 = vpop.f32.mrb[151].mxu1 }
 0x280   :  { %v3071_v39 = vmax.f32 %v2877_v46, 0.0  ;;  %v5670_v5 = vadd.f32 %v2678_v18, %v2101_v21  ;;  %v2680_v53 = vpop.f32.mrb[87].mxu0  ;;  %v2880_v19 = vadd.f32 %v5459_v38, %v2879_v47  ;;  %v2106_v38 = vadd.f32 %v5294_v30, %v5257_v42 }
 0x281   :  { %3138 = vst.msk [vmem:[%s5939_s3 + $0xb0] sm:$0xff] %vm3115_vm1, %v3073_v23  ;;  %v3074_v0 = vmax.f32 %v2888_v7, 0.0 }
 0x282   :  { %3136 = vst.msk [vmem:[%s5939_s3 + $0xa0] sm:$0xff] %vm3115_vm1, %v3071_v39  ;;  %v3072_v34 = vmax.f32 %v2880_v19, 0.0  ;;  %v5957_v39 = vld [vmem:[#allocation3_spill] sm:$0xff] }
 0x283   :  { %3139 = vst.msk [vmem:[%s5939_s3 + $0xb8] sm:$0xff] %vm3115_vm1, %v3074_v0  ;;  %v3723_v53 = vadd.f32 %v5294_v30, %v5957_v39 }
 0x284   :  { %3137 = vst.msk [vmem:[%s5939_s3 + $0xa8] sm:$0xff] %vm3115_vm1, %v3072_v34  ;;  %v3555_v48 = vpop.f32.mrb[152].mxu1 }
 0x285   :  { %v2683_v51 = vpop.f32.mrb[88].mxu0  ;;  %v2901_v40 = vadd.f32 %v5491_v13, %v3555_v48  ;;  %v2892_v63 = vpop.f32.mrb[153].mxu1 }
 0x286   :  { %v5694_v50 = vadd.f32 %v2683_v51, %v2106_v38  ;;  %v2685_v29 = vpop.f32.mrb[89].mxu0  ;;  %v2893_v15 = vadd.f32 %v5479_v62, %v2892_v63  ;;  %v3556_v36 = vpop.f32.mrb[154].mxu1 }
 0x287   :  { %v3077_v42 = vmax.f32 %v2901_v40, 0.0  ;;  %v2686_v24 = vpop.f32.mrb[90].mxu0  ;;  %v2904_v4 = vadd.f32 %v5495_v57, %v3556_v36  ;;  %v2895_v3 = vpop.f32.mrb[155].mxu1 }
 0x288   :  { %v3075_v32 = vmax.f32 %v2893_v15, 0.0  ;;  %v5698_v33 = vadd.f32 %v2686_v24, %v2109_v8  ;;  %v2688_v37 = vpop.f32.mrb[91].mxu0  ;;  %v2896_v13 = vadd.f32 %v5483_v55, %v2895_v3  ;;  %v2114_v55 = vadd.f32 %v5294_v30, %v5275_v6 }
 0x289   :  { %3142 = vst.msk [vmem:[%s5939_s3 + $0xd0] sm:$0xff] %vm3115_vm1, %v3077_v42  ;;  %v3078_v52 = vmax.f32 %v2904_v4, 0.0 }
 0x28a   :  { %3140 = vst.msk [vmem:[%s5939_s3 + $0xc0] sm:$0xff] %vm3115_vm1, %v3075_v32  ;;  %v3076_v62 = vmax.f32 %v2896_v13, 0.0  ;;  %v5959_v32 = vld [vmem:[#allocation5_spill] sm:$0xff] }
 0x28b   :  { %3143 = vst.msk [vmem:[%s5939_s3 + $0xd8] sm:$0xff] %vm3115_vm1, %v3078_v52  ;;  %v3727_v37 = vadd.f32 %v5294_v30, %v5959_v32 }
 0x28c   :  { %3141 = vst.msk [vmem:[%s5939_s3 + $0xc8] sm:$0xff] %vm3115_vm1, %v3076_v62  ;;  %v3559_v57 = vpop.f32.mrb[156].mxu1 }
 0x28d   :  { %v2691_v44 = vpop.f32.mrb[92].mxu0  ;;  %v2917_v41 = vadd.f32 %v5515_v49, %v3559_v57  ;;  %v2908_v60 = vpop.f32.mrb[157].mxu1 }
 0x28e   :  { %v5722_v10 = vadd.f32 %v2691_v44, %v2114_v55  ;;  %v2693_v2 = vpop.f32.mrb[93].mxu0  ;;  %v2909_v26 = vadd.f32 %v5503_v28, %v2908_v60  ;;  %v3560_v43 = vpop.f32.mrb[158].mxu1 }
 0x28f   :  { %v3081_v6 = vmax.f32 %v2917_v41, 0.0  ;;  %v2694_v27 = vpop.f32.mrb[94].mxu0  ;;  %v2920_v25 = vadd.f32 %v5519_v56, %v3560_v43  ;;  %v2911_v21 = vpop.f32.mrb[159].mxu1  ;;  %v5956_v56 = vld [vmem:[#allocation2_spill] sm:$0xff] }
 0x290   :  { %v3079_v31 = vmax.f32 %v2909_v26, 0.0  ;;  %v5726_v46 = vadd.f32 %v2694_v27, %v2117_v11  ;;  %v2696_v35 = vpop.f32.mrb[95].mxu0  ;;  %v2912_v49 = vadd.f32 %v5507_v45, %v2911_v21  ;;  %v3721_v45 = vadd.f32 %v5294_v30, %v5956_v56 }
 0x291   :  { %3146 = vst.msk [vmem:[%s5939_s3 + $0xf0] sm:$0xff] %vm3115_vm1, %v3081_v6  ;;  %v3082_v14 = vmax.f32 %v2920_v25, 0.0 }
 0x292   :  { %3144 = vst.msk [vmem:[%s5939_s3 + $0xe0] sm:$0xff] %vm3115_vm1, %v3079_v31  ;;  %v3080_v28 = vmax.f32 %v2912_v49, 0.0  ;;  %v5961_v31 = vld [vmem:[#allocation7_spill] sm:$0xff] }
 0x293   :  { %3147 = vst.msk [vmem:[%s5939_s3 + $0xf8] sm:$0xff] %vm3115_vm1, %v3082_v14  ;;  %v3731_v35 = vadd.f32 %v5294_v30, %v5961_v31 }
 0x294   :  { %3145 = vst.msk [vmem:[%s5939_s3 + $0xe8] sm:$0xff] %vm3115_vm1, %v3080_v28  ;;  %v3563_v23 = vpop.f32.mrb[160].mxu1 }
 0x295   :  { %v2699_v18 = vpop.f32.mrb[96].mxu0  ;;  %v2933_v7 = vadd.f32 %v5554_v22, %v3563_v23  ;;  %v2924_v47 = vpop.f32.mrb[161].mxu1 }
 0x296   :  { %v5750_v19 = vadd.f32 %v3721_v45, %v2699_v18  ;;  %v2701_v0 = vpop.f32.mrb[97].mxu0  ;;  %v2925_v34 = vadd.f32 %v5526_v61, %v2924_v47  ;;  %v3564_v38 = vpop.f32.mrb[162].mxu1 }
 0x297   :  { %v3085_v48 = vmax.f32 %v2933_v7, 0.0  ;;  %v2702_v51 = vpop.f32.mrb[98].mxu0  ;;  %v2936_v40 = vadd.f32 %v5558_v1, %v3564_v38  ;;  %v2927_v63 = vpop.f32.mrb[163].mxu1  ;;  %v5958_v1 = vld [vmem:[#allocation4_spill] sm:$0xff] }
 0x298   :  { %v3083_v8 = vmax.f32 %v2925_v34, 0.0  ;;  %v5754_v29 = vadd.f32 %v3723_v53, %v2702_v51  ;;  %v2704_v15 = vpop.f32.mrb[99].mxu0  ;;  %v2928_v22 = vadd.f32 %v5530_v20, %v2927_v63  ;;  %v3725_v20 = vadd.f32 %v5294_v30, %v5958_v1 }
 0x299   :  { %3150 = vst.msk [vmem:[%s5939_s3 + $0x110] sm:$0xff] %vm3115_vm1, %v3085_v48  ;;  %v3086_v36 = vmax.f32 %v2936_v40, 0.0  ;;  %v5963_v40 = vld [vmem:[#allocation9_spill] sm:$0xff] }
 0x29a   :  { %3148 = vst.msk [vmem:[%s5939_s3 + $0x100] sm:$0xff] %vm3115_vm1, %v3083_v8  ;;  %v3084_v61 = vmax.f32 %v2928_v22, 0.0  ;;  %v3735_v63 = vadd.f32 %v5294_v30, %v5963_v40 }
 0x29b   :  { %3151 = vst.msk [vmem:[%s5939_s3 + $0x118] sm:$0xff] %vm3115_vm1, %v3086_v36 }
 0x29c   :  { %3149 = vst.msk [vmem:[%s5939_s3 + $0x108] sm:$0xff] %vm3115_vm1, %v3084_v61  ;;  %v3567_v42 = vpop.f32.mrb[164].mxu1 }
 0x29d   :  { %v2707_v24 = vpop.f32.mrb[100].mxu0  ;;  %v2949_v4 = vadd.f32 %v5610_v59, %v3567_v42  ;;  %v2940_v3 = vpop.f32.mrb[165].mxu1 }
 0x29e   :  { %v5778_v13 = vadd.f32 %v3725_v20, %v2707_v24  ;;  %v2709_v52 = vpop.f32.mrb[101].mxu0  ;;  %v2941_v62 = vadd.f32 %v5582_v58, %v2940_v3  ;;  %v3568_v55 = vpop.f32.mrb[166].mxu1 }
 0x29f   :  { %v3089_v57 = vmax.f32 %v2949_v4, 0.0  ;;  %v2710_v44 = vpop.f32.mrb[102].mxu0  ;;  %v2952_v41 = vadd.f32 %v5614_v9, %v3568_v55  ;;  %v2943_v60 = vpop.f32.mrb[167].mxu1  ;;  %v5960_v9 = vld [vmem:[#allocation6_spill] sm:$0xff] }
 0x2a0   :  { %v3087_v11 = vmax.f32 %v2941_v62, 0.0  ;;  %v5782_v2 = vadd.f32 %v3727_v37, %v2710_v44  ;;  %v2712_v26 = vpop.f32.mrb[103].mxu0  ;;  %v2944_v59 = vadd.f32 %v5586_v16, %v2943_v60  ;;  %v3729_v16 = vadd.f32 %v5294_v30, %v5960_v9 }
 0x2a1   :  { %3154 = vst.msk [vmem:[%s5939_s3 + $0x130] sm:$0xff] %vm3115_vm1, %v3089_v57  ;;  %v3090_v43 = vmax.f32 %v2952_v41, 0.0  ;;  %v5965_v57 = vld [vmem:[#allocation11_spill] sm:$0xff] }
 0x2a2   :  { %3152 = vst.msk [vmem:[%s5939_s3 + $0x120] sm:$0xff] %vm3115_vm1, %v3087_v11  ;;  %v3088_v58 = vmax.f32 %v2944_v59, 0.0  ;;  %v3739_v44 = vadd.f32 %v5294_v30, %v5965_v57 }
 0x2a3   :  { %3155 = vst.msk [vmem:[%s5939_s3 + $0x138] sm:$0xff] %vm3115_vm1, %v3090_v43 }
 0x2a4   :  { %3153 = vst.msk [vmem:[%s5939_s3 + $0x128] sm:$0xff] %vm3115_vm1, %v3088_v58  ;;  %v3571_v6 = vpop.f32.mrb[168].mxu1 }
 0x2a5   :  { %v2715_v27 = vpop.f32.mrb[104].mxu0  ;;  %v2965_v25 = vadd.f32 %v5666_v12, %v3571_v6  ;;  %v2956_v21 = vpop.f32.mrb[169].mxu1 }
 0x2a6   :  { %v5806_v49 = vadd.f32 %v3729_v16, %v2715_v27  ;;  %v2717_v14 = vpop.f32.mrb[105].mxu0  ;;  %v2957_v28 = vadd.f32 %v5638_v54, %v2956_v21  ;;  %v3572_v56 = vpop.f32.mrb[170].mxu1 }
 0x2a7   :  { %v3093_v45 = vmax.f32 %v2965_v25, 0.0  ;;  %v2718_v23 = vpop.f32.mrb[106].mxu0  ;;  %v2968_v18 = vadd.f32 %v5670_v5, %v3572_v56  ;;  %v2959_v7 = vpop.f32.mrb[171].mxu1  ;;  %v5962_v5 = vld [vmem:[#allocation8_spill] sm:$0xff] }
 0x2a8   :  { %v3091_v47 = vmax.f32 %v2957_v28, 0.0  ;;  %v5810_v39 = vadd.f32 %v3731_v35, %v2718_v23  ;;  %v2720_v53 = vpop.f32.mrb[107].mxu0  ;;  %v2960_v12 = vadd.f32 %v5642_v17, %v2959_v7  ;;  %v3733_v17 = vadd.f32 %v5294_v30, %v5962_v5  ;;  %v5967_v28 = vld [vmem:[#allocation13_spill] sm:$0xff] }
 0x2a9   :  { %3158 = vst.msk [vmem:[%s5939_s3 + $0x150] sm:$0xff] %vm3115_vm1, %v3093_v45  ;;  %v3094_v0 = vmax.f32 %v2968_v18, 0.0 }
 0x2aa   :  { %3156 = vst.msk [vmem:[%s5939_s3 + $0x140] sm:$0xff] %vm3115_vm1, %v3091_v47  ;;  %v3092_v54 = vmax.f32 %v2960_v12, 0.0 }
 0x2ab   :  { %3159 = vst.msk [vmem:[%s5939_s3 + $0x158] sm:$0xff] %vm3115_vm1, %v3094_v0 }
 0x2ac   :  { %3157 = vst.msk [vmem:[%s5939_s3 + $0x148] sm:$0xff] %vm3115_vm1, %v3092_v54  ;;  %v3575_v34 = vpop.f32.mrb[172].mxu1 }
 0x2ad   :  { %v2723_v38 = vpop.f32.mrb[108].mxu0  ;;  %v2981_v48 = vadd.f32 %v5722_v10, %v3575_v34  ;;  %v2972_v51 = vpop.f32.mrb[173].mxu1 }
 0x2ae   :  { %v3734_v8 = vadd.f32 %v3733_v17, %v2723_v38  ;;  %v2725_v15 = vpop.f32.mrb[109].mxu0  ;;  %v2973_v22 = vadd.f32 %v5694_v50, %v2972_v51  ;;  %v3576_v36 = vpop.f32.mrb[174].mxu1 }
 0x2af   :  { %v3097_v61 = vmax.f32 %v2981_v48, 0.0  ;;  %v2726_v1 = vpop.f32.mrb[110].mxu0  ;;  %v2984_v20 = vadd.f32 %v5726_v46, %v3576_v36  ;;  %v2975_v42 = vpop.f32.mrb[175].mxu1  ;;  %v5964_v46 = vld [vmem:[#allocation10_spill] sm:$0xff]  ;;  %v5969_v15 = vld [vmem:[#allocation15_spill] sm:$0xff] }
 0x2b0   :  { %v3095_v24 = vmax.f32 %v2973_v22, 0.0  ;;  %v3736_v4 = vadd.f32 %v3735_v63, %v2726_v1  ;;  %v2728_v3 = vpop.f32.mrb[111].mxu0  ;;  %v2976_v32 = vadd.f32 %v5698_v33, %v2975_v42  ;;  %v3737_v33 = vadd.f32 %v5294_v30, %v5964_v46  ;;  %v5968_v48 = vld [vmem:[#allocation14_spill] sm:$0xff] }
 0x2b1   :  { %3162 = vst.msk [vmem:[%s5939_s3 + $0x170] sm:$0xff] %vm3115_vm1, %v3097_v61  ;;  %v3098_v10 = vmax.f32 %v2984_v20, 0.0 }
 0x2b2   :  { %3160 = vst.msk [vmem:[%s5939_s3 + $0x160] sm:$0xff] %vm3115_vm1, %v3095_v24  ;;  %v3096_v50 = vmax.f32 %v2976_v32, 0.0 }
 0x2b3   :  { %3163 = vst.msk [vmem:[%s5939_s3 + $0x178] sm:$0xff] %vm3115_vm1, %v3098_v10 }
 0x2b4   :  { %3161 = vst.msk [vmem:[%s5939_s3 + $0x168] sm:$0xff] %vm3115_vm1, %v3096_v50  ;;  %v3579_v37 = vpop.f32.mrb[176].mxu1 }
 0x2b5   :  { %v2731_v52 = vpop.f32.mrb[112].mxu0  ;;  %v2997_v62 = vadd.f32 %v5778_v13, %v3579_v37  ;;  %v2988_v55 = vpop.f32.mrb[177].mxu1  ;;  %v5966_v13 = vld [vmem:[#allocation12_spill] sm:$0xff] }
 0x2b6   :  { %v3738_v41 = vadd.f32 %v3737_v33, %v2731_v52  ;;  %v2733_v60 = vpop.f32.mrb[113].mxu0  ;;  %v2989_v11 = vadd.f32 %v5750_v19, %v2988_v55  ;;  %v3580_v26 = vpop.f32.mrb[178].mxu1  ;;  %v5970_v52 = vld [vmem:[#allocation16_spill] sm:$0xff] }
 0x2b7   :  { %v3101_v59 = vmax.f32 %v2997_v62, 0.0  ;;  %v2734_v43 = vpop.f32.mrb[114].mxu0  ;;  %v3000_v58 = vadd.f32 %v5782_v2, %v3580_v26  ;;  %v2991_v9 = vpop.f32.mrb[179].mxu1 }
 0x2b8   :  { %v3099_v16 = vmax.f32 %v2989_v11, 0.0  ;;  %v3740_v6 = vadd.f32 %v3739_v44, %v2734_v43  ;;  %v2736_v27 = vpop.f32.mrb[115].mxu0  ;;  %v2992_v25 = vadd.f32 %v5754_v29, %v2991_v9  ;;  %v4252_v29 = vld [vmem:[%s5938_s2] ss:$0 sm:$0xff] }
 0x2b9   :  { %3166 = vst.msk [vmem:[%s5939_s3 + $0x190] sm:$0xff] %vm3115_vm1, %v3101_v59  ;;  %v3102_v30 = vmax.f32 %v3000_v58, 0.0  ;;  %v3741_v2 = vadd.f32 %v4252_v29, %v5966_v13  ;;  %v3743_v56 = vadd.f32 %v4252_v29, %v5967_v28  ;;  %v3745_v51 = vadd.f32 %v4252_v29, %v5968_v48 }
 0x2ba   :  { %3164 = vst.msk [vmem:[%s5939_s3 + $0x180] sm:$0xff] %vm3115_vm1, %v3099_v16  ;;  %v3100_v19 = vmax.f32 %v2992_v25, 0.0  ;;  %v3747_v22 = vadd.f32 %v4252_v29, %v5969_v15  ;;  %v3749_v62 = vadd.f32 %v4252_v29, %v5970_v52 }
 0x2bb   :  { %3167 = vst.msk [vmem:[%s5939_s3 + $0x198] sm:$0xff] %vm3115_vm1, %v3102_v30 }
 0x2bc   :  { %3165 = vst.msk [vmem:[%s5939_s3 + $0x188] sm:$0xff] %vm3115_vm1, %v3100_v19  ;;  %v3583_v21 = vpop.f32.mrb[180].mxu1 }
 0x2bd   :  { %v2739_v31 = vpop.f32.mrb[116].mxu0  ;;  %v3013_v35 = vadd.f32 %v3734_v8, %v3583_v21  ;;  %v3004_v14 = vpop.f32.mrb[181].mxu1 }
 0x2be   :  { %v3742_v45 = vadd.f32 %v3741_v2, %v2739_v31  ;;  %v2741_v23 = vpop.f32.mrb[117].mxu0  ;;  %v3005_v18 = vadd.f32 %v5806_v49, %v3004_v14  ;;  %v3584_v7 = vpop.f32.mrb[182].mxu1 }
 0x2bf   :  { %v3105_v47 = vmax.f32 %v3013_v35, 0.0  ;;  %v2742_v53 = vpop.f32.mrb[118].mxu0  ;;  %v3016_v12 = vadd.f32 %v3736_v4, %v3584_v7  ;;  %v3007_v0 = vpop.f32.mrb[183].mxu1 }
 0x2c0   :  { %v3103_v54 = vmax.f32 %v3005_v18, 0.0  ;;  %v3744_v5 = vadd.f32 %v3743_v56, %v2742_v53  ;;  %v2744_v17 = vpop.f32.mrb[119].mxu0  ;;  %v3008_v34 = vadd.f32 %v5810_v39, %v3007_v0 }
 0x2c1   :  { %3170 = vst.msk [vmem:[%s5939_s3 + $0x1b0] sm:$0xff] %vm3115_vm1, %v3105_v47  ;;  %v3106_v38 = vmax.f32 %v3016_v12, 0.0 }
 0x2c2   :  { %3168 = vst.msk [vmem:[%s5939_s3 + $0x1a0] sm:$0xff] %vm3115_vm1, %v3103_v54  ;;  %v3104_v49 = vmax.f32 %v3008_v34, 0.0 }
 0x2c3   :  { %3171 = vst.msk [vmem:[%s5939_s3 + $0x1b8] sm:$0xff] %vm3115_vm1, %v3106_v38 }
 0x2c4   :  { %3169 = vst.msk [vmem:[%s5939_s3 + $0x1a8] sm:$0xff] %vm3115_vm1, %v3104_v49  ;;  %v3587_v39 = vpop.f32.mrb[184].mxu1 }
 0x2c5   :  { %v2747_v40 = vpop.f32.mrb[120].mxu0  ;;  %v3029_v63 = vadd.f32 %v3742_v45, %v3587_v39  ;;  %v3020_v8 = vpop.f32.mrb[185].mxu1 }
 0x2c6   :  { %v3746_v36 = vadd.f32 %v3745_v51, %v2747_v40  ;;  %v2749_v61 = vpop.f32.mrb[121].mxu0  ;;  %v3021_v1 = vadd.f32 %v3738_v41, %v3020_v8  ;;  %v3588_v20 = vpop.f32.mrb[186].mxu1  ;;  %v5971_v41 = vld [vmem:[#allocation17_spill] sm:$0xff] }
 0x2c7   :  { %v3109_v42 = vmax.f32 %v3029_v63, 0.0  ;;  %v2750_v24 = vpop.f32.mrb[122].mxu0  ;;  %v3032_v4 = vadd.f32 %v3744_v5, %v3588_v20  ;;  %v3023_v3 = vpop.f32.mrb[187].mxu1  ;;  %v3751_v60 = vadd.f32 %v4252_v29, %v5971_v41 }
 0x2c8   :  { %v3107_v32 = vmax.f32 %v3021_v1, 0.0  ;;  %v3748_v10 = vadd.f32 %v3747_v22, %v2750_v24  ;;  %v2752_v50 = vpop.f32.mrb[123].mxu0  ;;  %v3024_v46 = vadd.f32 %v3740_v6, %v3023_v3 }
 0x2c9   :  { %3174 = vst.msk [vmem:[%s5939_s3 + $0x1d0] sm:$0xff] %vm3115_vm1, %v3109_v42  ;;  %v3110_v33 = vmax.f32 %v3032_v4, 0.0 }
 0x2ca   :  { %3172 = vst.msk [vmem:[%s5939_s3 + $0x1c0] sm:$0xff] %vm3115_vm1, %v3107_v32  ;;  %v3108_v37 = vmax.f32 %v3024_v46, 0.0 }
 0x2cb   :  { %3175 = vst.msk [vmem:[%s5939_s3 + $0x1d8] sm:$0xff] %vm3115_vm1, %v3110_v33 }
 0x2cc   :  { %3173 = vst.msk [vmem:[%s5939_s3 + $0x1c8] sm:$0xff] %vm3115_vm1, %v3108_v37  ;;  %v3591_v55 = vpop.f32.mrb[188].mxu1 }
 0x2cd   :  { %v2755_v57 = vpop.f32.mrb[124].mxu0  ;;  %v3036_v44 = vpop.f32.mrb[189].mxu1 }
 0x2ce   :  { %v3750_v11 = vadd.f32 %v3749_v62, %v2755_v57  ;;  %v2757_v26 = vpop.f32.mrb[125].mxu0  ;;  %v3037_v59 = vadd.f32 %v3746_v36, %v3036_v44  ;;  %v3592_v43 = vpop.f32.mrb[190].mxu1 }
 0x2cf   :  { %v2758_v58 = vpop.f32.mrb[126].mxu0  ;;  %v3039_v9 = vpop.f32.mrb[191].mxu1 }
 0x2d0   :  { %v3045_v16 = vadd.f32 %v3750_v11, %v3591_v55  ;;  %v3111_v6 = vmax.f32 %v3037_v59, 0.0  ;;  %v3752_v27 = vadd.f32 %v3751_v60, %v2758_v58  ;;  %v2760_v25 = vpop.f32.mrb[127].mxu0  ;;  %v3040_v30 = vadd.f32 %v3748_v10, %v3039_v9 }
 0x2d2   :  { %v3113_v19 = vmax.f32 %v3045_v16, 0.0  ;;  %3176 = vst.msk [vmem:[%s5939_s3 + $0x1e0] sm:$0xff] %vm3115_vm1, %v3111_v6  ;;  %v3048_v13 = vadd.f32 %v3752_v27, %v3592_v43  ;;  %v3112_v2 = vmax.f32 %v3040_v30, 0.0 }
 0x2d4   :  { %3178 = vst.msk [vmem:[%s5939_s3 + $0x1f0] sm:$0xff] %vm3115_vm1, %v3113_v19  ;;  %v3114_v29 = vmax.f32 %v3048_v13, 0.0  ;;  %3177 = vst.msk [vmem:[%s5939_s3 + $0x1e8] sm:$0xff] %vm3115_vm1, %v3112_v2 }
 0x2d6   :  { %3179 = vst.msk [vmem:[%s5939_s3 + $0x1f8] sm:$0xff] %vm3115_vm1, %v3114_v29 }

// kernel: encoder_net_forward.7
= control target key start
LH: loop header
LB: loop body
LE: loop exit
PB: predicated region body
PF: predicated region fallthrough
CT: control target
= control target key end

     0   :  { %vm1454_vm0 = vcmask 523264   ;;  %s3922_s1 = inlined_call_operand.vmem [shape: bf16[1600,128], index: 1, kind: input, shape index: {}]   ;;  %s3923_s0 = inlined_call_operand.vmem [shape: bf16[128,1600], index: 0, kind: input, shape index: {}]   ;;  %s3924_s2 = inlined_call_operand.vmem [shape: f32[1,128], index: 2, kind: input, shape index: {}]   ;;  %s3925_s3 = inlined_call_operand.vmem [shape: f32[128,128], index: 3, kind: output, shape index: {}]  }
   0x1   :  { %v2835_v0 = vld [vmem:[%s3922_s1 + $0x40] sm:$0xff]   ;;  %v2839_v4 = vld [vmem:[%s3922_s1 + $0x48] sm:$0xff]   ;;  %v2843_v8 = vld [vmem:[%s3922_s1 + $0x50] sm:$0xff]  }
   0x2   :  { %v2836_v1 = vld [vmem:[%s3922_s1 + $0xc0] sm:$0xff]   ;;  %2407 = vmatprep.subr.bf16.mxu0 %v2835_v0  ;;  %v2840_v5 = vld [vmem:[%s3922_s1 + $0xc8] sm:$0xff]   ;;  %v2844_v9 = vld [vmem:[%s3922_s1 + $0xd0] sm:$0xff]  }
   0x3   :  { %v2837_v2 = vld [vmem:[%s3922_s1] sm:$0xff]   ;;  %2471 = vmatprep.subr.bf16.mxu1 %v2836_v1  ;;  %v2841_v6 = vld [vmem:[%s3922_s1 + $0x8] sm:$0xff]   ;;  %v2845_v10 = vld [vmem:[%s3922_s1 + $0x10] sm:$0xff]  }
   0x4   :  { %v2838_v3 = vld [vmem:[%s3922_s1 + $0x80] sm:$0xff]   ;;  %2408 = vmatpush3.bf16.msra.mxu0 %v2837_v2  ;;  %v2842_v7 = vld [vmem:[%s3922_s1 + $0x88] sm:$0xff]   ;;  %v2846_v11 = vld [vmem:[%s3922_s1 + $0x90] sm:$0xff]  }
   0x5   :  { %2472 = vmatpush3.bf16.msra.mxu1 %v2838_v3  ;;  %2409 = vmatprep.subr.bf16.mxu0 %v2839_v4  ;;  %v2847_v12 = vld [vmem:[%s3922_s1 + $0x58] sm:$0xff]   ;;  %v2851_v16 = vld [vmem:[%s3922_s1 + $0x60] sm:$0xff]   ;;  %v2855_v20 = vld [vmem:[%s3922_s1 + $0x68] sm:$0xff]  }
   0x6   :  { %2473 = vmatprep.subr.bf16.mxu1 %v2840_v5  ;;  %v2848_v13 = vld [vmem:[%s3922_s1 + $0xd8] sm:$0xff]   ;;  %v2852_v17 = vld [vmem:[%s3922_s1 + $0xe0] sm:$0xff]   ;;  %v2856_v21 = vld [vmem:[%s3922_s1 + $0xe8] sm:$0xff]  }
   0x7   :  { %v2849_v14 = vld [vmem:[%s3922_s1 + $0x18] sm:$0xff]   ;;  %v2853_v18 = vld [vmem:[%s3922_s1 + $0x20] sm:$0xff]   ;;  %v2857_v22 = vld [vmem:[%s3922_s1 + $0x28] sm:$0xff]  }
   0x8   :  { %2410 = vmatpush3.bf16.msra.mxu0 %v2841_v6  ;;  %v2850_v15 = vld [vmem:[%s3922_s1 + $0x98] sm:$0xff]   ;;  %v2854_v19 = vld [vmem:[%s3922_s1 + $0xa0] sm:$0xff]   ;;  %v2858_v23 = vld [vmem:[%s3922_s1 + $0xa8] sm:$0xff]  }
   0x9   :  { %2474 = vmatpush3.bf16.msra.mxu1 %v2842_v7  ;;  %2411 = vmatprep.subr.bf16.mxu0 %v2843_v8  ;;  %v2859_v24 = vld [vmem:[%s3922_s1 + $0x70] sm:$0xff]   ;;  %v2863_v28 = vld [vmem:[%s3922_s1 + $0x78] sm:$0xff]   ;;  %v2872_v35 = vld [vmem:[%s3923_s0 + $0xc] ss:$52 sps:$4 sm:$0xff]  }
   0xa   :  { %2475 = vmatprep.subr.bf16.mxu1 %v2844_v9  ;;  %v2860_v25 = vld [vmem:[%s3922_s1 + $0xf0] sm:$0xff]   ;;  %v2864_v29 = vld [vmem:[%s3922_s1 + $0xf8] sm:$0xff]   ;;  %v2873_v36 = vld [vmem:[%s3922_s1 + $0x140] sm:$0xff]   ;;  %1608 = vmatprep.mubr.bf16.mxu1 %v2872_v35 }
   0xb   :  { %v2861_v26 = vld [vmem:[%s3922_s1 + $0x30] sm:$0xff]   ;;  %v2865_v30 = vld [vmem:[%s3922_s1 + $0x38] sm:$0xff]   ;;  %v2874_v37 = vld [vmem:[%s3922_s1 + $0x1c0] sm:$0xff]  }
   0xc   :  { %2412 = vmatpush3.bf16.msra.mxu0 %v2845_v10  ;;  %v2862_v27 = vld [vmem:[%s3922_s1 + $0xb0] sm:$0xff]   ;;  %v2866_v31 = vld [vmem:[%s3922_s1 + $0xb8] sm:$0xff]   ;;  %v2875_v38 = vld [vmem:[%s3922_s1 + $0x100] sm:$0xff]  }
   0xd   :  { %2476 = vmatpush3.bf16.msra.mxu1 %v2846_v11  ;;  %2413 = vmatprep.subr.bf16.mxu0 %v2847_v12  ;;  %v2867_v32 = vld [vmem:[%s3923_s0] ss:$52 sps:$4 sm:$0xff]   ;;  %v2869_v33 = vld [vmem:[%s3923_s0 + $0x4] ss:$52 sps:$4 sm:$0xff]   ;;  %v2870_v34 = vld [vmem:[%s3923_s0 + $0x8] ss:$52 sps:$4 sm:$0xff]  }
   0xe   :  { %2477 = vmatprep.subr.bf16.mxu1 %v2848_v13  ;;  %1511 = vmatprep.mubr.bf16.mxu0 %v2869_v33  ;;  %v2876_v39 = vld [vmem:[%s3922_s1 + $0x180] sm:$0xff]   ;;  %v2879_v41 = vld [vmem:[%s3923_s0 + $0x74] ss:$52 sps:$4 sm:$0xff]   ;;  %v2889_v49 = vld [vmem:[%s3923_s0 + $0xdc] ss:$52 sps:$4 sm:$0xff]  }
   0xf   :  { %v2877_v40 = vld [vmem:[%s3923_s0 + $0x6c] ss:$52 sps:$4 sm:$0xff]   ;;  %v2881_v42 = vld [vmem:[%s3923_s0 + $0x68] ss:$52 sps:$4 sm:$0xff]   ;;  %v2882_v43 = vld [vmem:[%s3923_s0 + $0x70] ss:$52 sps:$4 sm:$0xff]  }
  0x10   :  { %2414 = vmatpush3.bf16.msra.mxu0 %v2849_v14  ;;  %v2883_v44 = vld [vmem:[%s3922_s1 + $0x148] sm:$0xff]   ;;  %v2891_v50 = vld [vmem:[%s3923_s0 + $0xd0] ss:$52 sps:$4 sm:$0xff]   ;;  %v2902_v59 = vld [vmem:[%s3923_s0 + $0x140] ss:$52 sps:$4 sm:$0xff]  }
  0x11   :  { %2478 = vmatpush3.bf16.msra.mxu1 %v2850_v15  ;;  %2415 = vmatprep.subr.bf16.mxu0 %v2851_v16  ;;  %v2884_v45 = vld [vmem:[%s3922_s1 + $0x1c8] sm:$0xff]   ;;  %v2893_v52 = vld [vmem:[%s3922_s1 + $0x150] sm:$0xff]   ;;  %v2899_v57 = vld [vmem:[%s3923_s0 + $0x144] ss:$52 sps:$4 sm:$0xff]  }
  0x12   :  { %2479 = vmatprep.subr.bf16.mxu1 %v2852_v17  ;;  %v2885_v46 = vld [vmem:[%s3922_s1 + $0x108] sm:$0xff]   ;;  %v2894_v53 = vld [vmem:[%s3922_s1 + $0x1d0] sm:$0xff]   ;;  %v2903_v60 = vld [vmem:[%s3922_s1 + $0x158] sm:$0xff]  }
  0x13   :  { %v2886_v47 = vld [vmem:[%s3922_s1 + $0x188] sm:$0xff]   ;;  %v2895_v54 = vld [vmem:[%s3922_s1 + $0x110] sm:$0xff]   ;;  %v2904_v61 = vld [vmem:[%s3922_s1 + $0x1d8] sm:$0xff]  }
  0x14   :  { %2416 = vmatpush3.bf16.msra.mxu0 %v2853_v18  ;;  %v2887_v48 = vld [vmem:[%s3923_s0 + $0xd4] ss:$52 sps:$4 sm:$0xff]   ;;  %v2892_v51 = vld [vmem:[%s3923_s0 + $0xd8] ss:$52 sps:$4 sm:$0xff]   ;;  %v2897_v56 = vld [vmem:[%s3923_s0 + $0x13c] ss:$52 sps:$4 sm:$0xff]  }
  0x15   :  { %2480 = vmatpush3.bf16.msra.mxu1 %v2854_v19  ;;  %2417 = vmatprep.subr.bf16.mxu0 %v2855_v20  ;;  %v2896_v55 = vld [vmem:[%s3922_s1 + $0x190] sm:$0xff]   ;;  %v2901_v58 = vld [vmem:[%s3923_s0 + $0x138] ss:$52 sps:$4 sm:$0xff]   ;;  %v2913_v3 = vld [vmem:[%s3922_s1 + $0x160] sm:$0xff]  }
  0x16   :  { %2481 = vmatprep.subr.bf16.mxu1 %v2856_v21  ;;  %v2905_v62 = vld [vmem:[%s3922_s1 + $0x118] sm:$0xff]   ;;  %v2909_v1 = vld [vmem:[%s3923_s0 + $0x1ac] ss:$52 sps:$4 sm:$0xff]   ;;  %v2919_v9 = vld [vmem:[%s3923_s0 + $0x214] ss:$52 sps:$4 sm:$0xff]  }
  0x17   :  { %v2906_v63 = vld [vmem:[%s3922_s1 + $0x198] sm:$0xff]   ;;  %v2911_v2 = vld [vmem:[%s3923_s0 + $0x1a0] ss:$52 sps:$4 sm:$0xff]   ;;  %v2923_v10 = vld [vmem:[%s3922_s1 + $0x168] sm:$0xff]  }
  0x18   :  { %2418 = vmatpush3.bf16.msra.mxu0 %v2857_v22  ;;  %v2907_v0 = vld [vmem:[%s3923_s0 + $0x1a4] ss:$52 sps:$4 sm:$0xff]   ;;  %v2912_v4 = vld [vmem:[%s3923_s0 + $0x1a8] ss:$52 sps:$4 sm:$0xff]   ;;  %v2917_v8 = vld [vmem:[%s3923_s0 + $0x20c] ss:$52 sps:$4 sm:$0xff]  }
  0x19   :  { %2482 = vmatpush3.bf16.msra.mxu1 %v2858_v23  ;;  %2419 = vmatprep.subr.bf16.mxu0 %v2859_v24  ;;  %v2914_v5 = vld [vmem:[%s3922_s1 + $0x1e0] sm:$0xff]   ;;  %v2924_v11 = vld [vmem:[%s3922_s1 + $0x1e8] sm:$0xff]   ;;  %v2929_v17 = vld [vmem:[%s3923_s0 + $0x27c] ss:$52 sps:$4 sm:$0xff]  }
  0x1a   :  { %2483 = vmatprep.subr.bf16.mxu1 %v2860_v25  ;;  %v2915_v6 = vld [vmem:[%s3922_s1 + $0x120] sm:$0xff]   ;;  %v2921_v12 = vld [vmem:[%s3923_s0 + $0x208] ss:$52 sps:$4 sm:$0xff]   ;;  %v2933_v18 = vld [vmem:[%s3922_s1 + $0x170] sm:$0xff]  }
  0x1b   :  { %v2916_v7 = vld [vmem:[%s3922_s1 + $0x1a0] sm:$0xff]   ;;  %v2925_v13 = vld [vmem:[%s3922_s1 + $0x128] sm:$0xff]   ;;  %v2934_v19 = vld [vmem:[%s3922_s1 + $0x1f0] sm:$0xff]  }
  0x1c   :  { %2420 = vmatpush3.bf16.msra.mxu0 %v2861_v26  ;;  %v2926_v14 = vld [vmem:[%s3922_s1 + $0x1a8] sm:$0xff]   ;;  %v2922_v15 = vld [vmem:[%s3923_s0 + $0x210] ss:$52 sps:$4 sm:$0xff]   ;;  %v2943_v26 = vld [vmem:[%s3922_s1 + $0x178] sm:$0xff]  }
  0x1d   :  { %2484 = vmatpush3.bf16.msra.mxu1 %v2862_v27  ;;  %2421 = vmatprep.subr.bf16.mxu0 %v2863_v28  ;;  %v2927_v16 = vld [vmem:[%s3923_s0 + $0x274] ss:$52 sps:$4 sm:$0xff]   ;;  %v2931_v22 = vld [vmem:[%s3923_s0 + $0x270] ss:$52 sps:$4 sm:$0xff]   ;;  %v2932_v23 = vld [vmem:[%s3923_s0 + $0x278] ss:$52 sps:$4 sm:$0xff]  }
  0x1e   :  { %2485 = vmatprep.subr.bf16.mxu1 %v2864_v29  ;;  %v2935_v20 = vld [vmem:[%s3922_s1 + $0x130] sm:$0xff]   ;;  %v2939_v25 = vld [vmem:[%s3923_s0 + $0x2e4] ss:$52 sps:$4 sm:$0xff]  }
  0x1f   :  { %v2936_v21 = vld [vmem:[%s3922_s1 + $0x1b0] sm:$0xff]   ;;  %v2944_v27 = vld [vmem:[%s3922_s1 + $0x1f8] sm:$0xff]   ;;  %v2953_v33 = vld [vmem:[%s3922_s1 + $0x240] sm:$0xff]  }
  0x20   :  { %2422 = vmatpush3.bf16.msra.mxu0 %v2865_v30  ;;  %v2937_v24 = vld [vmem:[%s3923_s0 + $0x2dc] ss:$52 sps:$4 sm:$0xff]   ;;  %v2941_v30 = vld [vmem:[%s3923_s0 + $0x2d8] ss:$52 sps:$4 sm:$0xff]  }
  0x21   :  { %2486 = vmatpush3.bf16.msra.mxu1 %v2866_v31  ;;  %2535 = vmatprep.subr.bf16.mxu0 %v2873_v36  ;;  %v2945_v28 = vld [vmem:[%s3922_s1 + $0x138] sm:$0xff]   ;;  %v2942_v31 = vld [vmem:[%s3923_s0 + $0x2e0] ss:$52 sps:$4 sm:$0xff]   ;;  %v2947_v36 = vld [vmem:[%s3923_s0 + $0x10] ss:$52 sps:$4 sm:$0xff]  }
  0x22   :  { %2599 = vmatprep.subr.bf16.mxu1 %v2874_v37  ;;  %v2946_v29 = vld [vmem:[%s3922_s1 + $0x1b8] sm:$0xff]  }
  0x23   :  { %1512 = vmatmul.mubr.bf16.vlgmr.msra.gmra.mrb[0].mxu0 %v2867_v32  ;;  %v2949_v32 = vld [vmem:[%s3923_s0 + $0x14] ss:$52 sps:$4 sm:$0xff]   ;;  %v2952_v35 = vld [vmem:[%s3923_s0 + $0x1c] ss:$52 sps:$4 sm:$0xff]   ;;  %v2950_v37 = vld [vmem:[%s3923_s0 + $0x18] ss:$52 sps:$4 sm:$0xff]  }
  0x24   :  { %1609 = vmatmul.mubr.bf16.vlgmr.msra.gmra.mrb[0].mxu1 %v2870_v34  ;;  %2536 = vmatpush3.bf16.msra.mxu0 %v2875_v38  ;;  %v2954_v34 = vld [vmem:[%s3922_s1 + $0x2c0] sm:$0xff]  }
  0x25   :  { %2600 = vmatpush3.bf16.msra.mxu1 %v2876_v39  ;;  %1519 = vmatprep.mubr.bf16.mxu0 %v2877_v40  ;;  %v2955_v38 = vld [vmem:[%s3922_s1 + $0x200] sm:$0xff]   ;;  %v2957_v40 = vld [vmem:[%s3923_s0 + $0x7c] ss:$52 sps:$4 sm:$0xff]  }
  0x26   :  { %1616 = vmatprep.mubr.bf16.mxu1 %v2879_v41  ;;  %2537 = vmatprep.subr.bf16.mxu0 %v2883_v44  ;;  %v2956_v39 = vld [vmem:[%s3922_s1 + $0x280] sm:$0xff]   ;;  %v2965_v44 = vld [vmem:[%s3922_s1 + $0x208] sm:$0xff]  }
  0x27   :  { %2601 = vmatprep.subr.bf16.mxu1 %v2884_v45  ;;  %v2959_v41 = vld [vmem:[%s3923_s0 + $0x84] ss:$52 sps:$4 sm:$0xff]   ;;  %v2966_v45 = vld [vmem:[%s3922_s1 + $0x288] sm:$0xff]  }
  0x28   :  { %2538 = vmatpush3.bf16.msra.mxu0 %v2885_v46  ;;  %v2961_v46 = vld [vmem:[%s3923_s0 + $0x78] ss:$52 sps:$4 sm:$0xff]  }
  0x29   :  { %2602 = vmatpush3.bf16.msra.mxu1 %v2886_v47  ;;  %2539 = vmatprep.subr.bf16.mxu0 %v2893_v52  ;;  %v2973_v47 = vld [vmem:[%s3922_s1 + $0x250] sm:$0xff]  }
  0x2a   :  { %2603 = vmatprep.subr.bf16.mxu1 %v2894_v53  ;;  %v2975_v52 = vld [vmem:[%s3922_s1 + $0x210] sm:$0xff]  }
  0x2b   :  { %1520 = vmatmul.mubr.bf16.gmra.mrb[4].mxu0 %v2881_v42  ;;  %v2963_v42 = vld [vmem:[%s3922_s1 + $0x248] sm:$0xff]   ;;  %v2976_v53 = vld [vmem:[%s3922_s1 + $0x290] sm:$0xff]  }
  0x2c   :  { %1617 = vmatmul.mubr.bf16.gmra.mrb[4].mxu1 %v2882_v43  ;;  %1527 = vmatprep.mubr.bf16.mxu0 %v2887_v48  ;;  %v2964_v43 = vld [vmem:[%s3922_s1 + $0x2c8] sm:$0xff]   ;;  %v2962_v48 = vld [vmem:[%s3923_s0 + $0x80] ss:$52 sps:$4 sm:$0xff]  }
  0x2d   :  { %1624 = vmatprep.mubr.bf16.mxu1 %v2889_v49  ;;  %2540 = vmatpush3.bf16.msra.mxu0 %v2895_v54  ;;  %v2974_v49 = vld [vmem:[%s3922_s1 + $0x2d0] sm:$0xff]   ;;  %v2983_v54 = vld [vmem:[%s3922_s1 + $0x258] sm:$0xff]  }
  0x2e   :  { %2604 = vmatpush3.bf16.msra.mxu1 %v2896_v55  ;;  %2541 = vmatprep.subr.bf16.mxu0 %v2903_v60  ;;  %v2984_v55 = vld [vmem:[%s3922_s1 + $0x2d8] sm:$0xff]   ;;  %v2977_v60 = vld [vmem:[%s3923_s0 + $0x14c] ss:$52 sps:$4 sm:$0xff]  }
  0x2f   :  { %2605 = vmatprep.subr.bf16.mxu1 %v2904_v61  ;;  %v2979_v61 = vld [vmem:[%s3923_s0 + $0x154] ss:$52 sps:$4 sm:$0xff]  }
  0x31   :  { %2542 = vmatpush3.bf16.msra.mxu0 %v2905_v62  ;;  %v2993_v62 = vld [vmem:[%s3922_s1 + $0x260] sm:$0xff]  }
  0x32   :  { %2606 = vmatpush3.bf16.msra.mxu1 %v2906_v63  ;;  %2543 = vmatprep.subr.bf16.mxu0 %v2913_v3  ;;  %v2994_v63 = vld [vmem:[%s3922_s1 + $0x2e0] sm:$0xff]  }
  0x33   :  { %1528 = vmatmul.mubr.bf16.gmra.mrb[8].mxu0 %v2891_v50  ;;  %2607 = vmatprep.subr.bf16.mxu1 %v2914_v5  ;;  %v2967_v50 = vld [vmem:[%s3923_s0 + $0xe4] ss:$52 sps:$4 sm:$0xff]   ;;  %v2989_v5 = vld [vmem:[%s3923_s0 + $0x1bc] ss:$52 sps:$4 sm:$0xff]  }
  0x34   :  { %1625 = vmatmul.mubr.bf16.gmra.mrb[8].mxu1 %v2892_v51  ;;  %1535 = vmatprep.mubr.bf16.mxu0 %v2897_v56  ;;  %v2969_v51 = vld [vmem:[%s3923_s0 + $0xec] ss:$52 sps:$4 sm:$0xff]   ;;  %v2982_v3 = vld [vmem:[%s3923_s0 + $0x150] ss:$52 sps:$4 sm:$0xff]  }
  0x35   :  { %1632 = vmatprep.mubr.bf16.mxu1 %v2899_v57  ;;  %2544 = vmatpush3.bf16.msra.mxu0 %v2915_v6  ;;  %v2971_v56 = vld [vmem:[%s3923_s0 + $0xe0] ss:$52 sps:$4 sm:$0xff]   ;;  %v2985_v57 = vld [vmem:[%s3922_s1 + $0x218] sm:$0xff]   ;;  %v3003_v6 = vld [vmem:[%s3922_s1 + $0x268] sm:$0xff]  }
  0x36   :  { %2608 = vmatpush3.bf16.msra.mxu1 %v2916_v7  ;;  %2545 = vmatprep.subr.bf16.mxu0 %v2923_v10  ;;  %v3004_v7 = vld [vmem:[%s3922_s1 + $0x2e8] sm:$0xff]   ;;  %v2991_v10 = vld [vmem:[%s3923_s0 + $0x1b0] ss:$52 sps:$4 sm:$0xff]  }
  0x37   :  { %2609 = vmatprep.subr.bf16.mxu1 %v2924_v11  ;;  %v2992_v11 = vld [vmem:[%s3923_s0 + $0x1b8] ss:$52 sps:$4 sm:$0xff]  }
  0x39   :  { %2546 = vmatpush3.bf16.msra.mxu0 %v2925_v13  ;;  %v2999_v13 = vld [vmem:[%s3923_s0 + $0x224] ss:$52 sps:$4 sm:$0xff]  }
  0x3a   :  { %2610 = vmatpush3.bf16.msra.mxu1 %v2926_v14  ;;  %2547 = vmatprep.subr.bf16.mxu0 %v2933_v18  ;;  %v3013_v14 = vld [vmem:[%s3922_s1 + $0x270] sm:$0xff]   ;;  %v3001_v18 = vld [vmem:[%s3923_s0 + $0x218] ss:$52 sps:$4 sm:$0xff]  }
  0x3b   :  { %1536 = vmatmul.mubr.bf16.gmra.mrb[12].mxu0 %v2901_v58  ;;  %2611 = vmatprep.subr.bf16.mxu1 %v2934_v19  ;;  %v2986_v58 = vld [vmem:[%s3922_s1 + $0x298] sm:$0xff]   ;;  %v3002_v19 = vld [vmem:[%s3923_s0 + $0x220] ss:$52 sps:$4 sm:$0xff]  }
  0x3c   :  { %1633 = vmatmul.mubr.bf16.gmra.mrb[12].mxu1 %v2902_v59  ;;  %1543 = vmatprep.mubr.bf16.mxu0 %v2907_v0  ;;  %v2972_v59 = vld [vmem:[%s3923_s0 + $0xe8] ss:$52 sps:$4 sm:$0xff]   ;;  %v2995_v0 = vld [vmem:[%s3922_s1 + $0x220] sm:$0xff]  }
  0x3d   :  { %1640 = vmatprep.mubr.bf16.mxu1 %v2909_v1  ;;  %2548 = vmatpush3.bf16.msra.mxu0 %v2935_v20  ;;  %v2996_v1 = vld [vmem:[%s3922_s1 + $0x2a0] sm:$0xff]  }
  0x3e   :  { %2612 = vmatpush3.bf16.msra.mxu1 %v2936_v21  ;;  %2549 = vmatprep.subr.bf16.mxu0 %v2943_v26  ;;  %v3007_v20 = vld [vmem:[%s3923_s0 + $0x284] ss:$52 sps:$4 sm:$0xff]  }
  0x3f   :  { %2613 = vmatprep.subr.bf16.mxu1 %v2944_v27  ;;  %v3023_v21 = vld [vmem:[%s3922_s1 + $0x278] sm:$0xff]   ;;  %v3033_v26 = vld [vmem:[%s3922_s1 + $0x300] sm:$0xff]  }
  0x40   :  { %v3011_v27 = vld [vmem:[%s3923_s0 + $0x280] ss:$52 sps:$4 sm:$0xff]  }
  0x41   :  { %2550 = vmatpush3.bf16.msra.mxu0 %v2945_v28  ;;  %v3012_v28 = vld [vmem:[%s3923_s0 + $0x288] ss:$52 sps:$4 sm:$0xff]  }
  0x42   :  { %2614 = vmatpush3.bf16.msra.mxu1 %v2946_v29  ;;  %2663 = vmatprep.subr.bf16.mxu0 %v2953_v33  ;;  %v3017_v29 = vld [vmem:[%s3923_s0 + $0x2ec] ss:$52 sps:$4 sm:$0xff]   ;;  %v3029_v33 = vld [vmem:[%s3923_s0 + $0x24] ss:$52 sps:$4 sm:$0xff]  }
  0x43   :  { %1544 = vmatmul.mubr.bf16.gmra.mrb[16].mxu0 %v2911_v2  ;;  %2727 = vmatprep.subr.bf16.mxu1 %v2954_v34  ;;  %v2981_v2 = vld [vmem:[%s3923_s0 + $0x148] ss:$52 sps:$4 sm:$0xff]   ;;  %v3032_v34 = vld [vmem:[%s3923_s0 + $0x2c] ss:$52 sps:$4 sm:$0xff]  }
  0x44   :  { %1641 = vmatmul.mubr.bf16.gmra.mrb[16].mxu1 %v2912_v4  ;;  %1551 = vmatprep.mubr.bf16.mxu0 %v2917_v8  ;;  %v2987_v4 = vld [vmem:[%s3923_s0 + $0x1b4] ss:$52 sps:$4 sm:$0xff]  }
  0x45   :  { %1648 = vmatprep.mubr.bf16.mxu1 %v2919_v9  ;;  %v3005_v8 = vld [vmem:[%s3922_s1 + $0x228] sm:$0xff]  }
  0x46   :  { %v3006_v9 = vld [vmem:[%s3922_s1 + $0x2a8] sm:$0xff]  }
  0x4b   :  { %1552 = vmatmul.mubr.bf16.gmra.mrb[20].mxu0 %v2921_v12  ;;  %v2997_v12 = vld [vmem:[%s3923_s0 + $0x21c] ss:$52 sps:$4 sm:$0xff]  }
  0x4c   :  { %1649 = vmatmul.mubr.bf16.gmra.mrb[20].mxu1 %v2922_v15  ;;  %1559 = vmatprep.mubr.bf16.mxu0 %v2927_v16  ;;  %v3014_v15 = vld [vmem:[%s3922_s1 + $0x2f0] sm:$0xff]  }
  0x4d   :  { %1656 = vmatprep.mubr.bf16.mxu1 %v2929_v17  ;;  %v3015_v16 = vld [vmem:[%s3922_s1 + $0x230] sm:$0xff]  }
  0x4e   :  { %v3016_v17 = vld [vmem:[%s3922_s1 + $0x2b0] sm:$0xff]  }
  0x53   :  { %1560 = vmatmul.mubr.bf16.gmra.mrb[24].mxu0 %v2931_v22  ;;  %v3009_v22 = vld [vmem:[%s3923_s0 + $0x28c] ss:$52 sps:$4 sm:$0xff]  }
  0x54   :  { %1657 = vmatmul.mubr.bf16.gmra.mrb[24].mxu1 %v2932_v23  ;;  %1567 = vmatprep.mubr.bf16.mxu0 %v2937_v24  ;;  %v3024_v23 = vld [vmem:[%s3922_s1 + $0x2f8] sm:$0xff]  }
  0x55   :  { %1664 = vmatprep.mubr.bf16.mxu1 %v2939_v25  ;;  %v3025_v24 = vld [vmem:[%s3922_s1 + $0x238] sm:$0xff]  }
  0x56   :  { %v3026_v25 = vld [vmem:[%s3922_s1 + $0x2b8] sm:$0xff]  }
  0x5b   :  { %1568 = vmatmul.mubr.bf16.gmra.mrb[28].mxu0 %v2941_v30  ;;  %v3019_v30 = vld [vmem:[%s3923_s0 + $0x2f4] ss:$52 sps:$4 sm:$0xff]  }
  0x5c   :  { %1665 = vmatmul.mubr.bf16.gmra.mrb[28].mxu1 %v2942_v31  ;;  %1705 = vmatprep.mubr.bf16.mxu0 %v2949_v32  ;;  %v3021_v31 = vld [vmem:[%s3923_s0 + $0x2e8] ss:$52 sps:$4 sm:$0xff]   ;;  %v3022_v32 = vld [vmem:[%s3923_s0 + $0x2f0] ss:$52 sps:$4 sm:$0xff]  }
  0x5d   :  { %1802 = vmatprep.mubr.bf16.mxu1 %v2952_v35  ;;  %v3027_v35 = vld [vmem:[%s3923_s0 + $0x20] ss:$52 sps:$4 sm:$0xff]  }
  0x63   :  { %1706 = vmatmul.mubr.bf16.vlgmr.msra.gmra.mrb[32].mxu0 %v2947_v36  ;;  %v3030_v36 = vld [vmem:[%s3923_s0 + $0x28] ss:$52 sps:$4 sm:$0xff]  }
  0x64   :  { %1803 = vmatmul.mubr.bf16.vlgmr.msra.gmra.mrb[32].mxu1 %v2950_v37  ;;  %2664 = vmatpush3.bf16.msra.mxu0 %v2955_v38  ;;  %v3034_v37 = vld [vmem:[%s3923_s0 + $0x8c] ss:$52 sps:$4 sm:$0xff]   ;;  %v3036_v38 = vld [vmem:[%s3923_s0 + $0x94] ss:$52 sps:$4 sm:$0xff]  }
  0x65   :  { %2728 = vmatpush3.bf16.msra.mxu1 %v2956_v39  ;;  %1713 = vmatprep.mubr.bf16.mxu0 %v2957_v40  ;;  %v3046_v39 = vld [vmem:[%s3922_s1 + $0x308] sm:$0xff]   ;;  %v3059_v40 = vld [vmem:[%s3922_s1 + $0x310] sm:$0xff]  }
  0x66   :  { %1810 = vmatprep.mubr.bf16.mxu1 %v2959_v41  ;;  %2665 = vmatprep.subr.bf16.mxu0 %v2963_v42  ;;  %v3038_v41 = vld [vmem:[%s3923_s0 + $0x88] ss:$52 sps:$4 sm:$0xff]   ;;  %v3039_v42 = vld [vmem:[%s3923_s0 + $0x90] ss:$52 sps:$4 sm:$0xff]  }
  0x67   :  { %2729 = vmatprep.subr.bf16.mxu1 %v2964_v43  ;;  %v3040_v43 = vld [vmem:[%s3923_s0 + $0xf4] ss:$52 sps:$4 sm:$0xff]  }
  0x68   :  { %2666 = vmatpush3.bf16.msra.mxu0 %v2965_v44  ;;  %v3042_v44 = vld [vmem:[%s3923_s0 + $0xfc] ss:$52 sps:$4 sm:$0xff]  }
  0x69   :  { %2730 = vmatpush3.bf16.msra.mxu1 %v2966_v45  ;;  %2667 = vmatprep.subr.bf16.mxu0 %v2973_v47  ;;  %v3072_v45 = vld [vmem:[%s3922_s1 + $0x318] sm:$0xff]  }
  0x6a   :  { %2731 = vmatprep.subr.bf16.mxu1 %v2974_v49  ;;  %v3045_v47 = vld [vmem:[%s3923_s0 + $0xf8] ss:$52 sps:$4 sm:$0xff]  }
  0x6b   :  { %1714 = vmatmul.mubr.bf16.gmra.mrb[36].mxu0 %v2961_v46  ;;  %v3044_v46 = vld [vmem:[%s3923_s0 + $0xf0] ss:$52 sps:$4 sm:$0xff]  }
  0x6c   :  { %1811 = vmatmul.mubr.bf16.gmra.mrb[36].mxu1 %v2962_v48  ;;  %1721 = vmatprep.mubr.bf16.mxu0 %v2967_v50  ;;  %v3047_v48 = vld [vmem:[%s3923_s0 + $0x15c] ss:$52 sps:$4 sm:$0xff]   ;;  %v3049_v49 = vld [vmem:[%s3923_s0 + $0x164] ss:$52 sps:$4 sm:$0xff]  }
  0x6d   :  { %1818 = vmatprep.mubr.bf16.mxu1 %v2969_v51  ;;  %2668 = vmatpush3.bf16.msra.mxu0 %v2975_v52  ;;  %v3051_v50 = vld [vmem:[%s3923_s0 + $0x158] ss:$52 sps:$4 sm:$0xff]   ;;  %v3052_v51 = vld [vmem:[%s3923_s0 + $0x160] ss:$52 sps:$4 sm:$0xff]  }
  0x6e   :  { %2732 = vmatpush3.bf16.msra.mxu1 %v2976_v53  ;;  %2669 = vmatprep.subr.bf16.mxu0 %v2983_v54  ;;  %v3053_v52 = vld [vmem:[%s3923_s0 + $0x1c4] ss:$52 sps:$4 sm:$0xff]   ;;  %v3055_v53 = vld [vmem:[%s3923_s0 + $0x1cc] ss:$52 sps:$4 sm:$0xff]  }
  0x6f   :  { %2733 = vmatprep.subr.bf16.mxu1 %v2984_v55  ;;  %v3057_v54 = vld [vmem:[%s3923_s0 + $0x1c0] ss:$52 sps:$4 sm:$0xff]   ;;  %v3058_v55 = vld [vmem:[%s3923_s0 + $0x1c8] ss:$52 sps:$4 sm:$0xff]  }
  0x71   :  { %2670 = vmatpush3.bf16.msra.mxu0 %v2985_v57  ;;  %v3062_v57 = vld [vmem:[%s3923_s0 + $0x234] ss:$52 sps:$4 sm:$0xff]  }
  0x72   :  { %2734 = vmatpush3.bf16.msra.mxu1 %v2986_v58  ;;  %2671 = vmatprep.subr.bf16.mxu0 %v2993_v62  ;;  %v3064_v58 = vld [vmem:[%s3923_s0 + $0x228] ss:$52 sps:$4 sm:$0xff]   ;;  %v3070_v62 = vld [vmem:[%s3923_s0 + $0x290] ss:$52 sps:$4 sm:$0xff]  }
  0x73   :  { %1722 = vmatmul.mubr.bf16.gmra.mrb[40].mxu0 %v2971_v56  ;;  %2735 = vmatprep.subr.bf16.mxu1 %v2994_v63  ;;  %v3060_v56 = vld [vmem:[%s3923_s0 + $0x22c] ss:$52 sps:$4 sm:$0xff]  }
  0x74   :  { %1819 = vmatmul.mubr.bf16.gmra.mrb[40].mxu1 %v2972_v59  ;;  %1729 = vmatprep.mubr.bf16.mxu0 %v2977_v60  ;;  %v3065_v59 = vld [vmem:[%s3923_s0 + $0x230] ss:$52 sps:$4 sm:$0xff]   ;;  %v3066_v60 = vld [vmem:[%s3923_s0 + $0x294] ss:$52 sps:$4 sm:$0xff]   ;;  %v3071_v63 = vld [vmem:[%s3923_s0 + $0x298] ss:$52 sps:$4 sm:$0xff]  }
  0x75   :  { %1826 = vmatprep.mubr.bf16.mxu1 %v2979_v61  ;;  %2672 = vmatpush3.bf16.msra.mxu0 %v2995_v0  ;;  %v3068_v61 = vld [vmem:[%s3923_s0 + $0x29c] ss:$52 sps:$4 sm:$0xff]  }
  0x76   :  { %2736 = vmatpush3.bf16.msra.mxu1 %v2996_v1  ;;  %2673 = vmatprep.subr.bf16.mxu0 %v3003_v6  ;;  %v3073_v0 = vld [vmem:[%s3923_s0 + $0x2fc] ss:$52 sps:$4 sm:$0xff]   ;;  %v3075_v1 = vld [vmem:[%s3923_s0 + $0x304] ss:$52 sps:$4 sm:$0xff]  }
  0x77   :  { %2737 = vmatprep.subr.bf16.mxu1 %v3004_v7  ;;  %v3081_v6 = vld [vmem:[%s3923_s0 + $0x98] ss:$52 sps:$4 sm:$0xff]  }
  0x78   :  { %v3082_v7 = vld [vmem:[%s3923_s0 + $0x238] ss:$52 sps:$4 sm:$0xff]  }
  0x79   :  { %2674 = vmatpush3.bf16.msra.mxu0 %v3005_v8  ;;  %v3083_v8 = vld [vmem:[%s3923_s0 + $0x100] ss:$52 sps:$4 sm:$0xff]  }
  0x7a   :  { %2738 = vmatpush3.bf16.msra.mxu1 %v3006_v9  ;;  %2675 = vmatprep.subr.bf16.mxu0 %v3013_v14  ;;  %v3084_v9 = vld [vmem:[%s3923_s0 + $0x2a0] ss:$52 sps:$4 sm:$0xff]  }
  0x7b   :  { %1730 = vmatmul.mubr.bf16.gmra.mrb[44].mxu0 %v2981_v2  ;;  %2739 = vmatprep.subr.bf16.mxu1 %v3014_v15  ;;  %v3077_v2 = vld [vmem:[%s3923_s0 + $0x2f8] ss:$52 sps:$4 sm:$0xff]   ;;  %v3730_v14 = vld [vmem:[%s3924_s2] ss:$0 sm:$0xff] }
  0x7c   :  { %1827 = vmatmul.mubr.bf16.gmra.mrb[44].mxu1 %v2982_v3  ;;  %1737 = vmatprep.mubr.bf16.mxu0 %v2987_v4  ;;  %v3078_v3 = vld [vmem:[%s3923_s0 + $0x300] ss:$52 sps:$4 sm:$0xff]   ;;  %v3079_v4 = vld [vmem:[%s3923_s0 + $0x30] ss:$52 sps:$4 sm:$0xff]  }
  0x7d   :  { %1834 = vmatprep.mubr.bf16.mxu1 %v2989_v5  ;;  %2676 = vmatpush3.bf16.msra.mxu0 %v3015_v16  ;;  %v3080_v5 = vld [vmem:[%s3923_s0 + $0x1d0] ss:$52 sps:$4 sm:$0xff]  }
  0x7e   :  { %2740 = vmatpush3.bf16.msra.mxu1 %v3016_v17  ;;  %2677 = vmatprep.subr.bf16.mxu0 %v3023_v21 }
  0x7f   :  { %2741 = vmatprep.subr.bf16.mxu1 %v3024_v23 }
  0x81   :  { %2678 = vmatpush3.bf16.msra.mxu0 %v3025_v24 }
  0x82   :  { %2742 = vmatpush3.bf16.msra.mxu1 %v3026_v25  ;;  %2803 = vmatprep.subr.bf16.mxu0 %v3033_v26 }
  0x83   :  { %1738 = vmatmul.mubr.bf16.gmra.mrb[48].mxu0 %v2991_v10  ;;  %2827 = vmatprep.subr.bf16.mxu1 %v3033_v26  ;;  %v3085_v10 = vld [vmem:[%s3923_s0 + $0x168] ss:$52 sps:$4 sm:$0xff]  }
  0x84   :  { %1835 = vmatmul.mubr.bf16.gmra.mrb[48].mxu1 %v2992_v11  ;;  %1745 = vmatprep.mubr.bf16.mxu0 %v2997_v12  ;;  %v3086_v11 = vld [vmem:[%s3923_s0 + $0x308] ss:$52 sps:$4 sm:$0xff]  }
  0x85   :  { %1842 = vmatprep.mubr.bf16.mxu1 %v2999_v13 }
  0x8b   :  { %1746 = vmatmul.mubr.bf16.gmra.mrb[52].mxu0 %v3001_v18 }
  0x8c   :  { %1843 = vmatmul.mubr.bf16.gmra.mrb[52].mxu1 %v3002_v19  ;;  %1753 = vmatprep.mubr.bf16.mxu0 %v3007_v20 }
  0x8d   :  { %1850 = vmatprep.mubr.bf16.mxu1 %v3009_v22 }
  0x93   :  { %1754 = vmatmul.mubr.bf16.gmra.mrb[56].mxu0 %v3011_v27 }
  0x94   :  { %1851 = vmatmul.mubr.bf16.gmra.mrb[56].mxu1 %v3012_v28  ;;  %1761 = vmatprep.mubr.bf16.mxu0 %v3017_v29 }
  0x95   :  { %1858 = vmatprep.mubr.bf16.mxu1 %v3019_v30 }
  0x9b   :  { %1762 = vmatmul.mubr.bf16.gmra.mrb[60].mxu0 %v3021_v31 }
  0x9c   :  { %1859 = vmatmul.mubr.bf16.gmra.mrb[60].mxu1 %v3022_v32  ;;  %1899 = vmatprep.mubr.bf16.mxu0 %v3029_v33 }
  0x9d   :  { %1996 = vmatprep.mubr.bf16.mxu1 %v3032_v34 }
  0xa3   :  { %1900 = vmatmul.mubr.bf16.vlgmr.msra.gmra.mrb[64].mxu0 %v3027_v35 }
  0xa4   :  { %1997 = vmatmul.mubr.bf16.vlgmr.msra.gmra.mrb[64].mxu1 %v3030_v36  ;;  %2804 = vmatpush3.bf16.msra.mxu0 %v3033_v26 }
  0xa5   :  { %2831 = vmatpush3.bf16.msra.mxu1 %v3033_v26  ;;  %1907 = vmatprep.mubr.bf16.mxu0 %v3034_v37 }
  0xa6   :  { %2004 = vmatprep.mubr.bf16.mxu1 %v3036_v38  ;;  %2805 = vmatprep.subr.bf16.mxu0 %v3046_v39 }
  0xa7   :  { %2828 = vmatprep.subr.bf16.mxu1 %v3046_v39 }
  0xa8   :  { %2806 = vmatpush3.bf16.msra.mxu0 %v3046_v39 }
  0xa9   :  { %2832 = vmatpush3.bf16.msra.mxu1 %v3046_v39  ;;  %2807 = vmatprep.subr.bf16.mxu0 %v3059_v40 }
  0xaa   :  { %2829 = vmatprep.subr.bf16.mxu1 %v3059_v40 }
  0xab   :  { %1908 = vmatmul.mubr.bf16.gmra.mrb[68].mxu0 %v3038_v41 }
  0xac   :  { %2005 = vmatmul.mubr.bf16.gmra.mrb[68].mxu1 %v3039_v42  ;;  %1915 = vmatprep.mubr.bf16.mxu0 %v3040_v43 }
  0xad   :  { %2012 = vmatprep.mubr.bf16.mxu1 %v3042_v44  ;;  %2808 = vmatpush3.bf16.msra.mxu0 %v3059_v40 }
  0xae   :  { %2833 = vmatpush3.bf16.msra.mxu1 %v3059_v40  ;;  %2809 = vmatprep.subr.bf16.mxu0 %v3072_v45 }
  0xaf   :  { %2830 = vmatprep.subr.bf16.mxu1 %v3072_v45 }
  0xb1   :  { %2810 = vmatpush3.bf16.msra.mxu0 %v3072_v45 }
  0xb2   :  { %2834 = vmatpush3.bf16.msra.mxu1 %v3072_v45 }
  0xb3   :  { %1916 = vmatmul.mubr.bf16.gmra.mrb[72].mxu0 %v3044_v46 }
  0xb4   :  { %2013 = vmatmul.mubr.bf16.gmra.mrb[72].mxu1 %v3045_v47  ;;  %1923 = vmatprep.mubr.bf16.mxu0 %v3047_v48 }
  0xb5   :  { %2020 = vmatprep.mubr.bf16.mxu1 %v3049_v49 }
  0xbb   :  { %1924 = vmatmul.mubr.bf16.gmra.mrb[76].mxu0 %v3051_v50 }
  0xbc   :  { %2021 = vmatmul.mubr.bf16.gmra.mrb[76].mxu1 %v3052_v51  ;;  %1931 = vmatprep.mubr.bf16.mxu0 %v3053_v52 }
  0xbd   :  { %2028 = vmatprep.mubr.bf16.mxu1 %v3055_v53 }
  0xc3   :  { %1932 = vmatmul.mubr.bf16.gmra.mrb[80].mxu0 %v3057_v54 }
  0xc4   :  { %2029 = vmatmul.mubr.bf16.gmra.mrb[80].mxu1 %v3058_v55  ;;  %1939 = vmatprep.mubr.bf16.mxu0 %v3060_v56 }
  0xc5   :  { %2036 = vmatprep.mubr.bf16.mxu1 %v3062_v57 }
  0xcb   :  { %1940 = vmatmul.mubr.bf16.gmra.mrb[84].mxu0 %v3064_v58 }
  0xcc   :  { %2037 = vmatmul.mubr.bf16.gmra.mrb[84].mxu1 %v3065_v59  ;;  %1947 = vmatprep.mubr.bf16.mxu0 %v3066_v60 }
  0xcd   :  { %2044 = vmatprep.mubr.bf16.mxu1 %v3068_v61 }
  0xd3   :  { %1948 = vmatmul.mubr.bf16.gmra.mrb[88].mxu0 %v3070_v62 }
  0xd4   :  { %2045 = vmatmul.mubr.bf16.gmra.mrb[88].mxu1 %v3071_v63  ;;  %1955 = vmatprep.mubr.bf16.mxu0 %v3073_v0 }
  0xd5   :  { %2052 = vmatprep.mubr.bf16.mxu1 %v3075_v1 }
  0xdb   :  { %1956 = vmatmul.mubr.bf16.gmra.mrb[92].mxu0 %v3077_v2 }
  0xdc   :  { %2053 = vmatmul.mubr.bf16.gmra.mrb[92].mxu1 %v3078_v3  ;;  %2811 = vmatprep.mubr.msk.bf16.mxu0 %vm1454_vm0, %v3079_v4 }
  0xdd   :  { %2819 = vmatprep.mubr.msk.bf16.mxu1 %vm1454_vm0, %v3080_v5 }
  0xe3   :  { %2812 = vmatmul.mubr.msk.bf16.vlgmr.msra.gmra.mrb[96].mxu0 %vm1454_vm0, %v3081_v6 }
  0xe4   :  { %2820 = vmatmul.mubr.msk.bf16.vlgmr.msra.gmra.mrb[96].mxu1 %vm1454_vm0, %v3082_v7  ;;  %2815 = vmatprep.mubr.msk.bf16.mxu0 %vm1454_vm0, %v3083_v8 }
  0xe5   :  { %2823 = vmatprep.mubr.msk.bf16.mxu1 %vm1454_vm0, %v3084_v9 }
  0xeb   :  { %2816 = vmatmul.mubr.msk.bf16.gmra.mrb[100].mxu0 %vm1454_vm0, %v3085_v10 }
  0xec   :  { %2824 = vmatmul.mubr.msk.bf16.gmra.mrb[100].mxu1 %vm1454_vm0, %v3086_v11 }
  0xf6   :  { %v2423_v12 = vpop.f32.mrb[0].mxu0 }
  0xf7   :  { %v2487_v13 = vpop.f32.mrb[0].mxu1  ;;  %v2424_v15 = vpop.f32.mrb[1].mxu0 }
  0xf8   :  { %v2425_v16 = vadd.f32 %v2424_v15, %v2423_v12  ;;  %v2488_v17 = vpop.f32.mrb[1].mxu1  ;;  %v2426_v18 = vpop.f32.mrb[2].mxu0 }
  0xf9   :  { %v2489_v19 = vadd.f32 %v2488_v17, %v2487_v13  ;;  %v2490_v20 = vpop.f32.mrb[2].mxu1  ;;  %v2427_v21 = vpop.f32.mrb[3].mxu0 }
  0xfa   :  { %v1514_v22 = vadd.f32 %v2425_v16, %v3730_v14  ;;  %v2428_v23 = vadd.f32 %v2427_v21, %v2426_v18  ;;  %v2491_v24 = vpop.f32.mrb[3].mxu1 }
  0xfb   :  { %v2492_v25 = vadd.f32 %v2491_v24, %v2490_v20 }
  0xfc   :  { %v3733_v26 = vadd.f32 %v2489_v19, %v1514_v22  ;;  %v1517_v27 = vadd.f32 %v2428_v23, %v3730_v14 }
  0xfe   :  { %v3736_v28 = vadd.f32 %v2492_v25, %v1517_v27  ;;  %v2429_v29 = vpop.f32.mrb[4].mxu0 }
  0xff   :  { %v2493_v30 = vpop.f32.mrb[4].mxu1  ;;  %v2430_v31 = vpop.f32.mrb[5].mxu0 }
 0x100   :  { %v2431_v32 = vadd.f32 %v2430_v31, %v2429_v29  ;;  %v2494_v33 = vpop.f32.mrb[5].mxu1  ;;  %v2432_v34 = vpop.f32.mrb[6].mxu0 }
 0x101   :  { %v2495_v35 = vadd.f32 %v2494_v33, %v2493_v30  ;;  %v2496_v36 = vpop.f32.mrb[6].mxu1  ;;  %v2433_v37 = vpop.f32.mrb[7].mxu0 }
 0x102   :  { %v1522_v38 = vadd.f32 %v2431_v32, %v3730_v14  ;;  %v2434_v39 = vadd.f32 %v2433_v37, %v2432_v34  ;;  %v2497_v40 = vpop.f32.mrb[7].mxu1 }
 0x103   :  { %v2498_v41 = vadd.f32 %v2497_v40, %v2496_v36 }
 0x104   :  { %v3739_v42 = vadd.f32 %v2495_v35, %v1522_v38  ;;  %v1525_v43 = vadd.f32 %v2434_v39, %v3730_v14 }
 0x106   :  { %v3742_v44 = vadd.f32 %v2498_v41, %v1525_v43  ;;  %v2435_v45 = vpop.f32.mrb[8].mxu0 }
 0x107   :  { %v2499_v46 = vpop.f32.mrb[8].mxu1  ;;  %v2436_v47 = vpop.f32.mrb[9].mxu0 }
 0x108   :  { %v2437_v48 = vadd.f32 %v2436_v47, %v2435_v45  ;;  %v2500_v49 = vpop.f32.mrb[9].mxu1  ;;  %v2438_v50 = vpop.f32.mrb[10].mxu0 }
 0x109   :  { %v2501_v51 = vadd.f32 %v2500_v49, %v2499_v46  ;;  %v2502_v52 = vpop.f32.mrb[10].mxu1  ;;  %v2439_v53 = vpop.f32.mrb[11].mxu0 }
 0x10a   :  { %v1530_v54 = vadd.f32 %v2437_v48, %v3730_v14  ;;  %v2440_v55 = vadd.f32 %v2439_v53, %v2438_v50  ;;  %v2503_v56 = vpop.f32.mrb[11].mxu1 }
 0x10b   :  { %v2504_v57 = vadd.f32 %v2503_v56, %v2502_v52 }
 0x10c   :  { %v3745_v58 = vadd.f32 %v2501_v51, %v1530_v54  ;;  %v1533_v59 = vadd.f32 %v2440_v55, %v3730_v14 }
 0x10e   :  { %v3748_v60 = vadd.f32 %v2504_v57, %v1533_v59  ;;  %v2441_v61 = vpop.f32.mrb[12].mxu0 }
 0x10f   :  { %v2505_v62 = vpop.f32.mrb[12].mxu1  ;;  %v2442_v63 = vpop.f32.mrb[13].mxu0 }
 0x110   :  { %v2443_v0 = vadd.f32 %v2442_v63, %v2441_v61  ;;  %v2506_v1 = vpop.f32.mrb[13].mxu1  ;;  %v2444_v2 = vpop.f32.mrb[14].mxu0 }
 0x111   :  { %v2507_v3 = vadd.f32 %v2506_v1, %v2505_v62  ;;  %v2508_v4 = vpop.f32.mrb[14].mxu1  ;;  %v2445_v5 = vpop.f32.mrb[15].mxu0 }
 0x112   :  { %v1538_v6 = vadd.f32 %v2443_v0, %v3730_v14  ;;  %v2446_v7 = vadd.f32 %v2445_v5, %v2444_v2  ;;  %v2509_v8 = vpop.f32.mrb[15].mxu1 }
 0x113   :  { %v2510_v9 = vadd.f32 %v2509_v8, %v2508_v4 }
 0x114   :  { %v3751_v10 = vadd.f32 %v2507_v3, %v1538_v6  ;;  %v1541_v11 = vadd.f32 %v2446_v7, %v3730_v14 }
 0x116   :  { %v3754_v12 = vadd.f32 %v2510_v9, %v1541_v11  ;;  %v2447_v13 = vpop.f32.mrb[16].mxu0 }
 0x117   :  { %v2511_v15 = vpop.f32.mrb[16].mxu1  ;;  %v2448_v16 = vpop.f32.mrb[17].mxu0 }
 0x118   :  { %v2449_v17 = vadd.f32 %v2448_v16, %v2447_v13  ;;  %v2512_v18 = vpop.f32.mrb[17].mxu1  ;;  %v2450_v19 = vpop.f32.mrb[18].mxu0 }
 0x119   :  { %v2513_v20 = vadd.f32 %v2512_v18, %v2511_v15  ;;  %v2514_v21 = vpop.f32.mrb[18].mxu1  ;;  %v2451_v22 = vpop.f32.mrb[19].mxu0 }
 0x11a   :  { %v1546_v23 = vadd.f32 %v2449_v17, %v3730_v14  ;;  %v2452_v24 = vadd.f32 %v2451_v22, %v2450_v19  ;;  %v2515_v25 = vpop.f32.mrb[19].mxu1 }
 0x11b   :  { %v2516_v27 = vadd.f32 %v2515_v25, %v2514_v21 }
 0x11c   :  { %v3757_v29 = vadd.f32 %v2513_v20, %v1546_v23  ;;  %v1549_v30 = vadd.f32 %v2452_v24, %v3730_v14 }
 0x11e   :  { %v3760_v31 = vadd.f32 %v2516_v27, %v1549_v30  ;;  %v2453_v32 = vpop.f32.mrb[20].mxu0 }
 0x11f   :  { %v2517_v33 = vpop.f32.mrb[20].mxu1  ;;  %v2454_v34 = vpop.f32.mrb[21].mxu0 }
 0x120   :  { %v2455_v35 = vadd.f32 %v2454_v34, %v2453_v32  ;;  %v2518_v36 = vpop.f32.mrb[21].mxu1  ;;  %v2456_v37 = vpop.f32.mrb[22].mxu0 }
 0x121   :  { %v2519_v38 = vadd.f32 %v2518_v36, %v2517_v33  ;;  %v2520_v39 = vpop.f32.mrb[22].mxu1  ;;  %v2457_v40 = vpop.f32.mrb[23].mxu0 }
 0x122   :  { %v1554_v41 = vadd.f32 %v2455_v35, %v3730_v14  ;;  %v2458_v43 = vadd.f32 %v2457_v40, %v2456_v37  ;;  %v2521_v45 = vpop.f32.mrb[23].mxu1 }
 0x123   :  { %v2522_v46 = vadd.f32 %v2521_v45, %v2520_v39 }
 0x124   :  { %v3763_v47 = vadd.f32 %v2519_v38, %v1554_v41  ;;  %v1557_v48 = vadd.f32 %v2458_v43, %v3730_v14 }
 0x126   :  { %v3766_v49 = vadd.f32 %v2522_v46, %v1557_v48  ;;  %v2459_v50 = vpop.f32.mrb[24].mxu0 }
 0x127   :  { %v2523_v51 = vpop.f32.mrb[24].mxu1  ;;  %v2460_v52 = vpop.f32.mrb[25].mxu0 }
 0x128   :  { %v2461_v53 = vadd.f32 %v2460_v52, %v2459_v50  ;;  %v2524_v54 = vpop.f32.mrb[25].mxu1  ;;  %v2462_v55 = vpop.f32.mrb[26].mxu0 }
 0x129   :  { %v2525_v56 = vadd.f32 %v2524_v54, %v2523_v51  ;;  %v2526_v57 = vpop.f32.mrb[26].mxu1  ;;  %v2463_v59 = vpop.f32.mrb[27].mxu0 }
 0x12a   :  { %v1562_v61 = vadd.f32 %v2461_v53, %v3730_v14  ;;  %v2464_v62 = vadd.f32 %v2463_v59, %v2462_v55  ;;  %v2527_v63 = vpop.f32.mrb[27].mxu1 }
 0x12b   :  { %v2528_v0 = vadd.f32 %v2527_v63, %v2526_v57 }
 0x12c   :  { %v3769_v1 = vadd.f32 %v2525_v56, %v1562_v61  ;;  %v1565_v2 = vadd.f32 %v2464_v62, %v3730_v14 }
 0x12e   :  { %v3772_v3 = vadd.f32 %v2528_v0, %v1565_v2  ;;  %v2465_v4 = vpop.f32.mrb[28].mxu0 }
 0x12f   :  { %v2529_v5 = vpop.f32.mrb[28].mxu1  ;;  %v2466_v6 = vpop.f32.mrb[29].mxu0 }
 0x130   :  { %v2467_v7 = vadd.f32 %v2466_v6, %v2465_v4  ;;  %v2530_v8 = vpop.f32.mrb[29].mxu1  ;;  %v2468_v9 = vpop.f32.mrb[30].mxu0 }
 0x131   :  { %v2531_v11 = vadd.f32 %v2530_v8, %v2529_v5  ;;  %v2532_v13 = vpop.f32.mrb[30].mxu1  ;;  %v2469_v15 = vpop.f32.mrb[31].mxu0 }
 0x132   :  { %v1570_v16 = vadd.f32 %v2467_v7, %v3730_v14  ;;  %v2470_v17 = vadd.f32 %v2469_v15, %v2468_v9  ;;  %v2533_v18 = vpop.f32.mrb[31].mxu1 }
 0x133   :  { %v2534_v19 = vadd.f32 %v2533_v18, %v2532_v13 }
 0x134   :  { %v3775_v20 = vadd.f32 %v2531_v11, %v1570_v16  ;;  %v1573_v21 = vadd.f32 %v2470_v17, %v3730_v14 }
 0x136   :  { %v3778_v22 = vadd.f32 %v2534_v19, %v1573_v21  ;;  %v2551_v23 = vpop.f32.mrb[32].mxu0 }
 0x137   :  { %v2615_v24 = vpop.f32.mrb[32].mxu1  ;;  %v2552_v25 = vpop.f32.mrb[33].mxu0 }
 0x138   :  { %v2553_v27 = vadd.f32 %v2552_v25, %v2551_v23  ;;  %v2616_v30 = vpop.f32.mrb[33].mxu1  ;;  %v2554_v32 = vpop.f32.mrb[34].mxu0 }
 0x139   :  { %v2617_v33 = vadd.f32 %v2616_v30, %v2615_v24  ;;  %v2618_v34 = vpop.f32.mrb[34].mxu1  ;;  %v2555_v35 = vpop.f32.mrb[35].mxu0 }
 0x13a   :  { %v1708_v36 = vadd.f32 %v2553_v27, %v3733_v26  ;;  %v2556_v37 = vadd.f32 %v2555_v35, %v2554_v32  ;;  %v2619_v38 = vpop.f32.mrb[35].mxu1 }
 0x13b   :  { %v2620_v39 = vadd.f32 %v2619_v38, %v2618_v34 }
 0x13c   :  { %v3781_v40 = vadd.f32 %v2617_v33, %v1708_v36  ;;  %v1711_v14 = vadd.f32 %v2556_v37, %v3736_v28 }
 0x13e   :  { %v3784_v41 = vadd.f32 %v2620_v39, %v1711_v14  ;;  %v2557_v43 = vpop.f32.mrb[36].mxu0 }
 0x13f   :  { %v2621_v45 = vpop.f32.mrb[36].mxu1  ;;  %v2558_v46 = vpop.f32.mrb[37].mxu0 }
 0x140   :  { %v2559_v48 = vadd.f32 %v2558_v46, %v2557_v43  ;;  %v2622_v50 = vpop.f32.mrb[37].mxu1  ;;  %v2560_v51 = vpop.f32.mrb[38].mxu0 }
 0x141   :  { %v2623_v52 = vadd.f32 %v2622_v50, %v2621_v45  ;;  %v2624_v53 = vpop.f32.mrb[38].mxu1  ;;  %v2561_v54 = vpop.f32.mrb[39].mxu0 }
 0x142   :  { %v1716_v26 = vadd.f32 %v2559_v48, %v3739_v42  ;;  %v2562_v55 = vadd.f32 %v2561_v54, %v2560_v51  ;;  %v2625_v56 = vpop.f32.mrb[39].mxu1 }
 0x143   :  { %v2626_v57 = vadd.f32 %v2625_v56, %v2624_v53 }
 0x144   :  { %v3787_v59 = vadd.f32 %v2623_v52, %v1716_v26  ;;  %v1719_v28 = vadd.f32 %v2562_v55, %v3742_v44 }
 0x146   :  { %v3790_v61 = vadd.f32 %v2626_v57, %v1719_v28  ;;  %v2563_v62 = vpop.f32.mrb[40].mxu0 }
 0x147   :  { %v2627_v63 = vpop.f32.mrb[40].mxu1  ;;  %v2564_v0 = vpop.f32.mrb[41].mxu0 }
 0x148   :  { %v2565_v2 = vadd.f32 %v2564_v0, %v2563_v62  ;;  %v2628_v4 = vpop.f32.mrb[41].mxu1  ;;  %v2566_v5 = vpop.f32.mrb[42].mxu0 }
 0x149   :  { %v2629_v6 = vadd.f32 %v2628_v4, %v2627_v63  ;;  %v2630_v7 = vpop.f32.mrb[42].mxu1  ;;  %v2567_v8 = vpop.f32.mrb[43].mxu0 }
 0x14a   :  { %v1724_v42 = vadd.f32 %v2565_v2, %v3745_v58  ;;  %v2568_v9 = vadd.f32 %v2567_v8, %v2566_v5  ;;  %v2631_v11 = vpop.f32.mrb[43].mxu1 }
 0x14b   :  { %v2632_v13 = vadd.f32 %v2631_v11, %v2630_v7 }
 0x14c   :  { %v3793_v15 = vadd.f32 %v2629_v6, %v1724_v42  ;;  %v1727_v44 = vadd.f32 %v2568_v9, %v3748_v60 }
 0x14e   :  { %v3796_v16 = vadd.f32 %v2632_v13, %v1727_v44  ;;  %v2569_v17 = vpop.f32.mrb[44].mxu0 }
 0x14f   :  { %v2633_v18 = vpop.f32.mrb[44].mxu1  ;;  %v2570_v19 = vpop.f32.mrb[45].mxu0 }
 0x150   :  { %v2571_v21 = vadd.f32 %v2570_v19, %v2569_v17  ;;  %v2634_v23 = vpop.f32.mrb[45].mxu1  ;;  %v2572_v24 = vpop.f32.mrb[46].mxu0 }
 0x151   :  { %v2635_v25 = vadd.f32 %v2634_v23, %v2633_v18  ;;  %v2636_v27 = vpop.f32.mrb[46].mxu1  ;;  %v2573_v30 = vpop.f32.mrb[47].mxu0 }
 0x152   :  { %v1732_v58 = vadd.f32 %v2571_v21, %v3751_v10  ;;  %v2574_v32 = vadd.f32 %v2573_v30, %v2572_v24  ;;  %v2637_v33 = vpop.f32.mrb[47].mxu1 }
 0x153   :  { %v2638_v34 = vadd.f32 %v2637_v33, %v2636_v27 }
 0x154   :  { %v3799_v35 = vadd.f32 %v2635_v25, %v1732_v58  ;;  %v1735_v60 = vadd.f32 %v2574_v32, %v3754_v12 }
 0x156   :  { %v3802_v36 = vadd.f32 %v2638_v34, %v1735_v60  ;;  %v2575_v37 = vpop.f32.mrb[48].mxu0 }
 0x157   :  { %v2639_v38 = vpop.f32.mrb[48].mxu1  ;;  %v2576_v39 = vpop.f32.mrb[49].mxu0 }
 0x158   :  { %v2577_v14 = vadd.f32 %v2576_v39, %v2575_v37  ;;  %v2640_v43 = vpop.f32.mrb[49].mxu1  ;;  %v2578_v45 = vpop.f32.mrb[50].mxu0 }
 0x159   :  { %v2641_v46 = vadd.f32 %v2640_v43, %v2639_v38  ;;  %v2642_v48 = vpop.f32.mrb[50].mxu1  ;;  %v2579_v50 = vpop.f32.mrb[51].mxu0 }
 0x15a   :  { %v1740_v10 = vadd.f32 %v2577_v14, %v3757_v29  ;;  %v2580_v51 = vadd.f32 %v2579_v50, %v2578_v45  ;;  %v2643_v52 = vpop.f32.mrb[51].mxu1 }
 0x15b   :  { %v2644_v53 = vadd.f32 %v2643_v52, %v2642_v48 }
 0x15c   :  { %v3805_v54 = vadd.f32 %v2641_v46, %v1740_v10  ;;  %v1743_v12 = vadd.f32 %v2580_v51, %v3760_v31 }
 0x15e   :  { %v3808_v26 = vadd.f32 %v2644_v53, %v1743_v12  ;;  %v2581_v55 = vpop.f32.mrb[52].mxu0 }
 0x15f   :  { %v2645_v56 = vpop.f32.mrb[52].mxu1  ;;  %v2582_v57 = vpop.f32.mrb[53].mxu0 }
 0x160   :  { %v2583_v28 = vadd.f32 %v2582_v57, %v2581_v55  ;;  %v2646_v62 = vpop.f32.mrb[53].mxu1  ;;  %v2584_v63 = vpop.f32.mrb[54].mxu0 }
 0x161   :  { %v2647_v0 = vadd.f32 %v2646_v62, %v2645_v56  ;;  %v2648_v2 = vpop.f32.mrb[54].mxu1  ;;  %v2585_v4 = vpop.f32.mrb[55].mxu0 }
 0x162   :  { %v1748_v29 = vadd.f32 %v2583_v28, %v3763_v47  ;;  %v2586_v5 = vadd.f32 %v2585_v4, %v2584_v63  ;;  %v2649_v6 = vpop.f32.mrb[55].mxu1 }
 0x163   :  { %v2650_v7 = vadd.f32 %v2649_v6, %v2648_v2 }
 0x164   :  { %v3811_v8 = vadd.f32 %v2647_v0, %v1748_v29  ;;  %v1751_v31 = vadd.f32 %v2586_v5, %v3766_v49 }
 0x166   :  { %v3814_v42 = vadd.f32 %v2650_v7, %v1751_v31  ;;  %v2587_v9 = vpop.f32.mrb[56].mxu0 }
 0x167   :  { %v2651_v11 = vpop.f32.mrb[56].mxu1  ;;  %v2588_v13 = vpop.f32.mrb[57].mxu0 }
 0x168   :  { %v2589_v44 = vadd.f32 %v2588_v13, %v2587_v9  ;;  %v2652_v17 = vpop.f32.mrb[57].mxu1  ;;  %v2590_v18 = vpop.f32.mrb[58].mxu0 }
 0x169   :  { %v2653_v19 = vadd.f32 %v2652_v17, %v2651_v11  ;;  %v2654_v21 = vpop.f32.mrb[58].mxu1  ;;  %v2591_v23 = vpop.f32.mrb[59].mxu0 }
 0x16a   :  { %v1756_v47 = vadd.f32 %v2589_v44, %v3769_v1  ;;  %v2592_v24 = vadd.f32 %v2591_v23, %v2590_v18  ;;  %v2655_v25 = vpop.f32.mrb[59].mxu1 }
 0x16b   :  { %v2656_v27 = vadd.f32 %v2655_v25, %v2654_v21 }
 0x16c   :  { %v3817_v30 = vadd.f32 %v2653_v19, %v1756_v47  ;;  %v1759_v49 = vadd.f32 %v2592_v24, %v3772_v3 }
 0x16e   :  { %v3820_v58 = vadd.f32 %v2656_v27, %v1759_v49  ;;  %v2593_v32 = vpop.f32.mrb[60].mxu0 }
 0x16f   :  { %v2657_v33 = vpop.f32.mrb[60].mxu1  ;;  %v2594_v34 = vpop.f32.mrb[61].mxu0 }
 0x170   :  { %v2595_v60 = vadd.f32 %v2594_v34, %v2593_v32  ;;  %v2658_v37 = vpop.f32.mrb[61].mxu1  ;;  %v2596_v38 = vpop.f32.mrb[62].mxu0 }
 0x171   :  { %v2659_v39 = vadd.f32 %v2658_v37, %v2657_v33  ;;  %v2660_v14 = vpop.f32.mrb[62].mxu1  ;;  %v2597_v43 = vpop.f32.mrb[63].mxu0 }
 0x172   :  { %v1764_v1 = vadd.f32 %v2595_v60, %v3775_v20  ;;  %v2598_v45 = vadd.f32 %v2597_v43, %v2596_v38  ;;  %v2661_v46 = vpop.f32.mrb[63].mxu1 }
 0x173   :  { %v2662_v48 = vadd.f32 %v2661_v46, %v2660_v14 }
 0x174   :  { %v3823_v50 = vadd.f32 %v2659_v39, %v1764_v1  ;;  %v1767_v3 = vadd.f32 %v2598_v45, %v3778_v22 }
 0x176   :  { %v3826_v10 = vadd.f32 %v2662_v48, %v1767_v3  ;;  %v2679_v51 = vpop.f32.mrb[64].mxu0 }
 0x177   :  { %v2743_v52 = vpop.f32.mrb[64].mxu1  ;;  %v2680_v53 = vpop.f32.mrb[65].mxu0 }
 0x178   :  { %v2681_v12 = vadd.f32 %v2680_v53, %v2679_v51  ;;  %v2744_v55 = vpop.f32.mrb[65].mxu1  ;;  %v2682_v56 = vpop.f32.mrb[66].mxu0 }
 0x179   :  { %v2745_v57 = vadd.f32 %v2744_v55, %v2743_v52  ;;  %v2746_v28 = vpop.f32.mrb[66].mxu1  ;;  %v2683_v62 = vpop.f32.mrb[67].mxu0 }
 0x17a   :  { %v1902_v20 = vadd.f32 %v2681_v12, %v3781_v40  ;;  %v2684_v63 = vadd.f32 %v2683_v62, %v2682_v56  ;;  %v2747_v0 = vpop.f32.mrb[67].mxu1 }
 0x17b   :  { %v2748_v2 = vadd.f32 %v2747_v0, %v2746_v28 }
 0x17c   :  { %v1905_v4 = vadd.f32 %v2684_v63, %v3784_v41  ;;  %v3830_v29 = vadd.f32 %v2745_v57, %v1902_v20 }
 0x17e   :  { %v2685_v22 = vpop.f32.mrb[68].mxu0  ;;  %v3832_v5 = vadd.f32 %v2748_v2, %v1905_v4 }
 0x17f   :  { %v2749_v6 = vpop.f32.mrb[68].mxu1  ;;  %v2686_v7 = vpop.f32.mrb[69].mxu0 }
 0x180   :  { %v2687_v31 = vadd.f32 %v2686_v7, %v2685_v22  ;;  %v2750_v9 = vpop.f32.mrb[69].mxu1  ;;  %v2688_v11 = vpop.f32.mrb[70].mxu0 }
 0x181   :  { %v2751_v13 = vadd.f32 %v2750_v9, %v2749_v6  ;;  %v2752_v44 = vpop.f32.mrb[70].mxu1  ;;  %v2689_v17 = vpop.f32.mrb[71].mxu0 }
 0x182   :  { %v1910_v40 = vadd.f32 %v2687_v31, %v3787_v59  ;;  %v2690_v18 = vadd.f32 %v2689_v17, %v2688_v11  ;;  %v2753_v19 = vpop.f32.mrb[71].mxu1 }
 0x183   :  { %v2754_v21 = vadd.f32 %v2753_v19, %v2752_v44 }
 0x184   :  { %v1913_v41 = vadd.f32 %v2690_v18, %v3790_v61  ;;  %v3836_v23 = vadd.f32 %v2751_v13, %v1910_v40 }
 0x186   :  { %v2691_v47 = vpop.f32.mrb[72].mxu0  ;;  %v3838_v24 = vadd.f32 %v2754_v21, %v1913_v41 }
 0x187   :  { %v2755_v25 = vpop.f32.mrb[72].mxu1  ;;  %v2692_v27 = vpop.f32.mrb[73].mxu0 }
 0x188   :  { %v2693_v49 = vadd.f32 %v2692_v27, %v2691_v47  ;;  %v2756_v32 = vpop.f32.mrb[73].mxu1  ;;  %v2694_v33 = vpop.f32.mrb[74].mxu0 }
 0x189   :  { %v2757_v34 = vadd.f32 %v2756_v32, %v2755_v25  ;;  %v2758_v60 = vpop.f32.mrb[74].mxu1  ;;  %v2695_v37 = vpop.f32.mrb[75].mxu0 }
 0x18a   :  { %v1918_v59 = vadd.f32 %v2693_v49, %v3793_v15  ;;  %v2696_v38 = vadd.f32 %v2695_v37, %v2694_v33  ;;  %v2759_v39 = vpop.f32.mrb[75].mxu1 }
 0x18b   :  { %v2760_v14 = vadd.f32 %v2759_v39, %v2758_v60 }
 0x18c   :  { %v1921_v61 = vadd.f32 %v2696_v38, %v3796_v16  ;;  %v3842_v43 = vadd.f32 %v2757_v34, %v1918_v59 }
 0x18e   :  { %v2697_v1 = vpop.f32.mrb[76].mxu0  ;;  %v3844_v45 = vadd.f32 %v2760_v14, %v1921_v61 }
 0x18f   :  { %v2761_v46 = vpop.f32.mrb[76].mxu1  ;;  %v2698_v48 = vpop.f32.mrb[77].mxu0 }
 0x190   :  { %v2699_v3 = vadd.f32 %v2698_v48, %v2697_v1  ;;  %v2762_v51 = vpop.f32.mrb[77].mxu1  ;;  %v2700_v52 = vpop.f32.mrb[78].mxu0 }
 0x191   :  { %v2763_v53 = vadd.f32 %v2762_v51, %v2761_v46  ;;  %v2764_v12 = vpop.f32.mrb[78].mxu1  ;;  %v2701_v55 = vpop.f32.mrb[79].mxu0 }
 0x192   :  { %v1926_v15 = vadd.f32 %v2699_v3, %v3799_v35  ;;  %v2702_v56 = vadd.f32 %v2701_v55, %v2700_v52  ;;  %v2765_v57 = vpop.f32.mrb[79].mxu1 }
 0x193   :  { %v2766_v28 = vadd.f32 %v2765_v57, %v2764_v12 }
 0x194   :  { %v1929_v16 = vadd.f32 %v2702_v56, %v3802_v36  ;;  %v3848_v62 = vadd.f32 %v2763_v53, %v1926_v15 }
 0x196   :  { %v2703_v20 = vpop.f32.mrb[80].mxu0  ;;  %v3850_v63 = vadd.f32 %v2766_v28, %v1929_v16 }
 0x197   :  { %v2767_v0 = vpop.f32.mrb[80].mxu1  ;;  %v2704_v2 = vpop.f32.mrb[81].mxu0 }
 0x198   :  { %v2705_v4 = vadd.f32 %v2704_v2, %v2703_v20  ;;  %v2768_v22 = vpop.f32.mrb[81].mxu1  ;;  %v2706_v6 = vpop.f32.mrb[82].mxu0 }
 0x199   :  { %v2769_v7 = vadd.f32 %v2768_v22, %v2767_v0  ;;  %v2770_v31 = vpop.f32.mrb[82].mxu1  ;;  %v2707_v9 = vpop.f32.mrb[83].mxu0 }
 0x19a   :  { %v1934_v35 = vadd.f32 %v2705_v4, %v3805_v54  ;;  %v2708_v11 = vadd.f32 %v2707_v9, %v2706_v6  ;;  %v2771_v13 = vpop.f32.mrb[83].mxu1 }
 0x19b   :  { %v2772_v44 = vadd.f32 %v2771_v13, %v2770_v31 }
 0x19c   :  { %v1937_v36 = vadd.f32 %v2708_v11, %v3808_v26  ;;  %v2031_v17 = vadd.f32 %v2769_v7, %v1934_v35 }
 0x19e   :  { %v2709_v40 = vpop.f32.mrb[84].mxu0  ;;  %v3854_v18 = vadd.f32 %v2772_v44, %v1937_v36 }
 0x19f   :  { %v2773_v19 = vpop.f32.mrb[84].mxu1  ;;  %v2710_v21 = vpop.f32.mrb[85].mxu0 }
 0x1a0   :  { %v2711_v41 = vadd.f32 %v2710_v21, %v2709_v40  ;;  %v2774_v47 = vpop.f32.mrb[85].mxu1  ;;  %v2712_v25 = vpop.f32.mrb[86].mxu0 }
 0x1a1   :  { %v2775_v27 = vadd.f32 %v2774_v47, %v2773_v19  ;;  %v2776_v49 = vpop.f32.mrb[86].mxu1  ;;  %v2713_v32 = vpop.f32.mrb[87].mxu0 }
 0x1a2   :  { %v1942_v33 = vadd.f32 %v2711_v41, %v3811_v8  ;;  %v2714_v54 = vadd.f32 %v2713_v32, %v2712_v25  ;;  %v2777_v34 = vpop.f32.mrb[87].mxu1 }
 0x1a3   :  { %v2778_v60 = vadd.f32 %v2777_v34, %v2776_v49 }
 0x1a4   :  { %v1945_v37 = vadd.f32 %v2714_v54, %v3814_v42  ;;  %v2039_v26 = vadd.f32 %v2775_v27, %v1942_v33 }
 0x1a6   :  { %v2715_v59 = vpop.f32.mrb[88].mxu0  ;;  %v2042_v38 = vadd.f32 %v2778_v60, %v1945_v37 }
 0x1a7   :  { %v2779_v39 = vpop.f32.mrb[88].mxu1  ;;  %v2716_v14 = vpop.f32.mrb[89].mxu0 }
 0x1a8   :  { %v2717_v61 = vadd.f32 %v2716_v14, %v2715_v59  ;;  %v2780_v1 = vpop.f32.mrb[89].mxu1  ;;  %v2718_v46 = vpop.f32.mrb[90].mxu0 }
 0x1a9   :  { %v2781_v48 = vadd.f32 %v2780_v1, %v2779_v39  ;;  %v2782_v3 = vpop.f32.mrb[90].mxu1  ;;  %v2719_v51 = vpop.f32.mrb[91].mxu0 }
 0x1aa   :  { %v1950_v52 = vadd.f32 %v2717_v61, %v3817_v30  ;;  %v2720_v53 = vadd.f32 %v2719_v51, %v2718_v46  ;;  %v2783_v8 = vpop.f32.mrb[91].mxu1 }
 0x1ab   :  { %v2784_v12 = vadd.f32 %v2783_v8, %v2782_v3 }
 0x1ac   :  { %v1953_v55 = vadd.f32 %v2720_v53, %v3820_v58  ;;  %v2047_v15 = vadd.f32 %v2781_v48, %v1950_v52 }
 0x1ae   :  { %v2721_v42 = vpop.f32.mrb[92].mxu0  ;;  %v3860_v56 = vadd.f32 %v2784_v12, %v1953_v55 }
 0x1af   :  { %v2785_v57 = vpop.f32.mrb[92].mxu1  ;;  %v2722_v28 = vpop.f32.mrb[93].mxu0 }
 0x1b0   :  { %v2723_v16 = vadd.f32 %v2722_v28, %v2721_v42  ;;  %v2786_v20 = vpop.f32.mrb[93].mxu1  ;;  %v2724_v0 = vpop.f32.mrb[94].mxu0 }
 0x1b1   :  { %v2787_v2 = vadd.f32 %v2786_v20, %v2785_v57  ;;  %v2788_v4 = vpop.f32.mrb[94].mxu1  ;;  %v2725_v22 = vpop.f32.mrb[95].mxu0 }
 0x1b2   :  { %v1958_v6 = vadd.f32 %v2723_v16, %v3823_v50  ;;  %v2726_v30 = vadd.f32 %v2725_v22, %v2724_v0  ;;  %v2789_v7 = vpop.f32.mrb[95].mxu1 }
 0x1b3   :  { %v2790_v31 = vadd.f32 %v2789_v7, %v2788_v4 }
 0x1b4   :  { %v1961_v9 = vadd.f32 %v2726_v30, %v3826_v10  ;;  %v2055_v58 = vadd.f32 %v2787_v2, %v1958_v6 }
 0x1b6   :  { %v2813_v35 = vpop.f32.mrb[96].mxu0  ;;  %v2058_v11 = vadd.f32 %v2790_v31, %v1961_v9 }
 0x1b7   :  { %v2104_v13 = vadd.f32 %v2813_v35, %v3836_v23  ;;  %v2821_v44 = vpop.f32.mrb[96].mxu1  ;;  %v2095_v36 = vpop.f32.mrb[97].mxu0 }
 0x1b8   :  { %v2136_v40 = vadd.f32 %v2821_v44, %v2039_v26  ;;  %v2096_v19 = vadd.f32 %v2095_v36, %v3830_v29  ;;  %v2127_v21 = vpop.f32.mrb[97].mxu1  ;;  %v2814_v41 = vpop.f32.mrb[98].mxu0 }
 0x1b9   :  { %v2160_v47 = vmax.f32 %v2104_v13, 0.0  ;;  %v2128_v25 = vadd.f32 %v2127_v21, %v2031_v17  ;;  %v2107_v50 = vadd.f32 %v2814_v41, %v3838_v24  ;;  %v2822_v27 = vpop.f32.mrb[98].mxu1  ;;  %v2098_v49 = vpop.f32.mrb[99].mxu0 }
 0x1ba   :  { %v2168_v32 = vmax.f32 %v2136_v40, 0.0  ;;  %v2158_v10 = vmax.f32 %v2096_v19, 0.0  ;;  %v2139_v33 = vadd.f32 %v2822_v27, %v2042_v38  ;;  %v2099_v54 = vadd.f32 %v2098_v49, %v3832_v5  ;;  %v2130_v34 = vpop.f32.mrb[99].mxu1 }
 0x1bb   :  { %2176 = vst [vmem:[%s3925_s3 + $0x10] sm:$0xff] %v2160_v47  ;;  %v2166_v23 = vmax.f32 %v2128_v25, 0.0  ;;  %v2161_v29 = vmax.f32 %v2107_v50, 0.0  ;;  %v2131_v60 = vadd.f32 %v2130_v34, %v3854_v18 }
 0x1bc   :  { %2184 = vst [vmem:[%s3925_s3 + $0x50] sm:$0xff] %v2168_v32  ;;  %2174 = vst [vmem:[%s3925_s3] sm:$0xff] %v2158_v10  ;;  %v2169_v24 = vmax.f32 %v2139_v33, 0.0  ;;  %v2159_v17 = vmax.f32 %v2099_v54, 0.0 }
 0x1bd   :  { %2182 = vst [vmem:[%s3925_s3 + $0x40] sm:$0xff] %v2166_v23  ;;  %2177 = vst [vmem:[%s3925_s3 + $0x18] sm:$0xff] %v2161_v29  ;;  %v2167_v5 = vmax.f32 %v2131_v60, 0.0 }
 0x1be   :  { %2185 = vst [vmem:[%s3925_s3 + $0x58] sm:$0xff] %v2169_v24  ;;  %2175 = vst [vmem:[%s3925_s3 + $0x8] sm:$0xff] %v2159_v17  ;;  %v2817_v18 = vpop.f32.mrb[100].mxu0 }
 0x1bf   :  { %2183 = vst [vmem:[%s3925_s3 + $0x48] sm:$0xff] %v2167_v5  ;;  %v2120_v37 = vadd.f32 %v2817_v18, %v3848_v62  ;;  %v2825_v26 = vpop.f32.mrb[100].mxu1  ;;  %v2111_v59 = vpop.f32.mrb[101].mxu0 }
 0x1c0   :  { %v2152_v38 = vadd.f32 %v2825_v26, %v2055_v58  ;;  %v2112_v39 = vadd.f32 %v2111_v59, %v3842_v43  ;;  %v2143_v14 = vpop.f32.mrb[101].mxu1  ;;  %v2818_v61 = vpop.f32.mrb[102].mxu0 }
 0x1c1   :  { %v2164_v1 = vmax.f32 %v2120_v37, 0.0  ;;  %v2144_v46 = vadd.f32 %v2143_v14, %v2047_v15  ;;  %v2123_v48 = vadd.f32 %v2818_v61, %v3850_v63  ;;  %v2826_v3 = vpop.f32.mrb[102].mxu1  ;;  %v2114_v51 = vpop.f32.mrb[103].mxu0 }
 0x1c2   :  { %v2172_v52 = vmax.f32 %v2152_v38, 0.0  ;;  %v2162_v53 = vmax.f32 %v2112_v39, 0.0  ;;  %v2155_v8 = vadd.f32 %v2826_v3, %v2058_v11  ;;  %v2115_v12 = vadd.f32 %v2114_v51, %v3844_v45  ;;  %v2146_v55 = vpop.f32.mrb[103].mxu1 }
 0x1c3   :  { %2180 = vst [vmem:[%s3925_s3 + $0x30] sm:$0xff] %v2164_v1  ;;  %v2170_v62 = vmax.f32 %v2144_v46, 0.0  ;;  %v2165_v43 = vmax.f32 %v2123_v48, 0.0  ;;  %v2147_v42 = vadd.f32 %v2146_v55, %v3860_v56 }
 0x1c4   :  { %2188 = vst [vmem:[%s3925_s3 + $0x70] sm:$0xff] %v2172_v52  ;;  %2178 = vst [vmem:[%s3925_s3 + $0x20] sm:$0xff] %v2162_v53  ;;  %v2173_v63 = vmax.f32 %v2155_v8, 0.0  ;;  %v2163_v15 = vmax.f32 %v2115_v12, 0.0 }
 0x1c5   :  { %2186 = vst [vmem:[%s3925_s3 + $0x60] sm:$0xff] %v2170_v62  ;;  %2181 = vst [vmem:[%s3925_s3 + $0x38] sm:$0xff] %v2165_v43  ;;  %v2171_v45 = vmax.f32 %v2147_v42, 0.0 }
 0x1c6   :  { %2189 = vst [vmem:[%s3925_s3 + $0x78] sm:$0xff] %v2173_v63  ;;  %2179 = vst [vmem:[%s3925_s3 + $0x28] sm:$0xff] %v2163_v15 }
 0x1c7   :  { %2187 = vst [vmem:[%s3925_s3 + $0x68] sm:$0xff] %v2171_v45 }

// kernel: encoder_net_forward.8
= control target key start
LH: loop header
LB: loop body
LE: loop exit
PB: predicated region body
PF: predicated region fallthrough
CT: control target
= control target key end

     0   :  { %s6083_s1 = inlined_call_operand.vmem [shape: bf16[3200,256], index: 1, kind: input, shape index: {}]   ;;  %s6084_s0 = inlined_call_operand.vmem [shape: bf16[32,3200], index: 0, kind: input, shape index: {}]   ;;  %s6085_s2 = inlined_call_operand.vmem [shape: f32[1,256], index: 2, kind: input, shape index: {}]   ;;  %s6086_s3 = inlined_call_operand.vmem [shape: f32[32,256], index: 3, kind: output, shape index: {}]  }
   0x1   :  { %v4011_v0 = vld [vmem:[%s6083_s1 + $0x4] ss:$8 sps:$4 sm:$0xff]   ;;  %v4015_v2 = vld [vmem:[%s6083_s1] ss:$8 sps:$4 sm:$0xff]   ;;  %v4017_v4 = vld [vmem:[%s6083_s1 + $0x14] ss:$8 sps:$4 sm:$0xff]  }
   0x2   :  { %v4013_v1 = vld [vmem:[%s6083_s1 + $0x604] ss:$8 sps:$4 sm:$0xff]   ;;  %2731 = vmatprep.subr.bf16.mxu1 %v4011_v0  ;;  %v4016_v3 = vld [vmem:[%s6083_s1 + $0x600] ss:$8 sps:$4 sm:$0xff]   ;;  %v4019_v5 = vld [vmem:[%s6083_s1 + $0x614] ss:$8 sps:$4 sm:$0xff]  }
   0x3   :  { %3049 = vmatprep.subr.bf16.mxu0 %v4013_v1  ;;  %2732 = vmatpush1.bf16.msra.mxu1 %v4015_v2  ;;  %v4021_v6 = vld [vmem:[%s6083_s1 + $0x10] ss:$8 sps:$4 sm:$0xff]   ;;  %v4023_v8 = vld [vmem:[%s6083_s1 + $0x24] ss:$8 sps:$4 sm:$0xff]   ;;  %v4027_v10 = vld [vmem:[%s6083_s1 + $0x20] ss:$8 sps:$4 sm:$0xff]  }
   0x4   :  { %3050 = vmatpush1.bf16.msra.mxu0 %v4016_v3  ;;  %2733 = vmatprep.subr.bf16.mxu1 %v4017_v4  ;;  %v4022_v7 = vld [vmem:[%s6083_s1 + $0x610] ss:$8 sps:$4 sm:$0xff]   ;;  %v4025_v9 = vld [vmem:[%s6083_s1 + $0x624] ss:$8 sps:$4 sm:$0xff]   ;;  %v4028_v11 = vld [vmem:[%s6083_s1 + $0x620] ss:$8 sps:$4 sm:$0xff]  }
   0x5   :  { %3051 = vmatprep.subr.bf16.mxu0 %v4019_v5  ;;  %v4029_v12 = vld [vmem:[%s6083_s1 + $0x34] ss:$8 sps:$4 sm:$0xff]   ;;  %v4033_v14 = vld [vmem:[%s6083_s1 + $0x30] ss:$8 sps:$4 sm:$0xff]   ;;  %v4035_v16 = vld [vmem:[%s6083_s1 + $0x44] ss:$8 sps:$4 sm:$0xff]  }
   0x6   :  { %v4031_v13 = vld [vmem:[%s6083_s1 + $0x634] ss:$8 sps:$4 sm:$0xff]   ;;  %v4034_v15 = vld [vmem:[%s6083_s1 + $0x630] ss:$8 sps:$4 sm:$0xff]   ;;  %v4037_v17 = vld [vmem:[%s6083_s1 + $0x644] ss:$8 sps:$4 sm:$0xff]  }
   0x7   :  { %2734 = vmatpush1.bf16.msra.mxu1 %v4021_v6  ;;  %v4039_v18 = vld [vmem:[%s6083_s1 + $0x40] ss:$8 sps:$4 sm:$0xff]   ;;  %v4041_v20 = vld [vmem:[%s6083_s1 + $0x54] ss:$8 sps:$4 sm:$0xff]   ;;  %v4045_v22 = vld [vmem:[%s6083_s1 + $0x50] ss:$8 sps:$4 sm:$0xff]  }
   0x8   :  { %3052 = vmatpush1.bf16.msra.mxu0 %v4022_v7  ;;  %2735 = vmatprep.subr.bf16.mxu1 %v4023_v8  ;;  %v4040_v19 = vld [vmem:[%s6083_s1 + $0x640] ss:$8 sps:$4 sm:$0xff]   ;;  %v4043_v21 = vld [vmem:[%s6083_s1 + $0x654] ss:$8 sps:$4 sm:$0xff]   ;;  %v4046_v23 = vld [vmem:[%s6083_s1 + $0x650] ss:$8 sps:$4 sm:$0xff]  }
   0x9   :  { %3053 = vmatprep.subr.bf16.mxu0 %v4025_v9  ;;  %v4047_v24 = vld [vmem:[%s6083_s1 + $0x64] ss:$8 sps:$4 sm:$0xff]   ;;  %v4051_v26 = vld [vmem:[%s6083_s1 + $0x60] ss:$8 sps:$4 sm:$0xff]   ;;  %v4053_v28 = vld [vmem:[%s6083_s1 + $0x74] ss:$8 sps:$4 sm:$0xff]  }
   0xa   :  { %v4049_v25 = vld [vmem:[%s6083_s1 + $0x664] ss:$8 sps:$4 sm:$0xff]   ;;  %v4052_v27 = vld [vmem:[%s6083_s1 + $0x660] ss:$8 sps:$4 sm:$0xff]   ;;  %v4055_v29 = vld [vmem:[%s6083_s1 + $0x674] ss:$8 sps:$4 sm:$0xff]  }
   0xb   :  { %2736 = vmatpush1.bf16.msra.mxu1 %v4027_v10  ;;  %v4057_v30 = vld [vmem:[%s6083_s1 + $0x70] ss:$8 sps:$4 sm:$0xff]   ;;  %v4059_v32 = vld [vmem:[%s6083_s1 + $0x84] ss:$8 sps:$4 sm:$0xff]   ;;  %v4063_v34 = vld [vmem:[%s6083_s1 + $0x80] ss:$8 sps:$4 sm:$0xff]  }
   0xc   :  { %3054 = vmatpush1.bf16.msra.mxu0 %v4028_v11  ;;  %2737 = vmatprep.subr.bf16.mxu1 %v4029_v12  ;;  %v4058_v31 = vld [vmem:[%s6083_s1 + $0x670] ss:$8 sps:$4 sm:$0xff]   ;;  %v4061_v33 = vld [vmem:[%s6083_s1 + $0x684] ss:$8 sps:$4 sm:$0xff]   ;;  %v4064_v35 = vld [vmem:[%s6083_s1 + $0x680] ss:$8 sps:$4 sm:$0xff]  }
   0xd   :  { %3055 = vmatprep.subr.bf16.mxu0 %v4031_v13  ;;  %v4065_v36 = vld [vmem:[%s6083_s1 + $0x94] ss:$8 sps:$4 sm:$0xff]   ;;  %v4069_v38 = vld [vmem:[%s6083_s1 + $0x90] ss:$8 sps:$4 sm:$0xff]   ;;  %v4071_v40 = vld [vmem:[%s6083_s1 + $0xa4] ss:$8 sps:$4 sm:$0xff]  }
   0xe   :  { %v4067_v37 = vld [vmem:[%s6083_s1 + $0x694] ss:$8 sps:$4 sm:$0xff]   ;;  %v4070_v39 = vld [vmem:[%s6083_s1 + $0x690] ss:$8 sps:$4 sm:$0xff]   ;;  %v4073_v41 = vld [vmem:[%s6083_s1 + $0x6a4] ss:$8 sps:$4 sm:$0xff]  }
   0xf   :  { %2738 = vmatpush1.bf16.msra.mxu1 %v4033_v14  ;;  %v4075_v42 = vld [vmem:[%s6083_s1 + $0xa0] ss:$8 sps:$4 sm:$0xff]   ;;  %v4077_v44 = vld [vmem:[%s6083_s1 + $0xb4] ss:$8 sps:$4 sm:$0xff]   ;;  %v4081_v46 = vld [vmem:[%s6083_s1 + $0xb0] ss:$8 sps:$4 sm:$0xff]  }
  0x10   :  { %3056 = vmatpush1.bf16.msra.mxu0 %v4034_v15  ;;  %2739 = vmatprep.subr.bf16.mxu1 %v4035_v16  ;;  %v4076_v43 = vld [vmem:[%s6083_s1 + $0x6a0] ss:$8 sps:$4 sm:$0xff]   ;;  %v4079_v45 = vld [vmem:[%s6083_s1 + $0x6b4] ss:$8 sps:$4 sm:$0xff]   ;;  %v4082_v47 = vld [vmem:[%s6083_s1 + $0x6b0] ss:$8 sps:$4 sm:$0xff]  }
  0x11   :  { %3057 = vmatprep.subr.bf16.mxu0 %v4037_v17  ;;  %v4109_v48 = vld [vmem:[%s6084_s0 + $0x4] ss:$100 sps:$4 sm:$0xff]   ;;  %v4115_v51 = vld [vmem:[%s6084_s0 + $0x34] ss:$100 sps:$4 sm:$0xff]  }
  0x12   :  { %v4083_v49 = vld [vmem:[%s6083_s1 + $0xc4] ss:$8 sps:$4 sm:$0xff]   ;;  %2763 = vmatprep.mubr.bf16.mxu1 %v4109_v48  ;;  %v4087_v52 = vld [vmem:[%s6083_s1 + $0xc0] ss:$8 sps:$4 sm:$0xff]   ;;  %v4089_v54 = vld [vmem:[%s6083_s1 + $0xd4] ss:$8 sps:$4 sm:$0xff]   ;;  %3081 = vmatprep.mubr.bf16.mxu0 %v4115_v51 }
  0x13   :  { %2740 = vmatpush1.bf16.msra.mxu1 %v4039_v18  ;;  %v4085_v50 = vld [vmem:[%s6083_s1 + $0x6c4] ss:$8 sps:$4 sm:$0xff]   ;;  %v4088_v53 = vld [vmem:[%s6083_s1 + $0x6c0] ss:$8 sps:$4 sm:$0xff]   ;;  %v4091_v55 = vld [vmem:[%s6083_s1 + $0x6d4] ss:$8 sps:$4 sm:$0xff]  }
  0x14   :  { %3058 = vmatpush1.bf16.msra.mxu0 %v4040_v19  ;;  %2741 = vmatprep.subr.bf16.mxu1 %v4041_v20  ;;  %v4093_v56 = vld [vmem:[%s6083_s1 + $0xd0] ss:$8 sps:$4 sm:$0xff]   ;;  %v4095_v58 = vld [vmem:[%s6083_s1 + $0xe4] ss:$8 sps:$4 sm:$0xff]   ;;  %v4099_v60 = vld [vmem:[%s6083_s1 + $0xe0] ss:$8 sps:$4 sm:$0xff]  }
  0x15   :  { %3059 = vmatprep.subr.bf16.mxu0 %v4043_v21  ;;  %v4094_v57 = vld [vmem:[%s6083_s1 + $0x6d0] ss:$8 sps:$4 sm:$0xff]   ;;  %v4097_v59 = vld [vmem:[%s6083_s1 + $0x6e4] ss:$8 sps:$4 sm:$0xff]   ;;  %v4100_v61 = vld [vmem:[%s6083_s1 + $0x6e0] ss:$8 sps:$4 sm:$0xff]  }
  0x16   :  { %v4101_v62 = vld [vmem:[%s6083_s1 + $0xf4] ss:$8 sps:$4 sm:$0xff]   ;;  %v4105_v0 = vld [vmem:[%s6083_s1 + $0xf0] ss:$8 sps:$4 sm:$0xff]   ;;  %v4112_v2 = vld [vmem:[%s6083_s1 + $0x104] ss:$8 sps:$4 sm:$0xff]  }
  0x17   :  { %2742 = vmatpush1.bf16.msra.mxu1 %v4045_v22  ;;  %v4103_v63 = vld [vmem:[%s6083_s1 + $0x6f4] ss:$8 sps:$4 sm:$0xff]   ;;  %v4106_v1 = vld [vmem:[%s6083_s1 + $0x6f0] ss:$8 sps:$4 sm:$0xff]   ;;  %v4118_v3 = vld [vmem:[%s6083_s1 + $0x704] ss:$8 sps:$4 sm:$0xff]  }
  0x18   :  { %3060 = vmatpush1.bf16.msra.mxu0 %v4046_v23  ;;  %2743 = vmatprep.subr.bf16.mxu1 %v4047_v24  ;;  %v4107_v4 = vld [vmem:[%s6084_s0] ss:$100 sps:$4 sm:$0xff]   ;;  %v4113_v6 = vld [vmem:[%s6084_s0 + $0x30] ss:$100 sps:$4 sm:$0xff]  }
  0x19   :  { %3061 = vmatprep.subr.bf16.mxu0 %v4049_v25  ;;  %v4110_v5 = vld [vmem:[%s6083_s1 + $0x100] ss:$8 sps:$4 sm:$0xff]   ;;  %v4121_v8 = vld [vmem:[%s6083_s1 + $0x114] ss:$8 sps:$4 sm:$0xff]   ;;  %v4119_v10 = vld [vmem:[%s6083_s1 + $0x110] ss:$8 sps:$4 sm:$0xff]  }
  0x1a   :  { %v4116_v7 = vld [vmem:[%s6083_s1 + $0x700] ss:$8 sps:$4 sm:$0xff]   ;;  %v4124_v9 = vld [vmem:[%s6083_s1 + $0x714] ss:$8 sps:$4 sm:$0xff]   ;;  %v4122_v11 = vld [vmem:[%s6083_s1 + $0x710] ss:$8 sps:$4 sm:$0xff]  }
  0x1b   :  { %2744 = vmatpush1.bf16.msra.mxu1 %v4051_v26  ;;  %v4127_v12 = vld [vmem:[%s6083_s1 + $0x124] ss:$8 sps:$4 sm:$0xff]   ;;  %v4125_v14 = vld [vmem:[%s6083_s1 + $0x120] ss:$8 sps:$4 sm:$0xff]   ;;  %v4133_v16 = vld [vmem:[%s6083_s1 + $0x134] ss:$8 sps:$4 sm:$0xff]  }
  0x1c   :  { %3062 = vmatpush1.bf16.msra.mxu0 %v4052_v27  ;;  %2745 = vmatprep.subr.bf16.mxu1 %v4053_v28  ;;  %v4130_v13 = vld [vmem:[%s6083_s1 + $0x724] ss:$8 sps:$4 sm:$0xff]   ;;  %v4128_v15 = vld [vmem:[%s6083_s1 + $0x720] ss:$8 sps:$4 sm:$0xff]   ;;  %v4136_v17 = vld [vmem:[%s6083_s1 + $0x734] ss:$8 sps:$4 sm:$0xff]  }
  0x1d   :  { %3063 = vmatprep.subr.bf16.mxu0 %v4055_v29  ;;  %v4131_v18 = vld [vmem:[%s6083_s1 + $0x130] ss:$8 sps:$4 sm:$0xff]   ;;  %v4139_v20 = vld [vmem:[%s6083_s1 + $0x144] ss:$8 sps:$4 sm:$0xff]   ;;  %v4137_v22 = vld [vmem:[%s6083_s1 + $0x140] ss:$8 sps:$4 sm:$0xff]  }
  0x1e   :  { %v4134_v19 = vld [vmem:[%s6083_s1 + $0x730] ss:$8 sps:$4 sm:$0xff]   ;;  %v4142_v21 = vld [vmem:[%s6083_s1 + $0x744] ss:$8 sps:$4 sm:$0xff]   ;;  %v4140_v23 = vld [vmem:[%s6083_s1 + $0x740] ss:$8 sps:$4 sm:$0xff]  }
  0x1f   :  { %2746 = vmatpush1.bf16.msra.mxu1 %v4057_v30  ;;  %v4145_v24 = vld [vmem:[%s6083_s1 + $0x154] ss:$8 sps:$4 sm:$0xff]   ;;  %v4143_v26 = vld [vmem:[%s6083_s1 + $0x150] ss:$8 sps:$4 sm:$0xff]   ;;  %v4151_v29 = vld [vmem:[%s6083_s1 + $0x164] ss:$8 sps:$4 sm:$0xff]  }
  0x20   :  { %3064 = vmatpush1.bf16.msra.mxu0 %v4058_v31  ;;  %2747 = vmatprep.subr.bf16.mxu1 %v4059_v32  ;;  %v4148_v25 = vld [vmem:[%s6083_s1 + $0x754] ss:$8 sps:$4 sm:$0xff]   ;;  %v4146_v27 = vld [vmem:[%s6083_s1 + $0x750] ss:$8 sps:$4 sm:$0xff]   ;;  %v4154_v30 = vld [vmem:[%s6083_s1 + $0x764] ss:$8 sps:$4 sm:$0xff]  }
  0x21   :  { %3065 = vmatprep.subr.bf16.mxu0 %v4061_v33  ;;  %v4197_v28 = vld [vmem:[%s6084_s0 + $0xcc] ss:$100 sps:$4 sm:$0xff]   ;;  %v4202_v31 = vld [vmem:[%s6084_s0 + $0xfc] ss:$100 sps:$4 sm:$0xff]  }
  0x22   :  { %v4149_v32 = vld [vmem:[%s6083_s1 + $0x160] ss:$8 sps:$4 sm:$0xff]   ;;  %v4167_v48 = vld [vmem:[%s6083_s1 + $0x190] ss:$8 sps:$4 sm:$0xff]   ;;  %v4178_v51 = vld [vmem:[%s6083_s1 + $0x7a4] ss:$8 sps:$4 sm:$0xff]  }
  0x23   :  { %2748 = vmatpush1.bf16.msra.mxu1 %v4063_v34  ;;  %v4152_v33 = vld [vmem:[%s6083_s1 + $0x760] ss:$8 sps:$4 sm:$0xff]  }
  0x24   :  { %3066 = vmatpush1.bf16.msra.mxu0 %v4064_v35  ;;  %2749 = vmatprep.subr.bf16.mxu1 %v4065_v36  ;;  %v4207_v34 = vld [vmem:[%s6084_s0 + $0xc8] ss:$100 sps:$4 sm:$0xff]   ;;  %v4208_v35 = vld [vmem:[%s6084_s0 + $0xf8] ss:$100 sps:$4 sm:$0xff]  }
  0x25   :  { %3067 = vmatprep.subr.bf16.mxu0 %v4067_v37  ;;  %v4157_v36 = vld [vmem:[%s6083_s1 + $0x174] ss:$8 sps:$4 sm:$0xff]  }
  0x26   :  { %v4160_v37 = vld [vmem:[%s6083_s1 + $0x774] ss:$8 sps:$4 sm:$0xff]  }
  0x27   :  { %2750 = vmatpush1.bf16.msra.mxu1 %v4069_v38  ;;  %v4155_v38 = vld [vmem:[%s6083_s1 + $0x170] ss:$8 sps:$4 sm:$0xff]  }
  0x28   :  { %3068 = vmatpush1.bf16.msra.mxu0 %v4070_v39  ;;  %2751 = vmatprep.subr.bf16.mxu1 %v4071_v40  ;;  %v4158_v39 = vld [vmem:[%s6083_s1 + $0x770] ss:$8 sps:$4 sm:$0xff]  }
  0x29   :  { %3069 = vmatprep.subr.bf16.mxu0 %v4073_v41  ;;  %v4217_v40 = vld [vmem:[%s6084_s0 + $0xc] ss:$100 sps:$4 sm:$0xff]  }
  0x2a   :  { %v4163_v41 = vld [vmem:[%s6083_s1 + $0x184] ss:$8 sps:$4 sm:$0xff]  }
  0x2b   :  { %2752 = vmatpush1.bf16.msra.mxu1 %v4075_v42  ;;  %v4166_v42 = vld [vmem:[%s6083_s1 + $0x784] ss:$8 sps:$4 sm:$0xff]  }
  0x2c   :  { %3070 = vmatpush1.bf16.msra.mxu0 %v4076_v43  ;;  %2753 = vmatprep.subr.bf16.mxu1 %v4077_v44  ;;  %v4223_v43 = vld [vmem:[%s6084_s0 + $0x3c] ss:$100 sps:$4 sm:$0xff]  }
  0x2d   :  { %3071 = vmatprep.subr.bf16.mxu0 %v4079_v45  ;;  %v4161_v44 = vld [vmem:[%s6083_s1 + $0x180] ss:$8 sps:$4 sm:$0xff]  }
  0x2e   :  { %v4164_v45 = vld [vmem:[%s6083_s1 + $0x780] ss:$8 sps:$4 sm:$0xff]  }
  0x2f   :  { %2754 = vmatpush1.bf16.msra.mxu1 %v4081_v46  ;;  %v4169_v46 = vld [vmem:[%s6083_s1 + $0x194] ss:$8 sps:$4 sm:$0xff]  }
  0x30   :  { %3072 = vmatpush1.bf16.msra.mxu0 %v4082_v47  ;;  %2755 = vmatprep.subr.bf16.mxu1 %v4083_v49  ;;  %v4172_v47 = vld [vmem:[%s6083_s1 + $0x794] ss:$8 sps:$4 sm:$0xff]   ;;  %v4170_v49 = vld [vmem:[%s6083_s1 + $0x790] ss:$8 sps:$4 sm:$0xff]  }
  0x31   :  { %3073 = vmatprep.subr.bf16.mxu0 %v4085_v50  ;;  %v4175_v50 = vld [vmem:[%s6083_s1 + $0x1a4] ss:$8 sps:$4 sm:$0xff]  }
  0x33   :  { %2756 = vmatpush1.bf16.msra.mxu1 %v4087_v52  ;;  %v4173_v52 = vld [vmem:[%s6083_s1 + $0x1a0] ss:$8 sps:$4 sm:$0xff]  }
  0x34   :  { %3074 = vmatpush1.bf16.msra.mxu0 %v4088_v53  ;;  %2757 = vmatprep.subr.bf16.mxu1 %v4089_v54  ;;  %v4176_v53 = vld [vmem:[%s6083_s1 + $0x7a0] ss:$8 sps:$4 sm:$0xff]   ;;  %v4181_v54 = vld [vmem:[%s6083_s1 + $0x1b4] ss:$8 sps:$4 sm:$0xff]  }
  0x35   :  { %3075 = vmatprep.subr.bf16.mxu0 %v4091_v55  ;;  %v4184_v55 = vld [vmem:[%s6083_s1 + $0x7b4] ss:$8 sps:$4 sm:$0xff]  }
  0x37   :  { %2758 = vmatpush1.bf16.msra.mxu1 %v4093_v56  ;;  %v4179_v56 = vld [vmem:[%s6083_s1 + $0x1b0] ss:$8 sps:$4 sm:$0xff]  }
  0x38   :  { %3076 = vmatpush1.bf16.msra.mxu0 %v4094_v57  ;;  %2759 = vmatprep.subr.bf16.mxu1 %v4095_v58  ;;  %v4182_v57 = vld [vmem:[%s6083_s1 + $0x7b0] ss:$8 sps:$4 sm:$0xff]   ;;  %v4187_v58 = vld [vmem:[%s6083_s1 + $0x1c4] ss:$8 sps:$4 sm:$0xff]  }
  0x39   :  { %3077 = vmatprep.subr.bf16.mxu0 %v4097_v59  ;;  %v4190_v59 = vld [vmem:[%s6083_s1 + $0x7c4] ss:$8 sps:$4 sm:$0xff]  }
  0x3b   :  { %2760 = vmatpush1.bf16.msra.mxu1 %v4099_v60  ;;  %v4185_v60 = vld [vmem:[%s6083_s1 + $0x1c0] ss:$8 sps:$4 sm:$0xff]  }
  0x3c   :  { %3078 = vmatpush1.bf16.msra.mxu0 %v4100_v61  ;;  %2761 = vmatprep.subr.bf16.mxu1 %v4101_v62  ;;  %v4188_v61 = vld [vmem:[%s6083_s1 + $0x7c0] ss:$8 sps:$4 sm:$0xff]   ;;  %v4193_v62 = vld [vmem:[%s6083_s1 + $0x1d4] ss:$8 sps:$4 sm:$0xff]  }
  0x3d   :  { %3079 = vmatprep.subr.bf16.mxu0 %v4103_v63  ;;  %v4196_v63 = vld [vmem:[%s6083_s1 + $0x7d4] ss:$8 sps:$4 sm:$0xff]  }
  0x3f   :  { %2762 = vmatpush1.bf16.msra.mxu1 %v4105_v0  ;;  %v4191_v0 = vld [vmem:[%s6083_s1 + $0x1d0] ss:$8 sps:$4 sm:$0xff]  }
  0x40   :  { %3080 = vmatpush1.bf16.msra.mxu0 %v4106_v1  ;;  %2784 = vmatprep.subr.bf16.mxu1 %v4112_v2  ;;  %v4194_v1 = vld [vmem:[%s6083_s1 + $0x7d0] ss:$8 sps:$4 sm:$0xff]   ;;  %v4201_v2 = vld [vmem:[%s6083_s1 + $0x1e4] ss:$8 sps:$4 sm:$0xff]  }
  0x41   :  { %3102 = vmatprep.subr.bf16.mxu0 %v4118_v3  ;;  %v4206_v3 = vld [vmem:[%s6083_s1 + $0x7e4] ss:$8 sps:$4 sm:$0xff]  }
  0x42   :  { %2764 = vmatmul.mubr.bf16.vlgmr.msra.gmra.mrb[0].mxu1 %v4107_v4  ;;  %v4199_v4 = vld [vmem:[%s6083_s1 + $0x1e0] ss:$8 sps:$4 sm:$0xff]  }
  0x43   :  { %3082 = vmatmul.mubr.bf16.vlgmr.msra.gmra.mrb[0].mxu0 %v4113_v6  ;;  %2785 = vmatpush1.bf16.msra.mxu1 %v4110_v5  ;;  %v4204_v5 = vld [vmem:[%s6083_s1 + $0x7e0] ss:$8 sps:$4 sm:$0xff]   ;;  %v4211_v6 = vld [vmem:[%s6083_s1 + $0x1f4] ss:$8 sps:$4 sm:$0xff]  }
  0x44   :  { %3103 = vmatpush1.bf16.msra.mxu0 %v4116_v7  ;;  %2786 = vmatprep.subr.bf16.mxu1 %v4121_v8  ;;  %v4214_v7 = vld [vmem:[%s6083_s1 + $0x7f4] ss:$8 sps:$4 sm:$0xff]   ;;  %v4209_v8 = vld [vmem:[%s6083_s1 + $0x1f0] ss:$8 sps:$4 sm:$0xff]  }
  0x45   :  { %3104 = vmatprep.subr.bf16.mxu0 %v4124_v9  ;;  %2773 = vmatprep.mubr.bf16.mxu1 %v4197_v28  ;;  %v4212_v9 = vld [vmem:[%s6083_s1 + $0x7f0] ss:$8 sps:$4 sm:$0xff]   ;;  %v4241_v28 = vld [vmem:[%s6083_s1 + $0x234] ss:$8 sps:$4 sm:$0xff]  }
  0x46   :  { %3091 = vmatprep.mubr.bf16.mxu0 %v4202_v31  ;;  %v4242_v31 = vld [vmem:[%s6083_s1 + $0x830] ss:$8 sps:$4 sm:$0xff]  }
  0x47   :  { %2787 = vmatpush1.bf16.msra.mxu1 %v4119_v10  ;;  %v4220_v10 = vld [vmem:[%s6083_s1 + $0x204] ss:$8 sps:$4 sm:$0xff]  }
  0x48   :  { %3105 = vmatpush1.bf16.msra.mxu0 %v4122_v11  ;;  %2788 = vmatprep.subr.bf16.mxu1 %v4127_v12  ;;  %v4226_v11 = vld [vmem:[%s6083_s1 + $0x804] ss:$8 sps:$4 sm:$0xff]  }
  0x49   :  { %3106 = vmatprep.subr.bf16.mxu0 %v4130_v13  ;;  %v4215_v12 = vld [vmem:[%s6084_s0 + $0x8] ss:$100 sps:$4 sm:$0xff]  }
  0x4a   :  { %2774 = vmatmul.mubr.bf16.gmra.mrb[4].mxu1 %v4207_v34  ;;  %v4218_v13 = vld [vmem:[%s6083_s1 + $0x200] ss:$8 sps:$4 sm:$0xff]   ;;  %v4250_v34 = vld [vmem:[%s6083_s1 + $0x844] ss:$8 sps:$4 sm:$0xff]  }
  0x4b   :  { %2789 = vmatpush1.bf16.msra.mxu1 %v4125_v14  ;;  %3092 = vmatmul.mubr.bf16.gmra.mrb[4].mxu0 %v4208_v35  ;;  %v4221_v14 = vld [vmem:[%s6084_s0 + $0x38] ss:$100 sps:$4 sm:$0xff]   ;;  %v4331_v35 = vld [vmem:[%s6084_s0 + $0x44] ss:$100 sps:$4 sm:$0xff]  }
  0x4c   :  { %3107 = vmatpush1.bf16.msra.mxu0 %v4128_v15  ;;  %2790 = vmatprep.subr.bf16.mxu1 %v4133_v16  ;;  %v4224_v15 = vld [vmem:[%s6083_s1 + $0x800] ss:$8 sps:$4 sm:$0xff]   ;;  %v4229_v16 = vld [vmem:[%s6083_s1 + $0x214] ss:$8 sps:$4 sm:$0xff]  }
  0x4d   :  { %3108 = vmatprep.subr.bf16.mxu0 %v4136_v17  ;;  %2816 = vmatprep.mubr.bf16.mxu1 %v4217_v40  ;;  %v4232_v17 = vld [vmem:[%s6083_s1 + $0x814] ss:$8 sps:$4 sm:$0xff]   ;;  %v4251_v40 = vld [vmem:[%s6083_s1 + $0x250] ss:$8 sps:$4 sm:$0xff]  }
  0x4e   :  { %3134 = vmatprep.mubr.bf16.mxu0 %v4223_v43  ;;  %v4262_v43 = vld [vmem:[%s6083_s1 + $0x864] ss:$8 sps:$4 sm:$0xff]  }
  0x4f   :  { %2791 = vmatpush1.bf16.msra.mxu1 %v4131_v18  ;;  %v4227_v18 = vld [vmem:[%s6083_s1 + $0x210] ss:$8 sps:$4 sm:$0xff]  }
  0x50   :  { %3109 = vmatpush1.bf16.msra.mxu0 %v4134_v19  ;;  %2792 = vmatprep.subr.bf16.mxu1 %v4139_v20  ;;  %v4230_v19 = vld [vmem:[%s6083_s1 + $0x810] ss:$8 sps:$4 sm:$0xff]  }
  0x51   :  { %3110 = vmatprep.subr.bf16.mxu0 %v4142_v21  ;;  %v4305_v20 = vld [vmem:[%s6084_s0 + $0xd4] ss:$100 sps:$4 sm:$0xff]   ;;  %v4235_v21 = vld [vmem:[%s6083_s1 + $0x224] ss:$8 sps:$4 sm:$0xff]  }
  0x53   :  { %2793 = vmatpush1.bf16.msra.mxu1 %v4137_v22  ;;  %v4238_v22 = vld [vmem:[%s6083_s1 + $0x824] ss:$8 sps:$4 sm:$0xff]  }
  0x54   :  { %3111 = vmatpush1.bf16.msra.mxu0 %v4140_v23  ;;  %2794 = vmatprep.subr.bf16.mxu1 %v4145_v24  ;;  %v4310_v23 = vld [vmem:[%s6084_s0 + $0x104] ss:$100 sps:$4 sm:$0xff]  }
  0x55   :  { %3112 = vmatprep.subr.bf16.mxu0 %v4148_v25  ;;  %v4233_v24 = vld [vmem:[%s6083_s1 + $0x220] ss:$8 sps:$4 sm:$0xff]  }
  0x56   :  { %v4236_v25 = vld [vmem:[%s6083_s1 + $0x820] ss:$8 sps:$4 sm:$0xff]  }
  0x57   :  { %2795 = vmatpush1.bf16.msra.mxu1 %v4143_v26  ;;  %v4315_v26 = vld [vmem:[%s6084_s0 + $0xd0] ss:$100 sps:$4 sm:$0xff]  }
  0x58   :  { %3113 = vmatpush1.bf16.msra.mxu0 %v4146_v27  ;;  %2796 = vmatprep.subr.bf16.mxu1 %v4151_v29  ;;  %v4316_v27 = vld [vmem:[%s6084_s0 + $0x100] ss:$100 sps:$4 sm:$0xff]   ;;  %v4244_v29 = vld [vmem:[%s6083_s1 + $0x834] ss:$8 sps:$4 sm:$0xff]  }
  0x59   :  { %3114 = vmatprep.subr.bf16.mxu0 %v4154_v30  ;;  %v4239_v30 = vld [vmem:[%s6083_s1 + $0x230] ss:$8 sps:$4 sm:$0xff]  }
  0x5b   :  { %2797 = vmatpush1.bf16.msra.mxu1 %v4149_v32  ;;  %v4325_v32 = vld [vmem:[%s6084_s0 + $0x14] ss:$100 sps:$4 sm:$0xff]  }
  0x5c   :  { %3115 = vmatpush1.bf16.msra.mxu0 %v4152_v33  ;;  %2798 = vmatprep.subr.bf16.mxu1 %v4157_v36  ;;  %v4247_v33 = vld [vmem:[%s6083_s1 + $0x244] ss:$8 sps:$4 sm:$0xff]   ;;  %v4245_v36 = vld [vmem:[%s6083_s1 + $0x240] ss:$8 sps:$4 sm:$0xff]  }
  0x5d   :  { %3116 = vmatprep.subr.bf16.mxu0 %v4160_v37  ;;  %v4248_v37 = vld [vmem:[%s6083_s1 + $0x840] ss:$8 sps:$4 sm:$0xff]  }
  0x5f   :  { %2799 = vmatpush1.bf16.msra.mxu1 %v4155_v38  ;;  %v4253_v38 = vld [vmem:[%s6083_s1 + $0x254] ss:$8 sps:$4 sm:$0xff]  }
  0x60   :  { %3117 = vmatpush1.bf16.msra.mxu0 %v4158_v39  ;;  %2800 = vmatprep.subr.bf16.mxu1 %v4163_v41  ;;  %v4256_v39 = vld [vmem:[%s6083_s1 + $0x854] ss:$8 sps:$4 sm:$0xff]   ;;  %v4254_v41 = vld [vmem:[%s6083_s1 + $0x850] ss:$8 sps:$4 sm:$0xff]  }
  0x61   :  { %3118 = vmatprep.subr.bf16.mxu0 %v4166_v42  ;;  %v4259_v42 = vld [vmem:[%s6083_s1 + $0x264] ss:$8 sps:$4 sm:$0xff]  }
  0x63   :  { %2801 = vmatpush1.bf16.msra.mxu1 %v4161_v44  ;;  %v4257_v44 = vld [vmem:[%s6083_s1 + $0x260] ss:$8 sps:$4 sm:$0xff]  }
  0x64   :  { %3119 = vmatpush1.bf16.msra.mxu0 %v4164_v45  ;;  %2802 = vmatprep.subr.bf16.mxu1 %v4169_v46  ;;  %v4260_v45 = vld [vmem:[%s6083_s1 + $0x860] ss:$8 sps:$4 sm:$0xff]   ;;  %v4265_v46 = vld [vmem:[%s6083_s1 + $0x274] ss:$8 sps:$4 sm:$0xff]  }
  0x65   :  { %3120 = vmatprep.subr.bf16.mxu0 %v4172_v47  ;;  %v4268_v47 = vld [vmem:[%s6083_s1 + $0x874] ss:$8 sps:$4 sm:$0xff]  }
  0x67   :  { %2803 = vmatpush1.bf16.msra.mxu1 %v4167_v48  ;;  %v4263_v48 = vld [vmem:[%s6083_s1 + $0x270] ss:$8 sps:$4 sm:$0xff]  }
  0x68   :  { %3121 = vmatpush1.bf16.msra.mxu0 %v4170_v49  ;;  %2804 = vmatprep.subr.bf16.mxu1 %v4175_v50  ;;  %v4266_v49 = vld [vmem:[%s6083_s1 + $0x870] ss:$8 sps:$4 sm:$0xff]   ;;  %v4271_v50 = vld [vmem:[%s6083_s1 + $0x284] ss:$8 sps:$4 sm:$0xff]  }
  0x69   :  { %3122 = vmatprep.subr.bf16.mxu0 %v4178_v51  ;;  %v4274_v51 = vld [vmem:[%s6083_s1 + $0x884] ss:$8 sps:$4 sm:$0xff]  }
  0x6b   :  { %2805 = vmatpush1.bf16.msra.mxu1 %v4173_v52  ;;  %v4269_v52 = vld [vmem:[%s6083_s1 + $0x280] ss:$8 sps:$4 sm:$0xff]  }
  0x6c   :  { %3123 = vmatpush1.bf16.msra.mxu0 %v4176_v53  ;;  %2806 = vmatprep.subr.bf16.mxu1 %v4181_v54  ;;  %v4272_v53 = vld [vmem:[%s6083_s1 + $0x880] ss:$8 sps:$4 sm:$0xff]   ;;  %v4277_v54 = vld [vmem:[%s6083_s1 + $0x294] ss:$8 sps:$4 sm:$0xff]  }
  0x6d   :  { %3124 = vmatprep.subr.bf16.mxu0 %v4184_v55  ;;  %v4280_v55 = vld [vmem:[%s6083_s1 + $0x894] ss:$8 sps:$4 sm:$0xff]  }
  0x6f   :  { %2807 = vmatpush1.bf16.msra.mxu1 %v4179_v56  ;;  %v4275_v56 = vld [vmem:[%s6083_s1 + $0x290] ss:$8 sps:$4 sm:$0xff]  }
  0x70   :  { %3125 = vmatpush1.bf16.msra.mxu0 %v4182_v57  ;;  %2808 = vmatprep.subr.bf16.mxu1 %v4187_v58  ;;  %v4278_v57 = vld [vmem:[%s6083_s1 + $0x890] ss:$8 sps:$4 sm:$0xff]   ;;  %v4283_v58 = vld [vmem:[%s6083_s1 + $0x2a4] ss:$8 sps:$4 sm:$0xff]  }
  0x71   :  { %3126 = vmatprep.subr.bf16.mxu0 %v4190_v59  ;;  %v4286_v59 = vld [vmem:[%s6083_s1 + $0x8a4] ss:$8 sps:$4 sm:$0xff]  }
  0x73   :  { %2809 = vmatpush1.bf16.msra.mxu1 %v4185_v60  ;;  %v4281_v60 = vld [vmem:[%s6083_s1 + $0x2a0] ss:$8 sps:$4 sm:$0xff]  }
  0x74   :  { %3127 = vmatpush1.bf16.msra.mxu0 %v4188_v61  ;;  %2810 = vmatprep.subr.bf16.mxu1 %v4193_v62  ;;  %v4284_v61 = vld [vmem:[%s6083_s1 + $0x8a0] ss:$8 sps:$4 sm:$0xff]   ;;  %v4289_v62 = vld [vmem:[%s6083_s1 + $0x2b4] ss:$8 sps:$4 sm:$0xff]  }
  0x75   :  { %3128 = vmatprep.subr.bf16.mxu0 %v4196_v63  ;;  %v4292_v63 = vld [vmem:[%s6083_s1 + $0x8b4] ss:$8 sps:$4 sm:$0xff]  }
  0x77   :  { %2811 = vmatpush1.bf16.msra.mxu1 %v4191_v0  ;;  %v4287_v0 = vld [vmem:[%s6083_s1 + $0x2b0] ss:$8 sps:$4 sm:$0xff]  }
  0x78   :  { %3129 = vmatpush1.bf16.msra.mxu0 %v4194_v1  ;;  %2812 = vmatprep.subr.bf16.mxu1 %v4201_v2  ;;  %v4290_v1 = vld [vmem:[%s6083_s1 + $0x8b0] ss:$8 sps:$4 sm:$0xff]   ;;  %v4295_v2 = vld [vmem:[%s6083_s1 + $0x2c4] ss:$8 sps:$4 sm:$0xff]  }
  0x79   :  { %3130 = vmatprep.subr.bf16.mxu0 %v4206_v3  ;;  %v4298_v3 = vld [vmem:[%s6083_s1 + $0x8c4] ss:$8 sps:$4 sm:$0xff]  }
  0x7b   :  { %2813 = vmatpush1.bf16.msra.mxu1 %v4199_v4  ;;  %v4293_v4 = vld [vmem:[%s6083_s1 + $0x2c0] ss:$8 sps:$4 sm:$0xff]  }
  0x7c   :  { %3131 = vmatpush1.bf16.msra.mxu0 %v4204_v5  ;;  %2814 = vmatprep.subr.bf16.mxu1 %v4211_v6  ;;  %v4296_v5 = vld [vmem:[%s6083_s1 + $0x8c0] ss:$8 sps:$4 sm:$0xff]   ;;  %v4301_v6 = vld [vmem:[%s6083_s1 + $0x2d4] ss:$8 sps:$4 sm:$0xff]  }
  0x7d   :  { %3132 = vmatprep.subr.bf16.mxu0 %v4214_v7  ;;  %v4304_v7 = vld [vmem:[%s6083_s1 + $0x8d4] ss:$8 sps:$4 sm:$0xff]  }
  0x7f   :  { %2815 = vmatpush1.bf16.msra.mxu1 %v4209_v8  ;;  %v4299_v8 = vld [vmem:[%s6083_s1 + $0x2d0] ss:$8 sps:$4 sm:$0xff]  }
  0x80   :  { %3133 = vmatpush1.bf16.msra.mxu0 %v4212_v9  ;;  %2837 = vmatprep.subr.bf16.mxu1 %v4220_v10  ;;  %v4302_v9 = vld [vmem:[%s6083_s1 + $0x8d0] ss:$8 sps:$4 sm:$0xff]   ;;  %v4309_v10 = vld [vmem:[%s6083_s1 + $0x2e4] ss:$8 sps:$4 sm:$0xff]  }
  0x81   :  { %3155 = vmatprep.subr.bf16.mxu0 %v4226_v11  ;;  %v4314_v11 = vld [vmem:[%s6083_s1 + $0x8e4] ss:$8 sps:$4 sm:$0xff]  }
  0x82   :  { %2817 = vmatmul.mubr.bf16.vlgmr.msra.gmra.mrb[0].mxu1 %v4215_v12  ;;  %v4307_v12 = vld [vmem:[%s6083_s1 + $0x2e0] ss:$8 sps:$4 sm:$0xff]  }
  0x83   :  { %3135 = vmatmul.mubr.bf16.vlgmr.msra.gmra.mrb[0].mxu0 %v4221_v14  ;;  %2838 = vmatpush1.bf16.msra.mxu1 %v4218_v13  ;;  %v4312_v13 = vld [vmem:[%s6083_s1 + $0x8e0] ss:$8 sps:$4 sm:$0xff]   ;;  %v4319_v14 = vld [vmem:[%s6083_s1 + $0x2f4] ss:$8 sps:$4 sm:$0xff]  }
  0x84   :  { %3156 = vmatpush1.bf16.msra.mxu0 %v4224_v15  ;;  %2839 = vmatprep.subr.bf16.mxu1 %v4229_v16  ;;  %v4322_v15 = vld [vmem:[%s6083_s1 + $0x8f4] ss:$8 sps:$4 sm:$0xff]   ;;  %v4317_v16 = vld [vmem:[%s6083_s1 + $0x2f0] ss:$8 sps:$4 sm:$0xff]  }
  0x85   :  { %3157 = vmatprep.subr.bf16.mxu0 %v4232_v17  ;;  %2826 = vmatprep.mubr.bf16.mxu1 %v4305_v20  ;;  %v4320_v17 = vld [vmem:[%s6083_s1 + $0x8f0] ss:$8 sps:$4 sm:$0xff]  }
  0x86   :  { %3144 = vmatprep.mubr.bf16.mxu0 %v4310_v23  ;;  %v4323_v20 = vld [vmem:[%s6084_s0 + $0x10] ss:$100 sps:$4 sm:$0xff]   ;;  %v4332_v23 = vld [vmem:[%s6083_s1 + $0x900] ss:$8 sps:$4 sm:$0xff]  }
  0x87   :  { %2840 = vmatpush1.bf16.msra.mxu1 %v4227_v18  ;;  %v4328_v18 = vld [vmem:[%s6083_s1 + $0x304] ss:$8 sps:$4 sm:$0xff]  }
  0x88   :  { %3158 = vmatpush1.bf16.msra.mxu0 %v4230_v19  ;;  %2841 = vmatprep.subr.bf16.mxu1 %v4235_v21  ;;  %v4334_v19 = vld [vmem:[%s6083_s1 + $0x904] ss:$8 sps:$4 sm:$0xff]   ;;  %v4326_v21 = vld [vmem:[%s6083_s1 + $0x300] ss:$8 sps:$4 sm:$0xff]  }
  0x89   :  { %3159 = vmatprep.subr.bf16.mxu0 %v4238_v22  ;;  %v4329_v22 = vld [vmem:[%s6084_s0 + $0x40] ss:$100 sps:$4 sm:$0xff]  }
  0x8a   :  { %2827 = vmatmul.mubr.bf16.gmra.mrb[4].mxu1 %v4315_v26  ;;  %v4413_v26 = vld [vmem:[%s6084_s0 + $0xdc] ss:$100 sps:$4 sm:$0xff]  }
  0x8b   :  { %3145 = vmatmul.mubr.bf16.gmra.mrb[4].mxu0 %v4316_v27  ;;  %2842 = vmatpush1.bf16.msra.mxu1 %v4233_v24  ;;  %v4337_v24 = vld [vmem:[%s6083_s1 + $0x314] ss:$8 sps:$4 sm:$0xff]   ;;  %v4418_v27 = vld [vmem:[%s6084_s0 + $0x10c] ss:$100 sps:$4 sm:$0xff]  }
  0x8c   :  { %3160 = vmatpush1.bf16.msra.mxu0 %v4236_v25  ;;  %2843 = vmatprep.subr.bf16.mxu1 %v4241_v28  ;;  %v4340_v25 = vld [vmem:[%s6083_s1 + $0x914] ss:$8 sps:$4 sm:$0xff]   ;;  %v4335_v28 = vld [vmem:[%s6083_s1 + $0x310] ss:$8 sps:$4 sm:$0xff]  }
  0x8d   :  { %3161 = vmatprep.subr.bf16.mxu0 %v4244_v29  ;;  %2869 = vmatprep.mubr.bf16.mxu1 %v4325_v32  ;;  %v4338_v29 = vld [vmem:[%s6083_s1 + $0x910] ss:$8 sps:$4 sm:$0xff]   ;;  %v4341_v32 = vld [vmem:[%s6083_s1 + $0x320] ss:$8 sps:$4 sm:$0xff]  }
  0x8e   :  { %3187 = vmatprep.mubr.bf16.mxu0 %v4331_v35  ;;  %v4424_v35 = vld [vmem:[%s6084_s0 + $0x108] ss:$100 sps:$4 sm:$0xff]  }
  0x8f   :  { %2844 = vmatpush1.bf16.msra.mxu1 %v4239_v30  ;;  %v4343_v30 = vld [vmem:[%s6083_s1 + $0x324] ss:$8 sps:$4 sm:$0xff]  }
  0x90   :  { %3162 = vmatpush1.bf16.msra.mxu0 %v4242_v31  ;;  %2845 = vmatprep.subr.bf16.mxu1 %v4247_v33  ;;  %v4346_v31 = vld [vmem:[%s6083_s1 + $0x924] ss:$8 sps:$4 sm:$0xff]   ;;  %v4344_v33 = vld [vmem:[%s6083_s1 + $0x920] ss:$8 sps:$4 sm:$0xff]  }
  0x91   :  { %3163 = vmatprep.subr.bf16.mxu0 %v4250_v34  ;;  %v4423_v34 = vld [vmem:[%s6084_s0 + $0xd8] ss:$100 sps:$4 sm:$0xff]  }
  0x93   :  { %2846 = vmatpush1.bf16.msra.mxu1 %v4245_v36  ;;  %v4349_v36 = vld [vmem:[%s6083_s1 + $0x334] ss:$8 sps:$4 sm:$0xff]  }
  0x94   :  { %3164 = vmatpush1.bf16.msra.mxu0 %v4248_v37  ;;  %2847 = vmatprep.subr.bf16.mxu1 %v4253_v38  ;;  %v4352_v37 = vld [vmem:[%s6083_s1 + $0x934] ss:$8 sps:$4 sm:$0xff]  }
  0x95   :  { %3165 = vmatprep.subr.bf16.mxu0 %v4256_v39  ;;  %v4433_v38 = vld [vmem:[%s6084_s0 + $0x1c] ss:$100 sps:$4 sm:$0xff]   ;;  %v4439_v39 = vld [vmem:[%s6084_s0 + $0x4c] ss:$100 sps:$4 sm:$0xff]  }
  0x97   :  { %2848 = vmatpush1.bf16.msra.mxu1 %v4251_v40  ;;  %v4347_v40 = vld [vmem:[%s6083_s1 + $0x330] ss:$8 sps:$4 sm:$0xff]  }
  0x98   :  { %3166 = vmatpush1.bf16.msra.mxu0 %v4254_v41  ;;  %2849 = vmatprep.subr.bf16.mxu1 %v4259_v42  ;;  %v4350_v41 = vld [vmem:[%s6083_s1 + $0x930] ss:$8 sps:$4 sm:$0xff]   ;;  %v4355_v42 = vld [vmem:[%s6083_s1 + $0x344] ss:$8 sps:$4 sm:$0xff]  }
  0x99   :  { %3167 = vmatprep.subr.bf16.mxu0 %v4262_v43  ;;  %v4358_v43 = vld [vmem:[%s6083_s1 + $0x944] ss:$8 sps:$4 sm:$0xff]  }
  0x9b   :  { %2850 = vmatpush1.bf16.msra.mxu1 %v4257_v44  ;;  %v4353_v44 = vld [vmem:[%s6083_s1 + $0x340] ss:$8 sps:$4 sm:$0xff]  }
  0x9c   :  { %3168 = vmatpush1.bf16.msra.mxu0 %v4260_v45  ;;  %2851 = vmatprep.subr.bf16.mxu1 %v4265_v46  ;;  %v4356_v45 = vld [vmem:[%s6083_s1 + $0x940] ss:$8 sps:$4 sm:$0xff]   ;;  %v4361_v46 = vld [vmem:[%s6083_s1 + $0x354] ss:$8 sps:$4 sm:$0xff]  }
  0x9d   :  { %3169 = vmatprep.subr.bf16.mxu0 %v4268_v47  ;;  %v4364_v47 = vld [vmem:[%s6083_s1 + $0x954] ss:$8 sps:$4 sm:$0xff]  }
  0x9f   :  { %2852 = vmatpush1.bf16.msra.mxu1 %v4263_v48  ;;  %v4359_v48 = vld [vmem:[%s6083_s1 + $0x350] ss:$8 sps:$4 sm:$0xff]  }
  0xa0   :  { %3170 = vmatpush1.bf16.msra.mxu0 %v4266_v49  ;;  %2853 = vmatprep.subr.bf16.mxu1 %v4271_v50  ;;  %v4362_v49 = vld [vmem:[%s6083_s1 + $0x950] ss:$8 sps:$4 sm:$0xff]   ;;  %v4367_v50 = vld [vmem:[%s6083_s1 + $0x364] ss:$8 sps:$4 sm:$0xff]  }
  0xa1   :  { %3171 = vmatprep.subr.bf16.mxu0 %v4274_v51  ;;  %v4370_v51 = vld [vmem:[%s6083_s1 + $0x964] ss:$8 sps:$4 sm:$0xff]  }
  0xa3   :  { %2854 = vmatpush1.bf16.msra.mxu1 %v4269_v52  ;;  %v4365_v52 = vld [vmem:[%s6083_s1 + $0x360] ss:$8 sps:$4 sm:$0xff]  }
  0xa4   :  { %3172 = vmatpush1.bf16.msra.mxu0 %v4272_v53  ;;  %2855 = vmatprep.subr.bf16.mxu1 %v4277_v54  ;;  %v4368_v53 = vld [vmem:[%s6083_s1 + $0x960] ss:$8 sps:$4 sm:$0xff]   ;;  %v4373_v54 = vld [vmem:[%s6083_s1 + $0x374] ss:$8 sps:$4 sm:$0xff]  }
  0xa5   :  { %3173 = vmatprep.subr.bf16.mxu0 %v4280_v55  ;;  %v4376_v55 = vld [vmem:[%s6083_s1 + $0x974] ss:$8 sps:$4 sm:$0xff]  }
  0xa7   :  { %2856 = vmatpush1.bf16.msra.mxu1 %v4275_v56  ;;  %v4371_v56 = vld [vmem:[%s6083_s1 + $0x370] ss:$8 sps:$4 sm:$0xff]  }
  0xa8   :  { %3174 = vmatpush1.bf16.msra.mxu0 %v4278_v57  ;;  %2857 = vmatprep.subr.bf16.mxu1 %v4283_v58  ;;  %v4374_v57 = vld [vmem:[%s6083_s1 + $0x970] ss:$8 sps:$4 sm:$0xff]   ;;  %v4379_v58 = vld [vmem:[%s6083_s1 + $0x384] ss:$8 sps:$4 sm:$0xff]  }
  0xa9   :  { %3175 = vmatprep.subr.bf16.mxu0 %v4286_v59  ;;  %v4382_v59 = vld [vmem:[%s6083_s1 + $0x984] ss:$8 sps:$4 sm:$0xff]  }
  0xab   :  { %2858 = vmatpush1.bf16.msra.mxu1 %v4281_v60  ;;  %v4377_v60 = vld [vmem:[%s6083_s1 + $0x380] ss:$8 sps:$4 sm:$0xff]  }
  0xac   :  { %3176 = vmatpush1.bf16.msra.mxu0 %v4284_v61  ;;  %2859 = vmatprep.subr.bf16.mxu1 %v4289_v62  ;;  %v4380_v61 = vld [vmem:[%s6083_s1 + $0x980] ss:$8 sps:$4 sm:$0xff]   ;;  %v4385_v62 = vld [vmem:[%s6083_s1 + $0x394] ss:$8 sps:$4 sm:$0xff]  }
  0xad   :  { %3177 = vmatprep.subr.bf16.mxu0 %v4292_v63  ;;  %v4388_v63 = vld [vmem:[%s6083_s1 + $0x994] ss:$8 sps:$4 sm:$0xff]  }
  0xaf   :  { %2860 = vmatpush1.bf16.msra.mxu1 %v4287_v0  ;;  %v4383_v0 = vld [vmem:[%s6083_s1 + $0x390] ss:$8 sps:$4 sm:$0xff]  }
  0xb0   :  { %3178 = vmatpush1.bf16.msra.mxu0 %v4290_v1  ;;  %2861 = vmatprep.subr.bf16.mxu1 %v4295_v2  ;;  %v4386_v1 = vld [vmem:[%s6083_s1 + $0x990] ss:$8 sps:$4 sm:$0xff]   ;;  %v4391_v2 = vld [vmem:[%s6083_s1 + $0x3a4] ss:$8 sps:$4 sm:$0xff]  }
  0xb1   :  { %3179 = vmatprep.subr.bf16.mxu0 %v4298_v3  ;;  %v4394_v3 = vld [vmem:[%s6083_s1 + $0x9a4] ss:$8 sps:$4 sm:$0xff]  }
  0xb3   :  { %2862 = vmatpush1.bf16.msra.mxu1 %v4293_v4  ;;  %v4389_v4 = vld [vmem:[%s6083_s1 + $0x3a0] ss:$8 sps:$4 sm:$0xff]  }
  0xb4   :  { %3180 = vmatpush1.bf16.msra.mxu0 %v4296_v5  ;;  %2863 = vmatprep.subr.bf16.mxu1 %v4301_v6  ;;  %v4392_v5 = vld [vmem:[%s6083_s1 + $0x9a0] ss:$8 sps:$4 sm:$0xff]   ;;  %v4397_v6 = vld [vmem:[%s6083_s1 + $0x3b4] ss:$8 sps:$4 sm:$0xff]  }
  0xb5   :  { %3181 = vmatprep.subr.bf16.mxu0 %v4304_v7  ;;  %v4400_v7 = vld [vmem:[%s6083_s1 + $0x9b4] ss:$8 sps:$4 sm:$0xff]  }
  0xb7   :  { %2864 = vmatpush1.bf16.msra.mxu1 %v4299_v8  ;;  %v4395_v8 = vld [vmem:[%s6083_s1 + $0x3b0] ss:$8 sps:$4 sm:$0xff]  }
  0xb8   :  { %3182 = vmatpush1.bf16.msra.mxu0 %v4302_v9  ;;  %2865 = vmatprep.subr.bf16.mxu1 %v4309_v10  ;;  %v4398_v9 = vld [vmem:[%s6083_s1 + $0x9b0] ss:$8 sps:$4 sm:$0xff]   ;;  %v4403_v10 = vld [vmem:[%s6083_s1 + $0x3c4] ss:$8 sps:$4 sm:$0xff]  }
  0xb9   :  { %3183 = vmatprep.subr.bf16.mxu0 %v4314_v11  ;;  %v4406_v11 = vld [vmem:[%s6083_s1 + $0x9c4] ss:$8 sps:$4 sm:$0xff]  }
  0xbb   :  { %2866 = vmatpush1.bf16.msra.mxu1 %v4307_v12  ;;  %v4401_v12 = vld [vmem:[%s6083_s1 + $0x3c0] ss:$8 sps:$4 sm:$0xff]  }
  0xbc   :  { %3184 = vmatpush1.bf16.msra.mxu0 %v4312_v13  ;;  %2867 = vmatprep.subr.bf16.mxu1 %v4319_v14  ;;  %v4404_v13 = vld [vmem:[%s6083_s1 + $0x9c0] ss:$8 sps:$4 sm:$0xff]   ;;  %v4409_v14 = vld [vmem:[%s6083_s1 + $0x3d4] ss:$8 sps:$4 sm:$0xff]  }
  0xbd   :  { %3185 = vmatprep.subr.bf16.mxu0 %v4322_v15  ;;  %v4412_v15 = vld [vmem:[%s6083_s1 + $0x9d4] ss:$8 sps:$4 sm:$0xff]  }
  0xbf   :  { %2868 = vmatpush1.bf16.msra.mxu1 %v4317_v16  ;;  %v4407_v16 = vld [vmem:[%s6083_s1 + $0x3d0] ss:$8 sps:$4 sm:$0xff]  }
  0xc0   :  { %3186 = vmatpush1.bf16.msra.mxu0 %v4320_v17  ;;  %2890 = vmatprep.subr.bf16.mxu1 %v4328_v18  ;;  %v4410_v17 = vld [vmem:[%s6083_s1 + $0x9d0] ss:$8 sps:$4 sm:$0xff]   ;;  %v4417_v18 = vld [vmem:[%s6083_s1 + $0x3e4] ss:$8 sps:$4 sm:$0xff]  }
  0xc1   :  { %3208 = vmatprep.subr.bf16.mxu0 %v4334_v19  ;;  %v4422_v19 = vld [vmem:[%s6083_s1 + $0x9e4] ss:$8 sps:$4 sm:$0xff]  }
  0xc2   :  { %2870 = vmatmul.mubr.bf16.vlgmr.msra.gmra.mrb[0].mxu1 %v4323_v20  ;;  %v4415_v20 = vld [vmem:[%s6083_s1 + $0x3e0] ss:$8 sps:$4 sm:$0xff]  }
  0xc3   :  { %3188 = vmatmul.mubr.bf16.vlgmr.msra.gmra.mrb[0].mxu0 %v4329_v22  ;;  %2891 = vmatpush1.bf16.msra.mxu1 %v4326_v21  ;;  %v4420_v21 = vld [vmem:[%s6083_s1 + $0x9e0] ss:$8 sps:$4 sm:$0xff]   ;;  %v4427_v22 = vld [vmem:[%s6083_s1 + $0x3f4] ss:$8 sps:$4 sm:$0xff]  }
  0xc4   :  { %3209 = vmatpush1.bf16.msra.mxu0 %v4332_v23  ;;  %2892 = vmatprep.subr.bf16.mxu1 %v4337_v24  ;;  %v4430_v23 = vld [vmem:[%s6083_s1 + $0x9f4] ss:$8 sps:$4 sm:$0xff]   ;;  %v4425_v24 = vld [vmem:[%s6083_s1 + $0x3f0] ss:$8 sps:$4 sm:$0xff]  }
  0xc5   :  { %3210 = vmatprep.subr.bf16.mxu0 %v4340_v25  ;;  %2879 = vmatprep.mubr.bf16.mxu1 %v4413_v26  ;;  %v4428_v25 = vld [vmem:[%s6083_s1 + $0x9f0] ss:$8 sps:$4 sm:$0xff]   ;;  %v4436_v26 = vld [vmem:[%s6083_s1 + $0x404] ss:$8 sps:$4 sm:$0xff]  }
  0xc6   :  { %3197 = vmatprep.mubr.bf16.mxu0 %v4418_v27  ;;  %v4442_v27 = vld [vmem:[%s6083_s1 + $0xa04] ss:$8 sps:$4 sm:$0xff]  }
  0xc7   :  { %2893 = vmatpush1.bf16.msra.mxu1 %v4335_v28  ;;  %v4431_v28 = vld [vmem:[%s6084_s0 + $0x18] ss:$100 sps:$4 sm:$0xff]  }
  0xc8   :  { %3211 = vmatpush1.bf16.msra.mxu0 %v4338_v29  ;;  %2894 = vmatprep.subr.bf16.mxu1 %v4343_v30  ;;  %v4434_v29 = vld [vmem:[%s6083_s1 + $0x400] ss:$8 sps:$4 sm:$0xff]  }
  0xc9   :  { %3212 = vmatprep.subr.bf16.mxu0 %v4346_v31  ;;  %v4437_v30 = vld [vmem:[%s6084_s0 + $0x48] ss:$100 sps:$4 sm:$0xff]  }
  0xca   :  { %2880 = vmatmul.mubr.bf16.gmra.mrb[4].mxu1 %v4423_v34  ;;  %v4440_v31 = vld [vmem:[%s6083_s1 + $0xa00] ss:$8 sps:$4 sm:$0xff]  }
  0xcb   :  { %3198 = vmatmul.mubr.bf16.gmra.mrb[4].mxu0 %v4424_v35  ;;  %2895 = vmatpush1.bf16.msra.mxu1 %v4341_v32  ;;  %v4445_v32 = vld [vmem:[%s6083_s1 + $0x414] ss:$8 sps:$4 sm:$0xff]   ;;  %v4521_v34 = vld [vmem:[%s6084_s0 + $0xe4] ss:$100 sps:$4 sm:$0xff]  }
  0xcc   :  { %3213 = vmatpush1.bf16.msra.mxu0 %v4344_v33  ;;  %2896 = vmatprep.subr.bf16.mxu1 %v4349_v36  ;;  %v4448_v33 = vld [vmem:[%s6083_s1 + $0xa14] ss:$8 sps:$4 sm:$0xff]   ;;  %v4443_v36 = vld [vmem:[%s6083_s1 + $0x410] ss:$8 sps:$4 sm:$0xff]  }
  0xcd   :  { %3214 = vmatprep.subr.bf16.mxu0 %v4352_v37  ;;  %2922 = vmatprep.mubr.bf16.mxu1 %v4433_v38  ;;  %v4526_v35 = vld [vmem:[%s6084_s0 + $0x114] ss:$100 sps:$4 sm:$0xff]   ;;  %v4451_v38 = vld [vmem:[%s6083_s1 + $0x424] ss:$8 sps:$4 sm:$0xff]  }
  0xce   :  { %3240 = vmatprep.mubr.bf16.mxu0 %v4439_v39  ;;  %v4446_v37 = vld [vmem:[%s6083_s1 + $0xa10] ss:$8 sps:$4 sm:$0xff]   ;;  %v4454_v39 = vld [vmem:[%s6083_s1 + $0xa24] ss:$8 sps:$4 sm:$0xff]  }
  0xcf   :  { %2897 = vmatpush1.bf16.msra.mxu1 %v4347_v40  ;;  %v4449_v40 = vld [vmem:[%s6083_s1 + $0x420] ss:$8 sps:$4 sm:$0xff]  }
  0xd0   :  { %3215 = vmatpush1.bf16.msra.mxu0 %v4350_v41  ;;  %2898 = vmatprep.subr.bf16.mxu1 %v4355_v42  ;;  %v4452_v41 = vld [vmem:[%s6083_s1 + $0xa20] ss:$8 sps:$4 sm:$0xff]  }
  0xd1   :  { %3216 = vmatprep.subr.bf16.mxu0 %v4358_v43  ;;  %v4531_v42 = vld [vmem:[%s6084_s0 + $0xe0] ss:$100 sps:$4 sm:$0xff]   ;;  %v4532_v43 = vld [vmem:[%s6084_s0 + $0x110] ss:$100 sps:$4 sm:$0xff]  }
  0xd3   :  { %2899 = vmatpush1.bf16.msra.mxu1 %v4353_v44  ;;  %v4457_v44 = vld [vmem:[%s6083_s1 + $0x434] ss:$8 sps:$4 sm:$0xff]  }
  0xd4   :  { %3217 = vmatpush1.bf16.msra.mxu0 %v4356_v45  ;;  %2900 = vmatprep.subr.bf16.mxu1 %v4361_v46  ;;  %v4460_v45 = vld [vmem:[%s6083_s1 + $0xa34] ss:$8 sps:$4 sm:$0xff]   ;;  %v4541_v46 = vld [vmem:[%s6084_s0 + $0x24] ss:$100 sps:$4 sm:$0xff]  }
  0xd5   :  { %3218 = vmatprep.subr.bf16.mxu0 %v4364_v47  ;;  %v4547_v47 = vld [vmem:[%s6084_s0 + $0x54] ss:$100 sps:$4 sm:$0xff]  }
  0xd7   :  { %2901 = vmatpush1.bf16.msra.mxu1 %v4359_v48  ;;  %v4455_v48 = vld [vmem:[%s6083_s1 + $0x430] ss:$8 sps:$4 sm:$0xff]  }
  0xd8   :  { %3219 = vmatpush1.bf16.msra.mxu0 %v4362_v49  ;;  %2902 = vmatprep.subr.bf16.mxu1 %v4367_v50  ;;  %v4458_v49 = vld [vmem:[%s6083_s1 + $0xa30] ss:$8 sps:$4 sm:$0xff]   ;;  %v4463_v50 = vld [vmem:[%s6083_s1 + $0x444] ss:$8 sps:$4 sm:$0xff]  }
  0xd9   :  { %3220 = vmatprep.subr.bf16.mxu0 %v4370_v51  ;;  %v4466_v51 = vld [vmem:[%s6083_s1 + $0xa44] ss:$8 sps:$4 sm:$0xff]  }
  0xdb   :  { %2903 = vmatpush1.bf16.msra.mxu1 %v4365_v52  ;;  %v4461_v52 = vld [vmem:[%s6083_s1 + $0x440] ss:$8 sps:$4 sm:$0xff]  }
  0xdc   :  { %3221 = vmatpush1.bf16.msra.mxu0 %v4368_v53  ;;  %2904 = vmatprep.subr.bf16.mxu1 %v4373_v54  ;;  %v4464_v53 = vld [vmem:[%s6083_s1 + $0xa40] ss:$8 sps:$4 sm:$0xff]   ;;  %v4469_v54 = vld [vmem:[%s6083_s1 + $0x454] ss:$8 sps:$4 sm:$0xff]  }
  0xdd   :  { %3222 = vmatprep.subr.bf16.mxu0 %v4376_v55  ;;  %v4472_v55 = vld [vmem:[%s6083_s1 + $0xa54] ss:$8 sps:$4 sm:$0xff]  }
  0xdf   :  { %2905 = vmatpush1.bf16.msra.mxu1 %v4371_v56  ;;  %v4467_v56 = vld [vmem:[%s6083_s1 + $0x450] ss:$8 sps:$4 sm:$0xff]  }
  0xe0   :  { %3223 = vmatpush1.bf16.msra.mxu0 %v4374_v57  ;;  %2906 = vmatprep.subr.bf16.mxu1 %v4379_v58  ;;  %v4470_v57 = vld [vmem:[%s6083_s1 + $0xa50] ss:$8 sps:$4 sm:$0xff]   ;;  %v4475_v58 = vld [vmem:[%s6083_s1 + $0x464] ss:$8 sps:$4 sm:$0xff]  }
  0xe1   :  { %3224 = vmatprep.subr.bf16.mxu0 %v4382_v59  ;;  %v4478_v59 = vld [vmem:[%s6083_s1 + $0xa64] ss:$8 sps:$4 sm:$0xff]  }
  0xe3   :  { %2907 = vmatpush1.bf16.msra.mxu1 %v4377_v60  ;;  %v4473_v60 = vld [vmem:[%s6083_s1 + $0x460] ss:$8 sps:$4 sm:$0xff]  }
  0xe4   :  { %3225 = vmatpush1.bf16.msra.mxu0 %v4380_v61  ;;  %2908 = vmatprep.subr.bf16.mxu1 %v4385_v62  ;;  %v4476_v61 = vld [vmem:[%s6083_s1 + $0xa60] ss:$8 sps:$4 sm:$0xff]   ;;  %v4481_v62 = vld [vmem:[%s6083_s1 + $0x474] ss:$8 sps:$4 sm:$0xff]  }
  0xe5   :  { %3226 = vmatprep.subr.bf16.mxu0 %v4388_v63  ;;  %v4484_v63 = vld [vmem:[%s6083_s1 + $0xa74] ss:$8 sps:$4 sm:$0xff]  }
  0xe7   :  { %2909 = vmatpush1.bf16.msra.mxu1 %v4383_v0  ;;  %v4479_v0 = vld [vmem:[%s6083_s1 + $0x470] ss:$8 sps:$4 sm:$0xff]  }
  0xe8   :  { %3227 = vmatpush1.bf16.msra.mxu0 %v4386_v1  ;;  %2910 = vmatprep.subr.bf16.mxu1 %v4391_v2  ;;  %v4482_v1 = vld [vmem:[%s6083_s1 + $0xa70] ss:$8 sps:$4 sm:$0xff]   ;;  %v4487_v2 = vld [vmem:[%s6083_s1 + $0x484] ss:$8 sps:$4 sm:$0xff]  }
  0xe9   :  { %3228 = vmatprep.subr.bf16.mxu0 %v4394_v3  ;;  %v4490_v3 = vld [vmem:[%s6083_s1 + $0xa84] ss:$8 sps:$4 sm:$0xff]  }
  0xeb   :  { %2911 = vmatpush1.bf16.msra.mxu1 %v4389_v4  ;;  %v4485_v4 = vld [vmem:[%s6083_s1 + $0x480] ss:$8 sps:$4 sm:$0xff]  }
  0xec   :  { %3229 = vmatpush1.bf16.msra.mxu0 %v4392_v5  ;;  %2912 = vmatprep.subr.bf16.mxu1 %v4397_v6  ;;  %v4488_v5 = vld [vmem:[%s6083_s1 + $0xa80] ss:$8 sps:$4 sm:$0xff]   ;;  %v4493_v6 = vld [vmem:[%s6083_s1 + $0x494] ss:$8 sps:$4 sm:$0xff]  }
  0xed   :  { %3230 = vmatprep.subr.bf16.mxu0 %v4400_v7  ;;  %v4496_v7 = vld [vmem:[%s6083_s1 + $0xa94] ss:$8 sps:$4 sm:$0xff]  }
  0xef   :  { %2913 = vmatpush1.bf16.msra.mxu1 %v4395_v8  ;;  %v4491_v8 = vld [vmem:[%s6083_s1 + $0x490] ss:$8 sps:$4 sm:$0xff]  }
  0xf0   :  { %3231 = vmatpush1.bf16.msra.mxu0 %v4398_v9  ;;  %2914 = vmatprep.subr.bf16.mxu1 %v4403_v10  ;;  %v4494_v9 = vld [vmem:[%s6083_s1 + $0xa90] ss:$8 sps:$4 sm:$0xff]   ;;  %v4499_v10 = vld [vmem:[%s6083_s1 + $0x4a4] ss:$8 sps:$4 sm:$0xff]  }
  0xf1   :  { %3232 = vmatprep.subr.bf16.mxu0 %v4406_v11  ;;  %v4502_v11 = vld [vmem:[%s6083_s1 + $0xaa4] ss:$8 sps:$4 sm:$0xff]  }
  0xf3   :  { %2915 = vmatpush1.bf16.msra.mxu1 %v4401_v12  ;;  %v4497_v12 = vld [vmem:[%s6083_s1 + $0x4a0] ss:$8 sps:$4 sm:$0xff]  }
  0xf4   :  { %3233 = vmatpush1.bf16.msra.mxu0 %v4404_v13  ;;  %2916 = vmatprep.subr.bf16.mxu1 %v4409_v14  ;;  %v4500_v13 = vld [vmem:[%s6083_s1 + $0xaa0] ss:$8 sps:$4 sm:$0xff]   ;;  %v4505_v14 = vld [vmem:[%s6083_s1 + $0x4b4] ss:$8 sps:$4 sm:$0xff]  }
  0xf5   :  { %3234 = vmatprep.subr.bf16.mxu0 %v4412_v15  ;;  %v4508_v15 = vld [vmem:[%s6083_s1 + $0xab4] ss:$8 sps:$4 sm:$0xff]  }
  0xf7   :  { %2917 = vmatpush1.bf16.msra.mxu1 %v4407_v16  ;;  %v4503_v16 = vld [vmem:[%s6083_s1 + $0x4b0] ss:$8 sps:$4 sm:$0xff]  }
  0xf8   :  { %3235 = vmatpush1.bf16.msra.mxu0 %v4410_v17  ;;  %2918 = vmatprep.subr.bf16.mxu1 %v4417_v18  ;;  %v4506_v17 = vld [vmem:[%s6083_s1 + $0xab0] ss:$8 sps:$4 sm:$0xff]   ;;  %v4511_v18 = vld [vmem:[%s6083_s1 + $0x4c4] ss:$8 sps:$4 sm:$0xff]  }
  0xf9   :  { %3236 = vmatprep.subr.bf16.mxu0 %v4422_v19  ;;  %v4514_v19 = vld [vmem:[%s6083_s1 + $0xac4] ss:$8 sps:$4 sm:$0xff]  }
  0xfb   :  { %2919 = vmatpush1.bf16.msra.mxu1 %v4415_v20  ;;  %v4509_v20 = vld [vmem:[%s6083_s1 + $0x4c0] ss:$8 sps:$4 sm:$0xff]  }
  0xfc   :  { %3237 = vmatpush1.bf16.msra.mxu0 %v4420_v21  ;;  %2920 = vmatprep.subr.bf16.mxu1 %v4427_v22  ;;  %v4512_v21 = vld [vmem:[%s6083_s1 + $0xac0] ss:$8 sps:$4 sm:$0xff]   ;;  %v4517_v22 = vld [vmem:[%s6083_s1 + $0x4d4] ss:$8 sps:$4 sm:$0xff]  }
  0xfd   :  { %3238 = vmatprep.subr.bf16.mxu0 %v4430_v23  ;;  %v4520_v23 = vld [vmem:[%s6083_s1 + $0xad4] ss:$8 sps:$4 sm:$0xff]  }
  0xff   :  { %2921 = vmatpush1.bf16.msra.mxu1 %v4425_v24  ;;  %v4515_v24 = vld [vmem:[%s6083_s1 + $0x4d0] ss:$8 sps:$4 sm:$0xff]  }
 0x100   :  { %3239 = vmatpush1.bf16.msra.mxu0 %v4428_v25  ;;  %2943 = vmatprep.subr.bf16.mxu1 %v4436_v26  ;;  %v4518_v25 = vld [vmem:[%s6083_s1 + $0xad0] ss:$8 sps:$4 sm:$0xff]   ;;  %v4525_v26 = vld [vmem:[%s6083_s1 + $0x4e4] ss:$8 sps:$4 sm:$0xff]  }
 0x101   :  { %3261 = vmatprep.subr.bf16.mxu0 %v4442_v27  ;;  %v4530_v27 = vld [vmem:[%s6083_s1 + $0xae4] ss:$8 sps:$4 sm:$0xff]  }
 0x102   :  { %2923 = vmatmul.mubr.bf16.vlgmr.msra.gmra.mrb[0].mxu1 %v4431_v28  ;;  %v4523_v28 = vld [vmem:[%s6083_s1 + $0x4e0] ss:$8 sps:$4 sm:$0xff]  }
 0x103   :  { %3241 = vmatmul.mubr.bf16.vlgmr.msra.gmra.mrb[0].mxu0 %v4437_v30  ;;  %2944 = vmatpush1.bf16.msra.mxu1 %v4434_v29  ;;  %v4528_v29 = vld [vmem:[%s6083_s1 + $0xae0] ss:$8 sps:$4 sm:$0xff]   ;;  %v4535_v30 = vld [vmem:[%s6083_s1 + $0x4f4] ss:$8 sps:$4 sm:$0xff]  }
 0x104   :  { %3262 = vmatpush1.bf16.msra.mxu0 %v4440_v31  ;;  %2945 = vmatprep.subr.bf16.mxu1 %v4445_v32  ;;  %v4538_v31 = vld [vmem:[%s6083_s1 + $0xaf4] ss:$8 sps:$4 sm:$0xff]   ;;  %v4533_v32 = vld [vmem:[%s6083_s1 + $0x4f0] ss:$8 sps:$4 sm:$0xff]  }
 0x105   :  { %3263 = vmatprep.subr.bf16.mxu0 %v4448_v33  ;;  %2932 = vmatprep.mubr.bf16.mxu1 %v4521_v34  ;;  %v4536_v33 = vld [vmem:[%s6083_s1 + $0xaf0] ss:$8 sps:$4 sm:$0xff]   ;;  %v4544_v34 = vld [vmem:[%s6083_s1 + $0x504] ss:$8 sps:$4 sm:$0xff]  }
 0x106   :  { %3250 = vmatprep.mubr.bf16.mxu0 %v4526_v35  ;;  %v4550_v35 = vld [vmem:[%s6083_s1 + $0xb04] ss:$8 sps:$4 sm:$0xff]  }
 0x107   :  { %2946 = vmatpush1.bf16.msra.mxu1 %v4443_v36  ;;  %v4539_v36 = vld [vmem:[%s6084_s0 + $0x20] ss:$100 sps:$4 sm:$0xff]  }
 0x108   :  { %3264 = vmatpush1.bf16.msra.mxu0 %v4446_v37  ;;  %2947 = vmatprep.subr.bf16.mxu1 %v4451_v38  ;;  %v4545_v37 = vld [vmem:[%s6084_s0 + $0x50] ss:$100 sps:$4 sm:$0xff]   ;;  %v4542_v38 = vld [vmem:[%s6083_s1 + $0x500] ss:$8 sps:$4 sm:$0xff]  }
 0x109   :  { %3265 = vmatprep.subr.bf16.mxu0 %v4454_v39  ;;  %v4548_v39 = vld [vmem:[%s6083_s1 + $0xb00] ss:$8 sps:$4 sm:$0xff]  }
 0x10a   :  { %2933 = vmatmul.mubr.bf16.gmra.mrb[4].mxu1 %v4531_v42  ;;  %v4629_v42 = vld [vmem:[%s6084_s0 + $0xec] ss:$100 sps:$4 sm:$0xff]  }
 0x10b   :  { %3251 = vmatmul.mubr.bf16.gmra.mrb[4].mxu0 %v4532_v43  ;;  %2948 = vmatpush1.bf16.msra.mxu1 %v4449_v40  ;;  %v4553_v40 = vld [vmem:[%s6083_s1 + $0x514] ss:$8 sps:$4 sm:$0xff]  }
 0x10c   :  { %3266 = vmatpush1.bf16.msra.mxu0 %v4452_v41  ;;  %2949 = vmatprep.subr.bf16.mxu1 %v4457_v44  ;;  %v4556_v41 = vld [vmem:[%s6083_s1 + $0xb14] ss:$8 sps:$4 sm:$0xff]   ;;  %v4551_v44 = vld [vmem:[%s6083_s1 + $0x510] ss:$8 sps:$4 sm:$0xff]  }
 0x10d   :  { %3267 = vmatprep.subr.bf16.mxu0 %v4460_v45  ;;  %2975 = vmatprep.mubr.bf16.mxu1 %v4541_v46  ;;  %v4631_v43 = vld [vmem:[%s6084_s0 + $0x11c] ss:$100 sps:$4 sm:$0xff]   ;;  %v4554_v45 = vld [vmem:[%s6083_s1 + $0xb10] ss:$8 sps:$4 sm:$0xff]   ;;  %v4559_v46 = vld [vmem:[%s6083_s1 + $0x524] ss:$8 sps:$4 sm:$0xff]  }
 0x10e   :  { %3293 = vmatprep.mubr.bf16.mxu0 %v4547_v47  ;;  %v4562_v47 = vld [vmem:[%s6083_s1 + $0xb24] ss:$8 sps:$4 sm:$0xff]  }
 0x10f   :  { %2950 = vmatpush1.bf16.msra.mxu1 %v4455_v48  ;;  %v4633_v48 = vld [vmem:[%s6084_s0 + $0xe8] ss:$100 sps:$4 sm:$0xff]  }
 0x110   :  { %3268 = vmatpush1.bf16.msra.mxu0 %v4458_v49  ;;  %2951 = vmatprep.subr.bf16.mxu1 %v4463_v50  ;;  %v4637_v49 = vld [vmem:[%s6084_s0 + $0x118] ss:$100 sps:$4 sm:$0xff]   ;;  %v4557_v50 = vld [vmem:[%s6083_s1 + $0x520] ss:$8 sps:$4 sm:$0xff]  }
 0x111   :  { %3269 = vmatprep.subr.bf16.mxu0 %v4466_v51  ;;  %v4560_v51 = vld [vmem:[%s6083_s1 + $0xb20] ss:$8 sps:$4 sm:$0xff]  }
 0x113   :  { %2952 = vmatpush1.bf16.msra.mxu1 %v4461_v52  ;;  %v4565_v52 = vld [vmem:[%s6083_s1 + $0x534] ss:$8 sps:$4 sm:$0xff]  }
 0x114   :  { %3270 = vmatpush1.bf16.msra.mxu0 %v4464_v53  ;;  %2953 = vmatprep.subr.bf16.mxu1 %v4469_v54  ;;  %v4568_v53 = vld [vmem:[%s6083_s1 + $0xb34] ss:$8 sps:$4 sm:$0xff]   ;;  %v4649_v54 = vld [vmem:[%s6084_s0 + $0x2c] ss:$100 sps:$4 sm:$0xff]  }
 0x115   :  { %3271 = vmatprep.subr.bf16.mxu0 %v4472_v55  ;;  %v4652_v55 = vld [vmem:[%s6084_s0 + $0x5c] ss:$100 sps:$4 sm:$0xff]  }
 0x117   :  { %2954 = vmatpush1.bf16.msra.mxu1 %v4467_v56  ;;  %v4563_v56 = vld [vmem:[%s6083_s1 + $0x530] ss:$8 sps:$4 sm:$0xff]  }
 0x118   :  { %3272 = vmatpush1.bf16.msra.mxu0 %v4470_v57  ;;  %2955 = vmatprep.subr.bf16.mxu1 %v4475_v58  ;;  %v4566_v57 = vld [vmem:[%s6083_s1 + $0xb30] ss:$8 sps:$4 sm:$0xff]   ;;  %v4571_v58 = vld [vmem:[%s6083_s1 + $0x544] ss:$8 sps:$4 sm:$0xff]  }
 0x119   :  { %3273 = vmatprep.subr.bf16.mxu0 %v4478_v59  ;;  %v4574_v59 = vld [vmem:[%s6083_s1 + $0xb44] ss:$8 sps:$4 sm:$0xff]  }
 0x11b   :  { %2956 = vmatpush1.bf16.msra.mxu1 %v4473_v60  ;;  %v4569_v60 = vld [vmem:[%s6083_s1 + $0x540] ss:$8 sps:$4 sm:$0xff]  }
 0x11c   :  { %3274 = vmatpush1.bf16.msra.mxu0 %v4476_v61  ;;  %2957 = vmatprep.subr.bf16.mxu1 %v4481_v62  ;;  %v4572_v61 = vld [vmem:[%s6083_s1 + $0xb40] ss:$8 sps:$4 sm:$0xff]   ;;  %v4577_v62 = vld [vmem:[%s6083_s1 + $0x554] ss:$8 sps:$4 sm:$0xff]  }
 0x11d   :  { %3275 = vmatprep.subr.bf16.mxu0 %v4484_v63  ;;  %v4580_v63 = vld [vmem:[%s6083_s1 + $0xb54] ss:$8 sps:$4 sm:$0xff]  }
 0x11f   :  { %2958 = vmatpush1.bf16.msra.mxu1 %v4479_v0  ;;  %v4575_v0 = vld [vmem:[%s6083_s1 + $0x550] ss:$8 sps:$4 sm:$0xff]  }
 0x120   :  { %3276 = vmatpush1.bf16.msra.mxu0 %v4482_v1  ;;  %2959 = vmatprep.subr.bf16.mxu1 %v4487_v2  ;;  %v4578_v1 = vld [vmem:[%s6083_s1 + $0xb50] ss:$8 sps:$4 sm:$0xff]   ;;  %v4583_v2 = vld [vmem:[%s6083_s1 + $0x564] ss:$8 sps:$4 sm:$0xff]  }
 0x121   :  { %3277 = vmatprep.subr.bf16.mxu0 %v4490_v3  ;;  %v4586_v3 = vld [vmem:[%s6083_s1 + $0xb64] ss:$8 sps:$4 sm:$0xff]  }
 0x123   :  { %2960 = vmatpush1.bf16.msra.mxu1 %v4485_v4  ;;  %v4581_v4 = vld [vmem:[%s6083_s1 + $0x560] ss:$8 sps:$4 sm:$0xff]  }
 0x124   :  { %3278 = vmatpush1.bf16.msra.mxu0 %v4488_v5  ;;  %2961 = vmatprep.subr.bf16.mxu1 %v4493_v6  ;;  %v4584_v5 = vld [vmem:[%s6083_s1 + $0xb60] ss:$8 sps:$4 sm:$0xff]   ;;  %v4589_v6 = vld [vmem:[%s6083_s1 + $0x574] ss:$8 sps:$4 sm:$0xff]  }
 0x125   :  { %3279 = vmatprep.subr.bf16.mxu0 %v4496_v7  ;;  %v4592_v7 = vld [vmem:[%s6083_s1 + $0xb74] ss:$8 sps:$4 sm:$0xff]  }
 0x127   :  { %2962 = vmatpush1.bf16.msra.mxu1 %v4491_v8  ;;  %v4587_v8 = vld [vmem:[%s6083_s1 + $0x570] ss:$8 sps:$4 sm:$0xff]  }
 0x128   :  { %3280 = vmatpush1.bf16.msra.mxu0 %v4494_v9  ;;  %2963 = vmatprep.subr.bf16.mxu1 %v4499_v10  ;;  %v4590_v9 = vld [vmem:[%s6083_s1 + $0xb70] ss:$8 sps:$4 sm:$0xff]   ;;  %v4595_v10 = vld [vmem:[%s6083_s1 + $0x584] ss:$8 sps:$4 sm:$0xff]  }
 0x129   :  { %3281 = vmatprep.subr.bf16.mxu0 %v4502_v11  ;;  %v4598_v11 = vld [vmem:[%s6083_s1 + $0xb84] ss:$8 sps:$4 sm:$0xff]  }
 0x12b   :  { %2964 = vmatpush1.bf16.msra.mxu1 %v4497_v12  ;;  %v4593_v12 = vld [vmem:[%s6083_s1 + $0x580] ss:$8 sps:$4 sm:$0xff]  }
 0x12c   :  { %3282 = vmatpush1.bf16.msra.mxu0 %v4500_v13  ;;  %2965 = vmatprep.subr.bf16.mxu1 %v4505_v14  ;;  %v4596_v13 = vld [vmem:[%s6083_s1 + $0xb80] ss:$8 sps:$4 sm:$0xff]   ;;  %v4601_v14 = vld [vmem:[%s6083_s1 + $0x594] ss:$8 sps:$4 sm:$0xff]  }
 0x12d   :  { %3283 = vmatprep.subr.bf16.mxu0 %v4508_v15  ;;  %v4604_v15 = vld [vmem:[%s6083_s1 + $0xb94] ss:$8 sps:$4 sm:$0xff]  }
 0x12f   :  { %2966 = vmatpush1.bf16.msra.mxu1 %v4503_v16  ;;  %v4599_v16 = vld [vmem:[%s6083_s1 + $0x590] ss:$8 sps:$4 sm:$0xff]  }
 0x130   :  { %3284 = vmatpush1.bf16.msra.mxu0 %v4506_v17  ;;  %2967 = vmatprep.subr.bf16.mxu1 %v4511_v18  ;;  %v4602_v17 = vld [vmem:[%s6083_s1 + $0xb90] ss:$8 sps:$4 sm:$0xff]   ;;  %v4607_v18 = vld [vmem:[%s6083_s1 + $0x5a4] ss:$8 sps:$4 sm:$0xff]  }
 0x131   :  { %3285 = vmatprep.subr.bf16.mxu0 %v4514_v19  ;;  %v4610_v19 = vld [vmem:[%s6083_s1 + $0xba4] ss:$8 sps:$4 sm:$0xff]  }
 0x133   :  { %2968 = vmatpush1.bf16.msra.mxu1 %v4509_v20  ;;  %v4605_v20 = vld [vmem:[%s6083_s1 + $0x5a0] ss:$8 sps:$4 sm:$0xff]  }
 0x134   :  { %3286 = vmatpush1.bf16.msra.mxu0 %v4512_v21  ;;  %2969 = vmatprep.subr.bf16.mxu1 %v4517_v22  ;;  %v4608_v21 = vld [vmem:[%s6083_s1 + $0xba0] ss:$8 sps:$4 sm:$0xff]   ;;  %v4613_v22 = vld [vmem:[%s6083_s1 + $0x5b4] ss:$8 sps:$4 sm:$0xff]  }
 0x135   :  { %3287 = vmatprep.subr.bf16.mxu0 %v4520_v23  ;;  %v4616_v23 = vld [vmem:[%s6083_s1 + $0xbb4] ss:$8 sps:$4 sm:$0xff]  }
 0x137   :  { %2970 = vmatpush1.bf16.msra.mxu1 %v4515_v24  ;;  %v4611_v24 = vld [vmem:[%s6083_s1 + $0x5b0] ss:$8 sps:$4 sm:$0xff]  }
 0x138   :  { %3288 = vmatpush1.bf16.msra.mxu0 %v4518_v25  ;;  %2971 = vmatprep.subr.bf16.mxu1 %v4525_v26  ;;  %v4614_v25 = vld [vmem:[%s6083_s1 + $0xbb0] ss:$8 sps:$4 sm:$0xff]   ;;  %v4619_v26 = vld [vmem:[%s6083_s1 + $0x5c4] ss:$8 sps:$4 sm:$0xff]  }
 0x139   :  { %3289 = vmatprep.subr.bf16.mxu0 %v4530_v27  ;;  %v4622_v27 = vld [vmem:[%s6083_s1 + $0xbc4] ss:$8 sps:$4 sm:$0xff]  }
 0x13b   :  { %2972 = vmatpush1.bf16.msra.mxu1 %v4523_v28  ;;  %v4617_v28 = vld [vmem:[%s6083_s1 + $0x5c0] ss:$8 sps:$4 sm:$0xff]  }
 0x13c   :  { %3290 = vmatpush1.bf16.msra.mxu0 %v4528_v29  ;;  %2973 = vmatprep.subr.bf16.mxu1 %v4535_v30  ;;  %v4620_v29 = vld [vmem:[%s6083_s1 + $0xbc0] ss:$8 sps:$4 sm:$0xff]   ;;  %v4625_v30 = vld [vmem:[%s6083_s1 + $0x5d4] ss:$8 sps:$4 sm:$0xff]  }
 0x13d   :  { %3291 = vmatprep.subr.bf16.mxu0 %v4538_v31  ;;  %v4628_v31 = vld [vmem:[%s6083_s1 + $0xbd4] ss:$8 sps:$4 sm:$0xff]  }
 0x13f   :  { %2974 = vmatpush1.bf16.msra.mxu1 %v4533_v32  ;;  %v4623_v32 = vld [vmem:[%s6083_s1 + $0x5d0] ss:$8 sps:$4 sm:$0xff]  }
 0x140   :  { %3292 = vmatpush1.bf16.msra.mxu0 %v4536_v33  ;;  %2996 = vmatprep.subr.bf16.mxu1 %v4544_v34  ;;  %v4626_v33 = vld [vmem:[%s6083_s1 + $0xbd0] ss:$8 sps:$4 sm:$0xff]   ;;  %v4636_v34 = vld [vmem:[%s6083_s1 + $0x5e4] ss:$8 sps:$4 sm:$0xff]  }
 0x141   :  { %3314 = vmatprep.subr.bf16.mxu0 %v4550_v35  ;;  %v4640_v35 = vld [vmem:[%s6083_s1 + $0xbe4] ss:$8 sps:$4 sm:$0xff]  }
 0x142   :  { %2976 = vmatmul.mubr.bf16.vlgmr.msra.gmra.mrb[0].mxu1 %v4539_v36  ;;  %v4634_v36 = vld [vmem:[%s6083_s1 + $0x5e0] ss:$8 sps:$4 sm:$0xff]  }
 0x143   :  { %3294 = vmatmul.mubr.bf16.vlgmr.msra.gmra.mrb[0].mxu0 %v4545_v37  ;;  %2997 = vmatpush1.bf16.msra.mxu1 %v4542_v38  ;;  %v4638_v37 = vld [vmem:[%s6083_s1 + $0xbe0] ss:$8 sps:$4 sm:$0xff]   ;;  %v4643_v38 = vld [vmem:[%s6083_s1 + $0x5f4] ss:$8 sps:$4 sm:$0xff]  }
 0x144   :  { %3315 = vmatpush1.bf16.msra.mxu0 %v4548_v39  ;;  %2998 = vmatprep.subr.bf16.mxu1 %v4553_v40  ;;  %v4646_v39 = vld [vmem:[%s6083_s1 + $0xbf4] ss:$8 sps:$4 sm:$0xff]   ;;  %v4641_v40 = vld [vmem:[%s6083_s1 + $0x5f0] ss:$8 sps:$4 sm:$0xff]  }
 0x145   :  { %3316 = vmatprep.subr.bf16.mxu0 %v4556_v41  ;;  %2985 = vmatprep.mubr.bf16.mxu1 %v4629_v42  ;;  %v4644_v41 = vld [vmem:[%s6083_s1 + $0xbf0] ss:$8 sps:$4 sm:$0xff]   ;;  %v4655_v42 = vld [vmem:[%s6083_s1 + $0xc04] ss:$8 sps:$4 sm:$0xff]  }
 0x146   :  { %3303 = vmatprep.mubr.bf16.mxu0 %v4631_v43  ;;  %v4647_v43 = vld [vmem:[%s6084_s0 + $0x28] ss:$100 sps:$4 sm:$0xff]  }
 0x147   :  { %2999 = vmatpush1.bf16.msra.mxu1 %v4551_v44  ;;  %v4650_v44 = vld [vmem:[%s6084_s0 + $0x58] ss:$100 sps:$4 sm:$0xff]  }
 0x148   :  { %3317 = vmatpush1.bf16.msra.mxu0 %v4554_v45  ;;  %3000 = vmatprep.subr.bf16.mxu1 %v4559_v46  ;;  %v4653_v45 = vld [vmem:[%s6083_s1 + $0xc00] ss:$8 sps:$4 sm:$0xff]   ;;  %v4658_v46 = vld [vmem:[%s6083_s1 + $0xc14] ss:$8 sps:$4 sm:$0xff]  }
 0x149   :  { %3318 = vmatprep.subr.bf16.mxu0 %v4562_v47  ;;  %v4659_v47 = vld [vmem:[%s6084_s0 + $0xf4] ss:$100 sps:$4 sm:$0xff]  }
 0x14a   :  { %2986 = vmatmul.mubr.bf16.gmra.mrb[4].mxu1 %v4633_v48  ;;  %v4661_v48 = vld [vmem:[%s6084_s0 + $0x124] ss:$100 sps:$4 sm:$0xff]  }
 0x14b   :  { %3304 = vmatmul.mubr.bf16.gmra.mrb[4].mxu0 %v4637_v49  ;;  %3001 = vmatpush1.bf16.msra.mxu1 %v4557_v50  ;;  %v4656_v49 = vld [vmem:[%s6083_s1 + $0xc10] ss:$8 sps:$4 sm:$0xff]   ;;  %v4667_v50 = vld [vmem:[%s6083_s1 + $0xc24] ss:$8 sps:$4 sm:$0xff]  }
 0x14c   :  { %3319 = vmatpush1.bf16.msra.mxu0 %v4560_v51  ;;  %3002 = vmatprep.subr.bf16.mxu1 %v4565_v52  ;;  %v4663_v51 = vld [vmem:[%s6084_s0 + $0xf0] ss:$100 sps:$4 sm:$0xff]   ;;  %v4664_v52 = vld [vmem:[%s6084_s0 + $0x120] ss:$100 sps:$4 sm:$0xff]  }
 0x14d   :  { %3320 = vmatprep.subr.bf16.mxu0 %v4568_v53  ;;  %3028 = vmatprep.mubr.bf16.mxu1 %v4649_v54  ;;  %v4665_v53 = vld [vmem:[%s6083_s1 + $0xc20] ss:$8 sps:$4 sm:$0xff]   ;;  %v4670_v54 = vld [vmem:[%s6083_s1 + $0xc34] ss:$8 sps:$4 sm:$0xff]  }
 0x14e   :  { %3346 = vmatprep.mubr.bf16.mxu0 %v4652_v55  ;;  %v4668_v55 = vld [vmem:[%s6083_s1 + $0xc30] ss:$8 sps:$4 sm:$0xff]  }
 0x14f   :  { %3003 = vmatpush1.bf16.msra.mxu1 %v4563_v56  ;;  %v4673_v56 = vld [vmem:[%s6083_s1 + $0xc44] ss:$8 sps:$4 sm:$0xff]  }
 0x150   :  { %3321 = vmatpush1.bf16.msra.mxu0 %v4566_v57  ;;  %3004 = vmatprep.subr.bf16.mxu1 %v4571_v58  ;;  %v4685_v57 = vmov 0   ;;  %v4671_v58 = vld [vmem:[%s6083_s1 + $0xc40] ss:$8 sps:$4 sm:$0xff]  }
 0x151   :  { %3322 = vmatprep.subr.bf16.mxu0 %v4574_v59  ;;  %v4676_v59 = vld [vmem:[%s6083_s1 + $0xc54] ss:$8 sps:$4 sm:$0xff]  }
 0x153   :  { %3005 = vmatpush1.bf16.msra.mxu1 %v4569_v60  ;;  %v4674_v60 = vld [vmem:[%s6083_s1 + $0xc50] ss:$8 sps:$4 sm:$0xff]  }
 0x154   :  { %3323 = vmatpush1.bf16.msra.mxu0 %v4572_v61  ;;  %3006 = vmatprep.subr.bf16.mxu1 %v4577_v62  ;;  %v4679_v61 = vld [vmem:[%s6083_s1 + $0xc64] ss:$8 sps:$4 sm:$0xff]   ;;  %v4677_v62 = vld [vmem:[%s6083_s1 + $0xc60] ss:$8 sps:$4 sm:$0xff]  }
 0x155   :  { %3324 = vmatprep.subr.bf16.mxu0 %v4580_v63  ;;  %v4682_v63 = vld [vmem:[%s6083_s1 + $0xc74] ss:$8 sps:$4 sm:$0xff]  }
 0x157   :  { %3007 = vmatpush1.bf16.msra.mxu1 %v4575_v0  ;;  %v4680_v0 = vld [vmem:[%s6083_s1 + $0xc70] ss:$8 sps:$4 sm:$0xff]  }
 0x158   :  { %3325 = vmatpush1.bf16.msra.mxu0 %v4578_v1  ;;  %3008 = vmatprep.subr.bf16.mxu1 %v4583_v2  ;;  %v4683_v1 = vld [vmem:[%s6084_s0 + $0x60] ss:$100 sps:$4 sm:$0xff]   ;;  %v4684_v2 = vld [vmem:[%s6084_s0 + $0x128] ss:$100 sps:$4 sm:$0xff]  }
 0x159   :  { %3326 = vmatprep.subr.bf16.mxu0 %v4586_v3  ;;  %v469_v3 = vlaneseq }
 0x15b   :  { %3009 = vmatpush1.bf16.msra.mxu1 %v4581_v4  ;;  %v470_v4 = vshrl.u32 %v469_v3, 7 }
 0x15c   :  { %3327 = vmatpush1.bf16.msra.mxu0 %v4584_v5  ;;  %3010 = vmatprep.subr.bf16.mxu1 %v4589_v6 }
 0x15d   :  { %3328 = vmatprep.subr.bf16.mxu0 %v4592_v7 }
 0x15f   :  { %3011 = vmatpush1.bf16.msra.mxu1 %v4587_v8  ;;  %v471_v8 = vsub.s32 0, %v470_v4 }
 0x160   :  { %3329 = vmatpush1.bf16.msra.mxu0 %v4590_v9  ;;  %3012 = vmatprep.subr.bf16.mxu1 %v4595_v10  ;;  %v467_v10 = vld [vmem:[%s6085_s2] sm:$0x3] }
 0x161   :  { %3330 = vmatprep.subr.bf16.mxu0 %v4598_v11  ;;  %v475_v11 = vsub.s32 1, %v470_v4 }
 0x163   :  { %3013 = vmatpush1.bf16.msra.mxu1 %v4593_v12  ;;  %v472_v12 = vrot.slane %v467_v10, %v471_v8 }
 0x164   :  { %3331 = vmatpush1.bf16.msra.mxu0 %v4596_v13  ;;  %3014 = vmatprep.subr.bf16.mxu1 %v4601_v14  ;;  %v476_v13 = vrot.slane %v467_v10, %v475_v11 }
 0x165   :  { %3332 = vmatprep.subr.bf16.mxu0 %v4604_v15 }
 0x167   :  { %3015 = vmatpush1.bf16.msra.mxu1 %v4599_v16 }
 0x168   :  { %3333 = vmatpush1.bf16.msra.mxu0 %v4602_v17  ;;  %3016 = vmatprep.subr.bf16.mxu1 %v4607_v18 }
 0x169   :  { %3334 = vmatprep.subr.bf16.mxu0 %v4610_v19 }
 0x16b   :  { %3017 = vmatpush1.bf16.msra.mxu1 %v4605_v20 }
 0x16c   :  { %3335 = vmatpush1.bf16.msra.mxu0 %v4608_v21  ;;  %3018 = vmatprep.subr.bf16.mxu1 %v4613_v22 }
 0x16d   :  { %3336 = vmatprep.subr.bf16.mxu0 %v4616_v23 }
 0x16f   :  { %3019 = vmatpush1.bf16.msra.mxu1 %v4611_v24 }
 0x170   :  { %3337 = vmatpush1.bf16.msra.mxu0 %v4614_v25  ;;  %3020 = vmatprep.subr.bf16.mxu1 %v4619_v26 }
 0x171   :  { %3338 = vmatprep.subr.bf16.mxu0 %v4622_v27 }
 0x173   :  { %3021 = vmatpush1.bf16.msra.mxu1 %v4617_v28 }
 0x174   :  { %3339 = vmatpush1.bf16.msra.mxu0 %v4620_v29  ;;  %3022 = vmatprep.subr.bf16.mxu1 %v4625_v30 }
 0x175   :  { %3340 = vmatprep.subr.bf16.mxu0 %v4628_v31 }
 0x177   :  { %3023 = vmatpush1.bf16.msra.mxu1 %v4623_v32 }
 0x178   :  { %3341 = vmatpush1.bf16.msra.mxu0 %v4626_v33  ;;  %3024 = vmatprep.subr.bf16.mxu1 %v4636_v34 }
 0x179   :  { %3342 = vmatprep.subr.bf16.mxu0 %v4640_v35 }
 0x17b   :  { %3025 = vmatpush1.bf16.msra.mxu1 %v4634_v36 }
 0x17c   :  { %3343 = vmatpush1.bf16.msra.mxu0 %v4638_v37  ;;  %3026 = vmatprep.subr.bf16.mxu1 %v4643_v38 }
 0x17d   :  { %3344 = vmatprep.subr.bf16.mxu0 %v4646_v39 }
 0x17f   :  { %3027 = vmatpush1.bf16.msra.mxu1 %v4641_v40 }
 0x180   :  { %3345 = vmatpush1.bf16.msra.mxu0 %v4644_v41  ;;  %3890 = vmatprep.subr.bf16.mxu1 %v4655_v42 }
 0x181   :  { %3367 = vmatprep.subr.bf16.mxu0 %v4655_v42 }
 0x182   :  { %3029 = vmatmul.mubr.bf16.vlgmr.msra.gmra.mrb[0].mxu1 %v4647_v43 }
 0x183   :  { %3347 = vmatmul.mubr.bf16.vlgmr.msra.gmra.mrb[0].mxu0 %v4650_v44  ;;  %3898 = vmatpush1.bf16.msra.mxu1 %v4653_v45 }
 0x184   :  { %3368 = vmatpush1.bf16.msra.mxu0 %v4653_v45  ;;  %3891 = vmatprep.subr.bf16.mxu1 %v4658_v46 }
 0x185   :  { %3369 = vmatprep.subr.bf16.mxu0 %v4658_v46  ;;  %3038 = vmatprep.mubr.bf16.mxu1 %v4659_v47 }
 0x186   :  { %3356 = vmatprep.mubr.bf16.mxu0 %v4661_v48 }
 0x187   :  { %3899 = vmatpush1.bf16.msra.mxu1 %v4656_v49 }
 0x188   :  { %3370 = vmatpush1.bf16.msra.mxu0 %v4656_v49  ;;  %3892 = vmatprep.subr.bf16.mxu1 %v4667_v50 }
 0x189   :  { %3371 = vmatprep.subr.bf16.mxu0 %v4667_v50 }
 0x18a   :  { %3039 = vmatmul.mubr.bf16.gmra.mrb[4].mxu1 %v4663_v51 }
 0x18b   :  { %3357 = vmatmul.mubr.bf16.gmra.mrb[4].mxu0 %v4664_v52  ;;  %3900 = vmatpush1.bf16.msra.mxu1 %v4665_v53 }
 0x18c   :  { %3372 = vmatpush1.bf16.msra.mxu0 %v4665_v53  ;;  %3893 = vmatprep.subr.bf16.mxu1 %v4670_v54 }
 0x18d   :  { %3373 = vmatprep.subr.bf16.mxu0 %v4670_v54  ;;  %3399 = vmatprep.mubr.bf16.mxu0 %v4685_v57 }
 0x18e   :  { %3409 = vmatprep.mubr.bf16.mxu1 %v4685_v57 }
 0x18f   :  { %3901 = vmatpush1.bf16.msra.mxu1 %v4668_v55 }
 0x190   :  { %3374 = vmatpush1.bf16.msra.mxu0 %v4668_v55  ;;  %3894 = vmatprep.subr.bf16.mxu1 %v4673_v56 }
 0x191   :  { %3375 = vmatprep.subr.bf16.mxu0 %v4673_v56 }
 0x193   :  { %3902 = vmatpush1.bf16.msra.mxu1 %v4671_v58 }
 0x194   :  { %3376 = vmatpush1.bf16.msra.mxu0 %v4671_v58  ;;  %3895 = vmatprep.subr.bf16.mxu1 %v4676_v59 }
 0x195   :  { %3377 = vmatprep.subr.bf16.mxu0 %v4676_v59 }
 0x197   :  { %3903 = vmatpush1.bf16.msra.mxu1 %v4674_v60 }
 0x198   :  { %3378 = vmatpush1.bf16.msra.mxu0 %v4674_v60  ;;  %3896 = vmatprep.subr.bf16.mxu1 %v4679_v61 }
 0x199   :  { %3379 = vmatprep.subr.bf16.mxu0 %v4679_v61 }
 0x19b   :  { %3904 = vmatpush1.bf16.msra.mxu1 %v4677_v62 }
 0x19c   :  { %3380 = vmatpush1.bf16.msra.mxu0 %v4677_v62  ;;  %3897 = vmatprep.subr.bf16.mxu1 %v4682_v63 }
 0x19d   :  { %3381 = vmatprep.subr.bf16.mxu0 %v4682_v63 }
 0x19f   :  { %3905 = vmatpush1.bf16.msra.mxu1 %v4680_v0 }
 0x1a0   :  { %3382 = vmatpush1.bf16.msra.mxu0 %v4680_v0 }
 0x1a2   :  { %3410 = vmatmul.mubr.bf16.vlgmr.msra.gmra.mrb[8].mxu1 %v4684_v2 }
 0x1a3   :  { %3400 = vmatmul.mubr.bf16.vlgmr.msra.gmra.mrb[0].mxu0 %v4683_v1 }
 0x255   :  { %v3030_v5 = vpop.f32.mrb[0].mxu1 }
 0x256   :  { %v3032_v6 = vpop.f32.mrb[1].mxu1  ;;  %v3906_v30 = vadd.f32 %v3030_v5, %v472_v12 }
 0x257   :  { %v3034_v7 = vpop.f32.mrb[2].mxu1  ;;  %v3908_v31 = vadd.f32 %v3032_v6, %v476_v13 }
 0x258   :  { %v3036_v9 = vpop.f32.mrb[3].mxu1  ;;  %v3910_v34 = vadd.f32 %v3034_v7, %v472_v12 }
 0x259   :  { %v3912_v39 = vadd.f32 %v3036_v9, %v476_v13 }
 0x25d   :  { %v3040_v14 = vpop.f32.mrb[4].mxu1 }
 0x25e   :  { %v3358_v15 = vpop.f32.mrb[4].mxu0  ;;  %v3914_v16 = vadd.f32 %v3040_v14, %v472_v12  ;;  %v3042_v17 = vpop.f32.mrb[5].mxu1 }
 0x25f   :  { %v3360_v18 = vpop.f32.mrb[5].mxu0  ;;  %v3917_v19 = vadd.f32 %v3042_v17, %v476_v13  ;;  %v3044_v20 = vpop.f32.mrb[6].mxu1 }
 0x260   :  { %v3362_v21 = vpop.f32.mrb[6].mxu0  ;;  %v3915_v22 = vadd.f32 %v3914_v16, %v3358_v15  ;;  %v3920_v23 = vadd.f32 %v3044_v20, %v472_v12  ;;  %v3046_v24 = vpop.f32.mrb[7].mxu1 }
 0x261   :  { %v3364_v25 = vpop.f32.mrb[7].mxu0  ;;  %v3918_v26 = vadd.f32 %v3917_v19, %v3360_v18  ;;  %v3923_v27 = vadd.f32 %v3046_v24, %v476_v13 }
 0x262   :  { %v3921_v28 = vadd.f32 %v3920_v23, %v3362_v21 }
 0x263   :  { %v3924_v29 = vadd.f32 %v3923_v27, %v3364_v25 }
 0x275   :  { %v3411_v33 = vpop.f32.mrb[8].mxu1 }
 0x276   :  { %v3401_v32 = vpop.f32.mrb[0].mxu0  ;;  %v3916_v36 = vadd.f32 %v3915_v22, %v3411_v33  ;;  %v3413_v38 = vpop.f32.mrb[9].mxu1 }
 0x277   :  { %v3907_v35 = vadd.f32 %v3906_v30, %v3401_v32  ;;  %v3403_v37 = vpop.f32.mrb[1].mxu0  ;;  %v3919_v41 = vadd.f32 %v3918_v26, %v3413_v38  ;;  %v3415_v43 = vpop.f32.mrb[10].mxu1 }
 0x278   :  { %v3909_v40 = vadd.f32 %v3908_v31, %v3403_v37  ;;  %v3405_v42 = vpop.f32.mrb[2].mxu0  ;;  %v3424_v45 = vmax.f32 %v3916_v36, 0.0  ;;  %v3922_v47 = vadd.f32 %v3921_v28, %v3415_v43  ;;  %v3417_v49 = vpop.f32.mrb[11].mxu1 }
 0x279   :  { %v3420_v44 = vmax.f32 %v3907_v35, 0.0  ;;  %v3911_v46 = vadd.f32 %v3910_v34, %v3405_v42  ;;  %v3407_v48 = vpop.f32.mrb[3].mxu0  ;;  %v3425_v51 = vmax.f32 %v3919_v41, 0.0  ;;  %v3925_v53 = vadd.f32 %v3924_v29, %v3417_v49 }
 0x27a   :  { %v3421_v50 = vmax.f32 %v3909_v40, 0.0  ;;  %v3913_v52 = vadd.f32 %v3912_v39, %v3407_v48  ;;  %3432 = vst [vmem:[%s6086_s3 + $0x20] sm:$0xff] %v3424_v45  ;;  %v3426_v55 = vmax.f32 %v3922_v47, 0.0 }
 0x27b   :  { %3428 = vst [vmem:[%s6086_s3] sm:$0xff] %v3420_v44  ;;  %v3422_v54 = vmax.f32 %v3911_v46, 0.0  ;;  %3433 = vst [vmem:[%s6086_s3 + $0x28] sm:$0xff] %v3425_v51  ;;  %v3427_v57 = vmax.f32 %v3925_v53, 0.0 }
 0x27c   :  { %3429 = vst [vmem:[%s6086_s3 + $0x8] sm:$0xff] %v3421_v50  ;;  %v3423_v56 = vmax.f32 %v3913_v52, 0.0  ;;  %3434 = vst [vmem:[%s6086_s3 + $0x30] sm:$0xff] %v3426_v55 }
 0x27d   :  { %3430 = vst [vmem:[%s6086_s3 + $0x10] sm:$0xff] %v3422_v54  ;;  %3435 = vst [vmem:[%s6086_s3 + $0x38] sm:$0xff] %v3427_v57 }
 0x27e   :  { %3431 = vst [vmem:[%s6086_s3 + $0x18] sm:$0xff] %v3423_v56 }

// kernel: encoder_net_forward.9
= control target key start
LH: loop header
LB: loop body
LE: loop exit
PB: predicated region body
PF: predicated region fallthrough
CT: control target
= control target key end

     0   :  { %14 = vsyncpa [#allocation3], 0  ;;  %v549_v38 = vlaneseq  ;;  %v5897_v39 = vmov 1966171168   ;;  %s7777_s0 = inlined_call_operand.vmem [shape: bf16[2,4096], index: 0, kind: input, shape index: {}]   ;;  %s7778_s1 = inlined_call_operand.vmem [shape: bf16[4096,256], index: 1, kind: input, shape index: {}]   ;;  %s7779_s2 = inlined_call_operand.vmem [shape: f32[1,256], index: 2, kind: input, shape index: {}]   ;;  %s7780_s3 = inlined_call_operand.vmem [shape: bf16[256,32], index: 3, kind: input, shape index: {}]   ;;  %s7781_s4 = inlined_call_operand.vmem [shape: f32[1,32], index: 4, kind: input, shape index: {}]   ;;  %s7782_s5 = inlined_call_operand.vmem [shape: bf16[256,32], index: 5, kind: input, shape index: {}]   ;;  %s7783_s6 = inlined_call_operand.vmem [shape: f32[1,32], index: 6, kind: input, shape index: {}]   ;;  %s7784_s7 = inlined_call_operand.hbm [shape: f32[2,32], index: 7, kind: output, shape index: {0}]   ;;  %s7785_s8 = inlined_call_operand.hbm [shape: f32[2,32], index: 8, kind: output, shape index: {1}]  }
   0x1   :  { %v5043_v0 = vld [vmem:[%s7778_s1 + $0x4] ss:$8 sps:$4 sm:$0xff]   ;;  %v5047_v2 = vld [vmem:[%s7778_s1] ss:$8 sps:$4 sm:$0xff]   ;;  %v5049_v4 = vld [vmem:[%s7778_s1 + $0x14] ss:$8 sps:$4 sm:$0xff]   ;;  %v565_v40 = vunpack.c.l.s4 %v5897_v39 }
   0x2   :  { %v5045_v1 = vld [vmem:[%s7778_s1 + $0x704] ss:$8 sps:$4 sm:$0xff]   ;;  %3351 = vmatprep.subr.bf16.mxu1 %v5043_v0  ;;  %v5048_v3 = vld [vmem:[%s7778_s1 + $0x700] ss:$8 sps:$4 sm:$0xff]   ;;  %v5051_v5 = vld [vmem:[%s7778_s1 + $0x714] ss:$8 sps:$4 sm:$0xff]  }
   0x3   :  { %3638 = vmatprep.subr.bf16.mxu0 %v5045_v1  ;;  %3352 = vmatpush1.bf16.msra.mxu1 %v5047_v2  ;;  %v5053_v6 = vld [vmem:[%s7778_s1 + $0x10] ss:$8 sps:$4 sm:$0xff]   ;;  %v5055_v8 = vld [vmem:[%s7778_s1 + $0x24] ss:$8 sps:$4 sm:$0xff]   ;;  %v5059_v10 = vld [vmem:[%s7778_s1 + $0x20] ss:$8 sps:$4 sm:$0xff]   ;;  %v566_v46 = vunpack.c.0.s8 %v565_v40 }
   0x4   :  { %3639 = vmatpush1.bf16.msra.mxu0 %v5048_v3  ;;  %3353 = vmatprep.subr.bf16.mxu1 %v5049_v4  ;;  %v5054_v7 = vld [vmem:[%s7778_s1 + $0x710] ss:$8 sps:$4 sm:$0xff]   ;;  %v5057_v9 = vld [vmem:[%s7778_s1 + $0x724] ss:$8 sps:$4 sm:$0xff]   ;;  %v5060_v11 = vld [vmem:[%s7778_s1 + $0x720] ss:$8 sps:$4 sm:$0xff]  }
   0x5   :  { %3640 = vmatprep.subr.bf16.mxu0 %v5051_v5  ;;  %v5061_v12 = vld [vmem:[%s7778_s1 + $0x34] ss:$8 sps:$4 sm:$0xff]   ;;  %v5065_v14 = vld [vmem:[%s7778_s1 + $0x30] ss:$8 sps:$4 sm:$0xff]   ;;  %v5067_v16 = vld [vmem:[%s7778_s1 + $0x44] ss:$8 sps:$4 sm:$0xff]  }
   0x6   :  { %v5063_v13 = vld [vmem:[%s7778_s1 + $0x734] ss:$8 sps:$4 sm:$0xff]   ;;  %v5066_v15 = vld [vmem:[%s7778_s1 + $0x730] ss:$8 sps:$4 sm:$0xff]   ;;  %v5069_v17 = vld [vmem:[%s7778_s1 + $0x744] ss:$8 sps:$4 sm:$0xff]  }
   0x7   :  { %3354 = vmatpush1.bf16.msra.mxu1 %v5053_v6  ;;  %v5071_v18 = vld [vmem:[%s7778_s1 + $0x40] ss:$8 sps:$4 sm:$0xff]   ;;  %v5073_v20 = vld [vmem:[%s7778_s1 + $0x54] ss:$8 sps:$4 sm:$0xff]   ;;  %v5077_v22 = vld [vmem:[%s7778_s1 + $0x50] ss:$8 sps:$4 sm:$0xff]  }
   0x8   :  { %3641 = vmatpush1.bf16.msra.mxu0 %v5054_v7  ;;  %3355 = vmatprep.subr.bf16.mxu1 %v5055_v8  ;;  %v5072_v19 = vld [vmem:[%s7778_s1 + $0x740] ss:$8 sps:$4 sm:$0xff]   ;;  %v5075_v21 = vld [vmem:[%s7778_s1 + $0x754] ss:$8 sps:$4 sm:$0xff]   ;;  %v5078_v23 = vld [vmem:[%s7778_s1 + $0x750] ss:$8 sps:$4 sm:$0xff]  }
   0x9   :  { %3642 = vmatprep.subr.bf16.mxu0 %v5057_v9  ;;  %v5079_v24 = vld [vmem:[%s7778_s1 + $0x64] ss:$8 sps:$4 sm:$0xff]   ;;  %v5083_v26 = vld [vmem:[%s7778_s1 + $0x60] ss:$8 sps:$4 sm:$0xff]   ;;  %v5085_v28 = vld [vmem:[%s7778_s1 + $0x74] ss:$8 sps:$4 sm:$0xff]  }
   0xa   :  { %v5081_v25 = vld [vmem:[%s7778_s1 + $0x764] ss:$8 sps:$4 sm:$0xff]   ;;  %v5084_v27 = vld [vmem:[%s7778_s1 + $0x760] ss:$8 sps:$4 sm:$0xff]   ;;  %v5087_v29 = vld [vmem:[%s7778_s1 + $0x774] ss:$8 sps:$4 sm:$0xff]  }
   0xb   :  { %3356 = vmatpush1.bf16.msra.mxu1 %v5059_v10  ;;  %v5089_v30 = vld [vmem:[%s7778_s1 + $0x70] ss:$8 sps:$4 sm:$0xff]   ;;  %v5091_v32 = vld [vmem:[%s7778_s1 + $0x84] ss:$8 sps:$4 sm:$0xff]   ;;  %v5095_v34 = vld [vmem:[%s7778_s1 + $0x80] ss:$8 sps:$4 sm:$0xff]  }
   0xc   :  { %3643 = vmatpush1.bf16.msra.mxu0 %v5060_v11  ;;  %3357 = vmatprep.subr.bf16.mxu1 %v5061_v12  ;;  %v5090_v31 = vld [vmem:[%s7778_s1 + $0x770] ss:$8 sps:$4 sm:$0xff]   ;;  %v5093_v33 = vld [vmem:[%s7778_s1 + $0x784] ss:$8 sps:$4 sm:$0xff]   ;;  %v5096_v35 = vld [vmem:[%s7778_s1 + $0x780] ss:$8 sps:$4 sm:$0xff]  }
   0xd   :  { %3644 = vmatprep.subr.bf16.mxu0 %v5063_v13  ;;  %v5097_v36 = vld [vmem:[%s7778_s1 + $0x94] ss:$8 sps:$4 sm:$0xff]   ;;  %v5101_v41 = vld [vmem:[%s7778_s1 + $0x90] ss:$8 sps:$4 sm:$0xff]   ;;  %v5103_v43 = vld [vmem:[%s7778_s1 + $0xa4] ss:$8 sps:$4 sm:$0xff]  }
   0xe   :  { %v5099_v37 = vld [vmem:[%s7778_s1 + $0x794] ss:$8 sps:$4 sm:$0xff]   ;;  %v5102_v42 = vld [vmem:[%s7778_s1 + $0x790] ss:$8 sps:$4 sm:$0xff]   ;;  %v5105_v44 = vld [vmem:[%s7778_s1 + $0x7a4] ss:$8 sps:$4 sm:$0xff]  }
   0xf   :  { %3358 = vmatpush1.bf16.msra.mxu1 %v5065_v14  ;;  %v6071_v45 = vshrl.u32 %v549_v38, 7  ;;  %v5107_v47 = vld [vmem:[%s7778_s1 + $0xa0] ss:$8 sps:$4 sm:$0xff]   ;;  %v5109_v49 = vld [vmem:[%s7778_s1 + $0xb4] ss:$8 sps:$4 sm:$0xff]  }
  0x10   :  { %3645 = vmatpush1.bf16.msra.mxu0 %v5066_v15  ;;  %3359 = vmatprep.subr.bf16.mxu1 %v5067_v16  ;;  %v5108_v48 = vld [vmem:[%s7778_s1 + $0x7a0] ss:$8 sps:$4 sm:$0xff]   ;;  %v5111_v50 = vld [vmem:[%s7778_s1 + $0x7b4] ss:$8 sps:$4 sm:$0xff]   ;;  %v5113_v53 = vld [vmem:[%s7778_s1 + $0xb0] ss:$8 sps:$4 sm:$0xff]  }
  0x11   :  { %3646 = vmatprep.subr.bf16.mxu0 %v5069_v17  ;;  %v6086_v51 = vsub.s32 %v566_v46, %v6071_v45  ;;  %v6091_v52 = vld [vmem:[%s7777_s0] sm:$0xff]  ;;  %v5114_v55 = vld [vmem:[%s7778_s1 + $0x7b0] ss:$8 sps:$4 sm:$0xff]   ;;  %v32_v56 = vld [vmem:[%s7777_s0 + $0x8] sm:$0xff] }
  0x12   :  { %v5115_v57 = vld [vmem:[%s7778_s1 + $0xc4] ss:$8 sps:$4 sm:$0xff]   ;;  %v612_v60 = vcombine.high %v32_v56, %v32_v56  ;;  %v5119_v63 = vld [vmem:[%s7778_s1 + $0xc0] ss:$8 sps:$4 sm:$0xff]   ;;  %v5121_v1 = vld [vmem:[%s7778_s1 + $0xd4] ss:$8 sps:$4 sm:$0xff]  }
  0x13   :  { %3360 = vmatpush1.bf16.msra.mxu1 %v5071_v18  ;;  %v570_v54 = vrot.slane %v6091_v52, %v6086_v51  ;;  %v5117_v58 = vld [vmem:[%s7778_s1 + $0x7c4] ss:$8 sps:$4 sm:$0xff]   ;;  %v5120_v0 = vld [vmem:[%s7778_s1 + $0x7c0] ss:$8 sps:$4 sm:$0xff]   ;;  %v5123_v2 = vld [vmem:[%s7778_s1 + $0x7d4] ss:$8 sps:$4 sm:$0xff]  }
  0x14   :  { %3647 = vmatpush1.bf16.msra.mxu0 %v5072_v19  ;;  %3361 = vmatprep.subr.bf16.mxu1 %v5073_v20  ;;  %v626_v62 = vrot.slane %v612_v60, %v6086_v51  ;;  %v5125_v5 = vld [vmem:[%s7778_s1 + $0xd0] ss:$8 sps:$4 sm:$0xff]   ;;  %v5127_v7 = vld [vmem:[%s7778_s1 + $0xe4] ss:$8 sps:$4 sm:$0xff]   ;;  %v5131_v10 = vld [vmem:[%s7778_s1 + $0xe0] ss:$8 sps:$4 sm:$0xff]  }
  0x15   :  { %3648 = vmatprep.subr.bf16.mxu0 %v5075_v21  ;;  %v578_v59 = vcombine.high %v570_v54, %v570_v54  ;;  %v5126_v6 = vld [vmem:[%s7778_s1 + $0x7d0] ss:$8 sps:$4 sm:$0xff]   ;;  %v5129_v8 = vld [vmem:[%s7778_s1 + $0x7e4] ss:$8 sps:$4 sm:$0xff]   ;;  %v5132_v11 = vld [vmem:[%s7778_s1 + $0x7e0] ss:$8 sps:$4 sm:$0xff]   ;;  %v6169_v19 = vrot.slane %v570_v54, %v6086_v51 }
  0x16   :  { %v628_v3 = vcombine.high %v626_v62, %v626_v62  ;;  %v5133_v12 = vld [vmem:[%s7778_s1 + $0xf4] ss:$8 sps:$4 sm:$0xff]   ;;  %v6154_v14 = vrot.slane %v626_v62, %v6086_v51  ;;  %v5137_v15 = vld [vmem:[%s7778_s1 + $0xf0] ss:$8 sps:$4 sm:$0xff]   ;;  %v5142_v17 = vld [vmem:[%s7778_s1 + $0x104] ss:$8 sps:$4 sm:$0xff]  }
  0x17   :  { %3362 = vmatpush1.bf16.msra.mxu1 %v5077_v22  ;;  %v600_v61 = vrot.slane %v578_v59, %v6086_v51  ;;  %v5135_v13 = vld [vmem:[%s7778_s1 + $0x7f4] ss:$8 sps:$4 sm:$0xff]   ;;  %v5138_v16 = vld [vmem:[%s7778_s1 + $0x7f0] ss:$8 sps:$4 sm:$0xff]   ;;  %v5146_v18 = vld [vmem:[%s7778_s1 + $0x804] ss:$8 sps:$4 sm:$0xff]  }
  0x18   :  { %3649 = vmatpush1.bf16.msra.mxu0 %v5078_v23  ;;  %3363 = vmatprep.subr.bf16.mxu1 %v5079_v24  ;;  %v6125_v4 = vrot.slane %v628_v3, %v6086_v51  ;;  %v658_v20 = vcombine.high %v6154_v14, %v6154_v14  ;;  %v5140_v21 = vld [vmem:[%s7778_s1 + $0x100] ss:$8 sps:$4 sm:$0xff]   ;;  %v5149_v23 = vld [vmem:[%s7778_s1 + $0x114] ss:$8 sps:$4 sm:$0xff]   ;;  %v5182_v46 = vld [vmem:[%s7778_s1 + $0x864] ss:$8 sps:$4 sm:$0xff]  }
  0x19   :  { %3650 = vmatprep.subr.bf16.mxu0 %v5081_v25  ;;  %3383 = vmatprep.mubr.bf16.mxu1 %v600_v61  ;;  %v5144_v22 = vld [vmem:[%s7778_s1 + $0x800] ss:$8 sps:$4 sm:$0xff]   ;;  %v5152_v24 = vld [vmem:[%s7778_s1 + $0x814] ss:$8 sps:$4 sm:$0xff]   ;;  %v610_v25 = vcombine.high %v600_v61, %v600_v61  ;;  %v5183_v56 = vld [vmem:[%s7778_s1 + $0x170] ss:$8 sps:$4 sm:$0xff]  }
  0x1a   :  { %v660_v9 = vcombine.high %v6125_v4, %v6125_v4  ;;  %v5165_v38 = vld [vmem:[%s7778_s1 + $0x140] ss:$8 sps:$4 sm:$0xff]   ;;  %v5173_v40 = vld [vmem:[%s7778_s1 + $0x154] ss:$8 sps:$4 sm:$0xff]   ;;  %v5194_v60 = vld [vmem:[%s7778_s1 + $0x884] ss:$8 sps:$4 sm:$0xff]  }
  0x1b   :  { %3364 = vmatpush1.bf16.msra.mxu1 %v5083_v26  ;;  %v5147_v26 = vld [vmem:[%s7778_s1 + $0x110] ss:$8 sps:$4 sm:$0xff]   ;;  %v5168_v39 = vld [vmem:[%s7778_s1 + $0x840] ss:$8 sps:$4 sm:$0xff]   ;;  %v5188_v54 = vld [vmem:[%s7778_s1 + $0x874] ss:$8 sps:$4 sm:$0xff]  }
  0x1c   :  { %3651 = vmatpush1.bf16.msra.mxu0 %v5084_v27  ;;  %3365 = vmatprep.subr.bf16.mxu1 %v5085_v28  ;;  %v5150_v27 = vld [vmem:[%s7778_s1 + $0x810] ss:$8 sps:$4 sm:$0xff]   ;;  %v5155_v28 = vld [vmem:[%s7778_s1 + $0x124] ss:$8 sps:$4 sm:$0xff]   ;;  %v5189_v61 = vld [vmem:[%s7778_s1 + $0x180] ss:$8 sps:$4 sm:$0xff]  }
  0x1d   :  { %3652 = vmatprep.subr.bf16.mxu0 %v5087_v29  ;;  %3670 = vmatprep.mubr.bf16.mxu0 %v660_v9  ;;  %v5158_v29 = vld [vmem:[%s7778_s1 + $0x824] ss:$8 sps:$4 sm:$0xff]   ;;  %v5192_v62 = vld [vmem:[%s7778_s1 + $0x880] ss:$8 sps:$4 sm:$0xff]   ;;  %v5212_v9 = vld [vmem:[%s7778_s1 + $0x8b4] ss:$8 sps:$4 sm:$0xff]  }
  0x1e   :  { %v5203_v3 = vld [vmem:[%s7778_s1 + $0x1a4] ss:$8 sps:$4 sm:$0xff]  }
  0x1f   :  { %3366 = vmatpush1.bf16.msra.mxu1 %v5089_v30  ;;  %v5153_v30 = vld [vmem:[%s7778_s1 + $0x120] ss:$8 sps:$4 sm:$0xff]  }
  0x20   :  { %3653 = vmatpush1.bf16.msra.mxu0 %v5090_v31  ;;  %3367 = vmatprep.subr.bf16.mxu1 %v5091_v32  ;;  %v5156_v31 = vld [vmem:[%s7778_s1 + $0x820] ss:$8 sps:$4 sm:$0xff]   ;;  %v5161_v32 = vld [vmem:[%s7778_s1 + $0x134] ss:$8 sps:$4 sm:$0xff]  }
  0x21   :  { %3654 = vmatprep.subr.bf16.mxu0 %v5093_v33  ;;  %v5164_v33 = vld [vmem:[%s7778_s1 + $0x834] ss:$8 sps:$4 sm:$0xff]  }
  0x23   :  { %3368 = vmatpush1.bf16.msra.mxu1 %v5095_v34  ;;  %v5159_v34 = vld [vmem:[%s7778_s1 + $0x130] ss:$8 sps:$4 sm:$0xff]  }
  0x24   :  { %3655 = vmatpush1.bf16.msra.mxu0 %v5096_v35  ;;  %3369 = vmatprep.subr.bf16.mxu1 %v5097_v36  ;;  %v5162_v35 = vld [vmem:[%s7778_s1 + $0x830] ss:$8 sps:$4 sm:$0xff]   ;;  %v5167_v36 = vld [vmem:[%s7778_s1 + $0x144] ss:$8 sps:$4 sm:$0xff]  }
  0x25   :  { %3656 = vmatprep.subr.bf16.mxu0 %v5099_v37  ;;  %v5170_v37 = vld [vmem:[%s7778_s1 + $0x844] ss:$8 sps:$4 sm:$0xff]  }
  0x27   :  { %3370 = vmatpush1.bf16.msra.mxu1 %v5101_v41  ;;  %v5176_v41 = vld [vmem:[%s7778_s1 + $0x854] ss:$8 sps:$4 sm:$0xff]  }
  0x28   :  { %3657 = vmatpush1.bf16.msra.mxu0 %v5102_v42  ;;  %3371 = vmatprep.subr.bf16.mxu1 %v5103_v43  ;;  %v5171_v42 = vld [vmem:[%s7778_s1 + $0x150] ss:$8 sps:$4 sm:$0xff]  }
  0x29   :  { %3658 = vmatprep.subr.bf16.mxu0 %v5105_v44  ;;  %v5174_v43 = vld [vmem:[%s7778_s1 + $0x850] ss:$8 sps:$4 sm:$0xff]   ;;  %v5179_v44 = vld [vmem:[%s7778_s1 + $0x164] ss:$8 sps:$4 sm:$0xff]  }
  0x2b   :  { %3372 = vmatpush1.bf16.msra.mxu1 %v5107_v47  ;;  %v5177_v47 = vld [vmem:[%s7778_s1 + $0x160] ss:$8 sps:$4 sm:$0xff]  }
  0x2c   :  { %3659 = vmatpush1.bf16.msra.mxu0 %v5108_v48  ;;  %3373 = vmatprep.subr.bf16.mxu1 %v5109_v49  ;;  %v6252_v48 = vld [vmem:[%s7777_s0 + $0x10] sm:$0xff]  ;;  %v5180_v49 = vld [vmem:[%s7778_s1 + $0x860] ss:$8 sps:$4 sm:$0xff]  }
  0x2d   :  { %3660 = vmatprep.subr.bf16.mxu0 %v5111_v50  ;;  %v5185_v50 = vld [vmem:[%s7778_s1 + $0x174] ss:$8 sps:$4 sm:$0xff]  }
  0x2f   :  { %3374 = vmatpush1.bf16.msra.mxu1 %v5113_v53  ;;  %v6262_v53 = vrot.slane %v6252_v48, %v6086_v51 }
  0x30   :  { %3661 = vmatpush1.bf16.msra.mxu0 %v5114_v55  ;;  %3375 = vmatprep.subr.bf16.mxu1 %v5115_v57  ;;  %v5186_v57 = vld [vmem:[%s7778_s1 + $0x870] ss:$8 sps:$4 sm:$0xff]  }
  0x31   :  { %3662 = vmatprep.subr.bf16.mxu0 %v5117_v58  ;;  %v676_v55 = vcombine.high %v6262_v53, %v6262_v53  ;;  %v5191_v58 = vld [vmem:[%s7778_s1 + $0x184] ss:$8 sps:$4 sm:$0xff]  }
  0x33   :  { %3376 = vmatpush1.bf16.msra.mxu1 %v5119_v63  ;;  %v6279_v59 = vrot.slane %v676_v55, %v6086_v51  ;;  %v5197_v63 = vld [vmem:[%s7778_s1 + $0x194] ss:$8 sps:$4 sm:$0xff]   ;;  %v5263_v55 = vld [vmem:[%s7778_s1 + $0x244] ss:$8 sps:$4 sm:$0xff]  }
  0x34   :  { %3663 = vmatpush1.bf16.msra.mxu0 %v5120_v0  ;;  %3377 = vmatprep.subr.bf16.mxu1 %v5121_v1  ;;  %v5200_v0 = vld [vmem:[%s7778_s1 + $0x894] ss:$8 sps:$4 sm:$0xff]   ;;  %v5195_v1 = vld [vmem:[%s7778_s1 + $0x190] ss:$8 sps:$4 sm:$0xff]  }
  0x35   :  { %3664 = vmatprep.subr.bf16.mxu0 %v5123_v2  ;;  %v5198_v2 = vld [vmem:[%s7778_s1 + $0x890] ss:$8 sps:$4 sm:$0xff]  }
  0x37   :  { %3378 = vmatpush1.bf16.msra.mxu1 %v5125_v5  ;;  %v5206_v5 = vld [vmem:[%s7778_s1 + $0x8a4] ss:$8 sps:$4 sm:$0xff]  }
  0x38   :  { %3665 = vmatpush1.bf16.msra.mxu0 %v5126_v6  ;;  %3379 = vmatprep.subr.bf16.mxu1 %v5127_v7  ;;  %v5201_v6 = vld [vmem:[%s7778_s1 + $0x1a0] ss:$8 sps:$4 sm:$0xff]  }
  0x39   :  { %3666 = vmatprep.subr.bf16.mxu0 %v5129_v8  ;;  %v5204_v7 = vld [vmem:[%s7778_s1 + $0x8a0] ss:$8 sps:$4 sm:$0xff]   ;;  %v5209_v8 = vld [vmem:[%s7778_s1 + $0x1b4] ss:$8 sps:$4 sm:$0xff]  }
  0x3b   :  { %3380 = vmatpush1.bf16.msra.mxu1 %v5131_v10  ;;  %v5207_v10 = vld [vmem:[%s7778_s1 + $0x1b0] ss:$8 sps:$4 sm:$0xff]  }
  0x3c   :  { %3667 = vmatpush1.bf16.msra.mxu0 %v5132_v11  ;;  %3381 = vmatprep.subr.bf16.mxu1 %v5133_v12  ;;  %v5210_v11 = vld [vmem:[%s7778_s1 + $0x8b0] ss:$8 sps:$4 sm:$0xff]   ;;  %v5215_v12 = vld [vmem:[%s7778_s1 + $0x1c4] ss:$8 sps:$4 sm:$0xff]  }
  0x3d   :  { %3668 = vmatprep.subr.bf16.mxu0 %v5135_v13  ;;  %v5218_v13 = vld [vmem:[%s7778_s1 + $0x8c4] ss:$8 sps:$4 sm:$0xff]  }
  0x3f   :  { %3382 = vmatpush1.bf16.msra.mxu1 %v5137_v15  ;;  %v5213_v15 = vld [vmem:[%s7778_s1 + $0x1c0] ss:$8 sps:$4 sm:$0xff]  }
  0x40   :  { %3669 = vmatpush1.bf16.msra.mxu0 %v5138_v16  ;;  %3392 = vmatprep.subr.bf16.mxu1 %v5142_v17  ;;  %v5216_v16 = vld [vmem:[%s7778_s1 + $0x8c0] ss:$8 sps:$4 sm:$0xff]   ;;  %v5221_v17 = vld [vmem:[%s7778_s1 + $0x1d4] ss:$8 sps:$4 sm:$0xff]  }
  0x41   :  { %3679 = vmatprep.subr.bf16.mxu0 %v5146_v18  ;;  %v5224_v18 = vld [vmem:[%s7778_s1 + $0x8d4] ss:$8 sps:$4 sm:$0xff]  }
  0x42   :  { %3384 = vmatmul.mubr.bf16.vlgmr.msra.gmra.mrb[0].mxu1 %v6169_v19 }
  0x43   :  { %3671 = vmatmul.mubr.bf16.vlgmr.msra.gmra.mrb[0].mxu0 %v658_v20  ;;  %3393 = vmatpush1.bf16.msra.mxu1 %v5140_v21  ;;  %v5219_v20 = vld [vmem:[%s7778_s1 + $0x1d0] ss:$8 sps:$4 sm:$0xff]  }
  0x44   :  { %3680 = vmatpush1.bf16.msra.mxu0 %v5144_v22  ;;  %3394 = vmatprep.subr.bf16.mxu1 %v5149_v23  ;;  %v5222_v21 = vld [vmem:[%s7778_s1 + $0x8d0] ss:$8 sps:$4 sm:$0xff]   ;;  %v5227_v22 = vld [vmem:[%s7778_s1 + $0x1e4] ss:$8 sps:$4 sm:$0xff]  }
  0x45   :  { %3681 = vmatprep.subr.bf16.mxu0 %v5152_v24  ;;  %3424 = vmatprep.mubr.bf16.mxu1 %v610_v25  ;;  %v5230_v23 = vld [vmem:[%s7778_s1 + $0x8e4] ss:$8 sps:$4 sm:$0xff]   ;;  %v563_v24 = vcombine.high %v6091_v52, %v6091_v52  ;;  %v5225_v25 = vld [vmem:[%s7778_s1 + $0x1e0] ss:$8 sps:$4 sm:$0xff]   ;;  %v5236_v52 = vld [vmem:[%s7778_s1 + $0x8f4] ss:$8 sps:$4 sm:$0xff]  }
  0x46   :  { %3711 = vmatprep.mubr.bf16.mxu0 %v6279_v59 }
  0x47   :  { %3395 = vmatpush1.bf16.msra.mxu1 %v5147_v26  ;;  %v5228_v26 = vld [vmem:[%s7778_s1 + $0x8e0] ss:$8 sps:$4 sm:$0xff]  }
  0x48   :  { %3682 = vmatpush1.bf16.msra.mxu0 %v5150_v27  ;;  %3396 = vmatprep.subr.bf16.mxu1 %v5155_v28  ;;  %v5233_v27 = vld [vmem:[%s7778_s1 + $0x1f4] ss:$8 sps:$4 sm:$0xff]   ;;  %v6372_v28 = vrot.slane %v563_v24, %v6086_v51  ;;  %v5303_v24 = vld [vmem:[%s7778_s1 + $0x2b0] ss:$8 sps:$4 sm:$0xff]  }
  0x49   :  { %3683 = vmatprep.subr.bf16.mxu0 %v5158_v29  ;;  %v5231_v29 = vld [vmem:[%s7778_s1 + $0x1f0] ss:$8 sps:$4 sm:$0xff]  }
  0x4b   :  { %3397 = vmatpush1.bf16.msra.mxu1 %v5153_v30  ;;  %v5234_v30 = vld [vmem:[%s7778_s1 + $0x8f0] ss:$8 sps:$4 sm:$0xff]  }
  0x4c   :  { %3684 = vmatpush1.bf16.msra.mxu0 %v5156_v31  ;;  %3398 = vmatprep.subr.bf16.mxu1 %v5161_v32  ;;  %v5239_v31 = vld [vmem:[%s7778_s1 + $0x204] ss:$8 sps:$4 sm:$0xff]  }
  0x4d   :  { %3685 = vmatprep.subr.bf16.mxu0 %v5164_v33  ;;  %v5242_v32 = vld [vmem:[%s7778_s1 + $0x904] ss:$8 sps:$4 sm:$0xff]   ;;  %v579_v33 = vcombine.high %v6372_v28, %v6372_v28 }
  0x4f   :  { %3399 = vmatpush1.bf16.msra.mxu1 %v5159_v34  ;;  %v608_v34 = vcombine.high %v6169_v19, %v6169_v19  ;;  %v5248_v19 = vld [vmem:[%s7778_s1 + $0x914] ss:$8 sps:$4 sm:$0xff]  }
  0x50   :  { %3686 = vmatpush1.bf16.msra.mxu0 %v5162_v35  ;;  %3400 = vmatprep.subr.bf16.mxu1 %v5167_v36  ;;  %v5237_v35 = vld [vmem:[%s7778_s1 + $0x200] ss:$8 sps:$4 sm:$0xff]   ;;  %v6395_v36 = vrot.slane %v6262_v53, %v6086_v51  ;;  %v5255_v53 = vld [vmem:[%s7778_s1 + $0x230] ss:$8 sps:$4 sm:$0xff]  }
  0x51   :  { %3687 = vmatprep.subr.bf16.mxu0 %v5170_v37  ;;  %v5240_v37 = vld [vmem:[%s7778_s1 + $0x900] ss:$8 sps:$4 sm:$0xff]  }
  0x53   :  { %3401 = vmatpush1.bf16.msra.mxu1 %v5165_v38  ;;  %v5245_v38 = vld [vmem:[%s7778_s1 + $0x214] ss:$8 sps:$4 sm:$0xff]  }
  0x54   :  { %3688 = vmatpush1.bf16.msra.mxu0 %v5168_v39  ;;  %3402 = vmatprep.subr.bf16.mxu1 %v5173_v40  ;;  %v6407_v39 = vrot.slane %v579_v33, %v6086_v51  ;;  %v708_v40 = vcombine.high %v6279_v59, %v6279_v59  ;;  %v5269_v59 = vld [vmem:[%s7778_s1 + $0x254] ss:$8 sps:$4 sm:$0xff]   ;;  %v5318_v33 = vld [vmem:[%s7778_s1 + $0x9d0] ss:$8 sps:$4 sm:$0xff]  }
  0x55   :  { %3689 = vmatprep.subr.bf16.mxu0 %v5176_v41  ;;  %v5243_v41 = vld [vmem:[%s7778_s1 + $0x210] ss:$8 sps:$4 sm:$0xff]  }
  0x57   :  { %3403 = vmatpush1.bf16.msra.mxu1 %v5171_v42  ;;  %v5246_v42 = vld [vmem:[%s7778_s1 + $0x910] ss:$8 sps:$4 sm:$0xff]  }
  0x58   :  { %3690 = vmatpush1.bf16.msra.mxu0 %v5174_v43  ;;  %3404 = vmatprep.subr.bf16.mxu1 %v5179_v44  ;;  %v5251_v43 = vld [vmem:[%s7778_s1 + $0x224] ss:$8 sps:$4 sm:$0xff]  }
  0x59   :  { %3691 = vmatprep.subr.bf16.mxu0 %v5182_v46  ;;  %v5254_v44 = vld [vmem:[%s7778_s1 + $0x924] ss:$8 sps:$4 sm:$0xff]   ;;  %v5249_v46 = vld [vmem:[%s7778_s1 + $0x220] ss:$8 sps:$4 sm:$0xff]  }
  0x5b   :  { %3405 = vmatpush1.bf16.msra.mxu1 %v5177_v47  ;;  %v5252_v47 = vld [vmem:[%s7778_s1 + $0x920] ss:$8 sps:$4 sm:$0xff]  }
  0x5c   :  { %3692 = vmatpush1.bf16.msra.mxu0 %v5180_v49  ;;  %3406 = vmatprep.subr.bf16.mxu1 %v5185_v50  ;;  %v5257_v49 = vld [vmem:[%s7778_s1 + $0x234] ss:$8 sps:$4 sm:$0xff]  }
  0x5d   :  { %3693 = vmatprep.subr.bf16.mxu0 %v5188_v54  ;;  %v5260_v50 = vld [vmem:[%s7778_s1 + $0x934] ss:$8 sps:$4 sm:$0xff]   ;;  %v5258_v54 = vld [vmem:[%s7778_s1 + $0x930] ss:$8 sps:$4 sm:$0xff]  }
  0x5f   :  { %3407 = vmatpush1.bf16.msra.mxu1 %v5183_v56  ;;  %v5266_v56 = vld [vmem:[%s7778_s1 + $0x944] ss:$8 sps:$4 sm:$0xff]  }
  0x60   :  { %3694 = vmatpush1.bf16.msra.mxu0 %v5186_v57  ;;  %3408 = vmatprep.subr.bf16.mxu1 %v5191_v58  ;;  %v5261_v57 = vld [vmem:[%s7778_s1 + $0x240] ss:$8 sps:$4 sm:$0xff]  }
  0x61   :  { %3695 = vmatprep.subr.bf16.mxu0 %v5194_v60  ;;  %v5264_v58 = vld [vmem:[%s7778_s1 + $0x940] ss:$8 sps:$4 sm:$0xff]   ;;  %v5272_v60 = vld [vmem:[%s7778_s1 + $0x954] ss:$8 sps:$4 sm:$0xff]  }
  0x63   :  { %3409 = vmatpush1.bf16.msra.mxu1 %v5189_v61  ;;  %v5267_v61 = vld [vmem:[%s7778_s1 + $0x250] ss:$8 sps:$4 sm:$0xff]  }
  0x64   :  { %3696 = vmatpush1.bf16.msra.mxu0 %v5192_v62  ;;  %3410 = vmatprep.subr.bf16.mxu1 %v5197_v63  ;;  %v5270_v62 = vld [vmem:[%s7778_s1 + $0x950] ss:$8 sps:$4 sm:$0xff]   ;;  %v5275_v63 = vld [vmem:[%s7778_s1 + $0x264] ss:$8 sps:$4 sm:$0xff]  }
  0x65   :  { %3697 = vmatprep.subr.bf16.mxu0 %v5200_v0  ;;  %v5278_v0 = vld [vmem:[%s7778_s1 + $0x964] ss:$8 sps:$4 sm:$0xff]  }
  0x67   :  { %3411 = vmatpush1.bf16.msra.mxu1 %v5195_v1  ;;  %v5273_v1 = vld [vmem:[%s7778_s1 + $0x260] ss:$8 sps:$4 sm:$0xff]  }
  0x68   :  { %3698 = vmatpush1.bf16.msra.mxu0 %v5198_v2  ;;  %3412 = vmatprep.subr.bf16.mxu1 %v5203_v3  ;;  %v5276_v2 = vld [vmem:[%s7778_s1 + $0x960] ss:$8 sps:$4 sm:$0xff]   ;;  %v5281_v3 = vld [vmem:[%s7778_s1 + $0x274] ss:$8 sps:$4 sm:$0xff]  }
  0x69   :  { %3699 = vmatprep.subr.bf16.mxu0 %v5206_v5  ;;  %v5284_v5 = vld [vmem:[%s7778_s1 + $0x974] ss:$8 sps:$4 sm:$0xff]  }
  0x6b   :  { %3413 = vmatpush1.bf16.msra.mxu1 %v5201_v6  ;;  %v5279_v6 = vld [vmem:[%s7778_s1 + $0x270] ss:$8 sps:$4 sm:$0xff]  }
  0x6c   :  { %3700 = vmatpush1.bf16.msra.mxu0 %v5204_v7  ;;  %3414 = vmatprep.subr.bf16.mxu1 %v5209_v8  ;;  %v5282_v7 = vld [vmem:[%s7778_s1 + $0x970] ss:$8 sps:$4 sm:$0xff]   ;;  %v5287_v8 = vld [vmem:[%s7778_s1 + $0x284] ss:$8 sps:$4 sm:$0xff]  }
  0x6d   :  { %3701 = vmatprep.subr.bf16.mxu0 %v5212_v9  ;;  %v5290_v9 = vld [vmem:[%s7778_s1 + $0x984] ss:$8 sps:$4 sm:$0xff]  }
  0x6f   :  { %3415 = vmatpush1.bf16.msra.mxu1 %v5207_v10  ;;  %v5285_v10 = vld [vmem:[%s7778_s1 + $0x280] ss:$8 sps:$4 sm:$0xff]  }
  0x70   :  { %3702 = vmatpush1.bf16.msra.mxu0 %v5210_v11  ;;  %3416 = vmatprep.subr.bf16.mxu1 %v5215_v12  ;;  %v5288_v11 = vld [vmem:[%s7778_s1 + $0x980] ss:$8 sps:$4 sm:$0xff]   ;;  %v5293_v12 = vld [vmem:[%s7778_s1 + $0x294] ss:$8 sps:$4 sm:$0xff]  }
  0x71   :  { %3703 = vmatprep.subr.bf16.mxu0 %v5218_v13  ;;  %v5296_v13 = vld [vmem:[%s7778_s1 + $0x994] ss:$8 sps:$4 sm:$0xff]  }
  0x73   :  { %3417 = vmatpush1.bf16.msra.mxu1 %v5213_v15  ;;  %v5291_v15 = vld [vmem:[%s7778_s1 + $0x290] ss:$8 sps:$4 sm:$0xff]  }
  0x74   :  { %3704 = vmatpush1.bf16.msra.mxu0 %v5216_v16  ;;  %3418 = vmatprep.subr.bf16.mxu1 %v5221_v17  ;;  %v5294_v16 = vld [vmem:[%s7778_s1 + $0x990] ss:$8 sps:$4 sm:$0xff]   ;;  %v5299_v17 = vld [vmem:[%s7778_s1 + $0x2a4] ss:$8 sps:$4 sm:$0xff]  }
  0x75   :  { %3705 = vmatprep.subr.bf16.mxu0 %v5224_v18  ;;  %v5302_v18 = vld [vmem:[%s7778_s1 + $0x9a4] ss:$8 sps:$4 sm:$0xff]  }
  0x77   :  { %3419 = vmatpush1.bf16.msra.mxu1 %v5219_v20  ;;  %v5297_v20 = vld [vmem:[%s7778_s1 + $0x2a0] ss:$8 sps:$4 sm:$0xff]  }
  0x78   :  { %3706 = vmatpush1.bf16.msra.mxu0 %v5222_v21  ;;  %3420 = vmatprep.subr.bf16.mxu1 %v5227_v22  ;;  %v5300_v21 = vld [vmem:[%s7778_s1 + $0x9a0] ss:$8 sps:$4 sm:$0xff]   ;;  %v5305_v22 = vld [vmem:[%s7778_s1 + $0x2b4] ss:$8 sps:$4 sm:$0xff]  }
  0x79   :  { %3707 = vmatprep.subr.bf16.mxu0 %v5230_v23  ;;  %v5308_v23 = vld [vmem:[%s7778_s1 + $0x9b4] ss:$8 sps:$4 sm:$0xff]  }
  0x7b   :  { %3421 = vmatpush1.bf16.msra.mxu1 %v5225_v25  ;;  %v5306_v25 = vld [vmem:[%s7778_s1 + $0x9b0] ss:$8 sps:$4 sm:$0xff]  }
  0x7c   :  { %3708 = vmatpush1.bf16.msra.mxu0 %v5228_v26  ;;  %3422 = vmatprep.subr.bf16.mxu1 %v5233_v27  ;;  %v5311_v26 = vld [vmem:[%s7778_s1 + $0x2c4] ss:$8 sps:$4 sm:$0xff]  }
  0x7d   :  { %3709 = vmatprep.subr.bf16.mxu0 %v5236_v52  ;;  %v5314_v27 = vld [vmem:[%s7778_s1 + $0x9c4] ss:$8 sps:$4 sm:$0xff]   ;;  %v5309_v52 = vld [vmem:[%s7778_s1 + $0x2c0] ss:$8 sps:$4 sm:$0xff]  }
  0x7f   :  { %3423 = vmatpush1.bf16.msra.mxu1 %v5231_v29  ;;  %v5312_v29 = vld [vmem:[%s7778_s1 + $0x9c0] ss:$8 sps:$4 sm:$0xff]  }
  0x80   :  { %3710 = vmatpush1.bf16.msra.mxu0 %v5234_v30  ;;  %3433 = vmatprep.subr.bf16.mxu1 %v5239_v31  ;;  %v5317_v30 = vld [vmem:[%s7778_s1 + $0x2d4] ss:$8 sps:$4 sm:$0xff]  }
  0x81   :  { %3720 = vmatprep.subr.bf16.mxu0 %v5242_v32  ;;  %v5320_v31 = vld [vmem:[%s7778_s1 + $0x9d4] ss:$8 sps:$4 sm:$0xff]   ;;  %v5315_v32 = vld [vmem:[%s7778_s1 + $0x2d0] ss:$8 sps:$4 sm:$0xff]  }
  0x82   :  { %3425 = vmatmul.mubr.bf16.vlgmr.msra.gmra.mrb[0].mxu1 %v608_v34  ;;  %v5323_v34 = vld [vmem:[%s7778_s1 + $0x2e4] ss:$8 sps:$4 sm:$0xff]  }
  0x83   :  { %3712 = vmatmul.mubr.bf16.vlgmr.msra.gmra.mrb[0].mxu0 %v6395_v36  ;;  %3434 = vmatpush1.bf16.msra.mxu1 %v5237_v35  ;;  %v5326_v35 = vld [vmem:[%s7778_s1 + $0x9e4] ss:$8 sps:$4 sm:$0xff]  }
  0x84   :  { %3721 = vmatpush1.bf16.msra.mxu0 %v5240_v37  ;;  %3435 = vmatprep.subr.bf16.mxu1 %v5245_v38  ;;  %v661_v37 = vcombine.high %v6252_v48, %v6252_v48  ;;  %v5321_v38 = vld [vmem:[%s7778_s1 + $0x2e0] ss:$8 sps:$4 sm:$0xff]   ;;  %v5332_v48 = vld [vmem:[%s7778_s1 + $0x9f4] ss:$8 sps:$4 sm:$0xff]  }
  0x85   :  { %3722 = vmatprep.subr.bf16.mxu0 %v5248_v19  ;;  %3465 = vmatprep.mubr.bf16.mxu1 %v6407_v39  ;;  %v5324_v19 = vld [vmem:[%s7778_s1 + $0x9e0] ss:$8 sps:$4 sm:$0xff]  }
  0x86   :  { %3752 = vmatprep.mubr.bf16.mxu0 %v708_v40  ;;  %v5329_v40 = vld [vmem:[%s7778_s1 + $0x2f4] ss:$8 sps:$4 sm:$0xff]  }
  0x87   :  { %3436 = vmatpush1.bf16.msra.mxu1 %v5243_v41  ;;  %v6584_v41 = vrot.slane %v661_v37, %v6086_v51  ;;  %v5402_v37 = vld [vmem:[%s7778_s1 + $0xab0] ss:$8 sps:$4 sm:$0xff]  }
  0x88   :  { %3723 = vmatpush1.bf16.msra.mxu0 %v5246_v42  ;;  %3437 = vmatprep.subr.bf16.mxu1 %v5251_v43  ;;  %v5327_v42 = vld [vmem:[%s7778_s1 + $0x2f0] ss:$8 sps:$4 sm:$0xff]  }
  0x89   :  { %3724 = vmatprep.subr.bf16.mxu0 %v5254_v44  ;;  %v5330_v43 = vld [vmem:[%s7778_s1 + $0x9f0] ss:$8 sps:$4 sm:$0xff]   ;;  %v5335_v44 = vld [vmem:[%s7778_s1 + $0x304] ss:$8 sps:$4 sm:$0xff]  }
  0x8b   :  { %3438 = vmatpush1.bf16.msra.mxu1 %v5249_v46  ;;  %v5338_v46 = vld [vmem:[%s7778_s1 + $0xa04] ss:$8 sps:$4 sm:$0xff]  }
  0x8c   :  { %3725 = vmatpush1.bf16.msra.mxu0 %v5252_v47  ;;  %3439 = vmatprep.subr.bf16.mxu1 %v5257_v49  ;;  %v677_v47 = vcombine.high %v6584_v41, %v6584_v41  ;;  %v5333_v49 = vld [vmem:[%s7778_s1 + $0x300] ss:$8 sps:$4 sm:$0xff]  }
  0x8d   :  { %3726 = vmatprep.subr.bf16.mxu0 %v5260_v50  ;;  %v6605_v50 = vrot.slane %v6372_v28, %v6086_v51  ;;  %v5344_v28 = vld [vmem:[%s7778_s1 + $0xa14] ss:$8 sps:$4 sm:$0xff]  }
  0x8f   :  { %3440 = vmatpush1.bf16.msra.mxu1 %v5255_v53  ;;  %v706_v53 = vcombine.high %v6395_v36, %v6395_v36  ;;  %v6621_v36 = vrot.slane %v677_v47, %v6086_v51  ;;  %v5419_v47 = vld [vmem:[%s7778_s1 + $0x3e4] ss:$8 sps:$4 sm:$0xff]  }
  0x90   :  { %3727 = vmatpush1.bf16.msra.mxu0 %v5258_v54  ;;  %3441 = vmatprep.subr.bf16.mxu1 %v5263_v55  ;;  %v5336_v54 = vld [vmem:[%s7778_s1 + $0xa00] ss:$8 sps:$4 sm:$0xff]   ;;  %v5341_v55 = vld [vmem:[%s7778_s1 + $0x314] ss:$8 sps:$4 sm:$0xff]  }
  0x91   :  { %3728 = vmatprep.subr.bf16.mxu0 %v5266_v56  ;;  %v611_v56 = vcombine.high %v6407_v39, %v6407_v39  ;;  %v5347_v39 = vld [vmem:[%s7778_s1 + $0x324] ss:$8 sps:$4 sm:$0xff]  }
  0x93   :  { %3442 = vmatpush1.bf16.msra.mxu1 %v5261_v57  ;;  %v5339_v57 = vld [vmem:[%s7778_s1 + $0x310] ss:$8 sps:$4 sm:$0xff]  }
  0x94   :  { %3729 = vmatpush1.bf16.msra.mxu0 %v5264_v58  ;;  %3443 = vmatprep.subr.bf16.mxu1 %v5269_v59  ;;  %v5342_v58 = vld [vmem:[%s7778_s1 + $0xa10] ss:$8 sps:$4 sm:$0xff]   ;;  %v5350_v59 = vld [vmem:[%s7778_s1 + $0xa24] ss:$8 sps:$4 sm:$0xff]  }
  0x95   :  { %3730 = vmatprep.subr.bf16.mxu0 %v5272_v60  ;;  %v5345_v60 = vld [vmem:[%s7778_s1 + $0x320] ss:$8 sps:$4 sm:$0xff]  }
  0x97   :  { %3444 = vmatpush1.bf16.msra.mxu1 %v5267_v61  ;;  %v5348_v61 = vld [vmem:[%s7778_s1 + $0xa20] ss:$8 sps:$4 sm:$0xff]  }
  0x98   :  { %3731 = vmatpush1.bf16.msra.mxu0 %v5270_v62  ;;  %3445 = vmatprep.subr.bf16.mxu1 %v5275_v63  ;;  %v5353_v62 = vld [vmem:[%s7778_s1 + $0x334] ss:$8 sps:$4 sm:$0xff]  }
  0x99   :  { %3732 = vmatprep.subr.bf16.mxu0 %v5278_v0  ;;  %v5356_v63 = vld [vmem:[%s7778_s1 + $0xa34] ss:$8 sps:$4 sm:$0xff]   ;;  %v5351_v0 = vld [vmem:[%s7778_s1 + $0x330] ss:$8 sps:$4 sm:$0xff]  }
  0x9b   :  { %3446 = vmatpush1.bf16.msra.mxu1 %v5273_v1  ;;  %v5354_v1 = vld [vmem:[%s7778_s1 + $0xa30] ss:$8 sps:$4 sm:$0xff]  }
  0x9c   :  { %3733 = vmatpush1.bf16.msra.mxu0 %v5276_v2  ;;  %3447 = vmatprep.subr.bf16.mxu1 %v5281_v3  ;;  %v5359_v2 = vld [vmem:[%s7778_s1 + $0x344] ss:$8 sps:$4 sm:$0xff]  }
  0x9d   :  { %3734 = vmatprep.subr.bf16.mxu0 %v5284_v5  ;;  %v5362_v3 = vld [vmem:[%s7778_s1 + $0xa44] ss:$8 sps:$4 sm:$0xff]   ;;  %v5357_v5 = vld [vmem:[%s7778_s1 + $0x340] ss:$8 sps:$4 sm:$0xff]  }
  0x9f   :  { %3448 = vmatpush1.bf16.msra.mxu1 %v5279_v6  ;;  %v5360_v6 = vld [vmem:[%s7778_s1 + $0xa40] ss:$8 sps:$4 sm:$0xff]  }
  0xa0   :  { %3735 = vmatpush1.bf16.msra.mxu0 %v5282_v7  ;;  %3449 = vmatprep.subr.bf16.mxu1 %v5287_v8  ;;  %v5365_v7 = vld [vmem:[%s7778_s1 + $0x354] ss:$8 sps:$4 sm:$0xff]  }
  0xa1   :  { %3736 = vmatprep.subr.bf16.mxu0 %v5290_v9  ;;  %v5368_v8 = vld [vmem:[%s7778_s1 + $0xa54] ss:$8 sps:$4 sm:$0xff]   ;;  %v5363_v9 = vld [vmem:[%s7778_s1 + $0x350] ss:$8 sps:$4 sm:$0xff]  }
  0xa3   :  { %3450 = vmatpush1.bf16.msra.mxu1 %v5285_v10  ;;  %v5366_v10 = vld [vmem:[%s7778_s1 + $0xa50] ss:$8 sps:$4 sm:$0xff]  }
  0xa4   :  { %3737 = vmatpush1.bf16.msra.mxu0 %v5288_v11  ;;  %3451 = vmatprep.subr.bf16.mxu1 %v5293_v12  ;;  %v5371_v11 = vld [vmem:[%s7778_s1 + $0x364] ss:$8 sps:$4 sm:$0xff]  }
  0xa5   :  { %3738 = vmatprep.subr.bf16.mxu0 %v5296_v13  ;;  %v5374_v12 = vld [vmem:[%s7778_s1 + $0xa64] ss:$8 sps:$4 sm:$0xff]   ;;  %v5369_v13 = vld [vmem:[%s7778_s1 + $0x360] ss:$8 sps:$4 sm:$0xff]  }
  0xa7   :  { %3452 = vmatpush1.bf16.msra.mxu1 %v5291_v15  ;;  %v5372_v15 = vld [vmem:[%s7778_s1 + $0xa60] ss:$8 sps:$4 sm:$0xff]  }
  0xa8   :  { %3739 = vmatpush1.bf16.msra.mxu0 %v5294_v16  ;;  %3453 = vmatprep.subr.bf16.mxu1 %v5299_v17  ;;  %v5377_v16 = vld [vmem:[%s7778_s1 + $0x374] ss:$8 sps:$4 sm:$0xff]  }
  0xa9   :  { %3740 = vmatprep.subr.bf16.mxu0 %v5302_v18  ;;  %v5380_v17 = vld [vmem:[%s7778_s1 + $0xa74] ss:$8 sps:$4 sm:$0xff]   ;;  %v5375_v18 = vld [vmem:[%s7778_s1 + $0x370] ss:$8 sps:$4 sm:$0xff]  }
  0xab   :  { %3454 = vmatpush1.bf16.msra.mxu1 %v5297_v20  ;;  %v5378_v20 = vld [vmem:[%s7778_s1 + $0xa70] ss:$8 sps:$4 sm:$0xff]  }
  0xac   :  { %3741 = vmatpush1.bf16.msra.mxu0 %v5300_v21  ;;  %3455 = vmatprep.subr.bf16.mxu1 %v5305_v22  ;;  %v5383_v21 = vld [vmem:[%s7778_s1 + $0x384] ss:$8 sps:$4 sm:$0xff]  }
  0xad   :  { %3742 = vmatprep.subr.bf16.mxu0 %v5308_v23  ;;  %v5386_v22 = vld [vmem:[%s7778_s1 + $0xa84] ss:$8 sps:$4 sm:$0xff]   ;;  %v5381_v23 = vld [vmem:[%s7778_s1 + $0x380] ss:$8 sps:$4 sm:$0xff]  }
  0xaf   :  { %3456 = vmatpush1.bf16.msra.mxu1 %v5303_v24  ;;  %v5384_v24 = vld [vmem:[%s7778_s1 + $0xa80] ss:$8 sps:$4 sm:$0xff]  }
  0xb0   :  { %3743 = vmatpush1.bf16.msra.mxu0 %v5306_v25  ;;  %3457 = vmatprep.subr.bf16.mxu1 %v5311_v26  ;;  %v5389_v25 = vld [vmem:[%s7778_s1 + $0x394] ss:$8 sps:$4 sm:$0xff]  }
  0xb1   :  { %3744 = vmatprep.subr.bf16.mxu0 %v5314_v27  ;;  %v5392_v26 = vld [vmem:[%s7778_s1 + $0xa94] ss:$8 sps:$4 sm:$0xff]   ;;  %v5387_v27 = vld [vmem:[%s7778_s1 + $0x390] ss:$8 sps:$4 sm:$0xff]  }
  0xb3   :  { %3458 = vmatpush1.bf16.msra.mxu1 %v5309_v52  ;;  %v5390_v52 = vld [vmem:[%s7778_s1 + $0xa90] ss:$8 sps:$4 sm:$0xff]  }
  0xb4   :  { %3745 = vmatpush1.bf16.msra.mxu0 %v5312_v29  ;;  %3459 = vmatprep.subr.bf16.mxu1 %v5317_v30  ;;  %v5395_v29 = vld [vmem:[%s7778_s1 + $0x3a4] ss:$8 sps:$4 sm:$0xff]  }
  0xb5   :  { %3746 = vmatprep.subr.bf16.mxu0 %v5320_v31  ;;  %v5398_v30 = vld [vmem:[%s7778_s1 + $0xaa4] ss:$8 sps:$4 sm:$0xff]   ;;  %v5393_v31 = vld [vmem:[%s7778_s1 + $0x3a0] ss:$8 sps:$4 sm:$0xff]  }
  0xb7   :  { %3460 = vmatpush1.bf16.msra.mxu1 %v5315_v32  ;;  %v5396_v32 = vld [vmem:[%s7778_s1 + $0xaa0] ss:$8 sps:$4 sm:$0xff]  }
  0xb8   :  { %3747 = vmatpush1.bf16.msra.mxu0 %v5318_v33  ;;  %3461 = vmatprep.subr.bf16.mxu1 %v5323_v34  ;;  %v5401_v33 = vld [vmem:[%s7778_s1 + $0x3b4] ss:$8 sps:$4 sm:$0xff]  }
  0xb9   :  { %3748 = vmatprep.subr.bf16.mxu0 %v5326_v35  ;;  %v5404_v34 = vld [vmem:[%s7778_s1 + $0xab4] ss:$8 sps:$4 sm:$0xff]   ;;  %v5399_v35 = vld [vmem:[%s7778_s1 + $0x3b0] ss:$8 sps:$4 sm:$0xff]  }
  0xbb   :  { %3462 = vmatpush1.bf16.msra.mxu1 %v5321_v38  ;;  %v5407_v38 = vld [vmem:[%s7778_s1 + $0x3c4] ss:$8 sps:$4 sm:$0xff]  }
  0xbc   :  { %3749 = vmatpush1.bf16.msra.mxu0 %v5324_v19  ;;  %3463 = vmatprep.subr.bf16.mxu1 %v5329_v40  ;;  %v5410_v19 = vld [vmem:[%s7778_s1 + $0xac4] ss:$8 sps:$4 sm:$0xff]   ;;  %v5405_v40 = vld [vmem:[%s7778_s1 + $0x3c0] ss:$8 sps:$4 sm:$0xff]  }
  0xbd   :  { %3750 = vmatprep.subr.bf16.mxu0 %v5332_v48  ;;  %v5408_v48 = vld [vmem:[%s7778_s1 + $0xac0] ss:$8 sps:$4 sm:$0xff]  }
  0xbf   :  { %3464 = vmatpush1.bf16.msra.mxu1 %v5327_v42  ;;  %v5413_v42 = vld [vmem:[%s7778_s1 + $0x3d4] ss:$8 sps:$4 sm:$0xff]  }
  0xc0   :  { %3751 = vmatpush1.bf16.msra.mxu0 %v5330_v43  ;;  %3474 = vmatprep.subr.bf16.mxu1 %v5335_v44  ;;  %v5416_v43 = vld [vmem:[%s7778_s1 + $0xad4] ss:$8 sps:$4 sm:$0xff]   ;;  %v5411_v44 = vld [vmem:[%s7778_s1 + $0x3d0] ss:$8 sps:$4 sm:$0xff]  }
  0xc1   :  { %3761 = vmatprep.subr.bf16.mxu0 %v5338_v46  ;;  %v5414_v46 = vld [vmem:[%s7778_s1 + $0xad0] ss:$8 sps:$4 sm:$0xff]  }
  0xc2   :  { %3466 = vmatmul.mubr.bf16.vlgmr.msra.gmra.mrb[0].mxu1 %v6605_v50 }
  0xc3   :  { %3753 = vmatmul.mubr.bf16.vlgmr.msra.gmra.mrb[0].mxu0 %v706_v53  ;;  %3475 = vmatpush1.bf16.msra.mxu1 %v5333_v49  ;;  %v5422_v49 = vld [vmem:[%s7778_s1 + $0xae4] ss:$8 sps:$4 sm:$0xff]   ;;  %v5417_v53 = vld [vmem:[%s7778_s1 + $0x3e0] ss:$8 sps:$4 sm:$0xff]  }
  0xc4   :  { %3762 = vmatpush1.bf16.msra.mxu0 %v5336_v54  ;;  %3476 = vmatprep.subr.bf16.mxu1 %v5341_v55  ;;  %v5420_v54 = vld [vmem:[%s7778_s1 + $0xae0] ss:$8 sps:$4 sm:$0xff]   ;;  %v5425_v55 = vld [vmem:[%s7778_s1 + $0x3f4] ss:$8 sps:$4 sm:$0xff]  }
  0xc5   :  { %3763 = vmatprep.subr.bf16.mxu0 %v5344_v28  ;;  %3506 = vmatprep.mubr.bf16.mxu1 %v611_v56  ;;  %v5428_v28 = vld [vmem:[%s7778_s1 + $0xaf4] ss:$8 sps:$4 sm:$0xff]   ;;  %v6796_v56 = vld.sshfl [vmem:[%s7777_s0 + $0x8] sm:$0xff pattern:$0x75316420] }
  0xc6   :  { %3793 = vmatprep.mubr.bf16.mxu0 %v6621_v36 }
  0xc7   :  { %3477 = vmatpush1.bf16.msra.mxu1 %v5339_v57  ;;  %v5423_v57 = vld [vmem:[%s7778_s1 + $0x3f0] ss:$8 sps:$4 sm:$0xff]  }
  0xc8   :  { %3764 = vmatpush1.bf16.msra.mxu0 %v5342_v58  ;;  %3478 = vmatprep.subr.bf16.mxu1 %v5347_v39  ;;  %v5426_v58 = vld [vmem:[%s7778_s1 + $0xaf0] ss:$8 sps:$4 sm:$0xff]   ;;  %v5431_v39 = vld [vmem:[%s7778_s1 + $0x404] ss:$8 sps:$4 sm:$0xff]  }
  0xc9   :  { %3765 = vmatprep.subr.bf16.mxu0 %v5350_v59  ;;  %v5435_v59 = vld [vmem:[%s7778_s1 + $0xb04] ss:$8 sps:$4 sm:$0xff]  }
  0xcb   :  { %3479 = vmatpush1.bf16.msra.mxu1 %v5345_v60  ;;  %v627_v60 = vcombine.high %v6796_v56, %v6796_v56 }
  0xcc   :  { %3766 = vmatpush1.bf16.msra.mxu0 %v5348_v61  ;;  %3480 = vmatprep.subr.bf16.mxu1 %v5353_v62  ;;  %v5429_v61 = vld [vmem:[%s7778_s1 + $0x400] ss:$8 sps:$4 sm:$0xff]   ;;  %v609_v62 = vcombine.high %v6605_v50, %v6605_v50  ;;  %v5441_v50 = vld [vmem:[%s7778_s1 + $0xb14] ss:$8 sps:$4 sm:$0xff]  }
  0xcd   :  { %3767 = vmatprep.subr.bf16.mxu0 %v5356_v63  ;;  %v6819_v63 = vrot.slane %v6584_v41, %v6086_v51  ;;  %v709_v41 = vcombine.high %v6621_v36, %v6621_v36  ;;  %v5447_v36 = vld [vmem:[%s7778_s1 + $0xb24] ss:$8 sps:$4 sm:$0xff]  }
  0xcf   :  { %3481 = vmatpush1.bf16.msra.mxu1 %v5351_v0  ;;  %v5433_v0 = vld [vmem:[%s7778_s1 + $0xb00] ss:$8 sps:$4 sm:$0xff]  }
  0xd0   :  { %3768 = vmatpush1.bf16.msra.mxu0 %v5354_v1  ;;  %3482 = vmatprep.subr.bf16.mxu1 %v5359_v2  ;;  %v5438_v1 = vld [vmem:[%s7778_s1 + $0x414] ss:$8 sps:$4 sm:$0xff]   ;;  %v6831_v2 = vrot.slane %v627_v60, %v6086_v51  ;;  %v5516_v60 = vld [vmem:[%s7778_s1 + $0x4e4] ss:$8 sps:$4 sm:$0xff]  }
  0xd1   :  { %3769 = vmatprep.subr.bf16.mxu0 %v5362_v3  ;;  %v5436_v3 = vld [vmem:[%s7778_s1 + $0x410] ss:$8 sps:$4 sm:$0xff]  }
  0xd3   :  { %3483 = vmatpush1.bf16.msra.mxu1 %v5357_v5  ;;  %v5439_v5 = vld [vmem:[%s7778_s1 + $0xb10] ss:$8 sps:$4 sm:$0xff]  }
  0xd4   :  { %3770 = vmatpush1.bf16.msra.mxu0 %v5360_v6  ;;  %3484 = vmatprep.subr.bf16.mxu1 %v5365_v7  ;;  %v5444_v6 = vld [vmem:[%s7778_s1 + $0x424] ss:$8 sps:$4 sm:$0xff]   ;;  %v5442_v7 = vld [vmem:[%s7778_s1 + $0x420] ss:$8 sps:$4 sm:$0xff]  }
  0xd5   :  { %3771 = vmatprep.subr.bf16.mxu0 %v5368_v8  ;;  %v5445_v8 = vld [vmem:[%s7778_s1 + $0xb20] ss:$8 sps:$4 sm:$0xff]  }
  0xd7   :  { %3485 = vmatpush1.bf16.msra.mxu1 %v5363_v9  ;;  %v5450_v9 = vld [vmem:[%s7778_s1 + $0x434] ss:$8 sps:$4 sm:$0xff]  }
  0xd8   :  { %3772 = vmatpush1.bf16.msra.mxu0 %v5366_v10  ;;  %3486 = vmatprep.subr.bf16.mxu1 %v5371_v11  ;;  %v5453_v10 = vld [vmem:[%s7778_s1 + $0xb34] ss:$8 sps:$4 sm:$0xff]   ;;  %v5448_v11 = vld [vmem:[%s7778_s1 + $0x430] ss:$8 sps:$4 sm:$0xff]  }
  0xd9   :  { %3773 = vmatprep.subr.bf16.mxu0 %v5374_v12  ;;  %v5451_v12 = vld [vmem:[%s7778_s1 + $0xb30] ss:$8 sps:$4 sm:$0xff]  }
  0xdb   :  { %3487 = vmatpush1.bf16.msra.mxu1 %v5369_v13  ;;  %v5456_v13 = vld [vmem:[%s7778_s1 + $0x444] ss:$8 sps:$4 sm:$0xff]  }
  0xdc   :  { %3774 = vmatpush1.bf16.msra.mxu0 %v5372_v15  ;;  %3488 = vmatprep.subr.bf16.mxu1 %v5377_v16  ;;  %v5459_v15 = vld [vmem:[%s7778_s1 + $0xb44] ss:$8 sps:$4 sm:$0xff]   ;;  %v5454_v16 = vld [vmem:[%s7778_s1 + $0x440] ss:$8 sps:$4 sm:$0xff]  }
  0xdd   :  { %3775 = vmatprep.subr.bf16.mxu0 %v5380_v17  ;;  %v5457_v17 = vld [vmem:[%s7778_s1 + $0xb40] ss:$8 sps:$4 sm:$0xff]  }
  0xdf   :  { %3489 = vmatpush1.bf16.msra.mxu1 %v5375_v18  ;;  %v5462_v18 = vld [vmem:[%s7778_s1 + $0x454] ss:$8 sps:$4 sm:$0xff]  }
  0xe0   :  { %3776 = vmatpush1.bf16.msra.mxu0 %v5378_v20  ;;  %3490 = vmatprep.subr.bf16.mxu1 %v5383_v21  ;;  %v5465_v20 = vld [vmem:[%s7778_s1 + $0xb54] ss:$8 sps:$4 sm:$0xff]   ;;  %v5460_v21 = vld [vmem:[%s7778_s1 + $0x450] ss:$8 sps:$4 sm:$0xff]  }
  0xe1   :  { %3777 = vmatprep.subr.bf16.mxu0 %v5386_v22  ;;  %v5463_v22 = vld [vmem:[%s7778_s1 + $0xb50] ss:$8 sps:$4 sm:$0xff]  }
  0xe3   :  { %3491 = vmatpush1.bf16.msra.mxu1 %v5381_v23  ;;  %v5468_v23 = vld [vmem:[%s7778_s1 + $0x464] ss:$8 sps:$4 sm:$0xff]  }
  0xe4   :  { %3778 = vmatpush1.bf16.msra.mxu0 %v5384_v24  ;;  %3492 = vmatprep.subr.bf16.mxu1 %v5389_v25  ;;  %v5471_v24 = vld [vmem:[%s7778_s1 + $0xb64] ss:$8 sps:$4 sm:$0xff]   ;;  %v5466_v25 = vld [vmem:[%s7778_s1 + $0x460] ss:$8 sps:$4 sm:$0xff]  }
  0xe5   :  { %3779 = vmatprep.subr.bf16.mxu0 %v5392_v26  ;;  %v5469_v26 = vld [vmem:[%s7778_s1 + $0xb60] ss:$8 sps:$4 sm:$0xff]  }
  0xe7   :  { %3493 = vmatpush1.bf16.msra.mxu1 %v5387_v27  ;;  %v5474_v27 = vld [vmem:[%s7778_s1 + $0x474] ss:$8 sps:$4 sm:$0xff]  }
  0xe8   :  { %3780 = vmatpush1.bf16.msra.mxu0 %v5390_v52  ;;  %3494 = vmatprep.subr.bf16.mxu1 %v5395_v29  ;;  %v5477_v52 = vld [vmem:[%s7778_s1 + $0xb74] ss:$8 sps:$4 sm:$0xff]   ;;  %v5472_v29 = vld [vmem:[%s7778_s1 + $0x470] ss:$8 sps:$4 sm:$0xff]  }
  0xe9   :  { %3781 = vmatprep.subr.bf16.mxu0 %v5398_v30  ;;  %v5475_v30 = vld [vmem:[%s7778_s1 + $0xb70] ss:$8 sps:$4 sm:$0xff]  }
  0xeb   :  { %3495 = vmatpush1.bf16.msra.mxu1 %v5393_v31  ;;  %v5480_v31 = vld [vmem:[%s7778_s1 + $0x484] ss:$8 sps:$4 sm:$0xff]  }
  0xec   :  { %3782 = vmatpush1.bf16.msra.mxu0 %v5396_v32  ;;  %3496 = vmatprep.subr.bf16.mxu1 %v5401_v33  ;;  %v5483_v32 = vld [vmem:[%s7778_s1 + $0xb84] ss:$8 sps:$4 sm:$0xff]   ;;  %v5478_v33 = vld [vmem:[%s7778_s1 + $0x480] ss:$8 sps:$4 sm:$0xff]  }
  0xed   :  { %3783 = vmatprep.subr.bf16.mxu0 %v5404_v34  ;;  %v5481_v34 = vld [vmem:[%s7778_s1 + $0xb80] ss:$8 sps:$4 sm:$0xff]  }
  0xef   :  { %3497 = vmatpush1.bf16.msra.mxu1 %v5399_v35  ;;  %v5486_v35 = vld [vmem:[%s7778_s1 + $0x494] ss:$8 sps:$4 sm:$0xff]  }
  0xf0   :  { %3784 = vmatpush1.bf16.msra.mxu0 %v5402_v37  ;;  %3498 = vmatprep.subr.bf16.mxu1 %v5407_v38  ;;  %v5489_v37 = vld [vmem:[%s7778_s1 + $0xb94] ss:$8 sps:$4 sm:$0xff]   ;;  %v5484_v38 = vld [vmem:[%s7778_s1 + $0x490] ss:$8 sps:$4 sm:$0xff]  }
  0xf1   :  { %3785 = vmatprep.subr.bf16.mxu0 %v5410_v19  ;;  %v5487_v19 = vld [vmem:[%s7778_s1 + $0xb90] ss:$8 sps:$4 sm:$0xff]  }
  0xf3   :  { %3499 = vmatpush1.bf16.msra.mxu1 %v5405_v40  ;;  %v5492_v40 = vld [vmem:[%s7778_s1 + $0x4a4] ss:$8 sps:$4 sm:$0xff]  }
  0xf4   :  { %3786 = vmatpush1.bf16.msra.mxu0 %v5408_v48  ;;  %3500 = vmatprep.subr.bf16.mxu1 %v5413_v42  ;;  %v5495_v48 = vld [vmem:[%s7778_s1 + $0xba4] ss:$8 sps:$4 sm:$0xff]   ;;  %v5490_v42 = vld [vmem:[%s7778_s1 + $0x4a0] ss:$8 sps:$4 sm:$0xff]  }
  0xf5   :  { %3787 = vmatprep.subr.bf16.mxu0 %v5416_v43  ;;  %v5493_v43 = vld [vmem:[%s7778_s1 + $0xba0] ss:$8 sps:$4 sm:$0xff]  }
  0xf7   :  { %3501 = vmatpush1.bf16.msra.mxu1 %v5411_v44  ;;  %v5498_v44 = vld [vmem:[%s7778_s1 + $0x4b4] ss:$8 sps:$4 sm:$0xff]  }
  0xf8   :  { %3788 = vmatpush1.bf16.msra.mxu0 %v5414_v46  ;;  %3502 = vmatprep.subr.bf16.mxu1 %v5419_v47  ;;  %v5501_v46 = vld [vmem:[%s7778_s1 + $0xbb4] ss:$8 sps:$4 sm:$0xff]   ;;  %v5496_v47 = vld [vmem:[%s7778_s1 + $0x4b0] ss:$8 sps:$4 sm:$0xff]  }
  0xf9   :  { %3789 = vmatprep.subr.bf16.mxu0 %v5422_v49  ;;  %v5499_v49 = vld [vmem:[%s7778_s1 + $0xbb0] ss:$8 sps:$4 sm:$0xff]  }
  0xfb   :  { %3503 = vmatpush1.bf16.msra.mxu1 %v5417_v53  ;;  %v5504_v53 = vld [vmem:[%s7778_s1 + $0x4c4] ss:$8 sps:$4 sm:$0xff]  }
  0xfc   :  { %3790 = vmatpush1.bf16.msra.mxu0 %v5420_v54  ;;  %3504 = vmatprep.subr.bf16.mxu1 %v5425_v55  ;;  %v5507_v54 = vld [vmem:[%s7778_s1 + $0xbc4] ss:$8 sps:$4 sm:$0xff]   ;;  %v5502_v55 = vld [vmem:[%s7778_s1 + $0x4c0] ss:$8 sps:$4 sm:$0xff]  }
  0xfd   :  { %3791 = vmatprep.subr.bf16.mxu0 %v5428_v28  ;;  %v5505_v28 = vld [vmem:[%s7778_s1 + $0xbc0] ss:$8 sps:$4 sm:$0xff]  }
  0xff   :  { %3505 = vmatpush1.bf16.msra.mxu1 %v5423_v57  ;;  %v5510_v57 = vld [vmem:[%s7778_s1 + $0x4d4] ss:$8 sps:$4 sm:$0xff]  }
 0x100   :  { %3792 = vmatpush1.bf16.msra.mxu0 %v5426_v58  ;;  %3515 = vmatprep.subr.bf16.mxu1 %v5431_v39  ;;  %v5513_v58 = vld [vmem:[%s7778_s1 + $0xbd4] ss:$8 sps:$4 sm:$0xff]   ;;  %v5508_v39 = vld [vmem:[%s7778_s1 + $0x4d0] ss:$8 sps:$4 sm:$0xff]  }
 0x101   :  { %3802 = vmatprep.subr.bf16.mxu0 %v5435_v59  ;;  %v5511_v59 = vld [vmem:[%s7778_s1 + $0xbd0] ss:$8 sps:$4 sm:$0xff]  }
 0x102   :  { %3507 = vmatmul.mubr.bf16.vlgmr.msra.gmra.mrb[0].mxu1 %v609_v62  ;;  %v6996_v62 = vld [vmem:[%s7777_s0 + $0x18] sm:$0xff] }
 0x103   :  { %3794 = vmatmul.mubr.bf16.vlgmr.msra.gmra.mrb[0].mxu0 %v6819_v63  ;;  %3516 = vmatpush1.bf16.msra.mxu1 %v5429_v61  ;;  %v5519_v61 = vld [vmem:[%s7778_s1 + $0xbe4] ss:$8 sps:$4 sm:$0xff]  }
 0x104   :  { %3803 = vmatpush1.bf16.msra.mxu0 %v5433_v0  ;;  %3517 = vmatprep.subr.bf16.mxu1 %v5438_v1  ;;  %v5514_v0 = vld [vmem:[%s7778_s1 + $0x4e0] ss:$8 sps:$4 sm:$0xff]  }
 0x105   :  { %3804 = vmatprep.subr.bf16.mxu0 %v5441_v50  ;;  %3547 = vmatprep.mubr.bf16.mxu1 %v6831_v2  ;;  %v5517_v1 = vld [vmem:[%s7778_s1 + $0xbe0] ss:$8 sps:$4 sm:$0xff]   ;;  %v5522_v50 = vld [vmem:[%s7778_s1 + $0x4f4] ss:$8 sps:$4 sm:$0xff]  }
 0x106   :  { %3834 = vmatprep.mubr.bf16.mxu0 %v709_v41  ;;  %v5525_v41 = vld [vmem:[%s7778_s1 + $0xbf4] ss:$8 sps:$4 sm:$0xff]  }
 0x107   :  { %3518 = vmatpush1.bf16.msra.mxu1 %v5436_v3  ;;  %v7012_v3 = vrot.slane %v6996_v62, %v6086_v51 }
 0x108   :  { %3805 = vmatpush1.bf16.msra.mxu0 %v5439_v5  ;;  %3519 = vmatprep.subr.bf16.mxu1 %v5444_v6  ;;  %v5520_v5 = vld [vmem:[%s7778_s1 + $0x4f0] ss:$8 sps:$4 sm:$0xff]  }
 0x109   :  { %3806 = vmatprep.subr.bf16.mxu0 %v5447_v36  ;;  %v5523_v6 = vld [vmem:[%s7778_s1 + $0xbf0] ss:$8 sps:$4 sm:$0xff]   ;;  %v5528_v36 = vld [vmem:[%s7778_s1 + $0x504] ss:$8 sps:$4 sm:$0xff]  }
 0x10b   :  { %3520 = vmatpush1.bf16.msra.mxu1 %v5442_v7  ;;  %v5531_v7 = vld [vmem:[%s7778_s1 + $0xc04] ss:$8 sps:$4 sm:$0xff]  }
 0x10c   :  { %3807 = vmatpush1.bf16.msra.mxu0 %v5445_v8  ;;  %3521 = vmatprep.subr.bf16.mxu1 %v5450_v9  ;;  %v5526_v8 = vld [vmem:[%s7778_s1 + $0x500] ss:$8 sps:$4 sm:$0xff]  }
 0x10d   :  { %3808 = vmatprep.subr.bf16.mxu0 %v5453_v10  ;;  %v5529_v9 = vld [vmem:[%s7778_s1 + $0xc00] ss:$8 sps:$4 sm:$0xff]   ;;  %v725_v10 = vcombine.high %v7012_v3, %v7012_v3 }
 0x10f   :  { %3522 = vmatpush1.bf16.msra.mxu1 %v5448_v11  ;;  %v7036_v11 = vrot.slane %v6796_v56, %v6086_v51  ;;  %v5532_v56 = vld [vmem:[%s7778_s1 + $0x510] ss:$8 sps:$4 sm:$0xff]  }
 0x110   :  { %3809 = vmatpush1.bf16.msra.mxu0 %v5451_v12  ;;  %3523 = vmatprep.subr.bf16.mxu1 %v5456_v13  ;;  %v707_v12 = vcombine.high %v6819_v63, %v6819_v63  ;;  %v5534_v13 = vld [vmem:[%s7778_s1 + $0x514] ss:$8 sps:$4 sm:$0xff]   ;;  %v5535_v63 = vld [vmem:[%s7778_s1 + $0xc10] ss:$8 sps:$4 sm:$0xff]  }
 0x111   :  { %3810 = vmatprep.subr.bf16.mxu0 %v5459_v15  ;;  %v5537_v15 = vld [vmem:[%s7778_s1 + $0xc14] ss:$8 sps:$4 sm:$0xff]  }
 0x113   :  { %3524 = vmatpush1.bf16.msra.mxu1 %v5454_v16  ;;  %v659_v16 = vcombine.high %v6831_v2, %v6831_v2  ;;  %v5538_v2 = vld [vmem:[%s7778_s1 + $0x520] ss:$8 sps:$4 sm:$0xff]  }
 0x114   :  { %3811 = vmatpush1.bf16.msra.mxu0 %v5457_v17  ;;  %3525 = vmatprep.subr.bf16.mxu1 %v5462_v18  ;;  %v7055_v17 = vrot.slane %v725_v10, %v6086_v51  ;;  %v5540_v18 = vld [vmem:[%s7778_s1 + $0x524] ss:$8 sps:$4 sm:$0xff]  }
 0x115   :  { %3812 = vmatprep.subr.bf16.mxu0 %v5465_v20  ;;  %v5543_v20 = vld [vmem:[%s7778_s1 + $0xc24] ss:$8 sps:$4 sm:$0xff]  }
 0x117   :  { %3526 = vmatpush1.bf16.msra.mxu1 %v5460_v21  ;;  %v5541_v21 = vld [vmem:[%s7778_s1 + $0xc20] ss:$8 sps:$4 sm:$0xff]  }
 0x118   :  { %3813 = vmatpush1.bf16.msra.mxu0 %v5463_v22  ;;  %3527 = vmatprep.subr.bf16.mxu1 %v5468_v23  ;;  %v5546_v22 = vld [vmem:[%s7778_s1 + $0x534] ss:$8 sps:$4 sm:$0xff]  }
 0x119   :  { %3814 = vmatprep.subr.bf16.mxu0 %v5471_v24  ;;  %v5549_v23 = vld [vmem:[%s7778_s1 + $0xc34] ss:$8 sps:$4 sm:$0xff]   ;;  %v5544_v24 = vld [vmem:[%s7778_s1 + $0x530] ss:$8 sps:$4 sm:$0xff]  }
 0x11b   :  { %3528 = vmatpush1.bf16.msra.mxu1 %v5466_v25  ;;  %v5547_v25 = vld [vmem:[%s7778_s1 + $0xc30] ss:$8 sps:$4 sm:$0xff]  }
 0x11c   :  { %3815 = vmatpush1.bf16.msra.mxu0 %v5469_v26  ;;  %3529 = vmatprep.subr.bf16.mxu1 %v5474_v27  ;;  %v5552_v26 = vld [vmem:[%s7778_s1 + $0x544] ss:$8 sps:$4 sm:$0xff]  }
 0x11d   :  { %3816 = vmatprep.subr.bf16.mxu0 %v5477_v52  ;;  %v5555_v27 = vld [vmem:[%s7778_s1 + $0xc44] ss:$8 sps:$4 sm:$0xff]   ;;  %v5550_v52 = vld [vmem:[%s7778_s1 + $0x540] ss:$8 sps:$4 sm:$0xff]  }
 0x11f   :  { %3530 = vmatpush1.bf16.msra.mxu1 %v5472_v29  ;;  %v5553_v29 = vld [vmem:[%s7778_s1 + $0xc40] ss:$8 sps:$4 sm:$0xff]  }
 0x120   :  { %3817 = vmatpush1.bf16.msra.mxu0 %v5475_v30  ;;  %3531 = vmatprep.subr.bf16.mxu1 %v5480_v31  ;;  %v5558_v30 = vld [vmem:[%s7778_s1 + $0x554] ss:$8 sps:$4 sm:$0xff]  }
 0x121   :  { %3818 = vmatprep.subr.bf16.mxu0 %v5483_v32  ;;  %v5561_v31 = vld [vmem:[%s7778_s1 + $0xc54] ss:$8 sps:$4 sm:$0xff]   ;;  %v5556_v32 = vld [vmem:[%s7778_s1 + $0x550] ss:$8 sps:$4 sm:$0xff]  }
 0x123   :  { %3532 = vmatpush1.bf16.msra.mxu1 %v5478_v33  ;;  %v5559_v33 = vld [vmem:[%s7778_s1 + $0xc50] ss:$8 sps:$4 sm:$0xff]  }
 0x124   :  { %3819 = vmatpush1.bf16.msra.mxu0 %v5481_v34  ;;  %3533 = vmatprep.subr.bf16.mxu1 %v5486_v35  ;;  %v5564_v34 = vld [vmem:[%s7778_s1 + $0x564] ss:$8 sps:$4 sm:$0xff]  }
 0x125   :  { %3820 = vmatprep.subr.bf16.mxu0 %v5489_v37  ;;  %v5567_v35 = vld [vmem:[%s7778_s1 + $0xc64] ss:$8 sps:$4 sm:$0xff]   ;;  %v5562_v37 = vld [vmem:[%s7778_s1 + $0x560] ss:$8 sps:$4 sm:$0xff]  }
 0x127   :  { %3534 = vmatpush1.bf16.msra.mxu1 %v5484_v38  ;;  %v5565_v38 = vld [vmem:[%s7778_s1 + $0xc60] ss:$8 sps:$4 sm:$0xff]  }
 0x128   :  { %3821 = vmatpush1.bf16.msra.mxu0 %v5487_v19  ;;  %3535 = vmatprep.subr.bf16.mxu1 %v5492_v40  ;;  %v5570_v19 = vld [vmem:[%s7778_s1 + $0x574] ss:$8 sps:$4 sm:$0xff]  }
 0x129   :  { %3822 = vmatprep.subr.bf16.mxu0 %v5495_v48  ;;  %v5573_v40 = vld [vmem:[%s7778_s1 + $0xc74] ss:$8 sps:$4 sm:$0xff]  }
 0x12b   :  { %3536 = vmatpush1.bf16.msra.mxu1 %v5490_v42 }
 0x12c   :  { %3823 = vmatpush1.bf16.msra.mxu0 %v5493_v43  ;;  %3537 = vmatprep.subr.bf16.mxu1 %v5498_v44 }
 0x12d   :  { %3824 = vmatprep.subr.bf16.mxu0 %v5501_v46 }
 0x12f   :  { %3538 = vmatpush1.bf16.msra.mxu1 %v5496_v47 }
 0x130   :  { %3825 = vmatpush1.bf16.msra.mxu0 %v5499_v49  ;;  %3539 = vmatprep.subr.bf16.mxu1 %v5504_v53 }
 0x131   :  { %3826 = vmatprep.subr.bf16.mxu0 %v5507_v54 }
 0x133   :  { %3540 = vmatpush1.bf16.msra.mxu1 %v5502_v55 }
 0x134   :  { %3827 = vmatpush1.bf16.msra.mxu0 %v5505_v28  ;;  %3541 = vmatprep.subr.bf16.mxu1 %v5510_v57 }
 0x135   :  { %3828 = vmatprep.subr.bf16.mxu0 %v5513_v58 }
 0x137   :  { %3542 = vmatpush1.bf16.msra.mxu1 %v5508_v39 }
 0x138   :  { %3829 = vmatpush1.bf16.msra.mxu0 %v5511_v59  ;;  %3543 = vmatprep.subr.bf16.mxu1 %v5516_v60 }
 0x139   :  { %3830 = vmatprep.subr.bf16.mxu0 %v5519_v61 }
 0x13b   :  { %3544 = vmatpush1.bf16.msra.mxu1 %v5514_v0 }
 0x13c   :  { %3831 = vmatpush1.bf16.msra.mxu0 %v5517_v1  ;;  %3545 = vmatprep.subr.bf16.mxu1 %v5522_v50 }
 0x13d   :  { %3832 = vmatprep.subr.bf16.mxu0 %v5525_v41 }
 0x13f   :  { %3546 = vmatpush1.bf16.msra.mxu1 %v5520_v5 }
 0x140   :  { %3833 = vmatpush1.bf16.msra.mxu0 %v5523_v6  ;;  %3556 = vmatprep.subr.bf16.mxu1 %v5528_v36 }
 0x141   :  { %3843 = vmatprep.subr.bf16.mxu0 %v5531_v7 }
 0x142   :  { %3548 = vmatmul.mubr.bf16.vlgmr.msra.gmra.mrb[0].mxu1 %v7036_v11 }
 0x143   :  { %3835 = vmatmul.mubr.bf16.vlgmr.msra.gmra.mrb[0].mxu0 %v707_v12  ;;  %3557 = vmatpush1.bf16.msra.mxu1 %v5526_v8 }
 0x144   :  { %3844 = vmatpush1.bf16.msra.mxu0 %v5529_v9  ;;  %3558 = vmatprep.subr.bf16.mxu1 %v5534_v13 }
 0x145   :  { %3845 = vmatprep.subr.bf16.mxu0 %v5537_v15  ;;  %3588 = vmatprep.mubr.bf16.mxu1 %v659_v16 }
 0x146   :  { %3875 = vmatprep.mubr.bf16.mxu0 %v7055_v17 }
 0x147   :  { %3559 = vmatpush1.bf16.msra.mxu1 %v5532_v56 }
 0x148   :  { %3846 = vmatpush1.bf16.msra.mxu0 %v5535_v63  ;;  %3560 = vmatprep.subr.bf16.mxu1 %v5540_v18 }
 0x149   :  { %3847 = vmatprep.subr.bf16.mxu0 %v5543_v20 }
 0x14b   :  { %3561 = vmatpush1.bf16.msra.mxu1 %v5538_v2 }
 0x14c   :  { %3848 = vmatpush1.bf16.msra.mxu0 %v5541_v21  ;;  %3562 = vmatprep.subr.bf16.mxu1 %v5546_v22 }
 0x14d   :  { %3849 = vmatprep.subr.bf16.mxu0 %v5549_v23 }
 0x14f   :  { %3563 = vmatpush1.bf16.msra.mxu1 %v5544_v24 }
 0x150   :  { %3850 = vmatpush1.bf16.msra.mxu0 %v5547_v25  ;;  %3564 = vmatprep.subr.bf16.mxu1 %v5552_v26 }
 0x151   :  { %3851 = vmatprep.subr.bf16.mxu0 %v5555_v27 }
 0x153   :  { %3565 = vmatpush1.bf16.msra.mxu1 %v5550_v52 }
 0x154   :  { %3852 = vmatpush1.bf16.msra.mxu0 %v5553_v29  ;;  %3566 = vmatprep.subr.bf16.mxu1 %v5558_v30 }
 0x155   :  { %3853 = vmatprep.subr.bf16.mxu0 %v5561_v31 }
 0x157   :  { %3567 = vmatpush1.bf16.msra.mxu1 %v5556_v32 }
 0x158   :  { %3854 = vmatpush1.bf16.msra.mxu0 %v5559_v33  ;;  %3568 = vmatprep.subr.bf16.mxu1 %v5564_v34 }
 0x159   :  { %3855 = vmatprep.subr.bf16.mxu0 %v5567_v35 }
 0x15a   :  { %15 = vsyncpa [#allocation5], 0  ;;  %v5568_v48 = vld [vmem:[%s7778_s1 + $0x570] ss:$8 sps:$4 sm:$0xff]   ;;  %v5576_v43 = vld [vmem:[%s7778_s1 + $0x584] ss:$8 sps:$4 sm:$0xff]   ;;  %v657_v2 = vcombine.high %v7036_v11, %v7036_v11  ;;  %v7237_v21 = vrot.slane %v7012_v3, %v6086_v51  ;;  %v757_v24 = vcombine.high %v7055_v17, %v7055_v17 }
 0x15b   :  { %3569 = vmatpush1.bf16.msra.mxu1 %v5562_v37  ;;  %v5571_v42 = vld [vmem:[%s7778_s1 + $0xc70] ss:$8 sps:$4 sm:$0xff]   ;;  %v5579_v44 = vld [vmem:[%s7778_s1 + $0xc84] ss:$8 sps:$4 sm:$0xff]   ;;  %v5574_v46 = vld [vmem:[%s7778_s1 + $0x580] ss:$8 sps:$4 sm:$0xff]  }
 0x15c   :  { %3856 = vmatpush1.bf16.msra.mxu0 %v5565_v38  ;;  %3570 = vmatprep.subr.bf16.mxu1 %v5570_v19  ;;  %v5577_v47 = vld [vmem:[%s7778_s1 + $0xc80] ss:$8 sps:$4 sm:$0xff]   ;;  %v5582_v49 = vld [vmem:[%s7778_s1 + $0x594] ss:$8 sps:$4 sm:$0xff]   ;;  %v5580_v54 = vld [vmem:[%s7778_s1 + $0x590] ss:$8 sps:$4 sm:$0xff]  }
 0x15d   :  { %3857 = vmatprep.subr.bf16.mxu0 %v5573_v40  ;;  %v5585_v53 = vld [vmem:[%s7778_s1 + $0xc94] ss:$8 sps:$4 sm:$0xff]   ;;  %v5583_v55 = vld [vmem:[%s7778_s1 + $0xc90] ss:$8 sps:$4 sm:$0xff]   ;;  %v5588_v28 = vld [vmem:[%s7778_s1 + $0x5a4] ss:$8 sps:$4 sm:$0xff]  }
 0x15e   :  { %v5591_v57 = vld [vmem:[%s7778_s1 + $0xca4] ss:$8 sps:$4 sm:$0xff]   ;;  %v5586_v58 = vld [vmem:[%s7778_s1 + $0x5a0] ss:$8 sps:$4 sm:$0xff]   ;;  %v5594_v59 = vld [vmem:[%s7778_s1 + $0x5b4] ss:$8 sps:$4 sm:$0xff]  }
 0x15f   :  { %3571 = vmatpush1.bf16.msra.mxu1 %v5568_v48  ;;  %v5589_v39 = vld [vmem:[%s7778_s1 + $0xca0] ss:$8 sps:$4 sm:$0xff]   ;;  %v5597_v60 = vld [vmem:[%s7778_s1 + $0xcb4] ss:$8 sps:$4 sm:$0xff]   ;;  %v5592_v61 = vld [vmem:[%s7778_s1 + $0x5b0] ss:$8 sps:$4 sm:$0xff]  }
 0x160   :  { %3858 = vmatpush1.bf16.msra.mxu0 %v5571_v42  ;;  %3572 = vmatprep.subr.bf16.mxu1 %v5576_v43  ;;  %v5595_v0 = vld [vmem:[%s7778_s1 + $0xcb0] ss:$8 sps:$4 sm:$0xff]   ;;  %v5600_v1 = vld [vmem:[%s7778_s1 + $0x5c4] ss:$8 sps:$4 sm:$0xff]   ;;  %v5598_v41 = vld [vmem:[%s7778_s1 + $0x5c0] ss:$8 sps:$4 sm:$0xff]  }
 0x161   :  { %3859 = vmatprep.subr.bf16.mxu0 %v5579_v44  ;;  %v5603_v50 = vld [vmem:[%s7778_s1 + $0xcc4] ss:$8 sps:$4 sm:$0xff]   ;;  %v5601_v5 = vld [vmem:[%s7778_s1 + $0xcc0] ss:$8 sps:$4 sm:$0xff]   ;;  %v5606_v6 = vld [vmem:[%s7778_s1 + $0x5d4] ss:$8 sps:$4 sm:$0xff]  }
 0x162   :  { %v5609_v36 = vld [vmem:[%s7778_s1 + $0xcd4] ss:$8 sps:$4 sm:$0xff]   ;;  %v5604_v7 = vld [vmem:[%s7778_s1 + $0x5d0] ss:$8 sps:$4 sm:$0xff]   ;;  %v5612_v9 = vld [vmem:[%s7778_s1 + $0x5e4] ss:$8 sps:$4 sm:$0xff]  }
 0x163   :  { %3573 = vmatpush1.bf16.msra.mxu1 %v5574_v46  ;;  %v5607_v8 = vld [vmem:[%s7778_s1 + $0xcd0] ss:$8 sps:$4 sm:$0xff]   ;;  %v5615_v10 = vld [vmem:[%s7778_s1 + $0xce4] ss:$8 sps:$4 sm:$0xff]   ;;  %v5610_v12 = vld [vmem:[%s7778_s1 + $0x5e0] ss:$8 sps:$4 sm:$0xff]  }
 0x164   :  { %3860 = vmatpush1.bf16.msra.mxu0 %v5577_v47  ;;  %3574 = vmatprep.subr.bf16.mxu1 %v5582_v49  ;;  %v5613_v13 = vld [vmem:[%s7778_s1 + $0xce0] ss:$8 sps:$4 sm:$0xff]   ;;  %v5618_v15 = vld [vmem:[%s7778_s1 + $0x5f4] ss:$8 sps:$4 sm:$0xff]   ;;  %v5616_v63 = vld [vmem:[%s7778_s1 + $0x5f0] ss:$8 sps:$4 sm:$0xff]  }
 0x165   :  { %3861 = vmatprep.subr.bf16.mxu0 %v5585_v53  ;;  %v5621_v56 = vld [vmem:[%s7778_s1 + $0xcf4] ss:$8 sps:$4 sm:$0xff]   ;;  %v5619_v16 = vld [vmem:[%s7778_s1 + $0xcf0] ss:$8 sps:$4 sm:$0xff]   ;;  %v5624_v18 = vld [vmem:[%s7778_s1 + $0x604] ss:$8 sps:$4 sm:$0xff]  }
 0x166   :  { %v5627_v20 = vld [vmem:[%s7778_s1 + $0xd04] ss:$8 sps:$4 sm:$0xff]   ;;  %v5622_v22 = vld [vmem:[%s7778_s1 + $0x600] ss:$8 sps:$4 sm:$0xff]   ;;  %v5630_v11 = vld [vmem:[%s7778_s1 + $0x614] ss:$8 sps:$4 sm:$0xff]  }
 0x167   :  { %3575 = vmatpush1.bf16.msra.mxu1 %v5580_v54  ;;  %v5625_v23 = vld [vmem:[%s7778_s1 + $0xd00] ss:$8 sps:$4 sm:$0xff]   ;;  %v5633_v3 = vld [vmem:[%s7778_s1 + $0xd14] ss:$8 sps:$4 sm:$0xff]   ;;  %v5628_v25 = vld [vmem:[%s7778_s1 + $0x610] ss:$8 sps:$4 sm:$0xff]  }
 0x168   :  { %3862 = vmatpush1.bf16.msra.mxu0 %v5583_v55  ;;  %3576 = vmatprep.subr.bf16.mxu1 %v5588_v28  ;;  %v5631_v26 = vld [vmem:[%s7778_s1 + $0xd10] ss:$8 sps:$4 sm:$0xff]   ;;  %v5636_v27 = vld [vmem:[%s7778_s1 + $0x624] ss:$8 sps:$4 sm:$0xff]   ;;  %v5634_v52 = vld [vmem:[%s7778_s1 + $0x620] ss:$8 sps:$4 sm:$0xff]  }
 0x169   :  { %3863 = vmatprep.subr.bf16.mxu0 %v5591_v57  ;;  %v5639_v17 = vld [vmem:[%s7778_s1 + $0xd24] ss:$8 sps:$4 sm:$0xff]   ;;  %v5637_v29 = vld [vmem:[%s7778_s1 + $0xd20] ss:$8 sps:$4 sm:$0xff]   ;;  %v5642_v30 = vld [vmem:[%s7778_s1 + $0x634] ss:$8 sps:$4 sm:$0xff]  }
 0x16a   :  { %v5640_v31 = vld [vmem:[%s7778_s1 + $0x630] ss:$8 sps:$4 sm:$0xff]   ;;  %v5648_v33 = vld [vmem:[%s7778_s1 + $0x644] ss:$8 sps:$4 sm:$0xff]   ;;  %v5646_v35 = vld [vmem:[%s7778_s1 + $0x640] ss:$8 sps:$4 sm:$0xff]  }
 0x16b   :  { %3577 = vmatpush1.bf16.msra.mxu1 %v5586_v58  ;;  %v5643_v32 = vld [vmem:[%s7778_s1 + $0xd30] ss:$8 sps:$4 sm:$0xff]   ;;  %v5651_v34 = vld [vmem:[%s7778_s1 + $0xd44] ss:$8 sps:$4 sm:$0xff]   ;;  %v5649_v37 = vld [vmem:[%s7778_s1 + $0xd40] ss:$8 sps:$4 sm:$0xff]  }
 0x16c   :  { %3864 = vmatpush1.bf16.msra.mxu0 %v5589_v39  ;;  %3578 = vmatprep.subr.bf16.mxu1 %v5594_v59  ;;  %v5654_v38 = vld [vmem:[%s7778_s1 + $0x654] ss:$8 sps:$4 sm:$0xff]   ;;  %v5652_v40 = vld [vmem:[%s7778_s1 + $0x650] ss:$8 sps:$4 sm:$0xff]   ;;  %v5660_v42 = vld [vmem:[%s7778_s1 + $0x664] ss:$8 sps:$4 sm:$0xff]  }
 0x16d   :  { %3865 = vmatprep.subr.bf16.mxu0 %v5597_v60  ;;  %v5657_v19 = vld [vmem:[%s7778_s1 + $0xd54] ss:$8 sps:$4 sm:$0xff]   ;;  %v5655_v48 = vld [vmem:[%s7778_s1 + $0xd50] ss:$8 sps:$4 sm:$0xff]   ;;  %v5663_v43 = vld [vmem:[%s7778_s1 + $0xd64] ss:$8 sps:$4 sm:$0xff]  }
 0x16e   :  { %v5658_v44 = vld [vmem:[%s7778_s1 + $0x660] ss:$8 sps:$4 sm:$0xff]   ;;  %v5666_v47 = vld [vmem:[%s7778_s1 + $0x674] ss:$8 sps:$4 sm:$0xff]   ;;  %v5664_v53 = vld [vmem:[%s7778_s1 + $0x670] ss:$8 sps:$4 sm:$0xff]  }
 0x16f   :  { %3579 = vmatpush1.bf16.msra.mxu1 %v5592_v61  ;;  %v5661_v46 = vld [vmem:[%s7778_s1 + $0xd60] ss:$8 sps:$4 sm:$0xff]   ;;  %v5669_v49 = vld [vmem:[%s7778_s1 + $0xd74] ss:$8 sps:$4 sm:$0xff]   ;;  %v5667_v54 = vld [vmem:[%s7778_s1 + $0xd70] ss:$8 sps:$4 sm:$0xff]  }
 0x170   :  { %3866 = vmatpush1.bf16.msra.mxu0 %v5595_v0  ;;  %3580 = vmatprep.subr.bf16.mxu1 %v5600_v1  ;;  %v5672_v55 = vld [vmem:[%s7778_s1 + $0x684] ss:$8 sps:$4 sm:$0xff]   ;;  %v5670_v57 = vld [vmem:[%s7778_s1 + $0x680] ss:$8 sps:$4 sm:$0xff]   ;;  %v5678_v39 = vld [vmem:[%s7778_s1 + $0x694] ss:$8 sps:$4 sm:$0xff]  }
 0x171   :  { %3867 = vmatprep.subr.bf16.mxu0 %v5603_v50  ;;  %v5675_v28 = vld [vmem:[%s7778_s1 + $0xd84] ss:$8 sps:$4 sm:$0xff]   ;;  %v5673_v58 = vld [vmem:[%s7778_s1 + $0xd80] ss:$8 sps:$4 sm:$0xff]   ;;  %v5681_v59 = vld [vmem:[%s7778_s1 + $0xd94] ss:$8 sps:$4 sm:$0xff]  }
 0x172   :  { %v5676_v60 = vld [vmem:[%s7778_s1 + $0x690] ss:$8 sps:$4 sm:$0xff]   ;;  %v5684_v0 = vld [vmem:[%s7778_s1 + $0x6a4] ss:$8 sps:$4 sm:$0xff]   ;;  %v5682_v50 = vld [vmem:[%s7778_s1 + $0x6a0] ss:$8 sps:$4 sm:$0xff]  }
 0x173   :  { %3581 = vmatpush1.bf16.msra.mxu1 %v5598_v41  ;;  %v5679_v61 = vld [vmem:[%s7778_s1 + $0xd90] ss:$8 sps:$4 sm:$0xff]   ;;  %v5687_v1 = vld [vmem:[%s7778_s1 + $0xda4] ss:$8 sps:$4 sm:$0xff]   ;;  %v5685_v41 = vld [vmem:[%s7778_s1 + $0xda0] ss:$8 sps:$4 sm:$0xff]  }
 0x174   :  { %3868 = vmatpush1.bf16.msra.mxu0 %v5601_v5  ;;  %3582 = vmatprep.subr.bf16.mxu1 %v5606_v6  ;;  %v5690_v5 = vld [vmem:[%s7778_s1 + $0x6b4] ss:$8 sps:$4 sm:$0xff]   ;;  %s5898_s25 = smov [#allocation2]   ;;  %vm4359_vm0 = vcmask 254976  }
 0x175   :  { %3869 = vmatprep.subr.bf16.mxu0 %v5609_v36  ;;  %v5693_v6 = vld [vmem:[%s7778_s1 + $0xdb4] ss:$8 sps:$4 sm:$0xff]   ;;  %v5688_v36 = vld [vmem:[%s7778_s1 + $0x6b0] ss:$8 sps:$4 sm:$0xff]   ;;  %s4368_s26 = sshll.u32 %s5898_s25, 4  ;;  %s4369_s26 = int_to_ptr.vmem [resolvable:$true] %s4368_s26 }
 0x176   :  { %p5854_p1 = scmp.lt.s32.totalorder %s4369_s26, %s4369_s26 }
 0x177   :  { %3583 = vmatpush1.bf16.msra.mxu1 %v5604_v7  ;;  %v5691_v7 = vld [vmem:[%s7778_s1 + $0xdb0] ss:$8 sps:$4 sm:$0xff]  }
 0x178   :  { %3870 = vmatpush1.bf16.msra.mxu0 %v5607_v8  ;;  %3584 = vmatprep.subr.bf16.mxu1 %v5612_v9  ;;  %v5696_v8 = vld [vmem:[%s7778_s1 + $0x6c4] ss:$8 sps:$4 sm:$0xff]  }
 0x179   :  { %3871 = vmatprep.subr.bf16.mxu0 %v5615_v10  ;;  %v5699_v9 = vld [vmem:[%s7778_s1 + $0xdc4] ss:$8 sps:$4 sm:$0xff]   ;;  %v5694_v10 = vld [vmem:[%s7778_s1 + $0x6c0] ss:$8 sps:$4 sm:$0xff]  }
 0x17b   :  { %3585 = vmatpush1.bf16.msra.mxu1 %v5610_v12  ;;  %v5697_v12 = vld [vmem:[%s7778_s1 + $0xdc0] ss:$8 sps:$4 sm:$0xff]  }
 0x17c   :  { %3872 = vmatpush1.bf16.msra.mxu0 %v5613_v13  ;;  %3586 = vmatprep.subr.bf16.mxu1 %v5618_v15  ;;  %v5702_v13 = vld [vmem:[%s7778_s1 + $0x6d4] ss:$8 sps:$4 sm:$0xff]  }
 0x17d   :  { %3873 = vmatprep.subr.bf16.mxu0 %v5621_v56  ;;  %v5705_v15 = vld [vmem:[%s7778_s1 + $0xdd4] ss:$8 sps:$4 sm:$0xff]   ;;  %v5700_v56 = vld [vmem:[%s7778_s1 + $0x6d0] ss:$8 sps:$4 sm:$0xff]  }
 0x17f   :  { %3587 = vmatpush1.bf16.msra.mxu1 %v5616_v63  ;;  %v5703_v63 = vld [vmem:[%s7778_s1 + $0xdd0] ss:$8 sps:$4 sm:$0xff]  }
 0x180   :  { %3874 = vmatpush1.bf16.msra.mxu0 %v5619_v16  ;;  %3597 = vmatprep.subr.bf16.mxu1 %v5624_v18  ;;  %v710_v16 = vcombine.high %v6996_v62, %v6996_v62  ;;  %v5708_v18 = vld [vmem:[%s7778_s1 + $0x6e4] ss:$8 sps:$4 sm:$0xff]   ;;  %v5709_v62 = vld [vmem:[%s7778_s1 + $0xde0] ss:$8 sps:$4 sm:$0xff]  }
 0x181   :  { %3884 = vmatprep.subr.bf16.mxu0 %v5627_v20  ;;  %v5711_v20 = vld [vmem:[%s7778_s1 + $0xde4] ss:$8 sps:$4 sm:$0xff]  }
 0x182   :  { %3589 = vmatmul.mubr.bf16.vlgmr.msra.gmra.mrb[0].mxu1 %v657_v2  ;;  %v5706_v2 = vld [vmem:[%s7778_s1 + $0x6e0] ss:$8 sps:$4 sm:$0xff]  }
 0x183   :  { %3876 = vmatmul.mubr.bf16.vlgmr.msra.gmra.mrb[0].mxu0 %v7237_v21  ;;  %3598 = vmatpush1.bf16.msra.mxu1 %v5622_v22  ;;  %v7420_v22 = vrot.slane %v710_v16, %v6086_v51  ;;  %v5816_v16 = vld [vmem:[%s7780_s3] sm:$0xff]  }
 0x184   :  { %3885 = vmatpush1.bf16.msra.mxu0 %v5625_v23  ;;  %3599 = vmatprep.subr.bf16.mxu1 %v5630_v11  ;;  %v5714_v23 = vld [vmem:[%s7778_s1 + $0x6f4] ss:$8 sps:$4 sm:$0xff]  }
 0x185   :  { %3886 = vmatprep.subr.bf16.mxu0 %v5633_v3  ;;  %3629 = vmatprep.mubr.bf16.mxu1 %v6125_v4  ;;  %v5645_v4 = vld [vmem:[%s7778_s1 + $0xd34] ss:$8 sps:$4 sm:$0xff]   ;;  %v5712_v3 = vld [vmem:[%s7778_s1 + $0x6f0] ss:$8 sps:$4 sm:$0xff]  }
 0x186   :  { %3916 = vmatprep.mubr.bf16.mxu0 %v757_v24  ;;  %v5717_v11 = vld [vmem:[%s7778_s1 + $0xdf4] ss:$8 sps:$4 sm:$0xff]   ;;  %v5715_v24 = vld [vmem:[%s7778_s1 + $0xdf0] ss:$8 sps:$4 sm:$0xff]  }
 0x187   :  { %3600 = vmatpush1.bf16.msra.mxu1 %v5628_v25  ;;  %v726_v25 = vcombine.high %v7420_v22, %v7420_v22 }
 0x188   :  { %3887 = vmatpush1.bf16.msra.mxu0 %v5631_v26  ;;  %3601 = vmatprep.subr.bf16.mxu1 %v5636_v27  ;;  %v5720_v26 = vld [vmem:[%s7778_s1 + $0xe04] ss:$8 sps:$4 sm:$0xff]   ;;  %v755_v27 = vcombine.high %v7237_v21, %v7237_v21  ;;  %v5721_v21 = vld [vmem:[%s7778_s1 + $0xe10] ss:$8 sps:$4 sm:$0xff]  }
 0x189   :  { %3888 = vmatprep.subr.bf16.mxu0 %v5639_v17  ;;  %v5718_v17 = vld [vmem:[%s7778_s1 + $0xe00] ss:$8 sps:$4 sm:$0xff]  }
 0x18b   :  { %3602 = vmatpush1.bf16.msra.mxu1 %v5634_v52  ;;  %v7445_v52 = vrot.slane %v726_v25, %v6086_v51  ;;  %v5794_v25 = vld [vmem:[%s7778_s1 + $0xf90] ss:$8 sps:$4 sm:$0xff]  }
 0x18c   :  { %3889 = vmatpush1.bf16.msra.mxu0 %v5637_v29  ;;  %3603 = vmatprep.subr.bf16.mxu1 %v5642_v30  ;;  %v5723_v29 = vld [vmem:[%s7778_s1 + $0xe14] ss:$8 sps:$4 sm:$0xff]   ;;  %v5726_v30 = vld [vmem:[%s7778_s1 + $0xe24] ss:$8 sps:$4 sm:$0xff]  }
 0x18d   :  { %3890 = vmatprep.subr.bf16.mxu0 %v5645_v4  ;;  %v5724_v4 = vld [vmem:[%s7778_s1 + $0xe20] ss:$8 sps:$4 sm:$0xff]  }
 0x18f   :  { %3604 = vmatpush1.bf16.msra.mxu1 %v5640_v31  ;;  %v5727_v31 = vld [vmem:[%s7778_s1 + $0xe30] ss:$8 sps:$4 sm:$0xff]  }
 0x190   :  { %3891 = vmatpush1.bf16.msra.mxu0 %v5643_v32  ;;  %3605 = vmatprep.subr.bf16.mxu1 %v5648_v33  ;;  %v5732_v32 = vld [vmem:[%s7778_s1 + $0xe44] ss:$8 sps:$4 sm:$0xff]   ;;  %v5730_v33 = vld [vmem:[%s7778_s1 + $0xe40] ss:$8 sps:$4 sm:$0xff]  }
 0x191   :  { %3892 = vmatprep.subr.bf16.mxu0 %v5651_v34  ;;  %v5735_v34 = vld [vmem:[%s7778_s1 + $0xe54] ss:$8 sps:$4 sm:$0xff]  }
 0x193   :  { %3606 = vmatpush1.bf16.msra.mxu1 %v5646_v35  ;;  %v5733_v35 = vld [vmem:[%s7778_s1 + $0xe50] ss:$8 sps:$4 sm:$0xff]  }
 0x194   :  { %3893 = vmatpush1.bf16.msra.mxu0 %v5649_v37  ;;  %3607 = vmatprep.subr.bf16.mxu1 %v5654_v38  ;;  %v5738_v37 = vld [vmem:[%s7778_s1 + $0xe64] ss:$8 sps:$4 sm:$0xff]   ;;  %v5736_v38 = vld [vmem:[%s7778_s1 + $0xe60] ss:$8 sps:$4 sm:$0xff]  }
 0x195   :  { %3894 = vmatprep.subr.bf16.mxu0 %v5657_v19  ;;  %v5741_v19 = vld [vmem:[%s7778_s1 + $0xe74] ss:$8 sps:$4 sm:$0xff]  }
 0x197   :  { %3608 = vmatpush1.bf16.msra.mxu1 %v5652_v40  ;;  %v5739_v40 = vld [vmem:[%s7778_s1 + $0xe70] ss:$8 sps:$4 sm:$0xff]  }
 0x198   :  { %3895 = vmatpush1.bf16.msra.mxu0 %v5655_v48  ;;  %3609 = vmatprep.subr.bf16.mxu1 %v5660_v42  ;;  %v5744_v48 = vld [vmem:[%s7778_s1 + $0xe84] ss:$8 sps:$4 sm:$0xff]   ;;  %v5742_v42 = vld [vmem:[%s7778_s1 + $0xe80] ss:$8 sps:$4 sm:$0xff]  }
 0x199   :  { %3896 = vmatprep.subr.bf16.mxu0 %v5663_v43  ;;  %v5747_v43 = vld [vmem:[%s7778_s1 + $0xe94] ss:$8 sps:$4 sm:$0xff]  }
 0x19b   :  { %3610 = vmatpush1.bf16.msra.mxu1 %v5658_v44  ;;  %v5745_v44 = vld [vmem:[%s7778_s1 + $0xe90] ss:$8 sps:$4 sm:$0xff]  }
 0x19c   :  { %3897 = vmatpush1.bf16.msra.mxu0 %v5661_v46  ;;  %3611 = vmatprep.subr.bf16.mxu1 %v5666_v47  ;;  %v5750_v46 = vld [vmem:[%s7778_s1 + $0xea4] ss:$8 sps:$4 sm:$0xff]   ;;  %v5748_v47 = vld [vmem:[%s7778_s1 + $0xea0] ss:$8 sps:$4 sm:$0xff]  }
 0x19d   :  { %3898 = vmatprep.subr.bf16.mxu0 %v5669_v49  ;;  %v5753_v49 = vld [vmem:[%s7778_s1 + $0xeb4] ss:$8 sps:$4 sm:$0xff]  }
 0x19f   :  { %3612 = vmatpush1.bf16.msra.mxu1 %v5664_v53  ;;  %v5751_v53 = vld [vmem:[%s7778_s1 + $0xeb0] ss:$8 sps:$4 sm:$0xff]  }
 0x1a0   :  { %3899 = vmatpush1.bf16.msra.mxu0 %v5667_v54  ;;  %3613 = vmatprep.subr.bf16.mxu1 %v5672_v55  ;;  %v5756_v54 = vld [vmem:[%s7778_s1 + $0xec4] ss:$8 sps:$4 sm:$0xff]   ;;  %v5754_v55 = vld [vmem:[%s7778_s1 + $0xec0] ss:$8 sps:$4 sm:$0xff]  }
 0x1a1   :  { %3900 = vmatprep.subr.bf16.mxu0 %v5675_v28  ;;  %v5759_v28 = vld [vmem:[%s7778_s1 + $0xed4] ss:$8 sps:$4 sm:$0xff]  }
 0x1a3   :  { %3614 = vmatpush1.bf16.msra.mxu1 %v5670_v57  ;;  %v5757_v57 = vld [vmem:[%s7778_s1 + $0xed0] ss:$8 sps:$4 sm:$0xff]  }
 0x1a4   :  { %3901 = vmatpush1.bf16.msra.mxu0 %v5673_v58  ;;  %3615 = vmatprep.subr.bf16.mxu1 %v5678_v39  ;;  %v5762_v58 = vld [vmem:[%s7778_s1 + $0xee4] ss:$8 sps:$4 sm:$0xff]   ;;  %v5760_v39 = vld [vmem:[%s7778_s1 + $0xee0] ss:$8 sps:$4 sm:$0xff]  }
 0x1a5   :  { %3902 = vmatprep.subr.bf16.mxu0 %v5681_v59  ;;  %v5765_v59 = vld [vmem:[%s7778_s1 + $0xef4] ss:$8 sps:$4 sm:$0xff]  }
 0x1a7   :  { %3616 = vmatpush1.bf16.msra.mxu1 %v5676_v60  ;;  %v5763_v60 = vld [vmem:[%s7778_s1 + $0xef0] ss:$8 sps:$4 sm:$0xff]  }
 0x1a8   :  { %3903 = vmatpush1.bf16.msra.mxu0 %v5679_v61  ;;  %3617 = vmatprep.subr.bf16.mxu1 %v5684_v0  ;;  %v5769_v61 = vld [vmem:[%s7778_s1 + $0xf04] ss:$8 sps:$4 sm:$0xff]   ;;  %v7544_v0 = vrot.slane %v7420_v22, %v6086_v51  ;;  %v5770_v51 = vld [vmem:[%s7778_s1 + $0xf10] ss:$8 sps:$4 sm:$0xff]  }
 0x1a9   :  { %3904 = vmatprep.subr.bf16.mxu0 %v5687_v1  ;;  %v5767_v1 = vld [vmem:[%s7778_s1 + $0xf00] ss:$8 sps:$4 sm:$0xff]   ;;  %v5819_v22 = vld [vmem:[%s7780_s3 + $0x50] sm:$0xff]  }
 0x1ab   :  { %3618 = vmatpush1.bf16.msra.mxu1 %v5682_v50  ;;  %v758_v50 = vcombine.high %v7445_v52, %v7445_v52 }
 0x1ac   :  { %3905 = vmatpush1.bf16.msra.mxu0 %v5685_v41  ;;  %3619 = vmatprep.subr.bf16.mxu1 %v5690_v5  ;;  %v5772_v41 = vld [vmem:[%s7778_s1 + $0xf14] ss:$8 sps:$4 sm:$0xff]   ;;  %v5775_v5 = vld [vmem:[%s7778_s1 + $0xf24] ss:$8 sps:$4 sm:$0xff]  }
 0x1ad   :  { %3906 = vmatprep.subr.bf16.mxu0 %v5693_v6  ;;  %v5773_v6 = vld [vmem:[%s7778_s1 + $0xf20] ss:$8 sps:$4 sm:$0xff]  }
 0x1af   :  { %3620 = vmatpush1.bf16.msra.mxu1 %v5688_v36  ;;  %v5778_v36 = vld [vmem:[%s7778_s1 + $0xf34] ss:$8 sps:$4 sm:$0xff]  }
 0x1b0   :  { %3907 = vmatpush1.bf16.msra.mxu0 %v5691_v7  ;;  %3621 = vmatprep.subr.bf16.mxu1 %v5696_v8  ;;  %v5776_v7 = vld [vmem:[%s7778_s1 + $0xf30] ss:$8 sps:$4 sm:$0xff]   ;;  %v5781_v8 = vld [vmem:[%s7778_s1 + $0xf44] ss:$8 sps:$4 sm:$0xff]  }
 0x1b1   :  { %3908 = vmatprep.subr.bf16.mxu0 %v5699_v9  ;;  %v5779_v9 = vld [vmem:[%s7778_s1 + $0xf40] ss:$8 sps:$4 sm:$0xff]  }
 0x1b3   :  { %3622 = vmatpush1.bf16.msra.mxu1 %v5694_v10  ;;  %v5784_v10 = vld [vmem:[%s7778_s1 + $0xf54] ss:$8 sps:$4 sm:$0xff]  }
 0x1b4   :  { %3909 = vmatpush1.bf16.msra.mxu0 %v5697_v12  ;;  %3623 = vmatprep.subr.bf16.mxu1 %v5702_v13  ;;  %v5782_v12 = vld [vmem:[%s7778_s1 + $0xf50] ss:$8 sps:$4 sm:$0xff]   ;;  %v5787_v13 = vld [vmem:[%s7778_s1 + $0xf64] ss:$8 sps:$4 sm:$0xff]  }
 0x1b5   :  { %3910 = vmatprep.subr.bf16.mxu0 %v5705_v15  ;;  %v5785_v15 = vld [vmem:[%s7778_s1 + $0xf60] ss:$8 sps:$4 sm:$0xff]  }
 0x1b7   :  { %3624 = vmatpush1.bf16.msra.mxu1 %v5700_v56  ;;  %v5790_v56 = vld [vmem:[%s7778_s1 + $0xf74] ss:$8 sps:$4 sm:$0xff]  }
 0x1b8   :  { %3911 = vmatpush1.bf16.msra.mxu0 %v5703_v63  ;;  %3625 = vmatprep.subr.bf16.mxu1 %v5708_v18  ;;  %v5815_v63 = vld [vmem:[%s7780_s3 + $0x40] sm:$0xff]   ;;  %v5817_v18 = vld [vmem:[%s7780_s3 + $0x48] sm:$0xff]  }
 0x1b9   :  { %3912 = vmatprep.subr.bf16.mxu0 %v5711_v20  ;;  %v5788_v20 = vld [vmem:[%s7778_s1 + $0xf70] ss:$8 sps:$4 sm:$0xff]  }
 0x1bb   :  { %3626 = vmatpush1.bf16.msra.mxu1 %v5706_v2  ;;  %v5818_v2 = vld [vmem:[%s7780_s3 + $0x8] sm:$0xff]  }
 0x1bc   :  { %3913 = vmatpush1.bf16.msra.mxu0 %v5709_v62  ;;  %3627 = vmatprep.subr.bf16.mxu1 %v5714_v23  ;;  %v5793_v62 = vld [vmem:[%s7778_s1 + $0xf84] ss:$8 sps:$4 sm:$0xff]   ;;  %v5791_v23 = vld [vmem:[%s7778_s1 + $0xf80] ss:$8 sps:$4 sm:$0xff]  }
 0x1bd   :  { %3914 = vmatprep.subr.bf16.mxu0 %v5717_v11  ;;  %v5820_v11 = vld [vmem:[%s7780_s3 + $0x10] sm:$0xff]  }
 0x1bf   :  { %3628 = vmatpush1.bf16.msra.mxu1 %v5712_v3  ;;  %v5796_v3 = vld [vmem:[%s7778_s1 + $0xf94] ss:$8 sps:$4 sm:$0xff]  }
 0x1c0   :  { %3915 = vmatpush1.bf16.msra.mxu0 %v5715_v24  ;;  %4936 = vmatprep.subr.bf16.mxu1 %v5815_v63  ;;  %v5821_v24 = vld [vmem:[%s7780_s3 + $0x58] sm:$0xff]   ;;  %v5842_v63 = vld [vmem:[%s7782_s5 + $0x28] sm:$0xff]  }
 0x1c1   :  { %3925 = vmatprep.subr.bf16.mxu0 %v5720_v26  ;;  %v5822_v26 = vld [vmem:[%s7780_s3 + $0x18] sm:$0xff]  }
 0x1c2   :  { %3630 = vmatmul.mubr.bf16.vlgmr.msra.gmra.mrb[0].mxu1 %v6154_v14  ;;  %v5729_v14 = vld [vmem:[%s7778_s1 + $0xe34] ss:$8 sps:$4 sm:$0xff]  }
 0x1c3   :  { %3917 = vmatmul.mubr.bf16.vlgmr.msra.gmra.mrb[0].mxu0 %v755_v27  ;;  %4937 = vmatpush3.bf16.msra.mxu1 %v5816_v16  ;;  %v5799_v27 = vld [vmem:[%s7778_s1 + $0xfa4] ss:$8 sps:$4 sm:$0xff]   ;;  %v5843_v16 = vld [vmem:[%s7782_s5 + $0x70] sm:$0xff]  }
 0x1c4   :  { %3926 = vmatpush1.bf16.msra.mxu0 %v5718_v17  ;;  %3957 = vmatprep.mubr.bf16.mxu0 %v7445_v52  ;;  %v5823_v17 = vld [vmem:[%s7780_s3 + $0x60] sm:$0xff]  }
 0x1c5   :  { %3927 = vmatprep.subr.bf16.mxu0 %v5723_v29  ;;  %4938 = vmatprep.subr.bf16.mxu1 %v5817_v18  ;;  %v5797_v52 = vld [vmem:[%s7778_s1 + $0xfa0] ss:$8 sps:$4 sm:$0xff]   ;;  %v5844_v18 = vld [vmem:[%s7782_s5 + $0x30] sm:$0xff]  }
 0x1c6   :  { %v5824_v29 = vld [vmem:[%s7780_s3 + $0x20] sm:$0xff]  }
 0x1c7   :  { %4939 = vmatpush3.bf16.msra.mxu1 %v5818_v2  ;;  %v5846_v2 = vld [vmem:[%s7782_s5 + $0x38] sm:$0xff]  }
 0x1c8   :  { %3928 = vmatpush1.bf16.msra.mxu0 %v5721_v21  ;;  %4940 = vmatprep.subr.bf16.mxu1 %v5819_v22  ;;  %v5802_v21 = vld [vmem:[%s7778_s1 + $0xfb4] ss:$8 sps:$4 sm:$0xff]  }
 0x1c9   :  { %3929 = vmatprep.subr.bf16.mxu0 %v5726_v30  ;;  %v5825_v30 = vld [vmem:[%s7780_s3 + $0x68] sm:$0xff]  }
 0x1cb   :  { %4941 = vmatpush3.bf16.msra.mxu1 %v5820_v11 }
 0x1cc   :  { %3930 = vmatpush1.bf16.msra.mxu0 %v5724_v4  ;;  %4942 = vmatprep.subr.bf16.mxu1 %v5821_v24  ;;  %v5800_v4 = vld [vmem:[%s7778_s1 + $0xfb0] ss:$8 sps:$4 sm:$0xff]  }
 0x1cd   :  { %3931 = vmatprep.subr.bf16.mxu0 %v5729_v14  ;;  %v5826_v14 = vld [vmem:[%s7780_s3 + $0x28] sm:$0xff]  }
 0x1cf   :  { %4943 = vmatpush3.bf16.msra.mxu1 %v5822_v26 }
 0x1d0   :  { %3932 = vmatpush1.bf16.msra.mxu0 %v5727_v31  ;;  %4944 = vmatprep.subr.bf16.mxu1 %v5823_v17  ;;  %v5805_v31 = vld [vmem:[%s7778_s1 + $0xfc4] ss:$8 sps:$4 sm:$0xff]  }
 0x1d1   :  { %3933 = vmatprep.subr.bf16.mxu0 %v5732_v32  ;;  %v5827_v32 = vld [vmem:[%s7780_s3 + $0x70] sm:$0xff]  }
 0x1d3   :  { %4945 = vmatpush3.bf16.msra.mxu1 %v5824_v29 }
 0x1d4   :  { %3934 = vmatpush1.bf16.msra.mxu0 %v5730_v33  ;;  %4946 = vmatprep.subr.bf16.mxu1 %v5825_v30  ;;  %v5803_v33 = vld [vmem:[%s7778_s1 + $0xfc0] ss:$8 sps:$4 sm:$0xff]  }
 0x1d5   :  { %3935 = vmatprep.subr.bf16.mxu0 %v5735_v34  ;;  %v5828_v34 = vld [vmem:[%s7780_s3 + $0x30] sm:$0xff]  }
 0x1d7   :  { %4947 = vmatpush3.bf16.msra.mxu1 %v5826_v14 }
 0x1d8   :  { %3936 = vmatpush1.bf16.msra.mxu0 %v5733_v35  ;;  %v5808_v35 = vld [vmem:[%s7778_s1 + $0xfd4] ss:$8 sps:$4 sm:$0xff]   ;;  %4948 = vmatprep.subr.bf16.mxu1 %v5827_v32 }
 0x1d9   :  { %3937 = vmatprep.subr.bf16.mxu0 %v5738_v37  ;;  %v5806_v37 = vld [vmem:[%s7778_s1 + $0xfd0] ss:$8 sps:$4 sm:$0xff]  }
 0x1db   :  { %4949 = vmatpush3.bf16.msra.mxu1 %v5828_v34 }
 0x1dc   :  { %3938 = vmatpush1.bf16.msra.mxu0 %v5736_v38  ;;  %v5811_v38 = vld [vmem:[%s7778_s1 + $0xfe4] ss:$8 sps:$4 sm:$0xff]  }
 0x1dd   :  { %3939 = vmatprep.subr.bf16.mxu0 %v5741_v19  ;;  %v5809_v19 = vld [vmem:[%s7778_s1 + $0xfe0] ss:$8 sps:$4 sm:$0xff]  }
 0x1e0   :  { %3940 = vmatpush1.bf16.msra.mxu0 %v5739_v40  ;;  %v5814_v40 = vld [vmem:[%s7778_s1 + $0xff4] ss:$8 sps:$4 sm:$0xff]  }
 0x1e1   :  { %3941 = vmatprep.subr.bf16.mxu0 %v5744_v48  ;;  %v5812_v48 = vld [vmem:[%s7778_s1 + $0xff0] ss:$8 sps:$4 sm:$0xff]  }
 0x1e4   :  { %3942 = vmatpush1.bf16.msra.mxu0 %v5742_v42  ;;  %v756_v42 = vcombine.high %v7544_v0, %v7544_v0 }
 0x1e5   :  { %3943 = vmatprep.subr.bf16.mxu0 %v5747_v43 }
 0x1e8   :  { %3944 = vmatpush1.bf16.msra.mxu0 %v5745_v44  ;;  %v5829_v44 = vld [vmem:[%s7780_s3 + $0x78] sm:$0xff]  }
 0x1e9   :  { %3945 = vmatprep.subr.bf16.mxu0 %v5750_v46  ;;  %4950 = vmatprep.subr.bf16.mxu1 %v5829_v44 }
 0x1ec   :  { %3946 = vmatpush1.bf16.msra.mxu0 %v5748_v47  ;;  %v5830_v47 = vld [vmem:[%s7780_s3 + $0x38] sm:$0xff]  }
 0x1ed   :  { %3947 = vmatprep.subr.bf16.mxu0 %v5753_v49  ;;  %4951 = vmatpush3.bf16.msra.mxu1 %v5830_v47 }
 0x1f0   :  { %3948 = vmatpush1.bf16.msra.mxu0 %v5751_v53 }
 0x1f1   :  { %3949 = vmatprep.subr.bf16.mxu0 %v5756_v54  ;;  %v5831_v54 = vld [vmem:[%s7782_s5 + $0x40] sm:$0xff]  }
 0x1f2   :  { %4958 = vmatprep.subr.bf16.mxu1 %v5831_v54 }
 0x1f4   :  { %3950 = vmatpush1.bf16.msra.mxu0 %v5754_v55  ;;  %v551_v55 = vsub.s32 0, %v6071_v45 }
 0x1f5   :  { %3951 = vmatprep.subr.bf16.mxu0 %v5759_v28  ;;  %v547_v28 = vld [vmem:[%s7779_s2] sm:$0x3] }
 0x1f8   :  { %3952 = vmatpush1.bf16.msra.mxu0 %v5757_v57  ;;  %v555_v57 = vsub.s32 1, %v6071_v45  ;;  %v5833_v45 = vld [vmem:[%s7782_s5 + $0x48] sm:$0xff]  }
 0x1f9   :  { %3953 = vmatprep.subr.bf16.mxu0 %v5762_v58  ;;  %v552_v58 = vrot.slane %v547_v28, %v551_v55 }
 0x1fc   :  { %3954 = vmatpush1.bf16.msra.mxu0 %v5760_v39  ;;  %v556_v39 = vrot.slane %v547_v28, %v555_v57 }
 0x1fd   :  { %3955 = vmatprep.subr.bf16.mxu0 %v5765_v59 }
 0x200   :  { %3956 = vmatpush1.bf16.msra.mxu0 %v5763_v60 }
 0x201   :  { %3966 = vmatprep.subr.bf16.mxu0 %v5769_v61 }
 0x203   :  { %3958 = vmatmul.mubr.bf16.vlgmr.msra.gmra.mrb[0].mxu0 %v7544_v0 }
 0x204   :  { %3967 = vmatpush1.bf16.msra.mxu0 %v5767_v1  ;;  %3998 = vmatprep.mubr.bf16.mxu0 %v758_v50 }
 0x205   :  { %3968 = vmatprep.subr.bf16.mxu0 %v5772_v41 }
 0x208   :  { %3969 = vmatpush1.bf16.msra.mxu0 %v5770_v51 }
 0x209   :  { %3970 = vmatprep.subr.bf16.mxu0 %v5775_v5 }
 0x20c   :  { %3971 = vmatpush1.bf16.msra.mxu0 %v5773_v6  ;;  %v5832_v6 = vld [vmem:[%s7782_s5] sm:$0xff]  }
 0x20d   :  { %3972 = vmatprep.subr.bf16.mxu0 %v5778_v36 }
 0x210   :  { %3973 = vmatpush1.bf16.msra.mxu0 %v5776_v7  ;;  %v5834_v7 = vld [vmem:[%s7782_s5 + $0x8] sm:$0xff]  }
 0x211   :  { %3974 = vmatprep.subr.bf16.mxu0 %v5781_v8  ;;  %v5835_v8 = vld [vmem:[%s7782_s5 + $0x50] sm:$0xff]  }
 0x214   :  { %3975 = vmatpush1.bf16.msra.mxu0 %v5779_v9  ;;  %v5836_v9 = vld [vmem:[%s7782_s5 + $0x10] sm:$0xff]  }
 0x215   :  { %3976 = vmatprep.subr.bf16.mxu0 %v5784_v10  ;;  %v5837_v10 = vld [vmem:[%s7782_s5 + $0x58] sm:$0xff]  }
 0x218   :  { %3977 = vmatpush1.bf16.msra.mxu0 %v5782_v12  ;;  %v5838_v12 = vld [vmem:[%s7782_s5 + $0x18] sm:$0xff]  }
 0x219   :  { %3978 = vmatprep.subr.bf16.mxu0 %v5787_v13  ;;  %v5839_v13 = vld [vmem:[%s7782_s5 + $0x60] sm:$0xff]  }
 0x21c   :  { %3979 = vmatpush1.bf16.msra.mxu0 %v5785_v15  ;;  %v5840_v15 = vld [vmem:[%s7782_s5 + $0x20] sm:$0xff]  }
 0x21d   :  { %3980 = vmatprep.subr.bf16.mxu0 %v5790_v56  ;;  %v5841_v56 = vld [vmem:[%s7782_s5 + $0x68] sm:$0xff]  }
 0x220   :  { %3981 = vmatpush1.bf16.msra.mxu0 %v5788_v20  ;;  %v5845_v20 = vld [vmem:[%s7782_s5 + $0x78] sm:$0xff]   ;;  %s5849_s5 = scalar_lea.vmem %s4369_s26, 32 }
 0x221   :  { %3982 = vmatprep.subr.bf16.mxu0 %v5793_v62  ;;  %p5850_p0 = scmp.ne.s32.totalorder %s4369_s26, %s5849_s5  ;;  %p5855_p2 = scmp.lt.s32.totalorder %s5849_s5, %s5849_s5 }
 0x223   :  { %p5856_p3 = por %p5855_p2, %p5854_p1 }
 0x224   :  { %3983 = vmatpush1.bf16.msra.mxu0 %v5791_v23  ;;  %v4902_v23 = vld [vmem:[%s7781_s4] ss:$0 sm:$0xff] }
 0x225   :  { %3984 = vmatprep.subr.bf16.mxu0 %v5796_v3  ;;  %p5857_p4 = pnand %p5856_p3, %p5850_p0 }
 0x228   :  { %3985 = vmatpush1.bf16.msra.mxu0 %v5794_v25 }
 0x229   :  { %3986 = vmatprep.subr.bf16.mxu0 %v5799_v27 }
 0x22c   :  { %3987 = vmatpush1.bf16.msra.mxu0 %v5797_v52 }
 0x22d   :  { %3988 = vmatprep.subr.bf16.mxu0 %v5802_v21 }
 0x230   :  { %3989 = vmatpush1.bf16.msra.mxu0 %v5800_v4 }
 0x231   :  { %3990 = vmatprep.subr.bf16.mxu0 %v5805_v31 }
 0x234   :  { %3991 = vmatpush1.bf16.msra.mxu0 %v5803_v33 }
 0x235   :  { %3992 = vmatprep.subr.bf16.mxu0 %v5808_v35 }
 0x238   :  { %3993 = vmatpush1.bf16.msra.mxu0 %v5806_v37 }
 0x239   :  { %3994 = vmatprep.subr.bf16.mxu0 %v5811_v38 }
 0x23c   :  { %3995 = vmatpush1.bf16.msra.mxu0 %v5809_v19 }
 0x23d   :  { %3996 = vmatprep.subr.bf16.mxu0 %v5814_v40 }
 0x240   :  { %3997 = vmatpush1.bf16.msra.mxu0 %v5812_v48 }
 0x243   :  { %3999 = vmatmul.mubr.bf16.vlgmr.msra.gmra.mrb[0].mxu0 %v756_v42 }
 0x295   :  { %v3631_v43 = vpop.f32.mrb[0].mxu1 }
 0x296   :  { %v3633_v46 = vpop.f32.mrb[1].mxu1  ;;  %v4980_v59 = vadd.f32 %v3631_v43, %v552_v58 }
 0x297   :  { %v3635_v49 = vpop.f32.mrb[2].mxu1  ;;  %v4982_v60 = vadd.f32 %v3633_v46, %v556_v39 }
 0x298   :  { %v3636_v53 = vpop.f32.mrb[3].mxu1 }
 0x316   :  { %v4000_v61 = vpop.f32.mrb[0].mxu0 }
 0x317   :  { %v4981_v0 = vadd.f32 %v4980_v59, %v4000_v61  ;;  %v4002_v1 = vpop.f32.mrb[1].mxu0 }
 0x318   :  { %v4983_v50 = vadd.f32 %v4982_v60, %v4002_v1  ;;  %v4004_v41 = vpop.f32.mrb[2].mxu0 }
 0x319   :  { %v4005_v51 = vpop.f32.mrb[3].mxu0  ;;  %v4007_v36 = vpack.c.bf16 %v4981_v0, %v4981_v0 }
 0x31a   :  { %v4008_v5 = vpack.c.bf16 %v4983_v50, %v4983_v50 }
 0x31c   :  { %4176 = vmatprep.mubr.bf16.mxu1 %v4008_v5 }
 0x31d   :  { %4177 = vmatmul.mubr.bf16.vlgmr.msra.gmra.mrb[4].mxu1 %v4007_v36 }
 0x31e   :  { %4959 = vmatpush3.bf16.msra.mxu1 %v5832_v6  ;;  %4351 = vmatprep.mubr.bf16.mxu1 %v4008_v5 }
 0x31f   :  { %4960 = vmatprep.subr.bf16.mxu1 %v5833_v45 }
 0x322   :  { %4961 = vmatpush3.bf16.msra.mxu1 %v5834_v7 }
 0x323   :  { %4962 = vmatprep.subr.bf16.mxu1 %v5835_v8 }
 0x326   :  { %4963 = vmatpush3.bf16.msra.mxu1 %v5836_v9 }
 0x327   :  { %4964 = vmatprep.subr.bf16.mxu1 %v5837_v10 }
 0x32a   :  { %4965 = vmatpush3.bf16.msra.mxu1 %v5838_v12 }
 0x32b   :  { %4966 = vmatprep.subr.bf16.mxu1 %v5839_v13 }
 0x32e   :  { %4967 = vmatpush3.bf16.msra.mxu1 %v5840_v15 }
 0x32f   :  { %4968 = vmatprep.subr.bf16.mxu1 %v5841_v56 }
 0x332   :  { %4969 = vmatpush3.bf16.msra.mxu1 %v5842_v63 }
 0x333   :  { %4970 = vmatprep.subr.bf16.mxu1 %v5843_v16 }
 0x336   :  { %4971 = vmatpush3.bf16.msra.mxu1 %v5844_v18 }
 0x337   :  { %4972 = vmatprep.subr.bf16.mxu1 %v5845_v20 }
 0x33a   :  { %4973 = vmatpush3.bf16.msra.mxu1 %v5846_v2 }
 0x33d   :  { %4352 = vmatmul.mubr.bf16.vlgmr.msra.gmra.mrb[8].mxu1 %v4007_v36 }
 0x3f0   :  { %v4952_v62 = vpop.f32.mrb[4].mxu1 }
 0x3f1   :  { %v4953_v22 = vpop.f32.mrb[5].mxu1 }
 0x3f2   :  { %v4954_v11 = vadd.f32 %v4953_v22, %v4952_v62  ;;  %v4955_v3 = vpop.f32.mrb[6].mxu1 }
 0x3f3   :  { %v4956_v24 = vpop.f32.mrb[7].mxu1 }
 0x3f4   :  { %v4179_v25 = vadd.f32 %v4954_v11, %v4902_v23 }
 0x3f6   :  { %4360 = vst.msk [vmem:[#allocation2] sm:$0x3] %vm4359_vm0, %v4179_v25 }
 0x3f7   :  { %5860 = shalt.err (!%p5857_p4)
}
 0x3f8   :  { %s5861_s4 = scalar_lea.hbm %s7784_s7, 32 }
 0x3f9   :  { %p5862_p5 = scmp.ne.s32.totalorder %s7784_s7, %s5861_s4  ;;  %p5865_p6 = scmp.lt.u32.totalorder %s5861_s4, %s7784_s7 }
 0x3fb   :  { %p5867_p7 = pnand %p5865_p6, %p5862_p5 }
 0x3fd   :  { %5870 = shalt.err (!%p5867_p7)
}
 0x3fe   :  { %4371 = dma.vmem_to_hbm [thread:$0]  %s4369_s26, 32, %s7784_s7, [#allocation3]   ;;  %v4919_v27 = vld [vmem:[%s7783_s6] ss:$0 sm:$0xff] }
 0x3ff   :  { %s5899_s14 = smov [#allocation4]  }
 0x400   :  { %s4378_s15 = sshll.u32 %s5899_s14, 4  ;;  %s4379_s15 = int_to_ptr.vmem [resolvable:$true] %s4378_s15 }
 0x401   :  { %s5871_s16 = scalar_lea.vmem %s4379_s15, 32  ;;  %p5876_p9 = scmp.lt.s32.totalorder %s4379_s15, %s4379_s15 }
 0x402   :  { %p5872_p8 = scmp.ne.s32.totalorder %s4379_s15, %s5871_s16  ;;  %p5877_p10 = scmp.lt.s32.totalorder %s5871_s16, %s5871_s16 }
 0x404   :  { %p5878_p11 = por %p5877_p10, %p5876_p9 }
 0x406   :  { %p5879_p12 = pnand %p5878_p11, %p5872_p8 }
 0x410   :  { %v4974_v26 = vpop.f32.mrb[8].mxu1 }
 0x411   :  { %v4975_v17 = vpop.f32.mrb[9].mxu1 }
 0x412   :  { %v4976_v52 = vadd.f32 %v4975_v17, %v4974_v26  ;;  %v4977_v29 = vpop.f32.mrb[10].mxu1 }
 0x413   :  { %v4978_v21 = vpop.f32.mrb[11].mxu1 }
 0x414   :  { %v4354_v30 = vadd.f32 %v4976_v52, %v4919_v27 }
 0x416   :  { %4361 = vst.msk [vmem:[#allocation4] sm:$0x3] %vm4359_vm0, %v4354_v30 }
 0x417   :  { %5882 = shalt.err (!%p5879_p12)
}
 0x418   :  { %s5883_s6 = scalar_lea.hbm %s7785_s8, 32 }
 0x419   :  { %p5884_p13 = scmp.ne.s32.totalorder %s7785_s8, %s5883_s6  ;;  %p5887_p0 = scmp.lt.u32.totalorder %s5883_s6, %s7785_s8 }
 0x41b   :  { %p5889_p1 = pnand %p5887_p0, %p5884_p13 }
 0x41d   :  { %5892 = shalt.err (!%p5889_p1)
}
 0x41e   :  { %4381 = dma.vmem_to_hbm [thread:$0]  %s4379_s15, 32, %s7785_s8, [#allocation5]  }
 0x41f   :  { %5893 = dma.done.wait [#allocation3], 32  }
 0x420   :  { %5894 = vsyncadd [#allocation3], 4294967264 }
 0x421   :  { %5895 = dma.done.wait [#allocation5], 32  }
 0x422   :  { %5896 = vsyncadd [#allocation5], 4294967264 }
 0x423   :  { %4388 = vsyncpa [#allocation3], 1 }
 0x424   :  { %4389 = vsyncpa [#allocation5], 1 }

</bundles_post_ra>
